<compile_context>
chip_gen: v7x
topology: tpu7x:2x2x1
jax: 0.10.0
libtpu: 0.0.40
codegen_flags: <defaults>
</compile_context>

<pallas_src>
import functools

import jax
import jax.numpy as jnp
from jax.experimental import pallas as pl
from jax.experimental.pallas import tpu as pltpu


# --------------------- batched matmul + bias (bf16 MXU) ----------------------

def _matmul_bias_kernel(x_ref, w_ref, b_ref, o_ref):
    x = x_ref[...]
    if x.dtype != jnp.bfloat16:
        x = x.astype(jnp.bfloat16)
    y = jnp.dot(x, w_ref[...], preferred_element_type=jnp.float32) + b_ref[...]
    o_ref[...] = y.astype(o_ref.dtype)


def _pick_block_m(m, target):
    """Largest divisor of m <= target; prefer >= 2 blocks (v7x megacore)."""
    t = min(target, m)
    bm = max(d for d in range(1, t + 1) if m % d == 0)
    if bm == m and m >= 16:
        cand = [d for d in range(8, m // 2 + 1, 8) if m % d == 0]
        if cand:
            bm = max(cand)
    return bm


def pallas_matmul_bias(x, w_t_bf16, b_f32, out_dtype=jnp.float32, block_m=256):
    """y = x @ w_t + b.  x: (M, K) [bf16/f32], w_t: (K, N) bf16, b: (N,) f32."""
    m, k = x.shape
    n = w_t_bf16.shape[1]
    bm = _pick_block_m(m, block_m)

    out_isz = jnp.dtype(out_dtype).itemsize

    def vmem_need(bm_):
        return (2 * bm_ * k * x.dtype.itemsize          # double-buffered LHS
                + 2 * bm_ * n * out_isz                  # double-buffered out
                + k * n * w_t_bf16.dtype.itemsize        # resident weight
                + 4 * n + (4 << 20))                     # bias + headroom

    # Keep the budget under v7x's 64 MiB physical VMEM.
    while vmem_need(bm) > (60 << 20) and bm > 8:
        bm = _pick_block_m(m, bm // 2)
    vmem_limit = int(min(max(vmem_need(bm), 32 << 20), 64 << 20))

    return pl.pallas_call(
        _matmul_bias_kernel,
        out_shape=jax.ShapeDtypeStruct((m, n), out_dtype),
        grid_spec=pltpu.PrefetchScalarGridSpec(
            num_scalar_prefetch=0,
            grid=(m // bm,),
            in_specs=[
                pl.BlockSpec((bm, k), lambda i: (i, 0)),
                pl.BlockSpec((k, n), lambda i: (0, 0)),
                pl.BlockSpec((1, n), lambda i: (0, 0)),
            ],
            out_specs=pl.BlockSpec((bm, n), lambda i: (i, 0)),
        ),
        compiler_params=pltpu.CompilerParams(
            dimension_semantics=("parallel",),
            vmem_limit_bytes=vmem_limit),
    )(x, w_t_bf16, b_f32.reshape(1, n))


# ------------- fused fc_mu / fc_logvar / reparam / latent_to_hidden ----------

def _latent_kernel(h_ref, g_ref, eps_ref, wml_ref, bml_ref,
                   wzh_ref, wgh_ref, bh_ref, mu_ref, logvar_ref, h0_ref,
                   *, latent):
    h = h_ref[...].astype(jnp.bfloat16)
    # One matmul for both mu and logvar (weights concatenated along lanes).
    ml = jnp.dot(h, wml_ref[...], preferred_element_type=jnp.float32) + bml_ref[...]
    mu = ml[:, :latent]
    logvar = ml[:, latent:]
    z = mu + eps_ref[...] * jnp.exp(0.5 * logvar)
    # latent_to_hidden(concat([z, genre])) == z @ Wz + genre @ Wg + b
    h0 = (jnp.dot(z.astype(jnp.bfloat16), wzh_ref[...],
                  preferred_element_type=jnp.float32)
          + jnp.dot(g_ref[...], wgh_ref[...],
                    preferred_element_type=jnp.float32)
          + bh_ref[...])
    mu_ref[...] = mu
    logvar_ref[...] = logvar
    h0_ref[...] = h0


def pallas_latent_head(h_last, genre_emb, eps, wml, bml, wzh, wgh, bh, latent):
    bp = h_last.shape[0]
    hidden = wzh.shape[1]
    return pl.pallas_call(
        functools.partial(_latent_kernel, latent=latent),
        out_shape=(jax.ShapeDtypeStruct((bp, latent), jnp.float32),
                   jax.ShapeDtypeStruct((bp, latent), jnp.float32),
                   jax.ShapeDtypeStruct((bp, hidden), jnp.float32)),
    )(h_last, genre_emb, eps, wml, bml.reshape(1, -1), wzh, wgh, bh.reshape(1, -1))


# ------------------------------ LSTM recurrences ------------------------------

def _lstm_step(gates, c, hidden):
    # Gate layout is (i, f, o, g): one fused sigmoid over the first 3H lanes and
    # one tanh over the last H -> fewer EUP launches on the serial chain.
    ifo = jax.nn.sigmoid(gates[:, :3 * hidden])
    g = jnp.tanh(gates[:, 3 * hidden:])
    i = ifo[:, :hidden]
    f = ifo[:, hidden:2 * hidden]
    o = ifo[:, 2 * hidden:]
    c_new = f * c + i * g
    h_new = o * jnp.tanh(c_new)
    return h_new, c_new


def _encoder_lstm_kernel(xg_ref, gg_ref, whh_ref, hlast_ref, h_scr, c_scr,
                         *, hidden, tblk):
    @pl.when(pl.program_id(1) == 0)
    def _():
        h_scr[...] = jnp.zeros_like(h_scr)
        c_scr[...] = jnp.zeros_like(c_scr)

    whh = whh_ref[...]                 # (H, 4H) bf16, loaded once per block
    gg = gg_ref[...]                   # (Bpb, 4H) f32: genre@Wg + bias, constant in t
    h = h_scr[...]
    c = c_scr[...]
    for t in range(tblk):              # static unroll over the time block
        gates = (xg_ref[t].astype(jnp.float32) + gg
                 + jnp.dot(h.astype(jnp.bfloat16), whh,
                           preferred_element_type=jnp.float32))
        h, c = _lstm_step(gates, c, hidden)
    h_scr[...] = h
    c_scr[...] = c

    @pl.when(pl.program_id(1) == pl.num_programs(1) - 1)
    def _():
        hlast_ref[...] = h             # only the final time block writes h_T


def encoder_lstm(xg_tm, genre_gates, whh_bf16, hidden, tblk, nb):
    """xg_tm: (T, Bp, 4H) bf16 precomputed x@Wih (time-major). Returns h_T (Bp, H)."""
    T, bp, g4 = xg_tm.shape
    bpb = bp // nb
    return pl.pallas_call(
        functools.partial(_encoder_lstm_kernel, hidden=hidden, tblk=tblk),
        out_shape=jax.ShapeDtypeStruct((bp, hidden), jnp.float32),
        grid_spec=pltpu.PrefetchScalarGridSpec(
            num_scalar_prefetch=0,
            grid=(nb, T // tblk),
            in_specs=[
                pl.BlockSpec((tblk, bpb, g4), lambda b, t: (t, b, 0)),
                pl.BlockSpec((bpb, g4), lambda b, t: (b, 0)),
                pl.BlockSpec((hidden, 4 * hidden), lambda b, t: (0, 0)),
            ],
            out_specs=pl.BlockSpec((bpb, hidden), lambda b, t: (b, 0)),
            scratch_shapes=[pltpu.VMEM((bpb, hidden), jnp.float32),
                            pltpu.VMEM((bpb, hidden), jnp.float32)],
        ),
        compiler_params=pltpu.CompilerParams(
            dimension_semantics=("parallel", "arbitrary")),
    )(xg_tm, genre_gates, whh_bf16)


def _decoder_lstm_kernel(xg_ref, h0_ref, whh_ref, hout_ref, h_scr, c_scr,
                         *, hidden, tblk):
    @pl.when(pl.program_id(1) == 0)
    def _():
        h_scr[...] = h0_ref[...]
        c_scr[...] = jnp.zeros_like(c_scr)

    whh = whh_ref[...]
    h = h_scr[...]
    c = c_scr[...]
    for t in range(tblk):
        gates = xg_ref[t].astype(jnp.float32) + jnp.dot(
            h.astype(jnp.bfloat16), whh, preferred_element_type=jnp.float32)
        h, c = _lstm_step(gates, c, hidden)
        hout_ref[t] = h.astype(jnp.bfloat16)   # lane-dense bf16 (Bpb, H) store
    h_scr[...] = h
    c_scr[...] = c


def decoder_lstm(xg_tm, h0, whh_bf16, hidden, tblk, nb):
    """xg_tm: (T, Bp, 4H) bf16 precomputed gates. Returns hidden states (T, Bp, H) bf16."""
    T, bp, g4 = xg_tm.shape
    bpb = bp // nb
    return pl.pallas_call(
        functools.partial(_decoder_lstm_kernel, hidden=hidden, tblk=tblk),
        out_shape=jax.ShapeDtypeStruct((T, bp, hidden), jnp.bfloat16),
        grid_spec=pltpu.PrefetchScalarGridSpec(
            num_scalar_prefetch=0,
            grid=(nb, T // tblk),
            in_specs=[
                pl.BlockSpec((tblk, bpb, g4), lambda b, t: (t, b, 0)),
                pl.BlockSpec((bpb, hidden), lambda b, t: (b, 0)),
                pl.BlockSpec((hidden, 4 * hidden), lambda b, t: (0, 0)),
            ],
            out_specs=pl.BlockSpec((tblk, bpb, hidden), lambda b, t: (t, b, 0)),
            scratch_shapes=[pltpu.VMEM((bpb, hidden), jnp.float32),
                            pltpu.VMEM((bpb, hidden), jnp.float32)],
        ),
        compiler_params=pltpu.CompilerParams(
            dimension_semantics=("parallel", "arbitrary")),
    )(xg_tm, h0, whh_bf16)


# ------------------------------- full MusicVAE --------------------------------

def init_params(key, vocab_size, embed_size, hidden_size, latent_size, num_genres):
    ks = jax.random.split(key, 16)
    bf = jnp.bfloat16

    def nrm(k, shape, dtype=jnp.float32, scale=0.1):
        return (scale * jax.random.normal(k, shape)).astype(dtype)

    return {
        # embeddings (bf16 so matmul LHS tiles arrive bf16; gathered in plain JAX)
        "embedding": nrm(ks[0], (vocab_size, embed_size), bf),
        "genre_embedding": nrm(ks[1], (num_genres, embed_size), bf),
        # encoder LSTM, split into the token / genre halves of the input weight
        # (== LSTM on concat([embedded, genre_emb])); bias = b_ih + b_hh folded.
        # Gate layout convention is (i, f, o, g).
        "enc_wih_t": nrm(ks[2], (embed_size, 4 * hidden_size), bf),
        "enc_wgh_t": nrm(ks[3], (embed_size, 4 * hidden_size), bf),
        "enc_whh_t": nrm(ks[4], (hidden_size, 4 * hidden_size), bf),
        "enc_b": nrm(ks[5], (4 * hidden_size,)),
        # fc_mu | fc_logvar fused along the lane dim
        "mulv_w_t": nrm(ks[6], (hidden_size, 2 * latent_size), bf),
        "mulv_b": nrm(ks[7], (2 * latent_size,)),
        # latent_to_hidden split into its z / genre halves (== Linear on concat)
        "l2h_wz_t": nrm(ks[8], (latent_size, hidden_size), bf),
        "l2h_wg_t": nrm(ks[9], (embed_size, hidden_size), bf),
        "l2h_b": nrm(ks[10], (hidden_size,)),
        # decoder LSTM
        "dec_wih_t": nrm(ks[11], (embed_size, 4 * hidden_size), bf),
        "dec_whh_t": nrm(ks[12], (hidden_size, 4 * hidden_size), bf),
        "dec_b": nrm(ks[13], (4 * hidden_size,)),
        # output projection
        "out_w_t": nrm(ks[14], (hidden_size, vocab_size), bf),
        "out_b": jnp.zeros((vocab_size,), jnp.float32),
    }


def music_vae_forward(params, x, genre, eps_key, *, tblk=16):
    """x: (B, T) int32 token ids; genre: (B,) int32. Returns (logits, mu, logvar)."""
    B, T = x.shape
    hidden = params["enc_whh_t"].shape[0]
    latent = params["l2h_wz_t"].shape[0]
    embed = params["embedding"].shape[1]
    vocab = params["out_w_t"].shape[1]

    # Pad batch to the f32 sublane width (8); padded rows are independent junk
    # that is sliced off at the end.
    bp = max(8, ((B + 7) // 8) * 8)
    pad = bp - B
    x_p = jnp.pad(x, ((0, pad), (0, 0)))
    genre_p = jnp.pad(genre, ((0, pad),))

    # Largest divisor of T that is <= tblk (static Python).
    tb = max(d for d in range(1, min(tblk, T) + 1) if T % d == 0)
    # Split the batch across two TensorCores (v7x megacore) when it is big enough.
    nb = 2 if (bp >= 16 and bp % 16 == 0) else 1

    # ------------------------------- encode ----------------------------------
    embedded = jnp.take(params["embedding"], x_p, axis=0)               # (Bp,T,E) bf16
    genre_emb = jnp.take(params["genre_embedding"], genre_p, axis=0)    # (Bp,E) bf16
    embedded_tm = jnp.transpose(embedded, (1, 0, 2))                    # (T,Bp,E) bf16

    # Hoisted token input projection for all timesteps (one batched MXU matmul,
    # bf16 slab).  Genre is constant over time -> a single (Bp,4H) slab (bias
    # folded here) added inside the recurrent kernel.
    enc_gates = pallas_matmul_bias(
        embedded_tm.reshape(T * bp, embed), params["enc_wih_t"],
        jnp.zeros((4 * hidden,), jnp.float32),
        out_dtype=jnp.bfloat16).reshape(T, bp, 4 * hidden)
    genre_gates = pallas_matmul_bias(genre_emb, params["enc_wgh_t"], params["enc_b"])

    h_last = encoder_lstm(enc_gates, genre_gates, params["enc_whh_t"],
                          hidden, tb, nb)                               # (Bp,H) f32

    # Fused fc_mu + fc_logvar + reparameterize + latent_to_hidden.
    eps = jax.random.normal(eps_key, (bp, latent), dtype=jnp.float32)
    mu_p, logvar_p, h0 = pallas_latent_head(
        h_last, genre_emb, eps,
        params["mulv_w_t"], params["mulv_b"],
        params["l2h_wz_t"], params["l2h_wg_t"], params["l2h_b"], latent)

    # ------------------------------- decode ----------------------------------
    dec_gates = pallas_matmul_bias(
        embedded_tm.reshape(T * bp, embed), params["dec_wih_t"], params["dec_b"],
        out_dtype=jnp.bfloat16).reshape(T, bp, 4 * hidden)

    h_all = decoder_lstm(dec_gates, h0, params["dec_whh_t"], hidden, tb, nb)  # (T,Bp,H) bf16

    # Output projection done batch-major so the big (Bp,T,V) f32 logits tensor
    # never needs an XLA transpose; only the small bf16 h slab is rearranged.
    # TODO(synk): fold this small bf16 transpose into the projection kernel too.
    h_bm = jnp.transpose(h_all, (1, 0, 2)).reshape(bp * T, hidden)
    logits = pallas_matmul_bias(
        h_bm, params["out_w_t"], params["out_b"]).reshape(bp, T, vocab)[:B]

    return logits, mu_p[:B], logvar_p[:B]


if __name__ == "__main__":
    # Small, lane-friendly hyper-parameters consistent with the module.
    VOCAB, EMBED, HIDDEN, LATENT, GENRES = 128, 32, 128, 32, 2
    B, T = 2, 16

    key = jax.random.PRNGKey(0)
    kp, kx, kg, keps = jax.random.split(key, 4)

    params = init_params(kp, VOCAB, EMBED, HIDDEN, LATENT, GENRES)
    x = jax.random.randint(kx, (B, T), 0, VOCAB, dtype=jnp.int32)
    genre = jax.random.randint(kg, (B,), 0, GENRES, dtype=jnp.int32)

    fwd = jax.jit(functools.partial(music_vae_forward, tblk=16))
    logits, mu, logvar = fwd(params, x, genre, keps)
    jax.block_until_ready((logits, mu, logvar))

    assert logits.shape == (B, T, VOCAB)
    assert mu.shape == (B, LATENT) and logvar.shape == (B, LATENT)
    print("KERNEL_OK")
</pallas_src>

<mosaic_0001>
module attributes {stable_mosaic.version = 11 : i64} {
  func.func @_matmul_bias_kernel(%arg0: i32, %arg1: memref<64x32xbf16, #tpu.memory_space<vmem>>, %arg2: memref<32x512xbf16, #tpu.memory_space<vmem>>, %arg3: memref<1x512xf32, #tpu.memory_space<vmem>>, %arg4: memref<64x512xbf16, #tpu.memory_space<vmem>>) attributes {dimension_semantics = [#tpu.dimension_semantics<parallel>], iteration_bounds = array<i64: 2>, scalar_prefetch = 0 : i64, scratch_operands = 0 : i64, tpu.core_type = #tpu.core_type<tc>, window_params = [{transform_indices = @transform_0, window_bounds = array<i64: 64, 32>}, {pipeline_mode = #tpu.pipeline_mode<synchronous>, transform_indices = @transform_1, window_bounds = array<i64: 32, 512>}, {pipeline_mode = #tpu.pipeline_mode<synchronous>, transform_indices = @transform_2, window_bounds = array<i64: 1, 512>}, {transform_indices = @transform_3, window_bounds = array<i64: 64, 512>}]} {
    %c0 = arith.constant 0 : index
    %c0_0 = arith.constant 0 : index
    %0 = vector.load %arg1[%c0, %c0_0] : memref<64x32xbf16, #tpu.memory_space<vmem>>, vector<64x32xbf16>
    %c0_1 = arith.constant 0 : index
    %c0_2 = arith.constant 0 : index
    %1 = vector.load %arg2[%c0_1, %c0_2] : memref<32x512xbf16, #tpu.memory_space<vmem>>, vector<32x512xbf16>
    %cst = arith.constant dense<0.000000e+00> : vector<64x512xf32>
    %2 = tpu.matmul %0, %1, %cst {dimension_numbers = #tpu.dot_dimension_numbers<[1], [0], [0], [1], [0, 0, 1, 1], [], []>} : vector<64x32xbf16>, vector<32x512xbf16>, vector<64x512xf32> -> vector<64x512xf32>
    %c0_3 = arith.constant 0 : index
    %c0_4 = arith.constant 0 : index
    %3 = vector.load %arg3[%c0_3, %c0_4] : memref<1x512xf32, #tpu.memory_space<vmem>>, vector<1x512xf32>
    %4 = vector.broadcast %3 : vector<1x512xf32> to vector<64x512xf32>
    %5 = arith.addf %2, %4 : vector<64x512xf32>
    %6 = arith.truncf %5 : vector<64x512xf32> to vector<64x512xbf16>
    %c0_5 = arith.constant 0 : index
    %c0_6 = arith.constant 0 : index
    %7 = vector.load %arg4[%c0_5, %c0_6] : memref<64x512xbf16, #tpu.memory_space<vmem>>, vector<64x512xbf16>
    tpu.vector_store %arg4[%c0_5, %c0_6], %6 {strides = array<i32>} : memref<64x512xbf16, #tpu.memory_space<vmem>>, vector<64x512xbf16>,
    return
  }
  func.func @transform_0(%arg0: i32) -> (i32, i32) {
    %c0_i32 = arith.constant 0 : i32
    %c0_i32_0 = arith.constant 0 : i32
    return %arg0, %c0_i32 : i32, i32
  }
  func.func @transform_1(%arg0: i32) -> (i32, i32) {
    %c0_i32 = arith.constant 0 : i32
    %c0_i32_0 = arith.constant 0 : i32
    %c0_i32_1 = arith.constant 0 : i32
    return %c0_i32, %c0_i32_0 : i32, i32
  }
  func.func @transform_2(%arg0: i32) -> (i32, i32) {
    %c0_i32 = arith.constant 0 : i32
    %c0_i32_0 = arith.constant 0 : i32
    %c0_i32_1 = arith.constant 0 : i32
    return %c0_i32, %c0_i32_0 : i32, i32
  }
  func.func @transform_3(%arg0: i32) -> (i32, i32) {
    %c0_i32 = arith.constant 0 : i32
    %c0_i32_0 = arith.constant 0 : i32
    return %arg0, %c0_i32 : i32, i32
  }
}

module attributes {stable_mosaic.version = 11 : i64} {
  func.func @_matmul_bias_kernel(%arg0: i32, %arg1: memref<8x32xbf16, #tpu.memory_space<vmem>>, %arg2: memref<32x512xbf16, #tpu.memory_space<vmem>>, %arg3: memref<1x512xf32, #tpu.memory_space<vmem>>, %arg4: memref<8x512xf32, #tpu.memory_space<vmem>>) attributes {dimension_semantics = [#tpu.dimension_semantics<parallel>], iteration_bounds = array<i64: 1>, scalar_prefetch = 0 : i64, scratch_operands = 0 : i64, tpu.core_type = #tpu.core_type<tc>, window_params = [{transform_indices = @transform_0, window_bounds = array<i64: 8, 32>}, {pipeline_mode = #tpu.pipeline_mode<synchronous>, transform_indices = @transform_1, window_bounds = array<i64: 32, 512>}, {pipeline_mode = #tpu.pipeline_mode<synchronous>, transform_indices = @transform_2, window_bounds = array<i64: 1, 512>}, {transform_indices = @transform_3, window_bounds = array<i64: 8, 512>}]} {
    %c0 = arith.constant 0 : index
    %c0_0 = arith.constant 0 : index
    %0 = vector.load %arg1[%c0, %c0_0] : memref<8x32xbf16, #tpu.memory_space<vmem>>, vector<8x32xbf16>
    %c0_1 = arith.constant 0 : index
    %c0_2 = arith.constant 0 : index
    %1 = vector.load %arg2[%c0_1, %c0_2] : memref<32x512xbf16, #tpu.memory_space<vmem>>, vector<32x512xbf16>
    %cst = arith.constant dense<0.000000e+00> : vector<8x512xf32>
    %2 = tpu.matmul %0, %1, %cst {dimension_numbers = #tpu.dot_dimension_numbers<[1], [0], [0], [1], [0, 0, 1, 1], [], []>} : vector<8x32xbf16>, vector<32x512xbf16>, vector<8x512xf32> -> vector<8x512xf32>
    %c0_3 = arith.constant 0 : index
    %c0_4 = arith.constant 0 : index
    %3 = vector.load %arg3[%c0_3, %c0_4] : memref<1x512xf32, #tpu.memory_space<vmem>>, vector<1x512xf32>
    %4 = vector.broadcast %3 : vector<1x512xf32> to vector<8x512xf32>
    %5 = arith.addf %2, %4 : vector<8x512xf32>
    %c0_5 = arith.constant 0 : index
    %c0_6 = arith.constant 0 : index
    %6 = vector.load %arg4[%c0_5, %c0_6] : memref<8x512xf32, #tpu.memory_space<vmem>>, vector<8x512xf32>
    tpu.vector_store %arg4[%c0_5, %c0_6], %5 {strides = array<i32>} : memref<8x512xf32, #tpu.memory_space<vmem>>, vector<8x512xf32>,
    return
  }
  func.func @transform_0(%arg0: i32) -> (i32, i32) {
    %c0_i32 = arith.constant 0 : i32
    %c0_i32_0 = arith.constant 0 : i32
    return %arg0, %c0_i32 : i32, i32
  }
  func.func @transform_1(%arg0: i32) -> (i32, i32) {
    %c0_i32 = arith.constant 0 : i32
    %c0_i32_0 = arith.constant 0 : i32
    %c0_i32_1 = arith.constant 0 : i32
    return %c0_i32, %c0_i32_0 : i32, i32
  }
  func.func @transform_2(%arg0: i32) -> (i32, i32) {
    %c0_i32 = arith.constant 0 : i32
    %c0_i32_0 = arith.constant 0 : i32
    %c0_i32_1 = arith.constant 0 : i32
    return %c0_i32, %c0_i32_0 : i32, i32
  }
  func.func @transform_3(%arg0: i32) -> (i32, i32) {
    %c0_i32 = arith.constant 0 : i32
    %c0_i32_0 = arith.constant 0 : i32
    return %arg0, %c0_i32 : i32, i32
  }
}

module attributes {stable_mosaic.version = 11 : i64} {
  func.func @_encoder_lstm_kernel(%arg0: i32, %arg1: i32, %arg2: memref<16x8x512xbf16, #tpu.memory_space<vmem>>, %arg3: memref<8x512xf32, #tpu.memory_space<vmem>>, %arg4: memref<128x512xbf16, #tpu.memory_space<vmem>>, %arg5: memref<8x128xf32, #tpu.memory_space<vmem>>, %arg6: memref<8x128xf32, #tpu.memory_space<vmem>>, %arg7: memref<8x128xf32, #tpu.memory_space<vmem>>) attributes {dimension_semantics = [#tpu.dimension_semantics<parallel>, #tpu.dimension_semantics<arbitrary>], iteration_bounds = array<i64: 1, 1>, scalar_prefetch = 0 : i64, scratch_operands = 2 : i64, tpu.core_type = #tpu.core_type<tc>, window_params = [{transform_indices = @transform_0, window_bounds = array<i64: 16, 8, 512>}, {transform_indices = @transform_1, window_bounds = array<i64: 8, 512>}, {pipeline_mode = #tpu.pipeline_mode<synchronous>, transform_indices = @transform_2, window_bounds = array<i64: 128, 512>}, {transform_indices = @transform_3, window_bounds = array<i64: 8, 128>}]} {
    %c0_i32 = arith.constant 0 : i32
    %0 = arith.cmpi eq, %arg1, %c0_i32 : i32
    %1 = arith.extui %0 : i1 to i32
    %c0_i32_0 = arith.constant 0 : i32
    %2 = arith.cmpi ne, %1, %c0_i32_0 : i32
    scf.if %2 {
      %cst_78 = arith.constant 0.000000e+00 : f32
      %380 = vector.broadcast %cst_78 : f32 to vector<8x128xf32>
      %c0_79 = arith.constant 0 : index
      %c0_80 = arith.constant 0 : index
      %381 = vector.load %arg6[%c0_79, %c0_80] : memref<8x128xf32, #tpu.memory_space<vmem>>, vector<8x128xf32>
      tpu.vector_store %arg6[%c0_79, %c0_80], %380 {strides = array<i32>} : memref<8x128xf32, #tpu.memory_space<vmem>>, vector<8x128xf32>,
      %cst_81 = arith.constant 0.000000e+00 : f32
      %382 = vector.broadcast %cst_81 : f32 to vector<8x128xf32>
      %c0_82 = arith.constant 0 : index
      %c0_83 = arith.constant 0 : index
      %383 = vector.load %arg7[%c0_82, %c0_83] : memref<8x128xf32, #tpu.memory_space<vmem>>, vector<8x128xf32>
      tpu.vector_store %arg7[%c0_82, %c0_83], %382 {strides = array<i32>} : memref<8x128xf32, #tpu.memory_space<vmem>>, vector<8x128xf32>,
    } else {
    }
    %c0 = arith.constant 0 : index
    %c0_1 = arith.constant 0 : index
    %3 = vector.load %arg4[%c0, %c0_1] : memref<128x512xbf16, #tpu.memory_space<vmem>>, vector<128x512xbf16>
    %c0_2 = arith.constant 0 : index
    %c0_3 = arith.constant 0 : index
    %4 = vector.load %arg3[%c0_2, %c0_3] : memref<8x512xf32, #tpu.memory_space<vmem>>, vector<8x512xf32>
    %c0_4 = arith.constant 0 : index
    %c0_5 = arith.constant 0 : index
    %5 = vector.load %arg6[%c0_4, %c0_5] : memref<8x128xf32, #tpu.memory_space<vmem>>, vector<8x128xf32>
    %c0_6 = arith.constant 0 : index
    %c0_7 = arith.constant 0 : index
    %6 = vector.load %arg7[%c0_6, %c0_7] : memref<8x128xf32, #tpu.memory_space<vmem>>, vector<8x128xf32>
    %c0_8 = arith.constant 0 : index
    %c0_9 = arith.constant 0 : index
    %c0_10 = arith.constant 0 : index
    %7 = vector.load %arg2[%c0_8, %c0_9, %c0_10] : memref<16x8x512xbf16, #tpu.memory_space<vmem>>, vector<1x8x512xbf16>
    %8 = vector.shape_cast %7 : vector<1x8x512xbf16> to vector<8x512xbf16>
    %9 = arith.extf %8 : vector<8x512xbf16> to vector<8x512xf32>
    %10 = arith.addf %9, %4 : vector<8x512xf32>
    %11 = arith.truncf %5 : vector<8x128xf32> to vector<8x128xbf16>
    %cst = arith.constant dense<0.000000e+00> : vector<8x512xf32>
    %12 = tpu.matmul %11, %3, %cst {dimension_numbers = #tpu.dot_dimension_numbers<[1], [0], [0], [1], [0, 0, 1, 1], [], []>} : vector<8x128xbf16>, vector<128x512xbf16>, vector<8x512xf32> -> vector<8x512xf32>
    %13 = arith.addf %10, %12 : vector<8x512xf32>
    %14 = vector.extract_strided_slice %13 {offsets = [0, 0], sizes = [8, 384], strides = [1, 1]} : vector<8x512xf32> to vector<8x384xf32>
    %15 = arith.negf %14 : vector<8x384xf32>
    %16 = math.exp %15 : vector<8x384xf32>
    %cst_11 = arith.constant 1.000000e+00 : f32
    %17 = vector.broadcast %cst_11 : f32 to vector<8x384xf32>
    %18 = arith.addf %17, %16 : vector<8x384xf32>
    %19 = arith.divf %17, %18 : vector<8x384xf32>
    %20 = vector.extract_strided_slice %13 {offsets = [0, 384], sizes = [8, 128], strides = [1, 1]} : vector<8x512xf32> to vector<8x128xf32>
    %21 = math.tanh %20 : vector<8x128xf32>
    %22 = vector.extract_strided_slice %19 {offsets = [0, 0], sizes = [8, 128], strides = [1, 1]} : vector<8x384xf32> to vector<8x128xf32>
    %23 = vector.extract_strided_slice %19 {offsets = [0, 128], sizes = [8, 128], strides = [1, 1]} : vector<8x384xf32> to vector<8x128xf32>
    %24 = vector.extract_strided_slice %19 {offsets = [0, 256], sizes = [8, 128], strides = [1, 1]} : vector<8x384xf32> to vector<8x128xf32>
    %25 = arith.mulf %23, %6 : vector<8x128xf32>
    %26 = arith.mulf %22, %21 : vector<8x128xf32>
    %27 = arith.addf %25, %26 : vector<8x128xf32>
    %28 = math.tanh %27 : vector<8x128xf32>
    %29 = arith.mulf %24, %28 : vector<8x128xf32>
    %c1 = arith.constant 1 : index
    %c0_12 = arith.constant 0 : index
    %c0_13 = arith.constant 0 : index
    %30 = vector.load %arg2[%c1, %c0_12, %c0_13] : memref<16x8x512xbf16, #tpu.memory_space<vmem>>, vector<1x8x512xbf16>
    %31 = vector.shape_cast %30 : vector<1x8x512xbf16> to vector<8x512xbf16>
    %32 = arith.extf %31 : vector<8x512xbf16> to vector<8x512xf32>
    %33 = arith.addf %32, %4 : vector<8x512xf32>
    %34 = arith.truncf %29 : vector<8x128xf32> to vector<8x128xbf16>
    %cst_14 = arith.constant dense<0.000000e+00> : vector<8x512xf32>
    %35 = tpu.matmul %34, %3, %cst_14 {dimension_numbers = #tpu.dot_dimension_numbers<[1], [0], [0], [1], [0, 0, 1, 1], [], []>} : vector<8x128xbf16>, vector<128x512xbf16>, vector<8x512xf32> -> vector<8x512xf32>
    %36 = arith.addf %33, %35 : vector<8x512xf32>
    %37 = vector.extract_strided_slice %36 {offsets = [0, 0], sizes = [8, 384], strides = [1, 1]} : vector<8x512xf32> to vector<8x384xf32>
    %38 = arith.negf %37 : vector<8x384xf32>
    %39 = math.exp %38 : vector<8x384xf32>
    %cst_15 = arith.constant 1.000000e+00 : f32
    %40 = vector.broadcast %cst_15 : f32 to vector<8x384xf32>
    %41 = arith.addf %40, %39 : vector<8x384xf32>
    %42 = arith.divf %40, %41 : vector<8x384xf32>
    %43 = vector.extract_strided_slice %36 {offsets = [0, 384], sizes = [8, 128], strides = [1, 1]} : vector<8x512xf32> to vector<8x128xf32>
    %44 = math.tanh %43 : vector<8x128xf32>
    %45 = vector.extract_strided_slice %42 {offsets = [0, 0], sizes = [8, 128], strides = [1, 1]} : vector<8x384xf32> to vector<8x128xf32>
    %46 = vector.extract_strided_slice %42 {offsets = [0, 128], sizes = [8, 128], strides = [1, 1]} : vector<8x384xf32> to vector<8x128xf32>
    %47 = vector.extract_strided_slice %42 {offsets = [0, 256], sizes = [8, 128], strides = [1, 1]} : vector<8x384xf32> to vector<8x128xf32>
    %48 = arith.mulf %46, %27 : vector<8x128xf32>
    %49 = arith.mulf %45, %44 : vector<8x128xf32>
    %50 = arith.addf %48, %49 : vector<8x128xf32>
    %51 = math.tanh %50 : vector<8x128xf32>
    %52 = arith.mulf %47, %51 : vector<8x128xf32>
    %c2 = arith.constant 2 : index
    %c0_16 = arith.constant 0 : index
    %c0_17 = arith.constant 0 : index
    %53 = vector.load %arg2[%c2, %c0_16, %c0_17] : memref<16x8x512xbf16, #tpu.memory_space<vmem>>, vector<1x8x512xbf16>
    %54 = vector.shape_cast %53 : vector<1x8x512xbf16> to vector<8x512xbf16>
    %55 = arith.extf %54 : vector<8x512xbf16> to vector<8x512xf32>
    %56 = arith.addf %55, %4 : vector<8x512xf32>
    %57 = arith.truncf %52 : vector<8x128xf32> to vector<8x128xbf16>
    %cst_18 = arith.constant dense<0.000000e+00> : vector<8x512xf32>
    %58 = tpu.matmul %57, %3, %cst_18 {dimension_numbers = #tpu.dot_dimension_numbers<[1], [0], [0], [1], [0, 0, 1, 1], [], []>} : vector<8x128xbf16>, vector<128x512xbf16>, vector<8x512xf32> -> vector<8x512xf32>
    %59 = arith.addf %56, %58 : vector<8x512xf32>
    %60 = vector.extract_strided_slice %59 {offsets = [0, 0], sizes = [8, 384], strides = [1, 1]} : vector<8x512xf32> to vector<8x384xf32>
    %61 = arith.negf %60 : vector<8x384xf32>
    %62 = math.exp %61 : vector<8x384xf32>
    %cst_19 = arith.constant 1.000000e+00 : f32
    %63 = vector.broadcast %cst_19 : f32 to vector<8x384xf32>
    %64 = arith.addf %63, %62 : vector<8x384xf32>
    %65 = arith.divf %63, %64 : vector<8x384xf32>
    %66 = vector.extract_strided_slice %59 {offsets = [0, 384], sizes = [8, 128], strides = [1, 1]} : vector<8x512xf32> to vector<8x128xf32>
    %67 = math.tanh %66 : vector<8x128xf32>
    %68 = vector.extract_strided_slice %65 {offsets = [0, 0], sizes = [8, 128], strides = [1, 1]} : vector<8x384xf32> to vector<8x128xf32>
    %69 = vector.extract_strided_slice %65 {offsets = [0, 128], sizes = [8, 128], strides = [1, 1]} : vector<8x384xf32> to vector<8x128xf32>
    %70 = vector.extract_strided_slice %65 {offsets = [0, 256], sizes = [8, 128], strides = [1, 1]} : vector<8x384xf32> to vector<8x128xf32>
    %71 = arith.mulf %69, %50 : vector<8x128xf32>
    %72 = arith.mulf %68, %67 : vector<8x128xf32>
    %73 = arith.addf %71, %72 : vector<8x128xf32>
    %74 = math.tanh %73 : vector<8x128xf32>
    %75 = arith.mulf %70, %74 : vector<8x128xf32>
    %c3 = arith.constant 3 : index
    %c0_20 = arith.constant 0 : index
    %c0_21 = arith.constant 0 : index
    %76 = vector.load %arg2[%c3, %c0_20, %c0_21] : memref<16x8x512xbf16, #tpu.memory_space<vmem>>, vector<1x8x512xbf16>
    %77 = vector.shape_cast %76 : vector<1x8x512xbf16> to vector<8x512xbf16>
    %78 = arith.extf %77 : vector<8x512xbf16> to vector<8x512xf32>
    %79 = arith.addf %78, %4 : vector<8x512xf32>
    %80 = arith.truncf %75 : vector<8x128xf32> to vector<8x128xbf16>
    %cst_22 = arith.constant dense<0.000000e+00> : vector<8x512xf32>
    %81 = tpu.matmul %80, %3, %cst_22 {dimension_numbers = #tpu.dot_dimension_numbers<[1], [0], [0], [1], [0, 0, 1, 1], [], []>} : vector<8x128xbf16>, vector<128x512xbf16>, vector<8x512xf32> -> vector<8x512xf32>
    %82 = arith.addf %79, %81 : vector<8x512xf32>
    %83 = vector.extract_strided_slice %82 {offsets = [0, 0], sizes = [8, 384], strides = [1, 1]} : vector<8x512xf32> to vector<8x384xf32>
    %84 = arith.negf %83 : vector<8x384xf32>
    %85 = math.exp %84 : vector<8x384xf32>
    %cst_23 = arith.constant 1.000000e+00 : f32
    %86 = vector.broadcast %cst_23 : f32 to vector<8x384xf32>
    %87 = arith.addf %86, %85 : vector<8x384xf32>
    %88 = arith.divf %86, %87 : vector<8x384xf32>
    %89 = vector.extract_strided_slice %82 {offsets = [0, 384], sizes = [8, 128], strides = [1, 1]} : vector<8x512xf32> to vector<8x128xf32>
    %90 = math.tanh %89 : vector<8x128xf32>
    %91 = vector.extract_strided_slice %88 {offsets = [0, 0], sizes = [8, 128], strides = [1, 1]} : vector<8x384xf32> to vector<8x128xf32>
    %92 = vector.extract_strided_slice %88 {offsets = [0, 128], sizes = [8, 128], strides = [1, 1]} : vector<8x384xf32> to vector<8x128xf32>
    %93 = vector.extract_strided_slice %88 {offsets = [0, 256], sizes = [8, 128], strides = [1, 1]} : vector<8x384xf32> to vector<8x128xf32>
    %94 = arith.mulf %92, %73 : vector<8x128xf32>
    %95 = arith.mulf %91, %90 : vector<8x128xf32>
    %96 = arith.addf %94, %95 : vector<8x128xf32>
    %97 = math.tanh %96 : vector<8x128xf32>
    %98 = arith.mulf %93, %97 : vector<8x128xf32>
    %c4 = arith.constant 4 : index
    %c0_24 = arith.constant 0 : index
    %c0_25 = arith.constant 0 : index
    %99 = vector.load %arg2[%c4, %c0_24, %c0_25] : memref<16x8x512xbf16, #tpu.memory_space<vmem>>, vector<1x8x512xbf16>
    %100 = vector.shape_cast %99 : vector<1x8x512xbf16> to vector<8x512xbf16>
    %101 = arith.extf %100 : vector<8x512xbf16> to vector<8x512xf32>
    %102 = arith.addf %101, %4 : vector<8x512xf32>
    %103 = arith.truncf %98 : vector<8x128xf32> to vector<8x128xbf16>
    %cst_26 = arith.constant dense<0.000000e+00> : vector<8x512xf32>
    %104 = tpu.matmul %103, %3, %cst_26 {dimension_numbers = #tpu.dot_dimension_numbers<[1], [0], [0], [1], [0, 0, 1, 1], [], []>} : vector<8x128xbf16>, vector<128x512xbf16>, vector<8x512xf32> -> vector<8x512xf32>
    %105 = arith.addf %102, %104 : vector<8x512xf32>
    %106 = vector.extract_strided_slice %105 {offsets = [0, 0], sizes = [8, 384], strides = [1, 1]} : vector<8x512xf32> to vector<8x384xf32>
    %107 = arith.negf %106 : vector<8x384xf32>
    %108 = math.exp %107 : vector<8x384xf32>
    %cst_27 = arith.constant 1.000000e+00 : f32
    %109 = vector.broadcast %cst_27 : f32 to vector<8x384xf32>
    %110 = arith.addf %109, %108 : vector<8x384xf32>
    %111 = arith.divf %109, %110 : vector<8x384xf32>
    %112 = vector.extract_strided_slice %105 {offsets = [0, 384], sizes = [8, 128], strides = [1, 1]} : vector<8x512xf32> to vector<8x128xf32>
    %113 = math.tanh %112 : vector<8x128xf32>
    %114 = vector.extract_strided_slice %111 {offsets = [0, 0], sizes = [8, 128], strides = [1, 1]} : vector<8x384xf32> to vector<8x128xf32>
    %115 = vector.extract_strided_slice %111 {offsets = [0, 128], sizes = [8, 128], strides = [1, 1]} : vector<8x384xf32> to vector<8x128xf32>
    %116 = vector.extract_strided_slice %111 {offsets = [0, 256], sizes = [8, 128], strides = [1, 1]} : vector<8x384xf32> to vector<8x128xf32>
    %117 = arith.mulf %115, %96 : vector<8x128xf32>
    %118 = arith.mulf %114, %113 : vector<8x128xf32>
    %119 = arith.addf %117, %118 : vector<8x128xf32>
    %120 = math.tanh %119 : vector<8x128xf32>
    %121 = arith.mulf %116, %120 : vector<8x128xf32>
    %c5 = arith.constant 5 : index
    %c0_28 = arith.constant 0 : index
    %c0_29 = arith.constant 0 : index
    %122 = vector.load %arg2[%c5, %c0_28, %c0_29] : memref<16x8x512xbf16, #tpu.memory_space<vmem>>, vector<1x8x512xbf16>
    %123 = vector.shape_cast %122 : vector<1x8x512xbf16> to vector<8x512xbf16>
    %124 = arith.extf %123 : vector<8x512xbf16> to vector<8x512xf32>
    %125 = arith.addf %124, %4 : vector<8x512xf32>
    %126 = arith.truncf %121 : vector<8x128xf32> to vector<8x128xbf16>
    %cst_30 = arith.constant dense<0.000000e+00> : vector<8x512xf32>
    %127 = tpu.matmul %126, %3, %cst_30 {dimension_numbers = #tpu.dot_dimension_numbers<[1], [0], [0], [1], [0, 0, 1, 1], [], []>} : vector<8x128xbf16>, vector<128x512xbf16>, vector<8x512xf32> -> vector<8x512xf32>
    %128 = arith.addf %125, %127 : vector<8x512xf32>
    %129 = vector.extract_strided_slice %128 {offsets = [0, 0], sizes = [8, 384], strides = [1, 1]} : vector<8x512xf32> to vector<8x384xf32>
    %130 = arith.negf %129 : vector<8x384xf32>
    %131 = math.exp %130 : vector<8x384xf32>
    %cst_31 = arith.constant 1.000000e+00 : f32
    %132 = vector.broadcast %cst_31 : f32 to vector<8x384xf32>
    %133 = arith.addf %132, %131 : vector<8x384xf32>
    %134 = arith.divf %132, %133 : vector<8x384xf32>
    %135 = vector.extract_strided_slice %128 {offsets = [0, 384], sizes = [8, 128], strides = [1, 1]} : vector<8x512xf32> to vector<8x128xf32>
    %136 = math.tanh %135 : vector<8x128xf32>
    %137 = vector.extract_strided_slice %134 {offsets = [0, 0], sizes = [8, 128], strides = [1, 1]} : vector<8x384xf32> to vector<8x128xf32>
    %138 = vector.extract_strided_slice %134 {offsets = [0, 128], sizes = [8, 128], strides = [1, 1]} : vector<8x384xf32> to vector<8x128xf32>
    %139 = vector.extract_strided_slice %134 {offsets = [0, 256], sizes = [8, 128], strides = [1, 1]} : vector<8x384xf32> to vector<8x128xf32>
    %140 = arith.mulf %138, %119 : vector<8x128xf32>
    %141 = arith.mulf %137, %136 : vector<8x128xf32>
    %142 = arith.addf %140, %141 : vector<8x128xf32>
    %143 = math.tanh %142 : vector<8x128xf32>
    %144 = arith.mulf %139, %143 : vector<8x128xf32>
    %c6 = arith.constant 6 : index
    %c0_32 = arith.constant 0 : index
    %c0_33 = arith.constant 0 : index
    %145 = vector.load %arg2[%c6, %c0_32, %c0_33] : memref<16x8x512xbf16, #tpu.memory_space<vmem>>, vector<1x8x512xbf16>
    %146 = vector.shape_cast %145 : vector<1x8x512xbf16> to vector<8x512xbf16>
    %147 = arith.extf %146 : vector<8x512xbf16> to vector<8x512xf32>
    %148 = arith.addf %147, %4 : vector<8x512xf32>
    %149 = arith.truncf %144 : vector<8x128xf32> to vector<8x128xbf16>
    %cst_34 = arith.constant dense<0.000000e+00> : vector<8x512xf32>
    %150 = tpu.matmul %149, %3, %cst_34 {dimension_numbers = #tpu.dot_dimension_numbers<[1], [0], [0], [1], [0, 0, 1, 1], [], []>} : vector<8x128xbf16>, vector<128x512xbf16>, vector<8x512xf32> -> vector<8x512xf32>
    %151 = arith.addf %148, %150 : vector<8x512xf32>
    %152 = vector.extract_strided_slice %151 {offsets = [0, 0], sizes = [8, 384], strides = [1, 1]} : vector<8x512xf32> to vector<8x384xf32>
    %153 = arith.negf %152 : vector<8x384xf32>
    %154 = math.exp %153 : vector<8x384xf32>
    %cst_35 = arith.constant 1.000000e+00 : f32
    %155 = vector.broadcast %cst_35 : f32 to vector<8x384xf32>
    %156 = arith.addf %155, %154 : vector<8x384xf32>
    %157 = arith.divf %155, %156 : vector<8x384xf32>
    %158 = vector.extract_strided_slice %151 {offsets = [0, 384], sizes = [8, 128], strides = [1, 1]} : vector<8x512xf32> to vector<8x128xf32>
    %159 = math.tanh %158 : vector<8x128xf32>
    %160 = vector.extract_strided_slice %157 {offsets = [0, 0], sizes = [8, 128], strides = [1, 1]} : vector<8x384xf32> to vector<8x128xf32>
    %161 = vector.extract_strided_slice %157 {offsets = [0, 128], sizes = [8, 128], strides = [1, 1]} : vector<8x384xf32> to vector<8x128xf32>
    %162 = vector.extract_strided_slice %157 {offsets = [0, 256], sizes = [8, 128], strides = [1, 1]} : vector<8x384xf32> to vector<8x128xf32>
    %163 = arith.mulf %161, %142 : vector<8x128xf32>
    %164 = arith.mulf %160, %159 : vector<8x128xf32>
    %165 = arith.addf %163, %164 : vector<8x128xf32>
    %166 = math.tanh %165 : vector<8x128xf32>
    %167 = arith.mulf %162, %166 : vector<8x128xf32>
    %c7 = arith.constant 7 : index
    %c0_36 = arith.constant 0 : index
    %c0_37 = arith.constant 0 : index
    %168 = vector.load %arg2[%c7, %c0_36, %c0_37] : memref<16x8x512xbf16, #tpu.memory_space<vmem>>, vector<1x8x512xbf16>
    %169 = vector.shape_cast %168 : vector<1x8x512xbf16> to vector<8x512xbf16>
    %170 = arith.extf %169 : vector<8x512xbf16> to vector<8x512xf32>
    %171 = arith.addf %170, %4 : vector<8x512xf32>
    %172 = arith.truncf %167 : vector<8x128xf32> to vector<8x128xbf16>
    %cst_38 = arith.constant dense<0.000000e+00> : vector<8x512xf32>
    %173 = tpu.matmul %172, %3, %cst_38 {dimension_numbers = #tpu.dot_dimension_numbers<[1], [0], [0], [1], [0, 0, 1, 1], [], []>} : vector<8x128xbf16>, vector<128x512xbf16>, vector<8x512xf32> -> vector<8x512xf32>
    %174 = arith.addf %171, %173 : vector<8x512xf32>
    %175 = vector.extract_strided_slice %174 {offsets = [0, 0], sizes = [8, 384], strides = [1, 1]} : vector<8x512xf32> to vector<8x384xf32>
    %176 = arith.negf %175 : vector<8x384xf32>
    %177 = math.exp %176 : vector<8x384xf32>
    %cst_39 = arith.constant 1.000000e+00 : f32
    %178 = vector.broadcast %cst_39 : f32 to vector<8x384xf32>
    %179 = arith.addf %178, %177 : vector<8x384xf32>
    %180 = arith.divf %178, %179 : vector<8x384xf32>
    %181 = vector.extract_strided_slice %174 {offsets = [0, 384], sizes = [8, 128], strides = [1, 1]} : vector<8x512xf32> to vector<8x128xf32>
    %182 = math.tanh %181 : vector<8x128xf32>
    %183 = vector.extract_strided_slice %180 {offsets = [0, 0], sizes = [8, 128], strides = [1, 1]} : vector<8x384xf32> to vector<8x128xf32>
    %184 = vector.extract_strided_slice %180 {offsets = [0, 128], sizes = [8, 128], strides = [1, 1]} : vector<8x384xf32> to vector<8x128xf32>
    %185 = vector.extract_strided_slice %180 {offsets = [0, 256], sizes = [8, 128], strides = [1, 1]} : vector<8x384xf32> to vector<8x128xf32>
    %186 = arith.mulf %184, %165 : vector<8x128xf32>
    %187 = arith.mulf %183, %182 : vector<8x128xf32>
    %188 = arith.addf %186, %187 : vector<8x128xf32>
    %189 = math.tanh %188 : vector<8x128xf32>
    %190 = arith.mulf %185, %189 : vector<8x128xf32>
    %c8 = arith.constant 8 : index
    %c0_40 = arith.constant 0 : index
    %c0_41 = arith.constant 0 : index
    %191 = vector.load %arg2[%c8, %c0_40, %c0_41] : memref<16x8x512xbf16, #tpu.memory_space<vmem>>, vector<1x8x512xbf16>
    %192 = vector.shape_cast %191 : vector<1x8x512xbf16> to vector<8x512xbf16>
    %193 = arith.extf %192 : vector<8x512xbf16> to vector<8x512xf32>
    %194 = arith.addf %193, %4 : vector<8x512xf32>
    %195 = arith.truncf %190 : vector<8x128xf32> to vector<8x128xbf16>
    %cst_42 = arith.constant dense<0.000000e+00> : vector<8x512xf32>
    %196 = tpu.matmul %195, %3, %cst_42 {dimension_numbers = #tpu.dot_dimension_numbers<[1], [0], [0], [1], [0, 0, 1, 1], [], []>} : vector<8x128xbf16>, vector<128x512xbf16>, vector<8x512xf32> -> vector<8x512xf32>
    %197 = arith.addf %194, %196 : vector<8x512xf32>
    %198 = vector.extract_strided_slice %197 {offsets = [0, 0], sizes = [8, 384], strides = [1, 1]} : vector<8x512xf32> to vector<8x384xf32>
    %199 = arith.negf %198 : vector<8x384xf32>
    %200 = math.exp %199 : vector<8x384xf32>
    %cst_43 = arith.constant 1.000000e+00 : f32
    %201 = vector.broadcast %cst_43 : f32 to vector<8x384xf32>
    %202 = arith.addf %201, %200 : vector<8x384xf32>
    %203 = arith.divf %201, %202 : vector<8x384xf32>
    %204 = vector.extract_strided_slice %197 {offsets = [0, 384], sizes = [8, 128], strides = [1, 1]} : vector<8x512xf32> to vector<8x128xf32>
    %205 = math.tanh %204 : vector<8x128xf32>
    %206 = vector.extract_strided_slice %203 {offsets = [0, 0], sizes = [8, 128], strides = [1, 1]} : vector<8x384xf32> to vector<8x128xf32>
    %207 = vector.extract_strided_slice %203 {offsets = [0, 128], sizes = [8, 128], strides = [1, 1]} : vector<8x384xf32> to vector<8x128xf32>
    %208 = vector.extract_strided_slice %203 {offsets = [0, 256], sizes = [8, 128], strides = [1, 1]} : vector<8x384xf32> to vector<8x128xf32>
    %209 = arith.mulf %207, %188 : vector<8x128xf32>
    %210 = arith.mulf %206, %205 : vector<8x128xf32>
    %211 = arith.addf %209, %210 : vector<8x128xf32>
    %212 = math.tanh %211 : vector<8x128xf32>
    %213 = arith.mulf %208, %212 : vector<8x128xf32>
    %c9 = arith.constant 9 : index
    %c0_44 = arith.constant 0 : index
    %c0_45 = arith.constant 0 : index
    %214 = vector.load %arg2[%c9, %c0_44, %c0_45] : memref<16x8x512xbf16, #tpu.memory_space<vmem>>, vector<1x8x512xbf16>
    %215 = vector.shape_cast %214 : vector<1x8x512xbf16> to vector<8x512xbf16>
    %216 = arith.extf %215 : vector<8x512xbf16> to vector<8x512xf32>
    %217 = arith.addf %216, %4 : vector<8x512xf32>
    %218 = arith.truncf %213 : vector<8x128xf32> to vector<8x128xbf16>
    %cst_46 = arith.constant dense<0.000000e+00> : vector<8x512xf32>
    %219 = tpu.matmul %218, %3, %cst_46 {dimension_numbers = #tpu.dot_dimension_numbers<[1], [0], [0], [1], [0, 0, 1, 1], [], []>} : vector<8x128xbf16>, vector<128x512xbf16>, vector<8x512xf32> -> vector<8x512xf32>
    %220 = arith.addf %217, %219 : vector<8x512xf32>
    %221 = vector.extract_strided_slice %220 {offsets = [0, 0], sizes = [8, 384], strides = [1, 1]} : vector<8x512xf32> to vector<8x384xf32>
    %222 = arith.negf %221 : vector<8x384xf32>
    %223 = math.exp %222 : vector<8x384xf32>
    %cst_47 = arith.constant 1.000000e+00 : f32
    %224 = vector.broadcast %cst_47 : f32 to vector<8x384xf32>
    %225 = arith.addf %224, %223 : vector<8x384xf32>
    %226 = arith.divf %224, %225 : vector<8x384xf32>
    %227 = vector.extract_strided_slice %220 {offsets = [0, 384], sizes = [8, 128], strides = [1, 1]} : vector<8x512xf32> to vector<8x128xf32>
    %228 = math.tanh %227 : vector<8x128xf32>
    %229 = vector.extract_strided_slice %226 {offsets = [0, 0], sizes = [8, 128], strides = [1, 1]} : vector<8x384xf32> to vector<8x128xf32>
    %230 = vector.extract_strided_slice %226 {offsets = [0, 128], sizes = [8, 128], strides = [1, 1]} : vector<8x384xf32> to vector<8x128xf32>
    %231 = vector.extract_strided_slice %226 {offsets = [0, 256], sizes = [8, 128], strides = [1, 1]} : vector<8x384xf32> to vector<8x128xf32>
    %232 = arith.mulf %230, %211 : vector<8x128xf32>
    %233 = arith.mulf %229, %228 : vector<8x128xf32>
    %234 = arith.addf %232, %233 : vector<8x128xf32>
    %235 = math.tanh %234 : vector<8x128xf32>
    %236 = arith.mulf %231, %235 : vector<8x128xf32>
    %c10 = arith.constant 10 : index
    %c0_48 = arith.constant 0 : index
    %c0_49 = arith.constant 0 : index
    %237 = vector.load %arg2[%c10, %c0_48, %c0_49] : memref<16x8x512xbf16, #tpu.memory_space<vmem>>, vector<1x8x512xbf16>
    %238 = vector.shape_cast %237 : vector<1x8x512xbf16> to vector<8x512xbf16>
    %239 = arith.extf %238 : vector<8x512xbf16> to vector<8x512xf32>
    %240 = arith.addf %239, %4 : vector<8x512xf32>
    %241 = arith.truncf %236 : vector<8x128xf32> to vector<8x128xbf16>
    %cst_50 = arith.constant dense<0.000000e+00> : vector<8x512xf32>
    %242 = tpu.matmul %241, %3, %cst_50 {dimension_numbers = #tpu.dot_dimension_numbers<[1], [0], [0], [1], [0, 0, 1, 1], [], []>} : vector<8x128xbf16>, vector<128x512xbf16>, vector<8x512xf32> -> vector<8x512xf32>
    %243 = arith.addf %240, %242 : vector<8x512xf32>
    %244 = vector.extract_strided_slice %243 {offsets = [0, 0], sizes = [8, 384], strides = [1, 1]} : vector<8x512xf32> to vector<8x384xf32>
    %245 = arith.negf %244 : vector<8x384xf32>
    %246 = math.exp %245 : vector<8x384xf32>
    %cst_51 = arith.constant 1.000000e+00 : f32
    %247 = vector.broadcast %cst_51 : f32 to vector<8x384xf32>
    %248 = arith.addf %247, %246 : vector<8x384xf32>
    %249 = arith.divf %247, %248 : vector<8x384xf32>
    %250 = vector.extract_strided_slice %243 {offsets = [0, 384], sizes = [8, 128], strides = [1, 1]} : vector<8x512xf32> to vector<8x128xf32>
    %251 = math.tanh %250 : vector<8x128xf32>
    %252 = vector.extract_strided_slice %249 {offsets = [0, 0], sizes = [8, 128], strides = [1, 1]} : vector<8x384xf32> to vector<8x128xf32>
    %253 = vector.extract_strided_slice %249 {offsets = [0, 128], sizes = [8, 128], strides = [1, 1]} : vector<8x384xf32> to vector<8x128xf32>
    %254 = vector.extract_strided_slice %249 {offsets = [0, 256], sizes = [8, 128], strides = [1, 1]} : vector<8x384xf32> to vector<8x128xf32>
    %255 = arith.mulf %253, %234 : vector<8x128xf32>
    %256 = arith.mulf %252, %251 : vector<8x128xf32>
    %257 = arith.addf %255, %256 : vector<8x128xf32>
    %258 = math.tanh %257 : vector<8x128xf32>
    %259 = arith.mulf %254, %258 : vector<8x128xf32>
    %c11 = arith.constant 11 : index
    %c0_52 = arith.constant 0 : index
    %c0_53 = arith.constant 0 : index
    %260 = vector.load %arg2[%c11, %c0_52, %c0_53] : memref<16x8x512xbf16, #tpu.memory_space<vmem>>, vector<1x8x512xbf16>
    %261 = vector.shape_cast %260 : vector<1x8x512xbf16> to vector<8x512xbf16>
    %262 = arith.extf %261 : vector<8x512xbf16> to vector<8x512xf32>
    %263 = arith.addf %262, %4 : vector<8x512xf32>
    %264 = arith.truncf %259 : vector<8x128xf32> to vector<8x128xbf16>
    %cst_54 = arith.constant dense<0.000000e+00> : vector<8x512xf32>
    %265 = tpu.matmul %264, %3, %cst_54 {dimension_numbers = #tpu.dot_dimension_numbers<[1], [0], [0], [1], [0, 0, 1, 1], [], []>} : vector<8x128xbf16>, vector<128x512xbf16>, vector<8x512xf32> -> vector<8x512xf32>
    %266 = arith.addf %263, %265 : vector<8x512xf32>
    %267 = vector.extract_strided_slice %266 {offsets = [0, 0], sizes = [8, 384], strides = [1, 1]} : vector<8x512xf32> to vector<8x384xf32>
    %268 = arith.negf %267 : vector<8x384xf32>
    %269 = math.exp %268 : vector<8x384xf32>
    %cst_55 = arith.constant 1.000000e+00 : f32
    %270 = vector.broadcast %cst_55 : f32 to vector<8x384xf32>
    %271 = arith.addf %270, %269 : vector<8x384xf32>
    %272 = arith.divf %270, %271 : vector<8x384xf32>
    %273 = vector.extract_strided_slice %266 {offsets = [0, 384], sizes = [8, 128], strides = [1, 1]} : vector<8x512xf32> to vector<8x128xf32>
    %274 = math.tanh %273 : vector<8x128xf32>
    %275 = vector.extract_strided_slice %272 {offsets = [0, 0], sizes = [8, 128], strides = [1, 1]} : vector<8x384xf32> to vector<8x128xf32>
    %276 = vector.extract_strided_slice %272 {offsets = [0, 128], sizes = [8, 128], strides = [1, 1]} : vector<8x384xf32> to vector<8x128xf32>
    %277 = vector.extract_strided_slice %272 {offsets = [0, 256], sizes = [8, 128], strides = [1, 1]} : vector<8x384xf32> to vector<8x128xf32>
    %278 = arith.mulf %276, %257 : vector<8x128xf32>
    %279 = arith.mulf %275, %274 : vector<8x128xf32>
    %280 = arith.addf %278, %279 : vector<8x128xf32>
    %281 = math.tanh %280 : vector<8x128xf32>
    %282 = arith.mulf %277, %281 : vector<8x128xf32>
    %c12 = arith.constant 12 : index
    %c0_56 = arith.constant 0 : index
    %c0_57 = arith.constant 0 : index
    %283 = vector.load %arg2[%c12, %c0_56, %c0_57] : memref<16x8x512xbf16, #tpu.memory_space<vmem>>, vector<1x8x512xbf16>
    %284 = vector.shape_cast %283 : vector<1x8x512xbf16> to vector<8x512xbf16>
    %285 = arith.extf %284 : vector<8x512xbf16> to vector<8x512xf32>
    %286 = arith.addf %285, %4 : vector<8x512xf32>
    %287 = arith.truncf %282 : vector<8x128xf32> to vector<8x128xbf16>
    %cst_58 = arith.constant dense<0.000000e+00> : vector<8x512xf32>
    %288 = tpu.matmul %287, %3, %cst_58 {dimension_numbers = #tpu.dot_dimension_numbers<[1], [0], [0], [1], [0, 0, 1, 1], [], []>} : vector<8x128xbf16>, vector<128x512xbf16>, vector<8x512xf32> -> vector<8x512xf32>
    %289 = arith.addf %286, %288 : vector<8x512xf32>
    %290 = vector.extract_strided_slice %289 {offsets = [0, 0], sizes = [8, 384], strides = [1, 1]} : vector<8x512xf32> to vector<8x384xf32>
    %291 = arith.negf %290 : vector<8x384xf32>
    %292 = math.exp %291 : vector<8x384xf32>
    %cst_59 = arith.constant 1.000000e+00 : f32
    %293 = vector.broadcast %cst_59 : f32 to vector<8x384xf32>
    %294 = arith.addf %293, %292 : vector<8x384xf32>
    %295 = arith.divf %293, %294 : vector<8x384xf32>
    %296 = vector.extract_strided_slice %289 {offsets = [0, 384], sizes = [8, 128], strides = [1, 1]} : vector<8x512xf32> to vector<8x128xf32>
    %297 = math.tanh %296 : vector<8x128xf32>
    %298 = vector.extract_strided_slice %295 {offsets = [0, 0], sizes = [8, 128], strides = [1, 1]} : vector<8x384xf32> to vector<8x128xf32>
    %299 = vector.extract_strided_slice %295 {offsets = [0, 128], sizes = [8, 128], strides = [1, 1]} : vector<8x384xf32> to vector<8x128xf32>
    %300 = vector.extract_strided_slice %295 {offsets = [0, 256], sizes = [8, 128], strides = [1, 1]} : vector<8x384xf32> to vector<8x128xf32>
    %301 = arith.mulf %299, %280 : vector<8x128xf32>
    %302 = arith.mulf %298, %297 : vector<8x128xf32>
    %303 = arith.addf %301, %302 : vector<8x128xf32>
    %304 = math.tanh %303 : vector<8x128xf32>
    %305 = arith.mulf %300, %304 : vector<8x128xf32>
    %c13 = arith.constant 13 : index
    %c0_60 = arith.constant 0 : index
    %c0_61 = arith.constant 0 : index
    %306 = vector.load %arg2[%c13, %c0_60, %c0_61] : memref<16x8x512xbf16, #tpu.memory_space<vmem>>, vector<1x8x512xbf16>
    %307 = vector.shape_cast %306 : vector<1x8x512xbf16> to vector<8x512xbf16>
    %308 = arith.extf %307 : vector<8x512xbf16> to vector<8x512xf32>
    %309 = arith.addf %308, %4 : vector<8x512xf32>
    %310 = arith.truncf %305 : vector<8x128xf32> to vector<8x128xbf16>
    %cst_62 = arith.constant dense<0.000000e+00> : vector<8x512xf32>
    %311 = tpu.matmul %310, %3, %cst_62 {dimension_numbers = #tpu.dot_dimension_numbers<[1], [0], [0], [1], [0, 0, 1, 1], [], []>} : vector<8x128xbf16>, vector<128x512xbf16>, vector<8x512xf32> -> vector<8x512xf32>
    %312 = arith.addf %309, %311 : vector<8x512xf32>
    %313 = vector.extract_strided_slice %312 {offsets = [0, 0], sizes = [8, 384], strides = [1, 1]} : vector<8x512xf32> to vector<8x384xf32>
    %314 = arith.negf %313 : vector<8x384xf32>
    %315 = math.exp %314 : vector<8x384xf32>
    %cst_63 = arith.constant 1.000000e+00 : f32
    %316 = vector.broadcast %cst_63 : f32 to vector<8x384xf32>
    %317 = arith.addf %316, %315 : vector<8x384xf32>
    %318 = arith.divf %316, %317 : vector<8x384xf32>
    %319 = vector.extract_strided_slice %312 {offsets = [0, 384], sizes = [8, 128], strides = [1, 1]} : vector<8x512xf32> to vector<8x128xf32>
    %320 = math.tanh %319 : vector<8x128xf32>
    %321 = vector.extract_strided_slice %318 {offsets = [0, 0], sizes = [8, 128], strides = [1, 1]} : vector<8x384xf32> to vector<8x128xf32>
    %322 = vector.extract_strided_slice %318 {offsets = [0, 128], sizes = [8, 128], strides = [1, 1]} : vector<8x384xf32> to vector<8x128xf32>
    %323 = vector.extract_strided_slice %318 {offsets = [0, 256], sizes = [8, 128], strides = [1, 1]} : vector<8x384xf32> to vector<8x128xf32>
    %324 = arith.mulf %322, %303 : vector<8x128xf32>
    %325 = arith.mulf %321, %320 : vector<8x128xf32>
    %326 = arith.addf %324, %325 : vector<8x128xf32>
    %327 = math.tanh %326 : vector<8x128xf32>
    %328 = arith.mulf %323, %327 : vector<8x128xf32>
    %c14 = arith.constant 14 : index
    %c0_64 = arith.constant 0 : index
    %c0_65 = arith.constant 0 : index
    %329 = vector.load %arg2[%c14, %c0_64, %c0_65] : memref<16x8x512xbf16, #tpu.memory_space<vmem>>, vector<1x8x512xbf16>
    %330 = vector.shape_cast %329 : vector<1x8x512xbf16> to vector<8x512xbf16>
    %331 = arith.extf %330 : vector<8x512xbf16> to vector<8x512xf32>
    %332 = arith.addf %331, %4 : vector<8x512xf32>
    %333 = arith.truncf %328 : vector<8x128xf32> to vector<8x128xbf16>
    %cst_66 = arith.constant dense<0.000000e+00> : vector<8x512xf32>
    %334 = tpu.matmul %333, %3, %cst_66 {dimension_numbers = #tpu.dot_dimension_numbers<[1], [0], [0], [1], [0, 0, 1, 1], [], []>} : vector<8x128xbf16>, vector<128x512xbf16>, vector<8x512xf32> -> vector<8x512xf32>
    %335 = arith.addf %332, %334 : vector<8x512xf32>
    %336 = vector.extract_strided_slice %335 {offsets = [0, 0], sizes = [8, 384], strides = [1, 1]} : vector<8x512xf32> to vector<8x384xf32>
    %337 = arith.negf %336 : vector<8x384xf32>
    %338 = math.exp %337 : vector<8x384xf32>
    %cst_67 = arith.constant 1.000000e+00 : f32
    %339 = vector.broadcast %cst_67 : f32 to vector<8x384xf32>
    %340 = arith.addf %339, %338 : vector<8x384xf32>
    %341 = arith.divf %339, %340 : vector<8x384xf32>
    %342 = vector.extract_strided_slice %335 {offsets = [0, 384], sizes = [8, 128], strides = [1, 1]} : vector<8x512xf32> to vector<8x128xf32>
    %343 = math.tanh %342 : vector<8x128xf32>
    %344 = vector.extract_strided_slice %341 {offsets = [0, 0], sizes = [8, 128], strides = [1, 1]} : vector<8x384xf32> to vector<8x128xf32>
    %345 = vector.extract_strided_slice %341 {offsets = [0, 128], sizes = [8, 128], strides = [1, 1]} : vector<8x384xf32> to vector<8x128xf32>
    %346 = vector.extract_strided_slice %341 {offsets = [0, 256], sizes = [8, 128], strides = [1, 1]} : vector<8x384xf32> to vector<8x128xf32>
    %347 = arith.mulf %345, %326 : vector<8x128xf32>
    %348 = arith.mulf %344, %343 : vector<8x128xf32>
    %349 = arith.addf %347, %348 : vector<8x128xf32>
    %350 = math.tanh %349 : vector<8x128xf32>
    %351 = arith.mulf %346, %350 : vector<8x128xf32>
    %c15 = arith.constant 15 : index
    %c0_68 = arith.constant 0 : index
    %c0_69 = arith.constant 0 : index
    %352 = vector.load %arg2[%c15, %c0_68, %c0_69] : memref<16x8x512xbf16, #tpu.memory_space<vmem>>, vector<1x8x512xbf16>
    %353 = vector.shape_cast %352 : vector<1x8x512xbf16> to vector<8x512xbf16>
    %354 = arith.extf %353 : vector<8x512xbf16> to vector<8x512xf32>
    %355 = arith.addf %354, %4 : vector<8x512xf32>
    %356 = arith.truncf %351 : vector<8x128xf32> to vector<8x128xbf16>
    %cst_70 = arith.constant dense<0.000000e+00> : vector<8x512xf32>
    %357 = tpu.matmul %356, %3, %cst_70 {dimension_numbers = #tpu.dot_dimension_numbers<[1], [0], [0], [1], [0, 0, 1, 1], [], []>} : vector<8x128xbf16>, vector<128x512xbf16>, vector<8x512xf32> -> vector<8x512xf32>
    %358 = arith.addf %355, %357 : vector<8x512xf32>
    %359 = vector.extract_strided_slice %358 {offsets = [0, 0], sizes = [8, 384], strides = [1, 1]} : vector<8x512xf32> to vector<8x384xf32>
    %360 = arith.negf %359 : vector<8x384xf32>
    %361 = math.exp %360 : vector<8x384xf32>
    %cst_71 = arith.constant 1.000000e+00 : f32
    %362 = vector.broadcast %cst_71 : f32 to vector<8x384xf32>
    %363 = arith.addf %362, %361 : vector<8x384xf32>
    %364 = arith.divf %362, %363 : vector<8x384xf32>
    %365 = vector.extract_strided_slice %358 {offsets = [0, 384], sizes = [8, 128], strides = [1, 1]} : vector<8x512xf32> to vector<8x128xf32>
    %366 = math.tanh %365 : vector<8x128xf32>
    %367 = vector.extract_strided_slice %364 {offsets = [0, 0], sizes = [8, 128], strides = [1, 1]} : vector<8x384xf32> to vector<8x128xf32>
    %368 = vector.extract_strided_slice %364 {offsets = [0, 128], sizes = [8, 128], strides = [1, 1]} : vector<8x384xf32> to vector<8x128xf32>
    %369 = vector.extract_strided_slice %364 {offsets = [0, 256], sizes = [8, 128], strides = [1, 1]} : vector<8x384xf32> to vector<8x128xf32>
    %370 = arith.mulf %368, %349 : vector<8x128xf32>
    %371 = arith.mulf %367, %366 : vector<8x128xf32>
    %372 = arith.addf %370, %371 : vector<8x128xf32>
    %373 = math.tanh %372 : vector<8x128xf32>
    %374 = arith.mulf %369, %373 : vector<8x128xf32>
    %c0_72 = arith.constant 0 : index
    %c0_73 = arith.constant 0 : index
    %375 = vector.load %arg6[%c0_72, %c0_73] : memref<8x128xf32, #tpu.memory_space<vmem>>, vector<8x128xf32>
    tpu.vector_store %arg6[%c0_72, %c0_73], %374 {strides = array<i32>} : memref<8x128xf32, #tpu.memory_space<vmem>>, vector<8x128xf32>,
    %c0_74 = arith.constant 0 : index
    %c0_75 = arith.constant 0 : index
    %376 = vector.load %arg7[%c0_74, %c0_75] : memref<8x128xf32, #tpu.memory_space<vmem>>, vector<8x128xf32>
    tpu.vector_store %arg7[%c0_74, %c0_75], %372 {strides = array<i32>} : memref<8x128xf32, #tpu.memory_space<vmem>>, vector<8x128xf32>,
    %c0_i32_76 = arith.constant 0 : i32
    %377 = arith.cmpi eq, %arg1, %c0_i32_76 : i32
    %378 = arith.extui %377 : i1 to i32
    %c0_i32_77 = arith.constant 0 : i32
    %379 = arith.cmpi ne, %378, %c0_i32_77 : i32
    scf.if %379 {
      %c0_78 = arith.constant 0 : index
      %c0_79 = arith.constant 0 : index
      %380 = vector.load %arg5[%c0_78, %c0_79] : memref<8x128xf32, #tpu.memory_space<vmem>>, vector<8x128xf32>
      tpu.vector_store %arg5[%c0_78, %c0_79], %374 {strides = array<i32>} : memref<8x128xf32, #tpu.memory_space<vmem>>, vector<8x128xf32>,
    } else {
    }
    return
  }
  func.func @transform_0(%arg0: i32, %arg1: i32) -> (i32, i32, i32) {
    %c0_i32 = arith.constant 0 : i32
    %c0_i32_0 = arith.constant 0 : i32
    return %arg1, %arg0, %c0_i32 : i32, i32, i32
  }
  func.func @transform_1(%arg0: i32, %arg1: i32) -> (i32, i32) {
    %c0_i32 = arith.constant 0 : i32
    %c0_i32_0 = arith.constant 0 : i32
    return %arg0, %c0_i32 : i32, i32
  }
  func.func @transform_2(%arg0: i32, %arg1: i32) -> (i32, i32) {
    %c0_i32 = arith.constant 0 : i32
    %c0_i32_0 = arith.constant 0 : i32
    %c0_i32_1 = arith.constant 0 : i32
    return %c0_i32, %c0_i32_0 : i32, i32
  }
  func.func @transform_3(%arg0: i32, %arg1: i32) -> (i32, i32) {
    %c0_i32 = arith.constant 0 : i32
    %c0_i32_0 = arith.constant 0 : i32
    return %arg0, %c0_i32 : i32, i32
  }
}

module attributes {stable_mosaic.version = 11 : i64} {
  func.func @_latent_kernel(%arg0: memref<8x128xf32, #tpu.memory_space<vmem>>, %arg1: memref<8x32xbf16, #tpu.memory_space<vmem>>, %arg2: memref<8x32xf32, #tpu.memory_space<vmem>>, %arg3: memref<128x64xbf16, #tpu.memory_space<vmem>>, %arg4: memref<1x64xf32, #tpu.memory_space<vmem>>, %arg5: memref<32x128xbf16, #tpu.memory_space<vmem>>, %arg6: memref<32x128xbf16, #tpu.memory_space<vmem>>, %arg7: memref<1x128xf32, #tpu.memory_space<vmem>>, %arg8: memref<8x32xf32, #tpu.memory_space<vmem>>, %arg9: memref<8x32xf32, #tpu.memory_space<vmem>>, %arg10: memref<8x128xf32, #tpu.memory_space<vmem>>) attributes {dimension_semantics = [], scalar_prefetch = 0 : i64, scratch_operands = 0 : i64, tpu.core_type = #tpu.core_type<tc>} {
    %c0 = arith.constant 0 : index
    %c0_0 = arith.constant 0 : index
    %0 = vector.load %arg0[%c0, %c0_0] : memref<8x128xf32, #tpu.memory_space<vmem>>, vector<8x128xf32>
    %1 = arith.truncf %0 : vector<8x128xf32> to vector<8x128xbf16>
    %c0_1 = arith.constant 0 : index
    %c0_2 = arith.constant 0 : index
    %2 = vector.load %arg3[%c0_1, %c0_2] : memref<128x64xbf16, #tpu.memory_space<vmem>>, vector<128x64xbf16>
    %cst = arith.constant dense<0.000000e+00> : vector<8x64xf32>
    %3 = tpu.matmul %1, %2, %cst {dimension_numbers = #tpu.dot_dimension_numbers<[1], [0], [0], [1], [0, 0, 1, 1], [], []>} : vector<8x128xbf16>, vector<128x64xbf16>, vector<8x64xf32> -> vector<8x64xf32>
    %c0_3 = arith.constant 0 : index
    %c0_4 = arith.constant 0 : index
    %4 = vector.load %arg4[%c0_3, %c0_4] : memref<1x64xf32, #tpu.memory_space<vmem>>, vector<1x64xf32>
    %5 = vector.broadcast %4 : vector<1x64xf32> to vector<8x64xf32>
    %6 = arith.addf %3, %5 : vector<8x64xf32>
    %7 = vector.extract_strided_slice %6 {offsets = [0, 0], sizes = [8, 32], strides = [1, 1]} : vector<8x64xf32> to vector<8x32xf32>
    %8 = vector.extract_strided_slice %6 {offsets = [0, 32], sizes = [8, 32], strides = [1, 1]} : vector<8x64xf32> to vector<8x32xf32>
    %c0_5 = arith.constant 0 : index
    %c0_6 = arith.constant 0 : index
    %9 = vector.load %arg2[%c0_5, %c0_6] : memref<8x32xf32, #tpu.memory_space<vmem>>, vector<8x32xf32>
    %cst_7 = arith.constant 5.000000e-01 : f32
    %10 = vector.broadcast %cst_7 : f32 to vector<8x32xf32>
    %11 = arith.mulf %10, %8 : vector<8x32xf32>
    %12 = math.exp %11 : vector<8x32xf32>
    %13 = arith.mulf %9, %12 : vector<8x32xf32>
    %14 = arith.addf %7, %13 : vector<8x32xf32>
    %15 = arith.truncf %14 : vector<8x32xf32> to vector<8x32xbf16>
    %c0_8 = arith.constant 0 : index
    %c0_9 = arith.constant 0 : index
    %16 = vector.load %arg5[%c0_8, %c0_9] : memref<32x128xbf16, #tpu.memory_space<vmem>>, vector<32x128xbf16>
    %cst_10 = arith.constant dense<0.000000e+00> : vector<8x128xf32>
    %17 = tpu.matmul %15, %16, %cst_10 {dimension_numbers = #tpu.dot_dimension_numbers<[1], [0], [0], [1], [0, 0, 1, 1], [], []>} : vector<8x32xbf16>, vector<32x128xbf16>, vector<8x128xf32> -> vector<8x128xf32>
    %c0_11 = arith.constant 0 : index
    %c0_12 = arith.constant 0 : index
    %18 = vector.load %arg1[%c0_11, %c0_12] : memref<8x32xbf16, #tpu.memory_space<vmem>>, vector<8x32xbf16>
    %c0_13 = arith.constant 0 : index
    %c0_14 = arith.constant 0 : index
    %19 = vector.load %arg6[%c0_13, %c0_14] : memref<32x128xbf16, #tpu.memory_space<vmem>>, vector<32x128xbf16>
    %cst_15 = arith.constant dense<0.000000e+00> : vector<8x128xf32>
    %20 = tpu.matmul %18, %19, %cst_15 {dimension_numbers = #tpu.dot_dimension_numbers<[1], [0], [0], [1], [0, 0, 1, 1], [], []>} : vector<8x32xbf16>, vector<32x128xbf16>, vector<8x128xf32> -> vector<8x128xf32>
    %21 = arith.addf %17, %20 : vector<8x128xf32>
    %c0_16 = arith.constant 0 : index
    %c0_17 = arith.constant 0 : index
    %22 = vector.load %arg7[%c0_16, %c0_17] : memref<1x128xf32, #tpu.memory_space<vmem>>, vector<1x128xf32>
    %23 = vector.broadcast %22 : vector<1x128xf32> to vector<8x128xf32>
    %24 = arith.addf %21, %23 : vector<8x128xf32>
    %c0_18 = arith.constant 0 : index
    %c0_19 = arith.constant 0 : index
    %25 = vector.load %arg8[%c0_18, %c0_19] : memref<8x32xf32, #tpu.memory_space<vmem>>, vector<8x32xf32>
    tpu.vector_store %arg8[%c0_18, %c0_19], %7 {strides = array<i32>} : memref<8x32xf32, #tpu.memory_space<vmem>>, vector<8x32xf32>,
    %c0_20 = arith.constant 0 : index
    %c0_21 = arith.constant 0 : index
    %26 = vector.load %arg9[%c0_20, %c0_21] : memref<8x32xf32, #tpu.memory_space<vmem>>, vector<8x32xf32>
    tpu.vector_store %arg9[%c0_20, %c0_21], %8 {strides = array<i32>} : memref<8x32xf32, #tpu.memory_space<vmem>>, vector<8x32xf32>,
    %c0_22 = arith.constant 0 : index
    %c0_23 = arith.constant 0 : index
    %27 = vector.load %arg10[%c0_22, %c0_23] : memref<8x128xf32, #tpu.memory_space<vmem>>, vector<8x128xf32>
    tpu.vector_store %arg10[%c0_22, %c0_23], %24 {strides = array<i32>} : memref<8x128xf32, #tpu.memory_space<vmem>>, vector<8x128xf32>,
    return
  }
}

module attributes {stable_mosaic.version = 11 : i64} {
  func.func @_matmul_bias_kernel(%arg0: i32, %arg1: memref<64x128xbf16, #tpu.memory_space<vmem>>, %arg2: memref<128x128xbf16, #tpu.memory_space<vmem>>, %arg3: memref<1x128xf32, #tpu.memory_space<vmem>>, %arg4: memref<64x128xf32, #tpu.memory_space<vmem>>) attributes {dimension_semantics = [#tpu.dimension_semantics<parallel>], iteration_bounds = array<i64: 2>, scalar_prefetch = 0 : i64, scratch_operands = 0 : i64, tpu.core_type = #tpu.core_type<tc>, window_params = [{transform_indices = @transform_0, window_bounds = array<i64: 64, 128>}, {pipeline_mode = #tpu.pipeline_mode<synchronous>, transform_indices = @transform_1, window_bounds = array<i64: 128, 128>}, {pipeline_mode = #tpu.pipeline_mode<synchronous>, transform_indices = @transform_2, window_bounds = array<i64: 1, 128>}, {transform_indices = @transform_3, window_bounds = array<i64: 64, 128>}]} {
    %c0 = arith.constant 0 : index
    %c0_0 = arith.constant 0 : index
    %0 = vector.load %arg1[%c0, %c0_0] : memref<64x128xbf16, #tpu.memory_space<vmem>>, vector<64x128xbf16>
    %c0_1 = arith.constant 0 : index
    %c0_2 = arith.constant 0 : index
    %1 = vector.load %arg2[%c0_1, %c0_2] : memref<128x128xbf16, #tpu.memory_space<vmem>>, vector<128x128xbf16>
    %cst = arith.constant dense<0.000000e+00> : vector<64x128xf32>
    %2 = tpu.matmul %0, %1, %cst {dimension_numbers = #tpu.dot_dimension_numbers<[1], [0], [0], [1], [0, 0, 1, 1], [], []>} : vector<64x128xbf16>, vector<128x128xbf16>, vector<64x128xf32> -> vector<64x128xf32>
    %c0_3 = arith.constant 0 : index
    %c0_4 = arith.constant 0 : index
    %3 = vector.load %arg3[%c0_3, %c0_4] : memref<1x128xf32, #tpu.memory_space<vmem>>, vector<1x128xf32>
    %4 = vector.broadcast %3 : vector<1x128xf32> to vector<64x128xf32>
    %5 = arith.addf %2, %4 : vector<64x128xf32>
    %c0_5 = arith.constant 0 : index
    %c0_6 = arith.constant 0 : index
    %6 = vector.load %arg4[%c0_5, %c0_6] : memref<64x128xf32, #tpu.memory_space<vmem>>, vector<64x128xf32>
    tpu.vector_store %arg4[%c0_5, %c0_6], %5 {strides = array<i32>} : memref<64x128xf32, #tpu.memory_space<vmem>>, vector<64x128xf32>,
    return
  }
  func.func @transform_0(%arg0: i32) -> (i32, i32) {
    %c0_i32 = arith.constant 0 : i32
    %c0_i32_0 = arith.constant 0 : i32
    return %arg0, %c0_i32 : i32, i32
  }
  func.func @transform_1(%arg0: i32) -> (i32, i32) {
    %c0_i32 = arith.constant 0 : i32
    %c0_i32_0 = arith.constant 0 : i32
    %c0_i32_1 = arith.constant 0 : i32
    return %c0_i32, %c0_i32_0 : i32, i32
  }
  func.func @transform_2(%arg0: i32) -> (i32, i32) {
    %c0_i32 = arith.constant 0 : i32
    %c0_i32_0 = arith.constant 0 : i32
    %c0_i32_1 = arith.constant 0 : i32
    return %c0_i32, %c0_i32_0 : i32, i32
  }
  func.func @transform_3(%arg0: i32) -> (i32, i32) {
    %c0_i32 = arith.constant 0 : i32
    %c0_i32_0 = arith.constant 0 : i32
    return %arg0, %c0_i32 : i32, i32
  }
}

module attributes {stable_mosaic.version = 11 : i64} {
  func.func @_decoder_lstm_kernel(%arg0: i32, %arg1: i32, %arg2: memref<16x8x512xbf16, #tpu.memory_space<vmem>>, %arg3: memref<8x128xf32, #tpu.memory_space<vmem>>, %arg4: memref<128x512xbf16, #tpu.memory_space<vmem>>, %arg5: memref<16x8x128xbf16, #tpu.memory_space<vmem>>, %arg6: memref<8x128xf32, #tpu.memory_space<vmem>>, %arg7: memref<8x128xf32, #tpu.memory_space<vmem>>) attributes {dimension_semantics = [#tpu.dimension_semantics<parallel>, #tpu.dimension_semantics<arbitrary>], iteration_bounds = array<i64: 1, 1>, scalar_prefetch = 0 : i64, scratch_operands = 2 : i64, tpu.core_type = #tpu.core_type<tc>, window_params = [{transform_indices = @transform_0, window_bounds = array<i64: 16, 8, 512>}, {transform_indices = @transform_1, window_bounds = array<i64: 8, 128>}, {pipeline_mode = #tpu.pipeline_mode<synchronous>, transform_indices = @transform_2, window_bounds = array<i64: 128, 512>}, {transform_indices = @transform_3, window_bounds = array<i64: 16, 8, 128>}]} {
    %c0_i32 = arith.constant 0 : i32
    %0 = arith.cmpi eq, %arg1, %c0_i32 : i32
    %1 = arith.extui %0 : i1 to i32
    %c0_i32_0 = arith.constant 0 : i32
    %2 = arith.cmpi ne, %1, %c0_i32_0 : i32
    scf.if %2 {
      %c0_122 = arith.constant 0 : index
      %c0_123 = arith.constant 0 : index
      %424 = vector.load %arg3[%c0_122, %c0_123] : memref<8x128xf32, #tpu.memory_space<vmem>>, vector<8x128xf32>
      %c0_124 = arith.constant 0 : index
      %c0_125 = arith.constant 0 : index
      %425 = vector.load %arg6[%c0_124, %c0_125] : memref<8x128xf32, #tpu.memory_space<vmem>>, vector<8x128xf32>
      tpu.vector_store %arg6[%c0_124, %c0_125], %424 {strides = array<i32>} : memref<8x128xf32, #tpu.memory_space<vmem>>, vector<8x128xf32>,
      %cst_126 = arith.constant 0.000000e+00 : f32
      %426 = vector.broadcast %cst_126 : f32 to vector<8x128xf32>
      %c0_127 = arith.constant 0 : index
      %c0_128 = arith.constant 0 : index
      %427 = vector.load %arg7[%c0_127, %c0_128] : memref<8x128xf32, #tpu.memory_space<vmem>>, vector<8x128xf32>
      tpu.vector_store %arg7[%c0_127, %c0_128], %426 {strides = array<i32>} : memref<8x128xf32, #tpu.memory_space<vmem>>, vector<8x128xf32>,
    } else {
    }
    %c0 = arith.constant 0 : index
    %c0_1 = arith.constant 0 : index
    %3 = vector.load %arg4[%c0, %c0_1] : memref<128x512xbf16, #tpu.memory_space<vmem>>, vector<128x512xbf16>
    %c0_2 = arith.constant 0 : index
    %c0_3 = arith.constant 0 : index
    %4 = vector.load %arg6[%c0_2, %c0_3] : memref<8x128xf32, #tpu.memory_space<vmem>>, vector<8x128xf32>
    %c0_4 = arith.constant 0 : index
    %c0_5 = arith.constant 0 : index
    %5 = vector.load %arg7[%c0_4, %c0_5] : memref<8x128xf32, #tpu.memory_space<vmem>>, vector<8x128xf32>
    %c0_6 = arith.constant 0 : index
    %c0_7 = arith.constant 0 : index
    %c0_8 = arith.constant 0 : index
    %6 = vector.load %arg2[%c0_6, %c0_7, %c0_8] : memref<16x8x512xbf16, #tpu.memory_space<vmem>>, vector<1x8x512xbf16>
    %7 = vector.shape_cast %6 : vector<1x8x512xbf16> to vector<8x512xbf16>
    %8 = arith.extf %7 : vector<8x512xbf16> to vector<8x512xf32>
    %9 = arith.truncf %4 : vector<8x128xf32> to vector<8x128xbf16>
    %cst = arith.constant dense<0.000000e+00> : vector<8x512xf32>
    %10 = tpu.matmul %9, %3, %cst {dimension_numbers = #tpu.dot_dimension_numbers<[1], [0], [0], [1], [0, 0, 1, 1], [], []>} : vector<8x128xbf16>, vector<128x512xbf16>, vector<8x512xf32> -> vector<8x512xf32>
    %11 = arith.addf %8, %10 : vector<8x512xf32>
    %12 = vector.extract_strided_slice %11 {offsets = [0, 0], sizes = [8, 384], strides = [1, 1]} : vector<8x512xf32> to vector<8x384xf32>
    %13 = arith.negf %12 : vector<8x384xf32>
    %14 = math.exp %13 : vector<8x384xf32>
    %cst_9 = arith.constant 1.000000e+00 : f32
    %15 = vector.broadcast %cst_9 : f32 to vector<8x384xf32>
    %16 = arith.addf %15, %14 : vector<8x384xf32>
    %17 = arith.divf %15, %16 : vector<8x384xf32>
    %18 = vector.extract_strided_slice %11 {offsets = [0, 384], sizes = [8, 128], strides = [1, 1]} : vector<8x512xf32> to vector<8x128xf32>
    %19 = math.tanh %18 : vector<8x128xf32>
    %20 = vector.extract_strided_slice %17 {offsets = [0, 0], sizes = [8, 128], strides = [1, 1]} : vector<8x384xf32> to vector<8x128xf32>
    %21 = vector.extract_strided_slice %17 {offsets = [0, 128], sizes = [8, 128], strides = [1, 1]} : vector<8x384xf32> to vector<8x128xf32>
    %22 = vector.extract_strided_slice %17 {offsets = [0, 256], sizes = [8, 128], strides = [1, 1]} : vector<8x384xf32> to vector<8x128xf32>
    %23 = arith.mulf %21, %5 : vector<8x128xf32>
    %24 = arith.mulf %20, %19 : vector<8x128xf32>
    %25 = arith.addf %23, %24 : vector<8x128xf32>
    %26 = math.tanh %25 : vector<8x128xf32>
    %27 = arith.mulf %22, %26 : vector<8x128xf32>
    %28 = arith.truncf %27 : vector<8x128xf32> to vector<8x128xbf16>
    %c0_10 = arith.constant 0 : index
    %c0_11 = arith.constant 0 : index
    %c0_12 = arith.constant 0 : index
    %29 = vector.load %arg5[%c0_10, %c0_11, %c0_12] : memref<16x8x128xbf16, #tpu.memory_space<vmem>>, vector<1x8x128xbf16>
    %30 = vector.shape_cast %29 : vector<1x8x128xbf16> to vector<8x128xbf16>
    %31 = vector.shape_cast %28 : vector<8x128xbf16> to vector<1x8x128xbf16>
    tpu.vector_store %arg5[%c0_10, %c0_11, %c0_12], %31 {strides = array<i32>} : memref<16x8x128xbf16, #tpu.memory_space<vmem>>, vector<1x8x128xbf16>,
    %c1 = arith.constant 1 : index
    %c0_13 = arith.constant 0 : index
    %c0_14 = arith.constant 0 : index
    %32 = vector.load %arg2[%c1, %c0_13, %c0_14] : memref<16x8x512xbf16, #tpu.memory_space<vmem>>, vector<1x8x512xbf16>
    %33 = vector.shape_cast %32 : vector<1x8x512xbf16> to vector<8x512xbf16>
    %34 = arith.extf %33 : vector<8x512xbf16> to vector<8x512xf32>
    %35 = arith.truncf %27 : vector<8x128xf32> to vector<8x128xbf16>
    %cst_15 = arith.constant dense<0.000000e+00> : vector<8x512xf32>
    %36 = tpu.matmul %35, %3, %cst_15 {dimension_numbers = #tpu.dot_dimension_numbers<[1], [0], [0], [1], [0, 0, 1, 1], [], []>} : vector<8x128xbf16>, vector<128x512xbf16>, vector<8x512xf32> -> vector<8x512xf32>
    %37 = arith.addf %34, %36 : vector<8x512xf32>
    %38 = vector.extract_strided_slice %37 {offsets = [0, 0], sizes = [8, 384], strides = [1, 1]} : vector<8x512xf32> to vector<8x384xf32>
    %39 = arith.negf %38 : vector<8x384xf32>
    %40 = math.exp %39 : vector<8x384xf32>
    %cst_16 = arith.constant 1.000000e+00 : f32
    %41 = vector.broadcast %cst_16 : f32 to vector<8x384xf32>
    %42 = arith.addf %41, %40 : vector<8x384xf32>
    %43 = arith.divf %41, %42 : vector<8x384xf32>
    %44 = vector.extract_strided_slice %37 {offsets = [0, 384], sizes = [8, 128], strides = [1, 1]} : vector<8x512xf32> to vector<8x128xf32>
    %45 = math.tanh %44 : vector<8x128xf32>
    %46 = vector.extract_strided_slice %43 {offsets = [0, 0], sizes = [8, 128], strides = [1, 1]} : vector<8x384xf32> to vector<8x128xf32>
    %47 = vector.extract_strided_slice %43 {offsets = [0, 128], sizes = [8, 128], strides = [1, 1]} : vector<8x384xf32> to vector<8x128xf32>
    %48 = vector.extract_strided_slice %43 {offsets = [0, 256], sizes = [8, 128], strides = [1, 1]} : vector<8x384xf32> to vector<8x128xf32>
    %49 = arith.mulf %47, %25 : vector<8x128xf32>
    %50 = arith.mulf %46, %45 : vector<8x128xf32>
    %51 = arith.addf %49, %50 : vector<8x128xf32>
    %52 = math.tanh %51 : vector<8x128xf32>
    %53 = arith.mulf %48, %52 : vector<8x128xf32>
    %54 = arith.truncf %53 : vector<8x128xf32> to vector<8x128xbf16>
    %c1_17 = arith.constant 1 : index
    %c0_18 = arith.constant 0 : index
    %c0_19 = arith.constant 0 : index
    %55 = vector.load %arg5[%c1_17, %c0_18, %c0_19] : memref<16x8x128xbf16, #tpu.memory_space<vmem>>, vector<1x8x128xbf16>
    %56 = vector.shape_cast %55 : vector<1x8x128xbf16> to vector<8x128xbf16>
    %57 = vector.shape_cast %54 : vector<8x128xbf16> to vector<1x8x128xbf16>
    tpu.vector_store %arg5[%c1_17, %c0_18, %c0_19], %57 {strides = array<i32>} : memref<16x8x128xbf16, #tpu.memory_space<vmem>>, vector<1x8x128xbf16>,
    %c2 = arith.constant 2 : index
    %c0_20 = arith.constant 0 : index
    %c0_21 = arith.constant 0 : index
    %58 = vector.load %arg2[%c2, %c0_20, %c0_21] : memref<16x8x512xbf16, #tpu.memory_space<vmem>>, vector<1x8x512xbf16>
    %59 = vector.shape_cast %58 : vector<1x8x512xbf16> to vector<8x512xbf16>
    %60 = arith.extf %59 : vector<8x512xbf16> to vector<8x512xf32>
    %61 = arith.truncf %53 : vector<8x128xf32> to vector<8x128xbf16>
    %cst_22 = arith.constant dense<0.000000e+00> : vector<8x512xf32>
    %62 = tpu.matmul %61, %3, %cst_22 {dimension_numbers = #tpu.dot_dimension_numbers<[1], [0], [0], [1], [0, 0, 1, 1], [], []>} : vector<8x128xbf16>, vector<128x512xbf16>, vector<8x512xf32> -> vector<8x512xf32>
    %63 = arith.addf %60, %62 : vector<8x512xf32>
    %64 = vector.extract_strided_slice %63 {offsets = [0, 0], sizes = [8, 384], strides = [1, 1]} : vector<8x512xf32> to vector<8x384xf32>
    %65 = arith.negf %64 : vector<8x384xf32>
    %66 = math.exp %65 : vector<8x384xf32>
    %cst_23 = arith.constant 1.000000e+00 : f32
    %67 = vector.broadcast %cst_23 : f32 to vector<8x384xf32>
    %68 = arith.addf %67, %66 : vector<8x384xf32>
    %69 = arith.divf %67, %68 : vector<8x384xf32>
    %70 = vector.extract_strided_slice %63 {offsets = [0, 384], sizes = [8, 128], strides = [1, 1]} : vector<8x512xf32> to vector<8x128xf32>
    %71 = math.tanh %70 : vector<8x128xf32>
    %72 = vector.extract_strided_slice %69 {offsets = [0, 0], sizes = [8, 128], strides = [1, 1]} : vector<8x384xf32> to vector<8x128xf32>
    %73 = vector.extract_strided_slice %69 {offsets = [0, 128], sizes = [8, 128], strides = [1, 1]} : vector<8x384xf32> to vector<8x128xf32>
    %74 = vector.extract_strided_slice %69 {offsets = [0, 256], sizes = [8, 128], strides = [1, 1]} : vector<8x384xf32> to vector<8x128xf32>
    %75 = arith.mulf %73, %51 : vector<8x128xf32>
    %76 = arith.mulf %72, %71 : vector<8x128xf32>
    %77 = arith.addf %75, %76 : vector<8x128xf32>
    %78 = math.tanh %77 : vector<8x128xf32>
    %79 = arith.mulf %74, %78 : vector<8x128xf32>
    %80 = arith.truncf %79 : vector<8x128xf32> to vector<8x128xbf16>
    %c2_24 = arith.constant 2 : index
    %c0_25 = arith.constant 0 : index
    %c0_26 = arith.constant 0 : index
    %81 = vector.load %arg5[%c2_24, %c0_25, %c0_26] : memref<16x8x128xbf16, #tpu.memory_space<vmem>>, vector<1x8x128xbf16>
    %82 = vector.shape_cast %81 : vector<1x8x128xbf16> to vector<8x128xbf16>
    %83 = vector.shape_cast %80 : vector<8x128xbf16> to vector<1x8x128xbf16>
    tpu.vector_store %arg5[%c2_24, %c0_25, %c0_26], %83 {strides = array<i32>} : memref<16x8x128xbf16, #tpu.memory_space<vmem>>, vector<1x8x128xbf16>,
    %c3 = arith.constant 3 : index
    %c0_27 = arith.constant 0 : index
    %c0_28 = arith.constant 0 : index
    %84 = vector.load %arg2[%c3, %c0_27, %c0_28] : memref<16x8x512xbf16, #tpu.memory_space<vmem>>, vector<1x8x512xbf16>
    %85 = vector.shape_cast %84 : vector<1x8x512xbf16> to vector<8x512xbf16>
    %86 = arith.extf %85 : vector<8x512xbf16> to vector<8x512xf32>
    %87 = arith.truncf %79 : vector<8x128xf32> to vector<8x128xbf16>
    %cst_29 = arith.constant dense<0.000000e+00> : vector<8x512xf32>
    %88 = tpu.matmul %87, %3, %cst_29 {dimension_numbers = #tpu.dot_dimension_numbers<[1], [0], [0], [1], [0, 0, 1, 1], [], []>} : vector<8x128xbf16>, vector<128x512xbf16>, vector<8x512xf32> -> vector<8x512xf32>
    %89 = arith.addf %86, %88 : vector<8x512xf32>
    %90 = vector.extract_strided_slice %89 {offsets = [0, 0], sizes = [8, 384], strides = [1, 1]} : vector<8x512xf32> to vector<8x384xf32>
    %91 = arith.negf %90 : vector<8x384xf32>
    %92 = math.exp %91 : vector<8x384xf32>
    %cst_30 = arith.constant 1.000000e+00 : f32
    %93 = vector.broadcast %cst_30 : f32 to vector<8x384xf32>
    %94 = arith.addf %93, %92 : vector<8x384xf32>
    %95 = arith.divf %93, %94 : vector<8x384xf32>
    %96 = vector.extract_strided_slice %89 {offsets = [0, 384], sizes = [8, 128], strides = [1, 1]} : vector<8x512xf32> to vector<8x128xf32>
    %97 = math.tanh %96 : vector<8x128xf32>
    %98 = vector.extract_strided_slice %95 {offsets = [0, 0], sizes = [8, 128], strides = [1, 1]} : vector<8x384xf32> to vector<8x128xf32>
    %99 = vector.extract_strided_slice %95 {offsets = [0, 128], sizes = [8, 128], strides = [1, 1]} : vector<8x384xf32> to vector<8x128xf32>
    %100 = vector.extract_strided_slice %95 {offsets = [0, 256], sizes = [8, 128], strides = [1, 1]} : vector<8x384xf32> to vector<8x128xf32>
    %101 = arith.mulf %99, %77 : vector<8x128xf32>
    %102 = arith.mulf %98, %97 : vector<8x128xf32>
    %103 = arith.addf %101, %102 : vector<8x128xf32>
    %104 = math.tanh %103 : vector<8x128xf32>
    %105 = arith.mulf %100, %104 : vector<8x128xf32>
    %106 = arith.truncf %105 : vector<8x128xf32> to vector<8x128xbf16>
    %c3_31 = arith.constant 3 : index
    %c0_32 = arith.constant 0 : index
    %c0_33 = arith.constant 0 : index
    %107 = vector.load %arg5[%c3_31, %c0_32, %c0_33] : memref<16x8x128xbf16, #tpu.memory_space<vmem>>, vector<1x8x128xbf16>
    %108 = vector.shape_cast %107 : vector<1x8x128xbf16> to vector<8x128xbf16>
    %109 = vector.shape_cast %106 : vector<8x128xbf16> to vector<1x8x128xbf16>
    tpu.vector_store %arg5[%c3_31, %c0_32, %c0_33], %109 {strides = array<i32>} : memref<16x8x128xbf16, #tpu.memory_space<vmem>>, vector<1x8x128xbf16>,
    %c4 = arith.constant 4 : index
    %c0_34 = arith.constant 0 : index
    %c0_35 = arith.constant 0 : index
    %110 = vector.load %arg2[%c4, %c0_34, %c0_35] : memref<16x8x512xbf16, #tpu.memory_space<vmem>>, vector<1x8x512xbf16>
    %111 = vector.shape_cast %110 : vector<1x8x512xbf16> to vector<8x512xbf16>
    %112 = arith.extf %111 : vector<8x512xbf16> to vector<8x512xf32>
    %113 = arith.truncf %105 : vector<8x128xf32> to vector<8x128xbf16>
    %cst_36 = arith.constant dense<0.000000e+00> : vector<8x512xf32>
    %114 = tpu.matmul %113, %3, %cst_36 {dimension_numbers = #tpu.dot_dimension_numbers<[1], [0], [0], [1], [0, 0, 1, 1], [], []>} : vector<8x128xbf16>, vector<128x512xbf16>, vector<8x512xf32> -> vector<8x512xf32>
    %115 = arith.addf %112, %114 : vector<8x512xf32>
    %116 = vector.extract_strided_slice %115 {offsets = [0, 0], sizes = [8, 384], strides = [1, 1]} : vector<8x512xf32> to vector<8x384xf32>
    %117 = arith.negf %116 : vector<8x384xf32>
    %118 = math.exp %117 : vector<8x384xf32>
    %cst_37 = arith.constant 1.000000e+00 : f32
    %119 = vector.broadcast %cst_37 : f32 to vector<8x384xf32>
    %120 = arith.addf %119, %118 : vector<8x384xf32>
    %121 = arith.divf %119, %120 : vector<8x384xf32>
    %122 = vector.extract_strided_slice %115 {offsets = [0, 384], sizes = [8, 128], strides = [1, 1]} : vector<8x512xf32> to vector<8x128xf32>
    %123 = math.tanh %122 : vector<8x128xf32>
    %124 = vector.extract_strided_slice %121 {offsets = [0, 0], sizes = [8, 128], strides = [1, 1]} : vector<8x384xf32> to vector<8x128xf32>
    %125 = vector.extract_strided_slice %121 {offsets = [0, 128], sizes = [8, 128], strides = [1, 1]} : vector<8x384xf32> to vector<8x128xf32>
    %126 = vector.extract_strided_slice %121 {offsets = [0, 256], sizes = [8, 128], strides = [1, 1]} : vector<8x384xf32> to vector<8x128xf32>
    %127 = arith.mulf %125, %103 : vector<8x128xf32>
    %128 = arith.mulf %124, %123 : vector<8x128xf32>
    %129 = arith.addf %127, %128 : vector<8x128xf32>
    %130 = math.tanh %129 : vector<8x128xf32>
    %131 = arith.mulf %126, %130 : vector<8x128xf32>
    %132 = arith.truncf %131 : vector<8x128xf32> to vector<8x128xbf16>
    %c4_38 = arith.constant 4 : index
    %c0_39 = arith.constant 0 : index
    %c0_40 = arith.constant 0 : index
    %133 = vector.load %arg5[%c4_38, %c0_39, %c0_40] : memref<16x8x128xbf16, #tpu.memory_space<vmem>>, vector<1x8x128xbf16>
    %134 = vector.shape_cast %133 : vector<1x8x128xbf16> to vector<8x128xbf16>
    %135 = vector.shape_cast %132 : vector<8x128xbf16> to vector<1x8x128xbf16>
    tpu.vector_store %arg5[%c4_38, %c0_39, %c0_40], %135 {strides = array<i32>} : memref<16x8x128xbf16, #tpu.memory_space<vmem>>, vector<1x8x128xbf16>,
    %c5 = arith.constant 5 : index
    %c0_41 = arith.constant 0 : index
    %c0_42 = arith.constant 0 : index
    %136 = vector.load %arg2[%c5, %c0_41, %c0_42] : memref<16x8x512xbf16, #tpu.memory_space<vmem>>, vector<1x8x512xbf16>
    %137 = vector.shape_cast %136 : vector<1x8x512xbf16> to vector<8x512xbf16>
    %138 = arith.extf %137 : vector<8x512xbf16> to vector<8x512xf32>
    %139 = arith.truncf %131 : vector<8x128xf32> to vector<8x128xbf16>
    %cst_43 = arith.constant dense<0.000000e+00> : vector<8x512xf32>
    %140 = tpu.matmul %139, %3, %cst_43 {dimension_numbers = #tpu.dot_dimension_numbers<[1], [0], [0], [1], [0, 0, 1, 1], [], []>} : vector<8x128xbf16>, vector<128x512xbf16>, vector<8x512xf32> -> vector<8x512xf32>
    %141 = arith.addf %138, %140 : vector<8x512xf32>
    %142 = vector.extract_strided_slice %141 {offsets = [0, 0], sizes = [8, 384], strides = [1, 1]} : vector<8x512xf32> to vector<8x384xf32>
    %143 = arith.negf %142 : vector<8x384xf32>
    %144 = math.exp %143 : vector<8x384xf32>
    %cst_44 = arith.constant 1.000000e+00 : f32
    %145 = vector.broadcast %cst_44 : f32 to vector<8x384xf32>
    %146 = arith.addf %145, %144 : vector<8x384xf32>
    %147 = arith.divf %145, %146 : vector<8x384xf32>
    %148 = vector.extract_strided_slice %141 {offsets = [0, 384], sizes = [8, 128], strides = [1, 1]} : vector<8x512xf32> to vector<8x128xf32>
    %149 = math.tanh %148 : vector<8x128xf32>
    %150 = vector.extract_strided_slice %147 {offsets = [0, 0], sizes = [8, 128], strides = [1, 1]} : vector<8x384xf32> to vector<8x128xf32>
    %151 = vector.extract_strided_slice %147 {offsets = [0, 128], sizes = [8, 128], strides = [1, 1]} : vector<8x384xf32> to vector<8x128xf32>
    %152 = vector.extract_strided_slice %147 {offsets = [0, 256], sizes = [8, 128], strides = [1, 1]} : vector<8x384xf32> to vector<8x128xf32>
    %153 = arith.mulf %151, %129 : vector<8x128xf32>
    %154 = arith.mulf %150, %149 : vector<8x128xf32>
    %155 = arith.addf %153, %154 : vector<8x128xf32>
    %156 = math.tanh %155 : vector<8x128xf32>
    %157 = arith.mulf %152, %156 : vector<8x128xf32>
    %158 = arith.truncf %157 : vector<8x128xf32> to vector<8x128xbf16>
    %c5_45 = arith.constant 5 : index
    %c0_46 = arith.constant 0 : index
    %c0_47 = arith.constant 0 : index
    %159 = vector.load %arg5[%c5_45, %c0_46, %c0_47] : memref<16x8x128xbf16, #tpu.memory_space<vmem>>, vector<1x8x128xbf16>
    %160 = vector.shape_cast %159 : vector<1x8x128xbf16> to vector<8x128xbf16>
    %161 = vector.shape_cast %158 : vector<8x128xbf16> to vector<1x8x128xbf16>
    tpu.vector_store %arg5[%c5_45, %c0_46, %c0_47], %161 {strides = array<i32>} : memref<16x8x128xbf16, #tpu.memory_space<vmem>>, vector<1x8x128xbf16>,
    %c6 = arith.constant 6 : index
    %c0_48 = arith.constant 0 : index
    %c0_49 = arith.constant 0 : index
    %162 = vector.load %arg2[%c6, %c0_48, %c0_49] : memref<16x8x512xbf16, #tpu.memory_space<vmem>>, vector<1x8x512xbf16>
    %163 = vector.shape_cast %162 : vector<1x8x512xbf16> to vector<8x512xbf16>
    %164 = arith.extf %163 : vector<8x512xbf16> to vector<8x512xf32>
    %165 = arith.truncf %157 : vector<8x128xf32> to vector<8x128xbf16>
    %cst_50 = arith.constant dense<0.000000e+00> : vector<8x512xf32>
    %166 = tpu.matmul %165, %3, %cst_50 {dimension_numbers = #tpu.dot_dimension_numbers<[1], [0], [0], [1], [0, 0, 1, 1], [], []>} : vector<8x128xbf16>, vector<128x512xbf16>, vector<8x512xf32> -> vector<8x512xf32>
    %167 = arith.addf %164, %166 : vector<8x512xf32>
    %168 = vector.extract_strided_slice %167 {offsets = [0, 0], sizes = [8, 384], strides = [1, 1]} : vector<8x512xf32> to vector<8x384xf32>
    %169 = arith.negf %168 : vector<8x384xf32>
    %170 = math.exp %169 : vector<8x384xf32>
    %cst_51 = arith.constant 1.000000e+00 : f32
    %171 = vector.broadcast %cst_51 : f32 to vector<8x384xf32>
    %172 = arith.addf %171, %170 : vector<8x384xf32>
    %173 = arith.divf %171, %172 : vector<8x384xf32>
    %174 = vector.extract_strided_slice %167 {offsets = [0, 384], sizes = [8, 128], strides = [1, 1]} : vector<8x512xf32> to vector<8x128xf32>
    %175 = math.tanh %174 : vector<8x128xf32>
    %176 = vector.extract_strided_slice %173 {offsets = [0, 0], sizes = [8, 128], strides = [1, 1]} : vector<8x384xf32> to vector<8x128xf32>
    %177 = vector.extract_strided_slice %173 {offsets = [0, 128], sizes = [8, 128], strides = [1, 1]} : vector<8x384xf32> to vector<8x128xf32>
    %178 = vector.extract_strided_slice %173 {offsets = [0, 256], sizes = [8, 128], strides = [1, 1]} : vector<8x384xf32> to vector<8x128xf32>
    %179 = arith.mulf %177, %155 : vector<8x128xf32>
    %180 = arith.mulf %176, %175 : vector<8x128xf32>
    %181 = arith.addf %179, %180 : vector<8x128xf32>
    %182 = math.tanh %181 : vector<8x128xf32>
    %183 = arith.mulf %178, %182 : vector<8x128xf32>
    %184 = arith.truncf %183 : vector<8x128xf32> to vector<8x128xbf16>
    %c6_52 = arith.constant 6 : index
    %c0_53 = arith.constant 0 : index
    %c0_54 = arith.constant 0 : index
    %185 = vector.load %arg5[%c6_52, %c0_53, %c0_54] : memref<16x8x128xbf16, #tpu.memory_space<vmem>>, vector<1x8x128xbf16>
    %186 = vector.shape_cast %185 : vector<1x8x128xbf16> to vector<8x128xbf16>
    %187 = vector.shape_cast %184 : vector<8x128xbf16> to vector<1x8x128xbf16>
    tpu.vector_store %arg5[%c6_52, %c0_53, %c0_54], %187 {strides = array<i32>} : memref<16x8x128xbf16, #tpu.memory_space<vmem>>, vector<1x8x128xbf16>,
    %c7 = arith.constant 7 : index
    %c0_55 = arith.constant 0 : index
    %c0_56 = arith.constant 0 : index
    %188 = vector.load %arg2[%c7, %c0_55, %c0_56] : memref<16x8x512xbf16, #tpu.memory_space<vmem>>, vector<1x8x512xbf16>
    %189 = vector.shape_cast %188 : vector<1x8x512xbf16> to vector<8x512xbf16>
    %190 = arith.extf %189 : vector<8x512xbf16> to vector<8x512xf32>
    %191 = arith.truncf %183 : vector<8x128xf32> to vector<8x128xbf16>
    %cst_57 = arith.constant dense<0.000000e+00> : vector<8x512xf32>
    %192 = tpu.matmul %191, %3, %cst_57 {dimension_numbers = #tpu.dot_dimension_numbers<[1], [0], [0], [1], [0, 0, 1, 1], [], []>} : vector<8x128xbf16>, vector<128x512xbf16>, vector<8x512xf32> -> vector<8x512xf32>
    %193 = arith.addf %190, %192 : vector<8x512xf32>
    %194 = vector.extract_strided_slice %193 {offsets = [0, 0], sizes = [8, 384], strides = [1, 1]} : vector<8x512xf32> to vector<8x384xf32>
    %195 = arith.negf %194 : vector<8x384xf32>
    %196 = math.exp %195 : vector<8x384xf32>
    %cst_58 = arith.constant 1.000000e+00 : f32
    %197 = vector.broadcast %cst_58 : f32 to vector<8x384xf32>
    %198 = arith.addf %197, %196 : vector<8x384xf32>
    %199 = arith.divf %197, %198 : vector<8x384xf32>
    %200 = vector.extract_strided_slice %193 {offsets = [0, 384], sizes = [8, 128], strides = [1, 1]} : vector<8x512xf32> to vector<8x128xf32>
    %201 = math.tanh %200 : vector<8x128xf32>
    %202 = vector.extract_strided_slice %199 {offsets = [0, 0], sizes = [8, 128], strides = [1, 1]} : vector<8x384xf32> to vector<8x128xf32>
    %203 = vector.extract_strided_slice %199 {offsets = [0, 128], sizes = [8, 128], strides = [1, 1]} : vector<8x384xf32> to vector<8x128xf32>
    %204 = vector.extract_strided_slice %199 {offsets = [0, 256], sizes = [8, 128], strides = [1, 1]} : vector<8x384xf32> to vector<8x128xf32>
    %205 = arith.mulf %203, %181 : vector<8x128xf32>
    %206 = arith.mulf %202, %201 : vector<8x128xf32>
    %207 = arith.addf %205, %206 : vector<8x128xf32>
    %208 = math.tanh %207 : vector<8x128xf32>
    %209 = arith.mulf %204, %208 : vector<8x128xf32>
    %210 = arith.truncf %209 : vector<8x128xf32> to vector<8x128xbf16>
    %c7_59 = arith.constant 7 : index
    %c0_60 = arith.constant 0 : index
    %c0_61 = arith.constant 0 : index
    %211 = vector.load %arg5[%c7_59, %c0_60, %c0_61] : memref<16x8x128xbf16, #tpu.memory_space<vmem>>, vector<1x8x128xbf16>
    %212 = vector.shape_cast %211 : vector<1x8x128xbf16> to vector<8x128xbf16>
    %213 = vector.shape_cast %210 : vector<8x128xbf16> to vector<1x8x128xbf16>
    tpu.vector_store %arg5[%c7_59, %c0_60, %c0_61], %213 {strides = array<i32>} : memref<16x8x128xbf16, #tpu.memory_space<vmem>>, vector<1x8x128xbf16>,
    %c8 = arith.constant 8 : index
    %c0_62 = arith.constant 0 : index
    %c0_63 = arith.constant 0 : index
    %214 = vector.load %arg2[%c8, %c0_62, %c0_63] : memref<16x8x512xbf16, #tpu.memory_space<vmem>>, vector<1x8x512xbf16>
    %215 = vector.shape_cast %214 : vector<1x8x512xbf16> to vector<8x512xbf16>
    %216 = arith.extf %215 : vector<8x512xbf16> to vector<8x512xf32>
    %217 = arith.truncf %209 : vector<8x128xf32> to vector<8x128xbf16>
    %cst_64 = arith.constant dense<0.000000e+00> : vector<8x512xf32>
    %218 = tpu.matmul %217, %3, %cst_64 {dimension_numbers = #tpu.dot_dimension_numbers<[1], [0], [0], [1], [0, 0, 1, 1], [], []>} : vector<8x128xbf16>, vector<128x512xbf16>, vector<8x512xf32> -> vector<8x512xf32>
    %219 = arith.addf %216, %218 : vector<8x512xf32>
    %220 = vector.extract_strided_slice %219 {offsets = [0, 0], sizes = [8, 384], strides = [1, 1]} : vector<8x512xf32> to vector<8x384xf32>
    %221 = arith.negf %220 : vector<8x384xf32>
    %222 = math.exp %221 : vector<8x384xf32>
    %cst_65 = arith.constant 1.000000e+00 : f32
    %223 = vector.broadcast %cst_65 : f32 to vector<8x384xf32>
    %224 = arith.addf %223, %222 : vector<8x384xf32>
    %225 = arith.divf %223, %224 : vector<8x384xf32>
    %226 = vector.extract_strided_slice %219 {offsets = [0, 384], sizes = [8, 128], strides = [1, 1]} : vector<8x512xf32> to vector<8x128xf32>
    %227 = math.tanh %226 : vector<8x128xf32>
    %228 = vector.extract_strided_slice %225 {offsets = [0, 0], sizes = [8, 128], strides = [1, 1]} : vector<8x384xf32> to vector<8x128xf32>
    %229 = vector.extract_strided_slice %225 {offsets = [0, 128], sizes = [8, 128], strides = [1, 1]} : vector<8x384xf32> to vector<8x128xf32>
    %230 = vector.extract_strided_slice %225 {offsets = [0, 256], sizes = [8, 128], strides = [1, 1]} : vector<8x384xf32> to vector<8x128xf32>
    %231 = arith.mulf %229, %207 : vector<8x128xf32>
    %232 = arith.mulf %228, %227 : vector<8x128xf32>
    %233 = arith.addf %231, %232 : vector<8x128xf32>
    %234 = math.tanh %233 : vector<8x128xf32>
    %235 = arith.mulf %230, %234 : vector<8x128xf32>
    %236 = arith.truncf %235 : vector<8x128xf32> to vector<8x128xbf16>
    %c8_66 = arith.constant 8 : index
    %c0_67 = arith.constant 0 : index
    %c0_68 = arith.constant 0 : index
    %237 = vector.load %arg5[%c8_66, %c0_67, %c0_68] : memref<16x8x128xbf16, #tpu.memory_space<vmem>>, vector<1x8x128xbf16>
    %238 = vector.shape_cast %237 : vector<1x8x128xbf16> to vector<8x128xbf16>
    %239 = vector.shape_cast %236 : vector<8x128xbf16> to vector<1x8x128xbf16>
    tpu.vector_store %arg5[%c8_66, %c0_67, %c0_68], %239 {strides = array<i32>} : memref<16x8x128xbf16, #tpu.memory_space<vmem>>, vector<1x8x128xbf16>,
    %c9 = arith.constant 9 : index
    %c0_69 = arith.constant 0 : index
    %c0_70 = arith.constant 0 : index
    %240 = vector.load %arg2[%c9, %c0_69, %c0_70] : memref<16x8x512xbf16, #tpu.memory_space<vmem>>, vector<1x8x512xbf16>
    %241 = vector.shape_cast %240 : vector<1x8x512xbf16> to vector<8x512xbf16>
    %242 = arith.extf %241 : vector<8x512xbf16> to vector<8x512xf32>
    %243 = arith.truncf %235 : vector<8x128xf32> to vector<8x128xbf16>
    %cst_71 = arith.constant dense<0.000000e+00> : vector<8x512xf32>
    %244 = tpu.matmul %243, %3, %cst_71 {dimension_numbers = #tpu.dot_dimension_numbers<[1], [0], [0], [1], [0, 0, 1, 1], [], []>} : vector<8x128xbf16>, vector<128x512xbf16>, vector<8x512xf32> -> vector<8x512xf32>
    %245 = arith.addf %242, %244 : vector<8x512xf32>
    %246 = vector.extract_strided_slice %245 {offsets = [0, 0], sizes = [8, 384], strides = [1, 1]} : vector<8x512xf32> to vector<8x384xf32>
    %247 = arith.negf %246 : vector<8x384xf32>
    %248 = math.exp %247 : vector<8x384xf32>
    %cst_72 = arith.constant 1.000000e+00 : f32
    %249 = vector.broadcast %cst_72 : f32 to vector<8x384xf32>
    %250 = arith.addf %249, %248 : vector<8x384xf32>
    %251 = arith.divf %249, %250 : vector<8x384xf32>
    %252 = vector.extract_strided_slice %245 {offsets = [0, 384], sizes = [8, 128], strides = [1, 1]} : vector<8x512xf32> to vector<8x128xf32>
    %253 = math.tanh %252 : vector<8x128xf32>
    %254 = vector.extract_strided_slice %251 {offsets = [0, 0], sizes = [8, 128], strides = [1, 1]} : vector<8x384xf32> to vector<8x128xf32>
    %255 = vector.extract_strided_slice %251 {offsets = [0, 128], sizes = [8, 128], strides = [1, 1]} : vector<8x384xf32> to vector<8x128xf32>
    %256 = vector.extract_strided_slice %251 {offsets = [0, 256], sizes = [8, 128], strides = [1, 1]} : vector<8x384xf32> to vector<8x128xf32>
    %257 = arith.mulf %255, %233 : vector<8x128xf32>
    %258 = arith.mulf %254, %253 : vector<8x128xf32>
    %259 = arith.addf %257, %258 : vector<8x128xf32>
    %260 = math.tanh %259 : vector<8x128xf32>
    %261 = arith.mulf %256, %260 : vector<8x128xf32>
    %262 = arith.truncf %261 : vector<8x128xf32> to vector<8x128xbf16>
    %c9_73 = arith.constant 9 : index
    %c0_74 = arith.constant 0 : index
    %c0_75 = arith.constant 0 : index
    %263 = vector.load %arg5[%c9_73, %c0_74, %c0_75] : memref<16x8x128xbf16, #tpu.memory_space<vmem>>, vector<1x8x128xbf16>
    %264 = vector.shape_cast %263 : vector<1x8x128xbf16> to vector<8x128xbf16>
    %265 = vector.shape_cast %262 : vector<8x128xbf16> to vector<1x8x128xbf16>
    tpu.vector_store %arg5[%c9_73, %c0_74, %c0_75], %265 {strides = array<i32>} : memref<16x8x128xbf16, #tpu.memory_space<vmem>>, vector<1x8x128xbf16>,
    %c10 = arith.constant 10 : index
    %c0_76 = arith.constant 0 : index
    %c0_77 = arith.constant 0 : index
    %266 = vector.load %arg2[%c10, %c0_76, %c0_77] : memref<16x8x512xbf16, #tpu.memory_space<vmem>>, vector<1x8x512xbf16>
    %267 = vector.shape_cast %266 : vector<1x8x512xbf16> to vector<8x512xbf16>
    %268 = arith.extf %267 : vector<8x512xbf16> to vector<8x512xf32>
    %269 = arith.truncf %261 : vector<8x128xf32> to vector<8x128xbf16>
    %cst_78 = arith.constant dense<0.000000e+00> : vector<8x512xf32>
    %270 = tpu.matmul %269, %3, %cst_78 {dimension_numbers = #tpu.dot_dimension_numbers<[1], [0], [0], [1], [0, 0, 1, 1], [], []>} : vector<8x128xbf16>, vector<128x512xbf16>, vector<8x512xf32> -> vector<8x512xf32>
    %271 = arith.addf %268, %270 : vector<8x512xf32>
    %272 = vector.extract_strided_slice %271 {offsets = [0, 0], sizes = [8, 384], strides = [1, 1]} : vector<8x512xf32> to vector<8x384xf32>
    %273 = arith.negf %272 : vector<8x384xf32>
    %274 = math.exp %273 : vector<8x384xf32>
    %cst_79 = arith.constant 1.000000e+00 : f32
    %275 = vector.broadcast %cst_79 : f32 to vector<8x384xf32>
    %276 = arith.addf %275, %274 : vector<8x384xf32>
    %277 = arith.divf %275, %276 : vector<8x384xf32>
    %278 = vector.extract_strided_slice %271 {offsets = [0, 384], sizes = [8, 128], strides = [1, 1]} : vector<8x512xf32> to vector<8x128xf32>
    %279 = math.tanh %278 : vector<8x128xf32>
    %280 = vector.extract_strided_slice %277 {offsets = [0, 0], sizes = [8, 128], strides = [1, 1]} : vector<8x384xf32> to vector<8x128xf32>
    %281 = vector.extract_strided_slice %277 {offsets = [0, 128], sizes = [8, 128], strides = [1, 1]} : vector<8x384xf32> to vector<8x128xf32>
    %282 = vector.extract_strided_slice %277 {offsets = [0, 256], sizes = [8, 128], strides = [1, 1]} : vector<8x384xf32> to vector<8x128xf32>
    %283 = arith.mulf %281, %259 : vector<8x128xf32>
    %284 = arith.mulf %280, %279 : vector<8x128xf32>
    %285 = arith.addf %283, %284 : vector<8x128xf32>
    %286 = math.tanh %285 : vector<8x128xf32>
    %287 = arith.mulf %282, %286 : vector<8x128xf32>
    %288 = arith.truncf %287 : vector<8x128xf32> to vector<8x128xbf16>
    %c10_80 = arith.constant 10 : index
    %c0_81 = arith.constant 0 : index
    %c0_82 = arith.constant 0 : index
    %289 = vector.load %arg5[%c10_80, %c0_81, %c0_82] : memref<16x8x128xbf16, #tpu.memory_space<vmem>>, vector<1x8x128xbf16>
    %290 = vector.shape_cast %289 : vector<1x8x128xbf16> to vector<8x128xbf16>
    %291 = vector.shape_cast %288 : vector<8x128xbf16> to vector<1x8x128xbf16>
    tpu.vector_store %arg5[%c10_80, %c0_81, %c0_82], %291 {strides = array<i32>} : memref<16x8x128xbf16, #tpu.memory_space<vmem>>, vector<1x8x128xbf16>,
    %c11 = arith.constant 11 : index
    %c0_83 = arith.constant 0 : index
    %c0_84 = arith.constant 0 : index
    %292 = vector.load %arg2[%c11, %c0_83, %c0_84] : memref<16x8x512xbf16, #tpu.memory_space<vmem>>, vector<1x8x512xbf16>
    %293 = vector.shape_cast %292 : vector<1x8x512xbf16> to vector<8x512xbf16>
    %294 = arith.extf %293 : vector<8x512xbf16> to vector<8x512xf32>
    %295 = arith.truncf %287 : vector<8x128xf32> to vector<8x128xbf16>
    %cst_85 = arith.constant dense<0.000000e+00> : vector<8x512xf32>
    %296 = tpu.matmul %295, %3, %cst_85 {dimension_numbers = #tpu.dot_dimension_numbers<[1], [0], [0], [1], [0, 0, 1, 1], [], []>} : vector<8x128xbf16>, vector<128x512xbf16>, vector<8x512xf32> -> vector<8x512xf32>
    %297 = arith.addf %294, %296 : vector<8x512xf32>
    %298 = vector.extract_strided_slice %297 {offsets = [0, 0], sizes = [8, 384], strides = [1, 1]} : vector<8x512xf32> to vector<8x384xf32>
    %299 = arith.negf %298 : vector<8x384xf32>
    %300 = math.exp %299 : vector<8x384xf32>
    %cst_86 = arith.constant 1.000000e+00 : f32
    %301 = vector.broadcast %cst_86 : f32 to vector<8x384xf32>
    %302 = arith.addf %301, %300 : vector<8x384xf32>
    %303 = arith.divf %301, %302 : vector<8x384xf32>
    %304 = vector.extract_strided_slice %297 {offsets = [0, 384], sizes = [8, 128], strides = [1, 1]} : vector<8x512xf32> to vector<8x128xf32>
    %305 = math.tanh %304 : vector<8x128xf32>
    %306 = vector.extract_strided_slice %303 {offsets = [0, 0], sizes = [8, 128], strides = [1, 1]} : vector<8x384xf32> to vector<8x128xf32>
    %307 = vector.extract_strided_slice %303 {offsets = [0, 128], sizes = [8, 128], strides = [1, 1]} : vector<8x384xf32> to vector<8x128xf32>
    %308 = vector.extract_strided_slice %303 {offsets = [0, 256], sizes = [8, 128], strides = [1, 1]} : vector<8x384xf32> to vector<8x128xf32>
    %309 = arith.mulf %307, %285 : vector<8x128xf32>
    %310 = arith.mulf %306, %305 : vector<8x128xf32>
    %311 = arith.addf %309, %310 : vector<8x128xf32>
    %312 = math.tanh %311 : vector<8x128xf32>
    %313 = arith.mulf %308, %312 : vector<8x128xf32>
    %314 = arith.truncf %313 : vector<8x128xf32> to vector<8x128xbf16>
    %c11_87 = arith.constant 11 : index
    %c0_88 = arith.constant 0 : index
    %c0_89 = arith.constant 0 : index
    %315 = vector.load %arg5[%c11_87, %c0_88, %c0_89] : memref<16x8x128xbf16, #tpu.memory_space<vmem>>, vector<1x8x128xbf16>
    %316 = vector.shape_cast %315 : vector<1x8x128xbf16> to vector<8x128xbf16>
    %317 = vector.shape_cast %314 : vector<8x128xbf16> to vector<1x8x128xbf16>
    tpu.vector_store %arg5[%c11_87, %c0_88, %c0_89], %317 {strides = array<i32>} : memref<16x8x128xbf16, #tpu.memory_space<vmem>>, vector<1x8x128xbf16>,
    %c12 = arith.constant 12 : index
    %c0_90 = arith.constant 0 : index
    %c0_91 = arith.constant 0 : index
    %318 = vector.load %arg2[%c12, %c0_90, %c0_91] : memref<16x8x512xbf16, #tpu.memory_space<vmem>>, vector<1x8x512xbf16>
    %319 = vector.shape_cast %318 : vector<1x8x512xbf16> to vector<8x512xbf16>
    %320 = arith.extf %319 : vector<8x512xbf16> to vector<8x512xf32>
    %321 = arith.truncf %313 : vector<8x128xf32> to vector<8x128xbf16>
    %cst_92 = arith.constant dense<0.000000e+00> : vector<8x512xf32>
    %322 = tpu.matmul %321, %3, %cst_92 {dimension_numbers = #tpu.dot_dimension_numbers<[1], [0], [0], [1], [0, 0, 1, 1], [], []>} : vector<8x128xbf16>, vector<128x512xbf16>, vector<8x512xf32> -> vector<8x512xf32>
    %323 = arith.addf %320, %322 : vector<8x512xf32>
    %324 = vector.extract_strided_slice %323 {offsets = [0, 0], sizes = [8, 384], strides = [1, 1]} : vector<8x512xf32> to vector<8x384xf32>
    %325 = arith.negf %324 : vector<8x384xf32>
    %326 = math.exp %325 : vector<8x384xf32>
    %cst_93 = arith.constant 1.000000e+00 : f32
    %327 = vector.broadcast %cst_93 : f32 to vector<8x384xf32>
    %328 = arith.addf %327, %326 : vector<8x384xf32>
    %329 = arith.divf %327, %328 : vector<8x384xf32>
    %330 = vector.extract_strided_slice %323 {offsets = [0, 384], sizes = [8, 128], strides = [1, 1]} : vector<8x512xf32> to vector<8x128xf32>
    %331 = math.tanh %330 : vector<8x128xf32>
    %332 = vector.extract_strided_slice %329 {offsets = [0, 0], sizes = [8, 128], strides = [1, 1]} : vector<8x384xf32> to vector<8x128xf32>
    %333 = vector.extract_strided_slice %329 {offsets = [0, 128], sizes = [8, 128], strides = [1, 1]} : vector<8x384xf32> to vector<8x128xf32>
    %334 = vector.extract_strided_slice %329 {offsets = [0, 256], sizes = [8, 128], strides = [1, 1]} : vector<8x384xf32> to vector<8x128xf32>
    %335 = arith.mulf %333, %311 : vector<8x128xf32>
    %336 = arith.mulf %332, %331 : vector<8x128xf32>
    %337 = arith.addf %335, %336 : vector<8x128xf32>
    %338 = math.tanh %337 : vector<8x128xf32>
    %339 = arith.mulf %334, %338 : vector<8x128xf32>
    %340 = arith.truncf %339 : vector<8x128xf32> to vector<8x128xbf16>
    %c12_94 = arith.constant 12 : index
    %c0_95 = arith.constant 0 : index
    %c0_96 = arith.constant 0 : index
    %341 = vector.load %arg5[%c12_94, %c0_95, %c0_96] : memref<16x8x128xbf16, #tpu.memory_space<vmem>>, vector<1x8x128xbf16>
    %342 = vector.shape_cast %341 : vector<1x8x128xbf16> to vector<8x128xbf16>
    %343 = vector.shape_cast %340 : vector<8x128xbf16> to vector<1x8x128xbf16>
    tpu.vector_store %arg5[%c12_94, %c0_95, %c0_96], %343 {strides = array<i32>} : memref<16x8x128xbf16, #tpu.memory_space<vmem>>, vector<1x8x128xbf16>,
    %c13 = arith.constant 13 : index
    %c0_97 = arith.constant 0 : index
    %c0_98 = arith.constant 0 : index
    %344 = vector.load %arg2[%c13, %c0_97, %c0_98] : memref<16x8x512xbf16, #tpu.memory_space<vmem>>, vector<1x8x512xbf16>
    %345 = vector.shape_cast %344 : vector<1x8x512xbf16> to vector<8x512xbf16>
    %346 = arith.extf %345 : vector<8x512xbf16> to vector<8x512xf32>
    %347 = arith.truncf %339 : vector<8x128xf32> to vector<8x128xbf16>
    %cst_99 = arith.constant dense<0.000000e+00> : vector<8x512xf32>
    %348 = tpu.matmul %347, %3, %cst_99 {dimension_numbers = #tpu.dot_dimension_numbers<[1], [0], [0], [1], [0, 0, 1, 1], [], []>} : vector<8x128xbf16>, vector<128x512xbf16>, vector<8x512xf32> -> vector<8x512xf32>
    %349 = arith.addf %346, %348 : vector<8x512xf32>
    %350 = vector.extract_strided_slice %349 {offsets = [0, 0], sizes = [8, 384], strides = [1, 1]} : vector<8x512xf32> to vector<8x384xf32>
    %351 = arith.negf %350 : vector<8x384xf32>
    %352 = math.exp %351 : vector<8x384xf32>
    %cst_100 = arith.constant 1.000000e+00 : f32
    %353 = vector.broadcast %cst_100 : f32 to vector<8x384xf32>
    %354 = arith.addf %353, %352 : vector<8x384xf32>
    %355 = arith.divf %353, %354 : vector<8x384xf32>
    %356 = vector.extract_strided_slice %349 {offsets = [0, 384], sizes = [8, 128], strides = [1, 1]} : vector<8x512xf32> to vector<8x128xf32>
    %357 = math.tanh %356 : vector<8x128xf32>
    %358 = vector.extract_strided_slice %355 {offsets = [0, 0], sizes = [8, 128], strides = [1, 1]} : vector<8x384xf32> to vector<8x128xf32>
    %359 = vector.extract_strided_slice %355 {offsets = [0, 128], sizes = [8, 128], strides = [1, 1]} : vector<8x384xf32> to vector<8x128xf32>
    %360 = vector.extract_strided_slice %355 {offsets = [0, 256], sizes = [8, 128], strides = [1, 1]} : vector<8x384xf32> to vector<8x128xf32>
    %361 = arith.mulf %359, %337 : vector<8x128xf32>
    %362 = arith.mulf %358, %357 : vector<8x128xf32>
    %363 = arith.addf %361, %362 : vector<8x128xf32>
    %364 = math.tanh %363 : vector<8x128xf32>
    %365 = arith.mulf %360, %364 : vector<8x128xf32>
    %366 = arith.truncf %365 : vector<8x128xf32> to vector<8x128xbf16>
    %c13_101 = arith.constant 13 : index
    %c0_102 = arith.constant 0 : index
    %c0_103 = arith.constant 0 : index
    %367 = vector.load %arg5[%c13_101, %c0_102, %c0_103] : memref<16x8x128xbf16, #tpu.memory_space<vmem>>, vector<1x8x128xbf16>
    %368 = vector.shape_cast %367 : vector<1x8x128xbf16> to vector<8x128xbf16>
    %369 = vector.shape_cast %366 : vector<8x128xbf16> to vector<1x8x128xbf16>
    tpu.vector_store %arg5[%c13_101, %c0_102, %c0_103], %369 {strides = array<i32>} : memref<16x8x128xbf16, #tpu.memory_space<vmem>>, vector<1x8x128xbf16>,
    %c14 = arith.constant 14 : index
    %c0_104 = arith.constant 0 : index
    %c0_105 = arith.constant 0 : index
    %370 = vector.load %arg2[%c14, %c0_104, %c0_105] : memref<16x8x512xbf16, #tpu.memory_space<vmem>>, vector<1x8x512xbf16>
    %371 = vector.shape_cast %370 : vector<1x8x512xbf16> to vector<8x512xbf16>
    %372 = arith.extf %371 : vector<8x512xbf16> to vector<8x512xf32>
    %373 = arith.truncf %365 : vector<8x128xf32> to vector<8x128xbf16>
    %cst_106 = arith.constant dense<0.000000e+00> : vector<8x512xf32>
    %374 = tpu.matmul %373, %3, %cst_106 {dimension_numbers = #tpu.dot_dimension_numbers<[1], [0], [0], [1], [0, 0, 1, 1], [], []>} : vector<8x128xbf16>, vector<128x512xbf16>, vector<8x512xf32> -> vector<8x512xf32>
    %375 = arith.addf %372, %374 : vector<8x512xf32>
    %376 = vector.extract_strided_slice %375 {offsets = [0, 0], sizes = [8, 384], strides = [1, 1]} : vector<8x512xf32> to vector<8x384xf32>
    %377 = arith.negf %376 : vector<8x384xf32>
    %378 = math.exp %377 : vector<8x384xf32>
    %cst_107 = arith.constant 1.000000e+00 : f32
    %379 = vector.broadcast %cst_107 : f32 to vector<8x384xf32>
    %380 = arith.addf %379, %378 : vector<8x384xf32>
    %381 = arith.divf %379, %380 : vector<8x384xf32>
    %382 = vector.extract_strided_slice %375 {offsets = [0, 384], sizes = [8, 128], strides = [1, 1]} : vector<8x512xf32> to vector<8x128xf32>
    %383 = math.tanh %382 : vector<8x128xf32>
    %384 = vector.extract_strided_slice %381 {offsets = [0, 0], sizes = [8, 128], strides = [1, 1]} : vector<8x384xf32> to vector<8x128xf32>
    %385 = vector.extract_strided_slice %381 {offsets = [0, 128], sizes = [8, 128], strides = [1, 1]} : vector<8x384xf32> to vector<8x128xf32>
    %386 = vector.extract_strided_slice %381 {offsets = [0, 256], sizes = [8, 128], strides = [1, 1]} : vector<8x384xf32> to vector<8x128xf32>
    %387 = arith.mulf %385, %363 : vector<8x128xf32>
    %388 = arith.mulf %384, %383 : vector<8x128xf32>
    %389 = arith.addf %387, %388 : vector<8x128xf32>
    %390 = math.tanh %389 : vector<8x128xf32>
    %391 = arith.mulf %386, %390 : vector<8x128xf32>
    %392 = arith.truncf %391 : vector<8x128xf32> to vector<8x128xbf16>
    %c14_108 = arith.constant 14 : index
    %c0_109 = arith.constant 0 : index
    %c0_110 = arith.constant 0 : index
    %393 = vector.load %arg5[%c14_108, %c0_109, %c0_110] : memref<16x8x128xbf16, #tpu.memory_space<vmem>>, vector<1x8x128xbf16>
    %394 = vector.shape_cast %393 : vector<1x8x128xbf16> to vector<8x128xbf16>
    %395 = vector.shape_cast %392 : vector<8x128xbf16> to vector<1x8x128xbf16>
    tpu.vector_store %arg5[%c14_108, %c0_109, %c0_110], %395 {strides = array<i32>} : memref<16x8x128xbf16, #tpu.memory_space<vmem>>, vector<1x8x128xbf16>,
    %c15 = arith.constant 15 : index
    %c0_111 = arith.constant 0 : index
    %c0_112 = arith.constant 0 : index
    %396 = vector.load %arg2[%c15, %c0_111, %c0_112] : memref<16x8x512xbf16, #tpu.memory_space<vmem>>, vector<1x8x512xbf16>
    %397 = vector.shape_cast %396 : vector<1x8x512xbf16> to vector<8x512xbf16>
    %398 = arith.extf %397 : vector<8x512xbf16> to vector<8x512xf32>
    %399 = arith.truncf %391 : vector<8x128xf32> to vector<8x128xbf16>
    %cst_113 = arith.constant dense<0.000000e+00> : vector<8x512xf32>
    %400 = tpu.matmul %399, %3, %cst_113 {dimension_numbers = #tpu.dot_dimension_numbers<[1], [0], [0], [1], [0, 0, 1, 1], [], []>} : vector<8x128xbf16>, vector<128x512xbf16>, vector<8x512xf32> -> vector<8x512xf32>
    %401 = arith.addf %398, %400 : vector<8x512xf32>
    %402 = vector.extract_strided_slice %401 {offsets = [0, 0], sizes = [8, 384], strides = [1, 1]} : vector<8x512xf32> to vector<8x384xf32>
    %403 = arith.negf %402 : vector<8x384xf32>
    %404 = math.exp %403 : vector<8x384xf32>
    %cst_114 = arith.constant 1.000000e+00 : f32
    %405 = vector.broadcast %cst_114 : f32 to vector<8x384xf32>
    %406 = arith.addf %405, %404 : vector<8x384xf32>
    %407 = arith.divf %405, %406 : vector<8x384xf32>
    %408 = vector.extract_strided_slice %401 {offsets = [0, 384], sizes = [8, 128], strides = [1, 1]} : vector<8x512xf32> to vector<8x128xf32>
    %409 = math.tanh %408 : vector<8x128xf32>
    %410 = vector.extract_strided_slice %407 {offsets = [0, 0], sizes = [8, 128], strides = [1, 1]} : vector<8x384xf32> to vector<8x128xf32>
    %411 = vector.extract_strided_slice %407 {offsets = [0, 128], sizes = [8, 128], strides = [1, 1]} : vector<8x384xf32> to vector<8x128xf32>
    %412 = vector.extract_strided_slice %407 {offsets = [0, 256], sizes = [8, 128], strides = [1, 1]} : vector<8x384xf32> to vector<8x128xf32>
    %413 = arith.mulf %411, %389 : vector<8x128xf32>
    %414 = arith.mulf %410, %409 : vector<8x128xf32>
    %415 = arith.addf %413, %414 : vector<8x128xf32>
    %416 = math.tanh %415 : vector<8x128xf32>
    %417 = arith.mulf %412, %416 : vector<8x128xf32>
    %418 = arith.truncf %417 : vector<8x128xf32> to vector<8x128xbf16>
    %c15_115 = arith.constant 15 : index
    %c0_116 = arith.constant 0 : index
    %c0_117 = arith.constant 0 : index
    %419 = vector.load %arg5[%c15_115, %c0_116, %c0_117] : memref<16x8x128xbf16, #tpu.memory_space<vmem>>, vector<1x8x128xbf16>
    %420 = vector.shape_cast %419 : vector<1x8x128xbf16> to vector<8x128xbf16>
    %421 = vector.shape_cast %418 : vector<8x128xbf16> to vector<1x8x128xbf16>
    tpu.vector_store %arg5[%c15_115, %c0_116, %c0_117], %421 {strides = array<i32>} : memref<16x8x128xbf16, #tpu.memory_space<vmem>>, vector<1x8x128xbf16>,
    %c0_118 = arith.constant 0 : index
    %c0_119 = arith.constant 0 : index
    %422 = vector.load %arg6[%c0_118, %c0_119] : memref<8x128xf32, #tpu.memory_space<vmem>>, vector<8x128xf32>
    tpu.vector_store %arg6[%c0_118, %c0_119], %417 {strides = array<i32>} : memref<8x128xf32, #tpu.memory_space<vmem>>, vector<8x128xf32>,
    %c0_120 = arith.constant 0 : index
    %c0_121 = arith.constant 0 : index
    %423 = vector.load %arg7[%c0_120, %c0_121] : memref<8x128xf32, #tpu.memory_space<vmem>>, vector<8x128xf32>
    tpu.vector_store %arg7[%c0_120, %c0_121], %415 {strides = array<i32>} : memref<8x128xf32, #tpu.memory_space<vmem>>, vector<8x128xf32>,
    return
  }
  func.func @transform_0(%arg0: i32, %arg1: i32) -> (i32, i32, i32) {
    %c0_i32 = arith.constant 0 : i32
    %c0_i32_0 = arith.constant 0 : i32
    return %arg1, %arg0, %c0_i32 : i32, i32, i32
  }
  func.func @transform_1(%arg0: i32, %arg1: i32) -> (i32, i32) {
    %c0_i32 = arith.constant 0 : i32
    %c0_i32_0 = arith.constant 0 : i32
    return %arg0, %c0_i32 : i32, i32
  }
  func.func @transform_2(%arg0: i32, %arg1: i32) -> (i32, i32) {
    %c0_i32 = arith.constant 0 : i32
    %c0_i32_0 = arith.constant 0 : i32
    %c0_i32_1 = arith.constant 0 : i32
    return %c0_i32, %c0_i32_0 : i32, i32
  }
  func.func @transform_3(%arg0: i32, %arg1: i32) -> (i32, i32, i32) {
    %c0_i32 = arith.constant 0 : i32
    %c0_i32_0 = arith.constant 0 : i32
    return %arg1, %arg0, %c0_i32 : i32, i32, i32
  }
}

</mosaic_0001>

<bundles_post_ra>
// kernel: music_vae_forward.9
= control target key start
LH: loop header
LB: loop body
LE: loop exit
PB: predicated region body
PF: predicated region fallthrough
CT: control target
= control target key end

     0   :  { %v203_v1 = vmov 0   ;;  %vm86_vm0 = vcmask 261120   ;;  %v26_v10 = vlaneseq  ;;  %s266_s1 = inlined_call_operand.vmem [shape: bf16[32,512], index: 1, kind: input, shape index: {}]   ;;  %s267_s0 = inlined_call_operand.vmem [shape: bf16[8,32], index: 0, kind: input, shape index: {}]   ;;  %s268_s2 = inlined_call_operand.vmem [shape: f32[1,512], index: 2, kind: input, shape index: {}]   ;;  %s269_s3 = inlined_call_operand.vmem [shape: f32[8,512], index: 3, kind: output, shape index: {}]  }
   0x1   :  { %v191_v0 = vld [vmem:[%s266_s1 + $0x4] ss:$16 sps:$4 sm:$0xff]   ;;  %122 = vmatprep.mubr.bf16.mxu0 %v203_v1  ;;  %163 = vmatprep.mubr.bf16.mxu1 %v203_v1  ;;  %v193_v2 = vld [vmem:[%s266_s1 + $0xc] ss:$16 sps:$4 sm:$0xff]   ;;  %v195_v3 = vld [vmem:[%s266_s1] ss:$16 sps:$4 sm:$0xff]  }
   0x2   :  { %90 = vmatprep.subr.bf16.mxu0 %v191_v0  ;;  %v196_v4 = vld [vmem:[%s266_s1 + $0x8] ss:$16 sps:$4 sm:$0xff]   ;;  %131 = vmatprep.subr.bf16.mxu1 %v193_v2  ;;  %v197_v5 = vld [vmem:[%s266_s1 + $0x24] ss:$16 sps:$4 sm:$0xff]   ;;  %v199_v6 = vld [vmem:[%s266_s1 + $0x2c] ss:$16 sps:$4 sm:$0xff]  }
   0x3   :  { %91 = vmatpush1.bf16.msra.mxu0 %v195_v3  ;;  %132 = vmatpush1.bf16.msra.mxu1 %v196_v4  ;;  %v201_v7 = vld [vmem:[%s266_s1 + $0x20] ss:$16 sps:$4 sm:$0xff]   ;;  %v202_v8 = vld [vmem:[%s266_s1 + $0x28] ss:$16 sps:$4 sm:$0xff]   ;;  %v27_v11 = vshrl.u32 %v26_v10, 7 }
   0x4   :  { %92 = vmatprep.subr.bf16.mxu0 %v197_v5  ;;  %133 = vmatprep.subr.bf16.mxu1 %v199_v6  ;;  %v15_v9 = vld [vmem:[%s267_s0] sm:$0xf] }
   0x5   :  { %v28_v12 = vsub.s32 0, %v27_v11  ;;  %v36_v13 = vsub.s32 2, %v27_v11  ;;  %v24_v14 = vld [vmem:[%s268_s2] sm:$0xf]  ;;  %v32_v15 = vsub.s32 1, %v27_v11  ;;  %v40_v16 = vsub.s32 3, %v27_v11 }
   0x7   :  { %93 = vmatpush1.bf16.msra.mxu0 %v201_v7  ;;  %134 = vmatpush1.bf16.msra.mxu1 %v202_v8  ;;  %v29_v17 = vrot.slane %v24_v14, %v28_v12  ;;  %v37_v18 = vrot.slane %v24_v14, %v36_v13  ;;  %v33_v19 = vrot.slane %v24_v14, %v32_v15 }
   0x8   :  { %v41_v20 = vrot.slane %v24_v14, %v40_v16 }
   0xa   :  { %188 = vmatmul.mubr.msk.bf16.vlgmr.msra.gmra.mrb[0].mxu0 %vm86_vm0, %v15_v9  ;;  %189 = vmatmul.mubr.msk.bf16.vlgmr.msra.gmra.mrb[0].mxu1 %vm86_vm0, %v15_v9 }
  0xdd   :  { %v124_v21 = vpop.f32.mrb[0].mxu0  ;;  %v165_v22 = vpop.f32.mrb[0].mxu1 }
  0xde   :  { %v125_v23 = vadd.f32 %v124_v21, %v29_v17  ;;  %v166_v24 = vadd.f32 %v165_v22, %v37_v18  ;;  %v126_v25 = vpop.f32.mrb[1].mxu0  ;;  %v167_v26 = vpop.f32.mrb[1].mxu1 }
  0xdf   :  { %v127_v27 = vadd.f32 %v126_v25, %v33_v19  ;;  %v168_v28 = vadd.f32 %v167_v26, %v41_v20  ;;  %v128_v29 = vpop.f32.mrb[2].mxu0  ;;  %v169_v30 = vpop.f32.mrb[2].mxu1 }
  0xe0   :  { %172 = vst [vmem:[%s269_s3] sm:$0xff] %v125_v23  ;;  %174 = vst [vmem:[%s269_s3 + $0x10] sm:$0xff] %v166_v24  ;;  %v129_v31 = vpop.f32.mrb[3].mxu0  ;;  %v170_v32 = vpop.f32.mrb[3].mxu1 }
  0xe1   :  { %173 = vst [vmem:[%s269_s3 + $0x8] sm:$0xff] %v127_v27  ;;  %175 = vst [vmem:[%s269_s3 + $0x18] sm:$0xff] %v168_v28 }

// kernel: music_vae_forward.8
= control target key start
LH: loop header
LB: loop body
LE: loop exit
PB: predicated region body
PF: predicated region fallthrough
CT: control target
= control target key end

     0   :  { %s723_s12 = smov 0   ;;  %s837_s0 = inlined_call_operand.vmem [shape: bf16[128,32], index: 0, kind: input, shape index: {}]   ;;  %s838_s1 = inlined_call_operand.vmem [shape: bf16[32,512], index: 1, kind: input, shape index: {}]   ;;  %s839_s2 = inlined_call_operand.vmem [shape: f32[1,512], index: 2, kind: input, shape index: {}]   ;;  %s840_s3 = inlined_call_operand.vmem [shape: bf16[128,512], index: 3, kind: output, shape index: {}]  }
   0x1 LB: > { %s604_s13 = sadd.s32 4294967295, %s700_s12   ;;  %p608_p0 = scmp.ge.s32.totalorder %s700_s12, 1  ;;  %s700_s12 = sphi %s723_s12, %s13_s12  }
   0x2   : > { %p138_p1 = scmp.lt.s32.totalorder %s700_s12, 3 }
   0x4   : > { %p139_p2 = pnand %p608_p0, %p138_p1 }
   0x5   : > { %v678_v0 = vld [vmem:[%s838_s1 + $0x4] ss:$16 sps:$4 sm:$0xff] (!%p139_p2)   ;;  %s609_s16 = sshll.u32 (!%p139_p2), %s604_s13, 3  ;;  %v680_v1 = vld [vmem:[%s838_s1 + $0xc] ss:$16 sps:$4 sm:$0xff] (!%p139_p2)   ;;  %v702_v2 = vmov (!%p139_p2), 0   ;;  %v195_v13 = vlaneseq (!%p139_p2) }
   0x6   : > { %142 = sbr.rel (%p139_p2) target bundleno = 261 (0x105), region = 32  ;;  %320 = vmatprep.mubr.bf16.mxu0 (!%p139_p2), %v702_v2  ;;  %393 = vmatprep.mubr.bf16.mxu1 (!%p139_p2), %v702_v2  ;;  %p164_p3 = scmp.lt.s32.totalorder (!%p139_p2), %s609_s16, 15  ;;  %v682_v3 = vld [vmem:[%s838_s1] ss:$16 sps:$4 sm:$0xff] (!%p139_p2)   ;;  %v683_v4 = vld [vmem:[%s838_s1 + $0x8] ss:$16 sps:$4 sm:$0xff] (!%p139_p2)  }
   0x7   : > { %288 = vmatprep.subr.bf16.mxu0 (!%p139_p2), %v678_v0  ;;  %361 = vmatprep.subr.bf16.mxu1 (!%p139_p2), %v680_v1  ;;  %v684_v5 = vld [vmem:[%s838_s1 + $0x24] ss:$16 sps:$4 sm:$0xff] (!%p139_p2)   ;;  %v686_v6 = vld [vmem:[%s838_s1 + $0x2c] ss:$16 sps:$4 sm:$0xff] (!%p139_p2)   ;;  %v688_v7 = vld [vmem:[%s838_s1 + $0x20] ss:$16 sps:$4 sm:$0xff] (!%p139_p2)  }
   0x8   : > { %289 = vmatpush1.bf16.msra.mxu0 (!%p139_p2), %v682_v3  ;;  %362 = vmatpush1.bf16.msra.mxu1 (!%p139_p2), %v683_v4  ;;  %v689_v8 = vld [vmem:[%s838_s1 + $0x28] ss:$16 sps:$4 sm:$0xff] (!%p139_p2)   ;;  %vm275_vm0 = vcmask (!%p139_p2), 261120   ;;  %v196_v14 = vshrl.u32 (!%p139_p2), %v195_v13, 7  ;;  %v193_v17 = vld [vmem:[%s839_s2] sm:$0xf] (!%p139_p2) }
   0x9   : > { %290 = vmatprep.subr.bf16.mxu0 (!%p139_p2), %v684_v5  ;;  %363 = vmatprep.subr.bf16.mxu1 (!%p139_p2), %v686_v6 }
   0xa   : > { %v197_v15 = vsub.s32 (!%p139_p2), 0, %v196_v14  ;;  %v205_v16 = vsub.s32 (!%p139_p2), 2, %v196_v14  ;;  %v201_v18 = vsub.s32 (!%p139_p2), 1, %v196_v14  ;;  %v209_v19 = vsub.s32 (!%p139_p2), 3, %v196_v14 }
   0xc   : > { %291 = vmatpush1.bf16.msra.mxu0 (!%p139_p2), %v688_v7  ;;  %364 = vmatpush1.bf16.msra.mxu1 (!%p139_p2), %v689_v8  ;;  %v772_v20 = vrot.slane (!%p139_p2), %v193_v17, %v197_v15  ;;  %v774_v21 = vrot.slane (!%p139_p2), %v193_v17, %v205_v16  ;;  %v776_v22 = vrot.slane (!%p139_p2), %v193_v17, %v201_v18 }
   0xd   : > { %s842_s16 = smov (!%p164_p3, %s609_s16), 15  ;;  %v778_v23 = vrot.slane %v193_v17, %v209_v19 }
   0xe   : > { %s610_s4 = sshll.u32 %s842_s16, 2  ;;  %s652_s10 = sshll.u32 %s842_s16, 4 }
   0xf   : > { %s167_s7 = scalar_lea.vmem %s837_s0, %s610_s4  ;;  %s788_s14 = scalar_lea.vmem %s840_s3, %s652_s10 }
  0x10   : > { %v690_v9 = vld [vmem:[%s167_s7] sm:$0xff]   ;;  %v691_v10 = vld [vmem:[%s167_s7 + $0x8] sm:$0xff]   ;;  %v692_v11 = vld [vmem:[%s167_s7 + $0x10] sm:$0xff]  }
  0x11   : > { %626 = vmatmul.mubr.msk.bf16.vlgmr.msra.gmra.mrb[0].mxu0 %vm275_vm0, %v690_v9  ;;  %630 = vmatmul.mubr.msk.bf16.vlgmr.msra.gmra.mrb[0].mxu1 %vm275_vm0, %v690_v9  ;;  %v693_v12 = vld [vmem:[%s167_s7 + $0x18] sm:$0xff]  }
  0x12   : > { %330 = vmatprep.mubr.bf16.mxu0 %v702_v2  ;;  %403 = vmatprep.mubr.bf16.mxu1 %v702_v2 }
  0x19   : > { %627 = vmatmul.mubr.msk.bf16.gmra.mrb[4].mxu0 %vm275_vm0, %v691_v10  ;;  %631 = vmatmul.mubr.msk.bf16.gmra.mrb[4].mxu1 %vm275_vm0, %v691_v10 }
  0x1a   : > { %340 = vmatprep.mubr.bf16.mxu0 %v702_v2  ;;  %413 = vmatprep.mubr.bf16.mxu1 %v702_v2 }
  0x21   : > { %628 = vmatmul.mubr.msk.bf16.gmra.mrb[8].mxu0 %vm275_vm0, %v692_v11  ;;  %632 = vmatmul.mubr.msk.bf16.gmra.mrb[8].mxu1 %vm275_vm0, %v692_v11 }
  0x22   : > { %350 = vmatprep.mubr.bf16.mxu0 %v702_v2  ;;  %423 = vmatprep.mubr.bf16.mxu1 %v702_v2 }
  0x29   : > { %629 = vmatmul.mubr.msk.bf16.gmra.mrb[12].mxu0 %vm275_vm0, %v693_v12  ;;  %633 = vmatmul.mubr.msk.bf16.gmra.mrb[12].mxu1 %vm275_vm0, %v693_v12 }
  0xe4   : > { %v322_v24 = vpop.f32.mrb[0].mxu0  ;;  %v395_v25 = vpop.f32.mrb[0].mxu1 }
  0xe5   : > { %v323_v26 = vadd.f32 %v322_v24, %v772_v20  ;;  %v396_v27 = vadd.f32 %v395_v25, %v774_v21  ;;  %v324_v28 = vpop.f32.mrb[1].mxu0  ;;  %v397_v29 = vpop.f32.mrb[1].mxu1 }
  0xe6   : > { %v325_v30 = vadd.f32 %v324_v28, %v776_v22  ;;  %v398_v31 = vadd.f32 %v397_v29, %v778_v23  ;;  %v326_v32 = vpop.f32.mrb[2].mxu0  ;;  %v399_v33 = vpop.f32.mrb[2].mxu1 }
  0xe7   : > { %v327_v34 = vadd.f32 %v326_v32, %v772_v20  ;;  %v400_v35 = vadd.f32 %v399_v33, %v774_v21  ;;  %v328_v36 = vpop.f32.mrb[3].mxu0  ;;  %v401_v37 = vpop.f32.mrb[3].mxu1 }
  0xe8   : > { %v653_v38 = vpack.c.bf16 %v325_v30, %v323_v26  ;;  %v654_v39 = vpack.c.bf16 %v398_v31, %v396_v27  ;;  %v329_v40 = vadd.f32 %v328_v36, %v776_v22  ;;  %v402_v41 = vadd.f32 %v401_v37, %v778_v23 }
  0xea   : > { %530 = vst [vmem:[%s788_s14] sm:$0xff] %v653_v38  ;;  %531 = vst [vmem:[%s788_s14 + $0x8] sm:$0xff] %v654_v39  ;;  %v655_v42 = vpack.c.bf16 %v329_v40, %v327_v34  ;;  %v656_v43 = vpack.c.bf16 %v402_v41, %v400_v35 }
  0xec   : > { %532 = vst [vmem:[%s788_s14 + $0x10] sm:$0xff] %v655_v42  ;;  %533 = vst [vmem:[%s788_s14 + $0x18] sm:$0xff] %v656_v43  ;;  %v332_v44 = vpop.f32.mrb[4].mxu0  ;;  %v405_v45 = vpop.f32.mrb[4].mxu1 }
  0xed   : > { %v333_v46 = vadd.f32 %v332_v44, %v772_v20  ;;  %v406_v47 = vadd.f32 %v405_v45, %v774_v21  ;;  %v334_v48 = vpop.f32.mrb[5].mxu0  ;;  %v407_v49 = vpop.f32.mrb[5].mxu1 }
  0xee   : > { %v335_v50 = vadd.f32 %v334_v48, %v776_v22  ;;  %v408_v51 = vadd.f32 %v407_v49, %v778_v23  ;;  %v336_v52 = vpop.f32.mrb[6].mxu0  ;;  %v409_v53 = vpop.f32.mrb[6].mxu1 }
  0xef   : > { %v337_v54 = vadd.f32 %v336_v52, %v772_v20  ;;  %v410_v55 = vadd.f32 %v409_v53, %v774_v21  ;;  %v338_v56 = vpop.f32.mrb[7].mxu0  ;;  %v411_v57 = vpop.f32.mrb[7].mxu1 }
  0xf0   : > { %v657_v58 = vpack.c.bf16 %v335_v50, %v333_v46  ;;  %v658_v59 = vpack.c.bf16 %v408_v51, %v406_v47  ;;  %v339_v60 = vadd.f32 %v338_v56, %v776_v22  ;;  %v412_v61 = vadd.f32 %v411_v57, %v778_v23 }
  0xf2   : > { %534 = vst [vmem:[%s788_s14 + $0x20] sm:$0xff] %v657_v58  ;;  %535 = vst [vmem:[%s788_s14 + $0x28] sm:$0xff] %v658_v59  ;;  %v659_v62 = vpack.c.bf16 %v339_v60, %v337_v54  ;;  %v660_v63 = vpack.c.bf16 %v412_v61, %v410_v55 }
  0xf4   : > { %536 = vst [vmem:[%s788_s14 + $0x30] sm:$0xff] %v659_v62  ;;  %537 = vst [vmem:[%s788_s14 + $0x38] sm:$0xff] %v660_v63  ;;  %v342_v0 = vpop.f32.mrb[8].mxu0  ;;  %v415_v1 = vpop.f32.mrb[8].mxu1 }
  0xf5   : > { %v343_v2 = vadd.f32 %v342_v0, %v772_v20  ;;  %v416_v3 = vadd.f32 %v415_v1, %v774_v21  ;;  %v344_v4 = vpop.f32.mrb[9].mxu0  ;;  %v417_v5 = vpop.f32.mrb[9].mxu1 }
  0xf6   : > { %v345_v6 = vadd.f32 %v344_v4, %v776_v22  ;;  %v418_v7 = vadd.f32 %v417_v5, %v778_v23  ;;  %v346_v8 = vpop.f32.mrb[10].mxu0  ;;  %v419_v9 = vpop.f32.mrb[10].mxu1 }
  0xf7   : > { %v347_v10 = vadd.f32 %v346_v8, %v772_v20  ;;  %v420_v11 = vadd.f32 %v419_v9, %v774_v21  ;;  %v348_v12 = vpop.f32.mrb[11].mxu0  ;;  %v421_v13 = vpop.f32.mrb[11].mxu1 }
  0xf8   : > { %v661_v14 = vpack.c.bf16 %v345_v6, %v343_v2  ;;  %v662_v15 = vpack.c.bf16 %v418_v7, %v416_v3  ;;  %v349_v16 = vadd.f32 %v348_v12, %v776_v22  ;;  %v422_v17 = vadd.f32 %v421_v13, %v778_v23 }
  0xfa   : > { %538 = vst [vmem:[%s788_s14 + $0x40] sm:$0xff] %v661_v14  ;;  %539 = vst [vmem:[%s788_s14 + $0x48] sm:$0xff] %v662_v15  ;;  %v663_v18 = vpack.c.bf16 %v349_v16, %v347_v10  ;;  %v664_v19 = vpack.c.bf16 %v422_v17, %v420_v11 }
  0xfc   : > { %540 = vst [vmem:[%s788_s14 + $0x50] sm:$0xff] %v663_v18  ;;  %541 = vst [vmem:[%s788_s14 + $0x58] sm:$0xff] %v664_v19  ;;  %v352_v24 = vpop.f32.mrb[12].mxu0  ;;  %v425_v25 = vpop.f32.mrb[12].mxu1 }
  0xfd   : > { %v353_v26 = vadd.f32 %v352_v24, %v772_v20  ;;  %v426_v27 = vadd.f32 %v425_v25, %v774_v21  ;;  %v354_v28 = vpop.f32.mrb[13].mxu0  ;;  %v427_v29 = vpop.f32.mrb[13].mxu1 }
  0xfe   : > { %v355_v30 = vadd.f32 %v354_v28, %v776_v22  ;;  %v428_v31 = vadd.f32 %v427_v29, %v778_v23  ;;  %v356_v32 = vpop.f32.mrb[14].mxu0  ;;  %v429_v33 = vpop.f32.mrb[14].mxu1 }
  0xff   : > { %v357_v34 = vadd.f32 %v356_v32, %v772_v20  ;;  %v430_v35 = vadd.f32 %v429_v33, %v774_v21  ;;  %v358_v36 = vpop.f32.mrb[15].mxu0  ;;  %v431_v37 = vpop.f32.mrb[15].mxu1 }
 0x100   : > { %v665_v38 = vpack.c.bf16 %v355_v30, %v353_v26  ;;  %v666_v39 = vpack.c.bf16 %v428_v31, %v426_v27  ;;  %v359_v40 = vadd.f32 %v358_v36, %v776_v22  ;;  %v432_v41 = vadd.f32 %v431_v37, %v778_v23 }
 0x102   : > { %542 = vst [vmem:[%s788_s14 + $0x60] sm:$0xff] %v665_v38  ;;  %543 = vst [vmem:[%s788_s14 + $0x68] sm:$0xff] %v666_v39  ;;  %v667_v42 = vpack.c.bf16 %v359_v40, %v357_v34  ;;  %v668_v43 = vpack.c.bf16 %v432_v41, %v430_v35 }
 0x104   : > { %544 = vst [vmem:[%s788_s14 + $0x70] sm:$0xff] %v667_v42  ;;  %545 = vst [vmem:[%s788_s14 + $0x78] sm:$0xff] %v668_v43 }
 0x105 PF: > { %s13_s12 = sadd.s32 1, %s700_s12  }
 0x106   : > { %p10_p4 = scmp.ge.s32.totalorder %s13_s12, 4  }
 0x108   :  { %12 = sbr.rel (!%p10_p4) target bundleno = 1 (0x1), region = 62 }

// kernel: music_vae_forward.13
= control target key start
LH: loop header
LB: loop body
LE: loop exit
PB: predicated region body
PF: predicated region fallthrough
CT: control target
= control target key end

     0   :  { %s531_s12 = smov 0   ;;  %s585_s0 = inlined_call_operand.vmem [shape: bf16[128,128], index: 0, kind: input, shape index: {}]   ;;  %s586_s1 = inlined_call_operand.vmem [shape: bf16[128,128], index: 1, kind: input, shape index: {}]   ;;  %s587_s2 = inlined_call_operand.vmem [shape: f32[1,128], index: 2, kind: input, shape index: {}]   ;;  %s588_s3 = inlined_call_operand.vmem [shape: f32[128,128], index: 3, kind: output, shape index: {}]  }
   0x1 LB: > { %s407_s13 = sadd.s32 4294967295, %s509_s12   ;;  %p411_p0 = scmp.ge.s32.totalorder %s509_s12, 1  ;;  %s509_s12 = sphi %s531_s12, %s13_s12  }
   0x2   : > { %p138_p1 = scmp.lt.s32.totalorder %s509_s12, 3 }
   0x4   : > { %p139_p2 = pnand %p411_p0, %p138_p1 }
   0x5   : > { %v491_v0 = vld [vmem:[%s586_s1] sm:$0xff] (!%p139_p2)   ;;  %s412_s16 = sshll.u32 (!%p139_p2), %s407_s13, 3  ;;  %v492_v1 = vld [vmem:[%s586_s1 + $0x8] sm:$0xff] (!%p139_p2)   ;;  %v493_v2 = vld [vmem:[%s586_s1 + $0x10] sm:$0xff] (!%p139_p2)  }
   0x6   : > { %142 = sbr.rel (%p139_p2) target bundleno = 256 (0x100), region = 32  ;;  %p163_p3 = scmp.lt.s32.totalorder (!%p139_p2), %s412_s16, 15  ;;  %443 = vmatprep.subr.bf16.mxu0 (!%p139_p2), %v491_v0  ;;  %467 = vmatprep.subr.bf16.mxu1 (!%p139_p2), %v491_v0  ;;  %v494_v3 = vld [vmem:[%s586_s1 + $0x18] sm:$0xff] (!%p139_p2)   ;;  %v495_v6 = vld [vmem:[%s586_s1 + $0x20] sm:$0xff] (!%p139_p2)   ;;  %v496_v7 = vld [vmem:[%s586_s1 + $0x28] sm:$0xff] (!%p139_p2)  }
   0x7   : > { %444 = vmatpush3.bf16.msra.mxu0 (!%p139_p2), %v491_v0  ;;  %475 = vmatpush3.bf16.msra.mxu1 (!%p139_p2), %v491_v0  ;;  %v497_v8 = vld [vmem:[%s586_s1 + $0x30] sm:$0xff] (!%p139_p2)   ;;  %v498_v9 = vld [vmem:[%s586_s1 + $0x38] sm:$0xff] (!%p139_p2)   ;;  %v416_v12 = vld [vmem:[%s587_s2] ss:$0 sm:$0xff] (!%p139_p2) }
   0x8   : > { %445 = vmatprep.subr.bf16.mxu0 (!%p139_p2), %v492_v1  ;;  %468 = vmatprep.subr.bf16.mxu1 (!%p139_p2), %v492_v1 }
   0xb   : > { %446 = vmatpush3.bf16.msra.mxu0 (!%p139_p2), %v492_v1  ;;  %476 = vmatpush3.bf16.msra.mxu1 (!%p139_p2), %v492_v1 }
   0xc   : > { %447 = vmatprep.subr.bf16.mxu0 (!%p139_p2), %v493_v2  ;;  %469 = vmatprep.subr.bf16.mxu1 (!%p139_p2), %v493_v2 }
   0xd   : > { %s590_s16 = smov (!%p163_p3, %s412_s16), 15 }
   0xe   : > { %s413_s21 = sshll.u32 %s590_s16, 2  ;;  %s415_s8 = sshll.u32 %s590_s16, 3 }
   0xf   : > { %s554_s24 = scalar_lea.vmem %s585_s0, %s413_s21  ;;  %448 = vmatpush3.bf16.msra.mxu0 %v493_v2  ;;  %477 = vmatpush3.bf16.msra.mxu1 %v493_v2  ;;  %s172_s14 = scalar_lea.vmem %s588_s3, %s415_s8 }
  0x10   : > { %v499_v4 = vld [vmem:[%s554_s24] sm:$0xff]   ;;  %v500_v5 = vld [vmem:[%s554_s24 + $0x10] sm:$0xff]   ;;  %449 = vmatprep.subr.bf16.mxu0 %v494_v3  ;;  %470 = vmatprep.subr.bf16.mxu1 %v494_v3  ;;  %v501_v10 = vld [vmem:[%s554_s24 + $0x8] sm:$0xff]  }
  0x11   : > { %459 = vmatprep.mubr.bf16.mxu0 %v499_v4  ;;  %463 = vmatprep.mubr.bf16.mxu1 %v500_v5  ;;  %v502_v11 = vld [vmem:[%s554_s24 + $0x18] sm:$0xff]  }
  0x13   : > { %450 = vmatpush3.bf16.msra.mxu0 %v494_v3  ;;  %478 = vmatpush3.bf16.msra.mxu1 %v494_v3 }
  0x14   : > { %451 = vmatprep.subr.bf16.mxu0 %v495_v6  ;;  %471 = vmatprep.subr.bf16.mxu1 %v495_v6 }
  0x17   : > { %452 = vmatpush3.bf16.msra.mxu0 %v495_v6  ;;  %479 = vmatpush3.bf16.msra.mxu1 %v495_v6 }
  0x18   : > { %453 = vmatprep.subr.bf16.mxu0 %v496_v7  ;;  %472 = vmatprep.subr.bf16.mxu1 %v496_v7 }
  0x1b   : > { %454 = vmatpush3.bf16.msra.mxu0 %v496_v7  ;;  %480 = vmatpush3.bf16.msra.mxu1 %v496_v7 }
  0x1c   : > { %455 = vmatprep.subr.bf16.mxu0 %v497_v8  ;;  %473 = vmatprep.subr.bf16.mxu1 %v497_v8 }
  0x1f   : > { %456 = vmatpush3.bf16.msra.mxu0 %v497_v8  ;;  %481 = vmatpush3.bf16.msra.mxu1 %v497_v8 }
  0x20   : > { %457 = vmatprep.subr.bf16.mxu0 %v498_v9  ;;  %474 = vmatprep.subr.bf16.mxu1 %v498_v9 }
  0x23   : > { %458 = vmatpush3.bf16.msra.mxu0 %v498_v9  ;;  %482 = vmatpush3.bf16.msra.mxu1 %v498_v9 }
  0x26   : > { %460 = vmatmul.mubr.bf16.vlgmr.msra.gmra.mrb[0].mxu0 %v501_v10  ;;  %464 = vmatmul.mubr.bf16.vlgmr.msra.gmra.mrb[0].mxu1 %v502_v11 }
  0xf9   : > { %v461_v13 = vpop.f32.mrb[0].mxu0  ;;  %v465_v14 = vpop.f32.mrb[0].mxu1 }
  0xfa   : > { %v321_v15 = vadd.f32 %v461_v13, %v416_v12  ;;  %v337_v16 = vadd.f32 %v465_v14, %v416_v12  ;;  %v312_v17 = vpop.f32.mrb[1].mxu0  ;;  %v328_v18 = vpop.f32.mrb[1].mxu1 }
  0xfb   : > { %v313_v19 = vadd.f32 %v416_v12, %v312_v17  ;;  %v329_v20 = vadd.f32 %v416_v12, %v328_v18  ;;  %v462_v21 = vpop.f32.mrb[2].mxu0  ;;  %v466_v22 = vpop.f32.mrb[2].mxu1 }
  0xfc   : > { %345 = vst [vmem:[%s172_s14 + $0x10] sm:$0xff] %v321_v15  ;;  %349 = vst [vmem:[%s172_s14 + $0x30] sm:$0xff] %v337_v16  ;;  %v324_v23 = vadd.f32 %v462_v21, %v416_v12  ;;  %v340_v24 = vadd.f32 %v466_v22, %v416_v12  ;;  %v315_v25 = vpop.f32.mrb[3].mxu0  ;;  %v331_v26 = vpop.f32.mrb[3].mxu1 }
  0xfd   : > { %343 = vst [vmem:[%s172_s14] sm:$0xff] %v313_v19  ;;  %347 = vst [vmem:[%s172_s14 + $0x20] sm:$0xff] %v329_v20  ;;  %v316_v27 = vadd.f32 %v416_v12, %v315_v25  ;;  %v332_v28 = vadd.f32 %v416_v12, %v331_v26 }
  0xfe   : > { %346 = vst [vmem:[%s172_s14 + $0x18] sm:$0xff] %v324_v23  ;;  %350 = vst [vmem:[%s172_s14 + $0x38] sm:$0xff] %v340_v24 }
  0xff   : > { %344 = vst [vmem:[%s172_s14 + $0x8] sm:$0xff] %v316_v27  ;;  %348 = vst [vmem:[%s172_s14 + $0x28] sm:$0xff] %v332_v28 }
 0x100 PF: > { %s13_s12 = sadd.s32 1, %s509_s12  }
 0x101   : > { %p10_p4 = scmp.ge.s32.totalorder %s13_s12, 4  }
 0x103   :  { %12 = sbr.rel (!%p10_p4) target bundleno = 1 (0x1), region = 62 }

// kernel: music_vae_forward.11
= control target key start
LH: loop header
LB: loop body
LE: loop exit
PB: predicated region body
PF: predicated region fallthrough
CT: control target
= control target key end

     0   :  { %v388_v0 = vmov 0.0   ;;  %vm389_vm0 = vmmov 0   ;;  %vm178_vm1 = vcmask 261120   ;;  %s513_s3 = inlined_call_operand.vmem [shape: bf16[128,64], index: 3, kind: input, shape index: {}]   ;;  %s514_s0 = inlined_call_operand.vmem [shape: f32[8,128], index: 0, kind: input, shape index: {}]   ;;  %s515_s6 = inlined_call_operand.vmem [shape: bf16[32,128], index: 6, kind: input, shape index: {}]   ;;  %s516_s5 = inlined_call_operand.vmem [shape: bf16[32,128], index: 5, kind: input, shape index: {}]   ;;  %s517_s1 = inlined_call_operand.vmem [shape: bf16[8,32], index: 1, kind: input, shape index: {}]   ;;  %s518_s4 = inlined_call_operand.vmem [shape: f32[1,64], index: 4, kind: input, shape index: {}]   ;;  %s519_s8 = inlined_call_operand.vmem [shape: f32[8,32], index: 8, kind: output, shape index: {0}]   ;;  %s520_s2 = inlined_call_operand.vmem [shape: f32[8,32], index: 2, kind: input, shape index: {}]   ;;  %s521_s9 = inlined_call_operand.vmem [shape: f32[8,32], index: 9, kind: output, shape index: {1}]   ;;  %s522_s7 = inlined_call_operand.vmem [shape: f32[1,128], index: 7, kind: input, shape index: {}]   ;;  %s523_s10 = inlined_call_operand.vmem [shape: f32[8,128], index: 10, kind: output, shape index: {2}]  }
   0x1   :  { %335 = vmatprep.subr.bf16.mxu0 %v388_v0  ;;  %v374_v1 = vld [vmem:[%s513_s3] sm:$0xff]   ;;  %351 = vmatprep.mubr.msk.bf16.mxu0 %vm389_vm0, %v388_v0  ;;  %v375_v2 = vld [vmem:[%s513_s3 + $0x8] sm:$0xff]   ;;  %v376_v3 = vld [vmem:[%s513_s3 + $0x10] sm:$0xff]  }
   0x2   :  { %355 = vmatprep.subr.bf16.mxu1 %v388_v0  ;;  %359 = vmatprep.mubr.msk.bf16.mxu1 %vm389_vm0, %v388_v0  ;;  %v377_v4 = vld [vmem:[%s513_s3 + $0x18] sm:$0xff]   ;;  %v378_v5 = vld [vmem:[%s513_s3 + $0x20] sm:$0xff]   ;;  %v379_v6 = vld [vmem:[%s513_s3 + $0x28] sm:$0xff]  }
   0x3   :  { %336 = vmatpush3.bf16.msra.mxu0 %v374_v1  ;;  %v380_v7 = vld [vmem:[%s513_s3 + $0x30] sm:$0xff]   ;;  %v381_v8 = vld [vmem:[%s513_s3 + $0x38] sm:$0xff]   ;;  %v33_v9 = vld [vmem:[%s514_s0] sm:$0xff] }
   0x4   :  { %337 = vmatprep.subr.bf16.mxu0 %v388_v0  ;;  %v34_v10 = vpack.c.bf16 %v33_v9, %v33_v9  ;;  %v382_v11 = vld [vmem:[%s515_s6] sm:$0xff]   ;;  %v383_v12 = vld [vmem:[%s515_s6 + $0x8] sm:$0xff]  }
   0x5   :  { %356 = vmatpush3.bf16.msra.mxu1 %v382_v11  ;;  %v161_v13 = vld [vmem:[%s517_s1] sm:$0xf]  ;;  %v385_v23 = vld [vmem:[%s516_s5 + $0x8] sm:$0xff]  }
   0x6   :  { %357 = vmatprep.subr.bf16.mxu1 %v388_v0  ;;  %v384_v14 = vld [vmem:[%s516_s5] sm:$0xff]  }
   0x7   :  { %338 = vmatpush3.bf16.msra.mxu0 %v375_v2  ;;  %v304_v15 = vld [vmem:[%s518_s4] ss:$0 sm:$0xff]  ;;  %s390_s4 = smov 96  }
   0x8   :  { %339 = vmatprep.subr.bf16.mxu0 %v388_v0  ;;  %v146_v29 = vld [vmem:[%s520_s2] sm:$0xff] }
   0x9   :  { %358 = vmatpush3.bf16.msra.mxu1 %v383_v12  ;;  %v319_v36 = vld [vmem:[%s522_s7] ss:$0 sm:$0xff] }
   0xa   :  { %363 = vmatprep.subr.bf16.mxu1 %v388_v0 }
   0xb   :  { %340 = vmatpush3.bf16.msra.mxu0 %v376_v3 }
   0xc   :  { %341 = vmatprep.subr.bf16.mxu0 %v388_v0  ;;  %360 = vmatmul.mubr.msk.bf16.vlgmr.msra.gmra.mrb[0].mxu1 %vm178_vm1, %v161_v13 }
   0xd   :  { %364 = vmatpush3.bf16.msra.mxu1 %v384_v14  ;;  %367 = vmatprep.mubr.msk.bf16.mxu1 %vm389_vm0, %v388_v0 }
   0xe   :  { %365 = vmatprep.subr.bf16.mxu1 %v388_v0 }
   0xf   :  { %342 = vmatpush3.bf16.msra.mxu0 %v377_v4 }
  0x10   :  { %343 = vmatprep.subr.bf16.mxu0 %v388_v0 }
  0x11   :  { %366 = vmatpush3.bf16.msra.mxu1 %v385_v23 }
  0x13   :  { %344 = vmatpush3.bf16.msra.mxu0 %v378_v5 }
  0x14   :  { %345 = vmatprep.subr.bf16.mxu0 %v388_v0 }
  0x17   :  { %346 = vmatpush3.bf16.msra.mxu0 %v379_v6 }
  0x18   :  { %347 = vmatprep.subr.bf16.mxu0 %v388_v0 }
  0x1b   :  { %348 = vmatpush3.bf16.msra.mxu0 %v380_v7 }
  0x1c   :  { %349 = vmatprep.subr.bf16.mxu0 %v388_v0 }
  0x1f   :  { %350 = vmatpush3.bf16.msra.mxu0 %v381_v8 }
  0x22   :  { %352 = vmatmul.mubr.bf16.vlgmr.msra.gmra.mrb[0].mxu0 %v34_v10 }
  0xdf   :  { %v216_v25 = vpop.f32.mrb[0].mxu1 }
  0xe0   :  { %v361_v26 = vpop.f32.mrb[1].mxu1 }
  0xe1   :  { %v219_v27 = vpop.f32.mrb[2].mxu1 }
  0xe2   :  { %v362_v28 = vpop.f32.mrb[3].mxu1 }
  0xf5   :  { %v140_v16 = vpop.f32.mrb[0].mxu0 }
  0xf6   :  { %v141_v17 = vadd.f32 %v304_v15, %v140_v16  ;;  %v353_v18 = vpop.f32.mrb[1].mxu0 }
  0xf7   :  { %v143_v19 = vpop.f32.mrb[2].mxu0 }
  0xf8   :  { %v147_v20 = vmul.f32 0.5, %v141_v17  ;;  %v354_v21 = vpop.f32.mrb[3].mxu0  ;;  %285 = vst.msk [vmem:[%s519_s8] sm:$0xff] %vm178_vm1, %v141_v17 }
  0xfa   :  { %v148_v22 = vmul.f32 1.442695, %v147_v20 }
  0xfc   :  { %386 = vpow2.f32 %v148_v22 }
 0x106   :  { %v387_v24 = vpop.eup %386 }
 0x107   :  { %151 = vrot.lane.b32.xlu0 %v387_v24, %s390_s4 }
 0x10b   :  { %287 = vrot.lane.b32.xlu0 %v141_v17, %s390_s4 }
 0x179   :  { %v152_v30 = vpop.permute.xlu0 %151 }
 0x17a   :  { %v154_v31 = vmul.f32 %v152_v30, %v146_v29 }
 0x17c   :  { %v155_v32 = vadd.f32 %v154_v31, %v141_v17 }
 0x17d   :  { %v288_v33 = vpop.permute.xlu0 %287 }
 0x17e   :  { %v156_v34 = vpack.c.bf16 %v155_v32, %v155_v32  ;;  %290 = vst.msk [vmem:[%s521_s9] sm:$0xff] %vm178_vm1, %v288_v33 }
 0x180   :  { %368 = vmatmul.mubr.msk.bf16.vlgmr.msra.gmra.mrb[4].mxu1 %vm178_vm1, %v156_v34 }
 0x253   :  { %v271_v35 = vpop.f32.mrb[4].mxu1 }
 0x254   :  { %v272_v37 = vadd.f32 %v271_v35, %v216_v25  ;;  %v369_v38 = vpop.f32.mrb[5].mxu1 }
 0x255   :  { %v274_v39 = vpop.f32.mrb[6].mxu1 }
 0x256   :  { %v284_v40 = vadd.f32 %v319_v36, %v272_v37  ;;  %v370_v41 = vpop.f32.mrb[7].mxu1 }
 0x258   :  { %291 = vst [vmem:[%s523_s10] sm:$0xff] %v284_v40 }

// kernel: music_vae_forward.10
= control target key start
LH: loop header
LB: loop body
LE: loop exit
PB: predicated region body
PF: predicated region fallthrough
CT: control target
= control target key end

     0   :  { %v2668_v1 = vmov 0   ;;  %v2669_v33 = vmov 0.0|0.0   ;;  %s3993_s2 = inlined_call_operand.vmem [shape: bf16[128,512], index: 2, kind: input, shape index: {}]   ;;  %s3994_s0 = inlined_call_operand.vmem [shape: bf16[16,8,512], index: 0, kind: input, shape index: {}]   ;;  %s3995_s1 = inlined_call_operand.vmem [shape: f32[8,512], index: 1, kind: input, shape index: {}]   ;;  %s3996_s3 = inlined_call_operand.vmem [shape: f32[8,128], index: 3, kind: output, shape index: {}]  }
   0x1   :  { %v2693_v0 = vld [vmem:[%s3993_s2 + $0x4] ss:$16 sps:$4 sm:$0xff]   ;;  %262 = vmatprep.mubr.bf16.mxu0 %v2668_v1  ;;  %303 = vmatprep.mubr.bf16.mxu1 %v2668_v1  ;;  %v2700_v2 = vld [vmem:[%s3993_s2] ss:$16 sps:$4 sm:$0xff]   ;;  %v2723_v6 = vld [vmem:[%s3993_s2 + $0xc] ss:$16 sps:$4 sm:$0xff]  }
   0x2   :  { %230 = vmatprep.subr.bf16.mxu0 %v2693_v0  ;;  %v2706_v3 = vld [vmem:[%s3993_s2 + $0x24] ss:$16 sps:$4 sm:$0xff]   ;;  %v2712_v4 = vld [vmem:[%s3993_s2 + $0x20] ss:$16 sps:$4 sm:$0xff]   ;;  %v2728_v7 = vld [vmem:[%s3993_s2 + $0x8] ss:$16 sps:$4 sm:$0xff]   ;;  %271 = vmatprep.subr.bf16.mxu1 %v2723_v6 }
   0x3   :  { %231 = vmatpush1.bf16.msra.mxu0 %v2700_v2  ;;  %v2718_v5 = vld [vmem:[%s3993_s2 + $0x44] ss:$16 sps:$4 sm:$0xff]   ;;  %v2734_v8 = vld [vmem:[%s3993_s2 + $0x40] ss:$16 sps:$4 sm:$0xff]   ;;  %272 = vmatpush1.bf16.msra.mxu1 %v2728_v7  ;;  %v2747_v10 = vld [vmem:[%s3993_s2 + $0x2c] ss:$16 sps:$4 sm:$0xff]  }
   0x4   :  { %232 = vmatprep.subr.bf16.mxu0 %v2706_v3  ;;  %v2741_v9 = vld [vmem:[%s3993_s2 + $0x64] ss:$16 sps:$4 sm:$0xff]   ;;  %v2752_v11 = vld [vmem:[%s3993_s2 + $0x28] ss:$16 sps:$4 sm:$0xff]   ;;  %273 = vmatprep.subr.bf16.mxu1 %v2747_v10  ;;  %v2759_v12 = vld [vmem:[%s3993_s2 + $0x60] ss:$16 sps:$4 sm:$0xff]  }
   0x5   :  { %v2764_v13 = vld [vmem:[%s3993_s2 + $0x84] ss:$16 sps:$4 sm:$0xff]   ;;  %v2769_v14 = vld [vmem:[%s3993_s2 + $0x4c] ss:$16 sps:$4 sm:$0xff]   ;;  %v2776_v15 = vld [vmem:[%s3993_s2 + $0x48] ss:$16 sps:$4 sm:$0xff]  }
   0x6   :  { %v2782_v16 = vld [vmem:[%s3993_s2 + $0x6c] ss:$16 sps:$4 sm:$0xff]   ;;  %v2788_v17 = vld [vmem:[%s3993_s2 + $0x80] ss:$16 sps:$4 sm:$0xff]   ;;  %v2794_v18 = vld [vmem:[%s3993_s2 + $0xa4] ss:$16 sps:$4 sm:$0xff]  }
   0x7   :  { %233 = vmatpush1.bf16.msra.mxu0 %v2712_v4  ;;  %274 = vmatpush1.bf16.msra.mxu1 %v2752_v11  ;;  %v2800_v19 = vld [vmem:[%s3993_s2 + $0x68] ss:$16 sps:$4 sm:$0xff]   ;;  %v2806_v20 = vld [vmem:[%s3993_s2 + $0x8c] ss:$16 sps:$4 sm:$0xff]   ;;  %v2812_v21 = vld [vmem:[%s3993_s2 + $0xa0] ss:$16 sps:$4 sm:$0xff]  }
   0x8   :  { %234 = vmatprep.subr.bf16.mxu0 %v2718_v5  ;;  %275 = vmatprep.subr.bf16.mxu1 %v2769_v14  ;;  %v2817_v22 = vld [vmem:[%s3993_s2 + $0xc4] ss:$16 sps:$4 sm:$0xff]   ;;  %v2824_v23 = vld [vmem:[%s3993_s2 + $0x88] ss:$16 sps:$4 sm:$0xff]   ;;  %v2830_v24 = vld [vmem:[%s3993_s2 + $0xac] ss:$16 sps:$4 sm:$0xff]  }
   0x9   :  { %v2836_v25 = vld [vmem:[%s3993_s2 + $0xc0] ss:$16 sps:$4 sm:$0xff]   ;;  %v2842_v26 = vld [vmem:[%s3993_s2 + $0xe4] ss:$16 sps:$4 sm:$0xff]   ;;  %v2848_v27 = vld [vmem:[%s3993_s2 + $0xa8] ss:$16 sps:$4 sm:$0xff]  }
   0xa   :  { %v2854_v28 = vld [vmem:[%s3993_s2 + $0xcc] ss:$16 sps:$4 sm:$0xff]   ;;  %v2860_v29 = vld [vmem:[%s3993_s2 + $0xe0] ss:$16 sps:$4 sm:$0xff]   ;;  %v2867_v30 = vld [vmem:[%s3993_s2 + $0xc8] ss:$16 sps:$4 sm:$0xff]  }
   0xb   :  { %235 = vmatpush1.bf16.msra.mxu0 %v2734_v8  ;;  %276 = vmatpush1.bf16.msra.mxu1 %v2776_v15  ;;  %v2873_v31 = vld [vmem:[%s3993_s2 + $0xec] ss:$16 sps:$4 sm:$0xff]   ;;  %v2880_v32 = vld [vmem:[%s3993_s2 + $0xe8] ss:$16 sps:$4 sm:$0xff]   ;;  %v59_v34 = vld [vmem:[%s3994_s0] sm:$0xff] }
   0xc   :  { %236 = vmatprep.subr.bf16.mxu0 %v2741_v9  ;;  %277 = vmatprep.subr.bf16.mxu1 %v2782_v16  ;;  %v61_v35 = vunpack.c.l.bf16 %v59_v34  ;;  %v2926_v36 = vld [vmem:[%s3995_s1] sm:$0xff]  ;;  %v62_v37 = vunpack.c.h.bf16 %v59_v34  ;;  %v2931_v38 = vld [vmem:[%s3995_s1 + $0x8] sm:$0xff]  ;;  %v2941_v44 = vld [vmem:[%s3995_s1 + $0x10] sm:$0xff] }
   0xd   :  { %v60_v39 = vld [vmem:[%s3994_s0 + $0x8] sm:$0xff]  ;;  %v2947_v55 = vld [vmem:[%s3995_s1 + $0x18] sm:$0xff] }
   0xe   :  { %v65_v40 = vadd.f32 %v61_v35, %v2926_v36  ;;  %v66_v41 = vadd.f32 %v62_v37, %v2931_v38  ;;  %v63_v42 = vunpack.c.l.bf16 %v60_v39  ;;  %v64_v53 = vunpack.c.h.bf16 %v60_v39 }
   0xf   :  { %237 = vmatpush1.bf16.msra.mxu0 %v2759_v12  ;;  %278 = vmatpush1.bf16.msra.mxu1 %v2800_v19 }
  0x10   :  { %238 = vmatprep.subr.bf16.mxu0 %v2764_v13  ;;  %279 = vmatprep.subr.bf16.mxu1 %v2806_v20  ;;  %v67_v51 = vadd.f32 %v63_v42, %v2941_v44  ;;  %v68_v59 = vadd.f32 %v64_v53, %v2947_v55 }
  0x13   :  { %239 = vmatpush1.bf16.msra.mxu0 %v2788_v17  ;;  %280 = vmatpush1.bf16.msra.mxu1 %v2824_v23 }
  0x14   :  { %240 = vmatprep.subr.bf16.mxu0 %v2794_v18  ;;  %281 = vmatprep.subr.bf16.mxu1 %v2830_v24 }
  0x17   :  { %241 = vmatpush1.bf16.msra.mxu0 %v2812_v21  ;;  %282 = vmatpush1.bf16.msra.mxu1 %v2848_v27 }
  0x18   :  { %242 = vmatprep.subr.bf16.mxu0 %v2817_v22  ;;  %283 = vmatprep.subr.bf16.mxu1 %v2854_v28 }
  0x1b   :  { %243 = vmatpush1.bf16.msra.mxu0 %v2836_v25  ;;  %284 = vmatpush1.bf16.msra.mxu1 %v2867_v30 }
  0x1c   :  { %244 = vmatprep.subr.bf16.mxu0 %v2842_v26  ;;  %285 = vmatprep.subr.bf16.mxu1 %v2873_v31 }
  0x1f   :  { %245 = vmatpush1.bf16.msra.mxu0 %v2860_v29  ;;  %286 = vmatpush1.bf16.msra.mxu1 %v2880_v32 }
  0x20   :  { %352 = vmatprep.subr.bf16.mxu0 %v2693_v0  ;;  %393 = vmatprep.subr.bf16.mxu1 %v2723_v6 }
  0x22   :  { %263 = vmatmul.mubr.bf16.vlgmr.msra.gmra.mrb[0].mxu0 %v2669_v33  ;;  %304 = vmatmul.mubr.bf16.vlgmr.msra.gmra.mrb[0].mxu1 %v2669_v33 }
  0x23   :  { %353 = vmatpush1.bf16.msra.mxu0 %v2700_v2  ;;  %384 = vmatprep.mubr.bf16.mxu0 %v2668_v1 }
  0x24   :  { %354 = vmatprep.subr.bf16.mxu0 %v2706_v3  ;;  %394 = vmatpush1.bf16.msra.mxu1 %v2728_v7 }
  0x25   :  { %395 = vmatprep.subr.bf16.mxu1 %v2747_v10  ;;  %425 = vmatprep.mubr.bf16.mxu1 %v2668_v1 }
  0x27   :  { %355 = vmatpush1.bf16.msra.mxu0 %v2712_v4 }
  0x28   :  { %356 = vmatprep.subr.bf16.mxu0 %v2718_v5  ;;  %396 = vmatpush1.bf16.msra.mxu1 %v2752_v11 }
  0x29   :  { %397 = vmatprep.subr.bf16.mxu1 %v2769_v14 }
  0x2b   :  { %357 = vmatpush1.bf16.msra.mxu0 %v2734_v8 }
  0x2c   :  { %358 = vmatprep.subr.bf16.mxu0 %v2741_v9  ;;  %398 = vmatpush1.bf16.msra.mxu1 %v2776_v15 }
  0x2d   :  { %399 = vmatprep.subr.bf16.mxu1 %v2782_v16 }
  0x2f   :  { %359 = vmatpush1.bf16.msra.mxu0 %v2759_v12 }
  0x30   :  { %360 = vmatprep.subr.bf16.mxu0 %v2764_v13  ;;  %400 = vmatpush1.bf16.msra.mxu1 %v2800_v19 }
  0x31   :  { %401 = vmatprep.subr.bf16.mxu1 %v2806_v20 }
  0x33   :  { %361 = vmatpush1.bf16.msra.mxu0 %v2788_v17 }
  0x34   :  { %362 = vmatprep.subr.bf16.mxu0 %v2794_v18  ;;  %402 = vmatpush1.bf16.msra.mxu1 %v2824_v23 }
  0x35   :  { %403 = vmatprep.subr.bf16.mxu1 %v2830_v24 }
  0x37   :  { %363 = vmatpush1.bf16.msra.mxu0 %v2812_v21 }
  0x38   :  { %364 = vmatprep.subr.bf16.mxu0 %v2817_v22  ;;  %404 = vmatpush1.bf16.msra.mxu1 %v2848_v27 }
  0x39   :  { %405 = vmatprep.subr.bf16.mxu1 %v2854_v28 }
  0x3b   :  { %365 = vmatpush1.bf16.msra.mxu0 %v2836_v25 }
  0x3c   :  { %366 = vmatprep.subr.bf16.mxu0 %v2842_v26  ;;  %406 = vmatpush1.bf16.msra.mxu1 %v2867_v30 }
  0x3d   :  { %407 = vmatprep.subr.bf16.mxu1 %v2873_v31 }
  0x3f   :  { %367 = vmatpush1.bf16.msra.mxu0 %v2860_v29 }
  0x40   :  { %474 = vmatprep.subr.bf16.mxu0 %v2693_v0  ;;  %408 = vmatpush1.bf16.msra.mxu1 %v2880_v32 }
  0x41   :  { %515 = vmatprep.subr.bf16.mxu1 %v2723_v6 }
  0xf5   :  { %v264_v43 = vpop.f32.mrb[0].mxu0  ;;  %v305_v54 = vpop.f32.mrb[0].mxu1 }
  0xf6   :  { %v312_v45 = vadd.f32 %v264_v43, %v65_v40  ;;  %v266_v46 = vpop.f32.mrb[1].mxu0  ;;  %v307_v56 = vpop.f32.mrb[1].mxu1  ;;  %v314_v57 = vadd.f32 %v305_v54, %v67_v51  ;;  %v2215_v51 = vld [vmem:[%s3994_s0 + $0x10] sm:$0xff] }
  0xf7   :  { %v313_v47 = vadd.f32 %v266_v46, %v66_v41  ;;  %v268_v48 = vpop.f32.mrb[2].mxu0  ;;  %v309_v58 = vpop.f32.mrb[2].mxu1  ;;  %v315_v62 = vadd.f32 %v307_v56, %v68_v59  ;;  %v344_v53 = vunpack.c.h.bf16 %v2215_v51  ;;  %v2216_v56 = vld [vmem:[%s3994_s0 + $0x18] sm:$0xff] }
  0xf8   :  { %v2212_v49 = vmul.f32 -1.442695, %v312_v45  ;;  %v269_v50 = vpop.f32.mrb[3].mxu0  ;;  %v310_v60 = vpop.f32.mrb[3].mxu1  ;;  %v2214_v61 = vmul.f32 -1.442695, %v314_v57 }
  0xf9   :  { %v2213_v52 = vmul.f32 -1.442695, %v313_v47  ;;  %v348_v57 = vadd.f32 %v344_v53, %v2931_v38 }
  0xfa   :  { %2340 = vpow2.f32 %v2212_v49 }
  0xfb   :  { %2342 = vpow2.f32 %v2213_v52  ;;  %v343_v52 = vunpack.c.l.bf16 %v2215_v51 }
  0xfc   :  { %2344 = vpow2.f32 %v2214_v61  ;;  %v345_v61 = vunpack.c.l.bf16 %v2216_v56 }
  0xfd   :  { %2346 = vtanh.f32 %v315_v62  ;;  %v347_v54 = vadd.f32 %v343_v52, %v2926_v36 }
 0x104   :  { %v2341_v63 = vpop.eup %2340 }
 0x105   :  { %v2343_v33 = vpop.eup %2342  ;;  %v325_v34 = vadd.f32 1.0, %v2341_v63 }
 0x106   :  { %v326_v35 = vadd.f32 1.0, %v2343_v33  ;;  %v2345_v37 = vpop.eup %2344 }
 0x107   :  { %2348 = vrcp.f32 %v325_v34  ;;  %v2347_v39 = vpop.eup %2346  ;;  %v327_v41 = vadd.f32 1.0, %v2345_v37 }
 0x108   :  { %2350 = vrcp.f32 %v326_v35 }
 0x109   :  { %2352 = vrcp.f32 %v327_v41 }
 0x111   :  { %v2349_v40 = vpop.eup %2348 }
 0x112   :  { %v2351_v42 = vpop.eup %2350  ;;  %v336_v43 = vmul.f32 %v2349_v40, %v2347_v39 }
 0x113   :  { %v335_v45 = vmul.f32 0.0, %v2351_v42  ;;  %v2353_v47 = vpop.eup %2352  ;;  %v346_v42 = vunpack.c.h.bf16 %v2216_v56 }
 0x115   :  { %v2950_v46 = vadd.f32 %v336_v43, %v335_v45  ;;  %v349_v43 = vadd.f32 %v345_v61, %v2941_v44  ;;  %v350_v45 = vadd.f32 %v346_v42, %v2947_v55 }
 0x117   :  { %2354 = vtanh.f32 %v2950_v46 }
 0x121   :  { %v2355_v48 = vpop.eup %2354 }
 0x122   :  { %v339_v49 = vmul.f32 %v2355_v48, %v2353_v47 }
 0x124   :  { %v351_v50 = vpack.c.bf16 %v339_v49, %v339_v49 }
 0x126   :  { %385 = vmatmul.mubr.bf16.vlgmr.msra.gmra.mrb[4].mxu0 %v351_v50  ;;  %426 = vmatmul.mubr.bf16.vlgmr.msra.gmra.mrb[4].mxu1 %v351_v50 }
 0x127   :  { %475 = vmatpush1.bf16.msra.mxu0 %v2700_v2  ;;  %516 = vmatpush1.bf16.msra.mxu1 %v2728_v7 }
 0x128   :  { %476 = vmatprep.subr.bf16.mxu0 %v2706_v3  ;;  %517 = vmatprep.subr.bf16.mxu1 %v2747_v10 }
 0x129   :  { %506 = vmatprep.mubr.bf16.mxu0 %v2668_v1  ;;  %547 = vmatprep.mubr.bf16.mxu1 %v2668_v1 }
 0x12b   :  { %477 = vmatpush1.bf16.msra.mxu0 %v2712_v4  ;;  %518 = vmatpush1.bf16.msra.mxu1 %v2752_v11 }
 0x12c   :  { %478 = vmatprep.subr.bf16.mxu0 %v2718_v5  ;;  %519 = vmatprep.subr.bf16.mxu1 %v2769_v14 }
 0x12f   :  { %479 = vmatpush1.bf16.msra.mxu0 %v2734_v8  ;;  %520 = vmatpush1.bf16.msra.mxu1 %v2776_v15 }
 0x130   :  { %480 = vmatprep.subr.bf16.mxu0 %v2741_v9  ;;  %521 = vmatprep.subr.bf16.mxu1 %v2782_v16 }
 0x133   :  { %481 = vmatpush1.bf16.msra.mxu0 %v2759_v12  ;;  %522 = vmatpush1.bf16.msra.mxu1 %v2800_v19 }
 0x134   :  { %482 = vmatprep.subr.bf16.mxu0 %v2764_v13  ;;  %523 = vmatprep.subr.bf16.mxu1 %v2806_v20 }
 0x137   :  { %483 = vmatpush1.bf16.msra.mxu0 %v2788_v17  ;;  %524 = vmatpush1.bf16.msra.mxu1 %v2824_v23 }
 0x138   :  { %484 = vmatprep.subr.bf16.mxu0 %v2794_v18  ;;  %525 = vmatprep.subr.bf16.mxu1 %v2830_v24 }
 0x13b   :  { %485 = vmatpush1.bf16.msra.mxu0 %v2812_v21  ;;  %526 = vmatpush1.bf16.msra.mxu1 %v2848_v27 }
 0x13c   :  { %486 = vmatprep.subr.bf16.mxu0 %v2817_v22  ;;  %527 = vmatprep.subr.bf16.mxu1 %v2854_v28 }
 0x13f   :  { %487 = vmatpush1.bf16.msra.mxu0 %v2836_v25  ;;  %528 = vmatpush1.bf16.msra.mxu1 %v2867_v30 }
 0x140   :  { %488 = vmatprep.subr.bf16.mxu0 %v2842_v26  ;;  %529 = vmatprep.subr.bf16.mxu1 %v2873_v31 }
 0x143   :  { %489 = vmatpush1.bf16.msra.mxu0 %v2860_v29  ;;  %530 = vmatpush1.bf16.msra.mxu1 %v2880_v32 }
 0x144   :  { %596 = vmatprep.subr.bf16.mxu0 %v2693_v0  ;;  %637 = vmatprep.subr.bf16.mxu1 %v2723_v6 }
 0x1f9   :  { %v386_v58 = vpop.f32.mrb[4].mxu0  ;;  %v427_v59 = vpop.f32.mrb[4].mxu1 }
 0x1fa   :  { %v434_v60 = vadd.f32 %v386_v58, %v347_v54  ;;  %v388_v62 = vpop.f32.mrb[5].mxu0  ;;  %v429_v63 = vpop.f32.mrb[5].mxu1  ;;  %v436_v47 = vadd.f32 %v427_v59, %v349_v43 }
 0x1fb   :  { %v435_v33 = vadd.f32 %v388_v62, %v348_v57  ;;  %v390_v34 = vpop.f32.mrb[6].mxu0  ;;  %v431_v35 = vpop.f32.mrb[6].mxu1  ;;  %v437_v48 = vadd.f32 %v429_v63, %v350_v45 }
 0x1fc   :  { %v2217_v37 = vmul.f32 -1.442695, %v434_v60  ;;  %v391_v39 = vpop.f32.mrb[7].mxu0  ;;  %v432_v40 = vpop.f32.mrb[7].mxu1  ;;  %v2219_v49 = vmul.f32 -1.442695, %v436_v47 }
 0x1fd   :  { %v2218_v41 = vmul.f32 -1.442695, %v435_v33 }
 0x1fe   :  { %2356 = vpow2.f32 %v2217_v37 }
 0x1ff   :  { %2358 = vpow2.f32 %v2218_v41  ;;  %v2221_v41 = vld [vmem:[%s3994_s0 + $0x28] sm:$0xff] }
 0x200   :  { %2360 = vtanh.f32 %v437_v48  ;;  %v467_v48 = vunpack.c.l.bf16 %v2221_v41 }
 0x201   :  { %2362 = vpow2.f32 %v2219_v49 }
 0x208   :  { %v2357_v50 = vpop.eup %2356 }
 0x209   :  { %v447_v51 = vadd.f32 1.0, %v2357_v50  ;;  %v2359_v52 = vpop.eup %2358 }
 0x20a   :  { %v448_v53 = vadd.f32 1.0, %v2359_v52  ;;  %v2361_v54 = vpop.eup %2360 }
 0x20b   :  { %2364 = vrcp.f32 %v447_v51  ;;  %v2363_v57 = vpop.eup %2362 }
 0x20c   :  { %2366 = vrcp.f32 %v448_v53  ;;  %v449_v61 = vadd.f32 1.0, %v2363_v57 }
 0x20e   :  { %2368 = vrcp.f32 %v449_v61  ;;  %v471_v61 = vadd.f32 %v467_v48, %v2941_v44 }
 0x215   :  { %v2365_v56 = vpop.eup %2364 }
 0x216   :  { %v458_v58 = vmul.f32 %v2365_v56, %v2361_v54  ;;  %v2367_v60 = vpop.eup %2366 }
 0x217   :  { %v457_v62 = vmul.f32 %v2367_v60, %v2950_v46  ;;  %v2220_v46 = vld [vmem:[%s3994_s0 + $0x20] sm:$0xff]  ;;  %v468_v60 = vunpack.c.h.bf16 %v2221_v41 }
 0x218   :  { %v2369_v59 = vpop.eup %2368  ;;  %v465_v37 = vunpack.c.l.bf16 %v2220_v46  ;;  %v466_v39 = vunpack.c.h.bf16 %v2220_v46 }
 0x219   :  { %v2998_v33 = vadd.f32 %v458_v58, %v457_v62  ;;  %v472_v62 = vadd.f32 %v468_v60, %v2947_v55 }
 0x21a   :  { %v469_v40 = vadd.f32 %v465_v37, %v2926_v36  ;;  %v470_v42 = vadd.f32 %v466_v39, %v2931_v38 }
 0x21b   :  { %2370 = vtanh.f32 %v2998_v33 }
 0x225   :  { %v2371_v63 = vpop.eup %2370 }
 0x226   :  { %v461_v34 = vmul.f32 %v2371_v63, %v2369_v59 }
 0x228   :  { %v473_v35 = vpack.c.bf16 %v461_v34, %v461_v34 }
 0x22a   :  { %507 = vmatmul.mubr.bf16.vlgmr.msra.gmra.mrb[8].mxu0 %v473_v35  ;;  %548 = vmatmul.mubr.bf16.vlgmr.msra.gmra.mrb[8].mxu1 %v473_v35 }
 0x22b   :  { %597 = vmatpush1.bf16.msra.mxu0 %v2700_v2  ;;  %638 = vmatpush1.bf16.msra.mxu1 %v2728_v7 }
 0x22c   :  { %598 = vmatprep.subr.bf16.mxu0 %v2706_v3  ;;  %639 = vmatprep.subr.bf16.mxu1 %v2747_v10 }
 0x22d   :  { %628 = vmatprep.mubr.bf16.mxu0 %v2668_v1  ;;  %669 = vmatprep.mubr.bf16.mxu1 %v2668_v1 }
 0x22f   :  { %599 = vmatpush1.bf16.msra.mxu0 %v2712_v4  ;;  %640 = vmatpush1.bf16.msra.mxu1 %v2752_v11 }
 0x230   :  { %600 = vmatprep.subr.bf16.mxu0 %v2718_v5  ;;  %641 = vmatprep.subr.bf16.mxu1 %v2769_v14 }
 0x233   :  { %601 = vmatpush1.bf16.msra.mxu0 %v2734_v8  ;;  %642 = vmatpush1.bf16.msra.mxu1 %v2776_v15 }
 0x234   :  { %602 = vmatprep.subr.bf16.mxu0 %v2741_v9  ;;  %643 = vmatprep.subr.bf16.mxu1 %v2782_v16 }
 0x237   :  { %603 = vmatpush1.bf16.msra.mxu0 %v2759_v12  ;;  %644 = vmatpush1.bf16.msra.mxu1 %v2800_v19 }
 0x238   :  { %604 = vmatprep.subr.bf16.mxu0 %v2764_v13  ;;  %645 = vmatprep.subr.bf16.mxu1 %v2806_v20 }
 0x23b   :  { %605 = vmatpush1.bf16.msra.mxu0 %v2788_v17  ;;  %646 = vmatpush1.bf16.msra.mxu1 %v2824_v23 }
 0x23c   :  { %606 = vmatprep.subr.bf16.mxu0 %v2794_v18  ;;  %647 = vmatprep.subr.bf16.mxu1 %v2830_v24 }
 0x23f   :  { %607 = vmatpush1.bf16.msra.mxu0 %v2812_v21  ;;  %648 = vmatpush1.bf16.msra.mxu1 %v2848_v27 }
 0x240   :  { %608 = vmatprep.subr.bf16.mxu0 %v2817_v22  ;;  %649 = vmatprep.subr.bf16.mxu1 %v2854_v28 }
 0x243   :  { %609 = vmatpush1.bf16.msra.mxu0 %v2836_v25  ;;  %650 = vmatpush1.bf16.msra.mxu1 %v2867_v30 }
 0x244   :  { %610 = vmatprep.subr.bf16.mxu0 %v2842_v26  ;;  %651 = vmatprep.subr.bf16.mxu1 %v2873_v31 }
 0x247   :  { %611 = vmatpush1.bf16.msra.mxu0 %v2860_v29  ;;  %652 = vmatpush1.bf16.msra.mxu1 %v2880_v32 }
 0x248   :  { %718 = vmatprep.subr.bf16.mxu0 %v2693_v0  ;;  %759 = vmatprep.subr.bf16.mxu1 %v2723_v6 }
 0x2fd   :  { %v508_v43 = vpop.f32.mrb[8].mxu0  ;;  %v549_v45 = vpop.f32.mrb[8].mxu1 }
 0x2fe   :  { %v556_v47 = vadd.f32 %v508_v43, %v469_v40  ;;  %v510_v49 = vpop.f32.mrb[9].mxu0  ;;  %v551_v50 = vpop.f32.mrb[9].mxu1  ;;  %v558_v59 = vadd.f32 %v549_v45, %v471_v61 }
 0x2ff   :  { %v557_v51 = vadd.f32 %v510_v49, %v470_v42  ;;  %v512_v52 = vpop.f32.mrb[10].mxu0  ;;  %v553_v53 = vpop.f32.mrb[10].mxu1  ;;  %v559_v63 = vadd.f32 %v551_v50, %v472_v62 }
 0x300   :  { %v2222_v54 = vmul.f32 -1.442695, %v556_v47  ;;  %v513_v57 = vpop.f32.mrb[11].mxu0  ;;  %v554_v56 = vpop.f32.mrb[11].mxu1  ;;  %v2224_v34 = vmul.f32 -1.442695, %v558_v59 }
 0x301   :  { %v2223_v58 = vmul.f32 -1.442695, %v557_v51 }
 0x302   :  { %2372 = vpow2.f32 %v2222_v54 }
 0x303   :  { %2374 = vpow2.f32 %v2223_v58  ;;  %v2226_v58 = vld [vmem:[%s3994_s0 + $0x38] sm:$0xff] }
 0x304   :  { %2376 = vtanh.f32 %v559_v63  ;;  %v589_v63 = vunpack.c.l.bf16 %v2226_v58 }
 0x305   :  { %2378 = vpow2.f32 %v2224_v34 }
 0x30c   :  { %v2373_v35 = vpop.eup %2372 }
 0x30d   :  { %v569_v46 = vadd.f32 1.0, %v2373_v35  ;;  %v2375_v37 = vpop.eup %2374 }
 0x30e   :  { %v570_v39 = vadd.f32 1.0, %v2375_v37  ;;  %v2377_v40 = vpop.eup %2376 }
 0x30f   :  { %2380 = vrcp.f32 %v569_v46  ;;  %v2379_v42 = vpop.eup %2378 }
 0x310   :  { %2382 = vrcp.f32 %v570_v39  ;;  %v571_v48 = vadd.f32 1.0, %v2379_v42 }
 0x312   :  { %2384 = vrcp.f32 %v571_v48  ;;  %v593_v48 = vadd.f32 %v589_v63, %v2941_v44 }
 0x319   :  { %v2381_v41 = vpop.eup %2380 }
 0x31a   :  { %v580_v43 = vmul.f32 %v2381_v41, %v2377_v40  ;;  %v2383_v47 = vpop.eup %2382 }
 0x31b   :  { %v579_v49 = vmul.f32 %v2383_v47, %v2998_v33  ;;  %v2225_v33 = vld [vmem:[%s3994_s0 + $0x30] sm:$0xff]  ;;  %v590_v47 = vunpack.c.h.bf16 %v2226_v58 }
 0x31c   :  { %v2385_v45 = vpop.eup %2384  ;;  %v587_v54 = vunpack.c.l.bf16 %v2225_v33  ;;  %v588_v57 = vunpack.c.h.bf16 %v2225_v33 }
 0x31d   :  { %v3046_v51 = vadd.f32 %v580_v43, %v579_v49  ;;  %v594_v49 = vadd.f32 %v590_v47, %v2947_v55 }
 0x31e   :  { %v591_v56 = vadd.f32 %v587_v54, %v2926_v36  ;;  %v592_v60 = vadd.f32 %v588_v57, %v2931_v38 }
 0x31f   :  { %2386 = vtanh.f32 %v3046_v51 }
 0x329   :  { %v2387_v50 = vpop.eup %2386 }
 0x32a   :  { %v583_v52 = vmul.f32 %v2387_v50, %v2385_v45 }
 0x32c   :  { %v595_v53 = vpack.c.bf16 %v583_v52, %v583_v52 }
 0x32e   :  { %629 = vmatmul.mubr.bf16.vlgmr.msra.gmra.mrb[12].mxu0 %v595_v53  ;;  %670 = vmatmul.mubr.bf16.vlgmr.msra.gmra.mrb[12].mxu1 %v595_v53 }
 0x32f   :  { %719 = vmatpush1.bf16.msra.mxu0 %v2700_v2  ;;  %760 = vmatpush1.bf16.msra.mxu1 %v2728_v7 }
 0x330   :  { %720 = vmatprep.subr.bf16.mxu0 %v2706_v3  ;;  %761 = vmatprep.subr.bf16.mxu1 %v2747_v10 }
 0x331   :  { %750 = vmatprep.mubr.bf16.mxu0 %v2668_v1  ;;  %791 = vmatprep.mubr.bf16.mxu1 %v2668_v1 }
 0x333   :  { %721 = vmatpush1.bf16.msra.mxu0 %v2712_v4  ;;  %762 = vmatpush1.bf16.msra.mxu1 %v2752_v11 }
 0x334   :  { %722 = vmatprep.subr.bf16.mxu0 %v2718_v5  ;;  %763 = vmatprep.subr.bf16.mxu1 %v2769_v14 }
 0x337   :  { %723 = vmatpush1.bf16.msra.mxu0 %v2734_v8  ;;  %764 = vmatpush1.bf16.msra.mxu1 %v2776_v15 }
 0x338   :  { %724 = vmatprep.subr.bf16.mxu0 %v2741_v9  ;;  %765 = vmatprep.subr.bf16.mxu1 %v2782_v16 }
 0x33b   :  { %725 = vmatpush1.bf16.msra.mxu0 %v2759_v12  ;;  %766 = vmatpush1.bf16.msra.mxu1 %v2800_v19 }
 0x33c   :  { %726 = vmatprep.subr.bf16.mxu0 %v2764_v13  ;;  %767 = vmatprep.subr.bf16.mxu1 %v2806_v20 }
 0x33f   :  { %727 = vmatpush1.bf16.msra.mxu0 %v2788_v17  ;;  %768 = vmatpush1.bf16.msra.mxu1 %v2824_v23 }
 0x340   :  { %728 = vmatprep.subr.bf16.mxu0 %v2794_v18  ;;  %769 = vmatprep.subr.bf16.mxu1 %v2830_v24 }
 0x343   :  { %729 = vmatpush1.bf16.msra.mxu0 %v2812_v21  ;;  %770 = vmatpush1.bf16.msra.mxu1 %v2848_v27 }
 0x344   :  { %730 = vmatprep.subr.bf16.mxu0 %v2817_v22  ;;  %771 = vmatprep.subr.bf16.mxu1 %v2854_v28 }
 0x347   :  { %731 = vmatpush1.bf16.msra.mxu0 %v2836_v25  ;;  %772 = vmatpush1.bf16.msra.mxu1 %v2867_v30 }
 0x348   :  { %732 = vmatprep.subr.bf16.mxu0 %v2842_v26  ;;  %773 = vmatprep.subr.bf16.mxu1 %v2873_v31 }
 0x34b   :  { %733 = vmatpush1.bf16.msra.mxu0 %v2860_v29  ;;  %774 = vmatpush1.bf16.msra.mxu1 %v2880_v32 }
 0x34c   :  { %840 = vmatprep.subr.bf16.mxu0 %v2693_v0  ;;  %881 = vmatprep.subr.bf16.mxu1 %v2723_v6 }
 0x401   :  { %v630_v61 = vpop.f32.mrb[12].mxu0  ;;  %v671_v62 = vpop.f32.mrb[12].mxu1 }
 0x402   :  { %v678_v59 = vadd.f32 %v630_v61, %v591_v56  ;;  %v632_v34 = vpop.f32.mrb[13].mxu0  ;;  %v673_v35 = vpop.f32.mrb[13].mxu1  ;;  %v680_v45 = vadd.f32 %v671_v62, %v593_v48 }
 0x403   :  { %v679_v46 = vadd.f32 %v632_v34, %v592_v60  ;;  %v634_v37 = vpop.f32.mrb[14].mxu0  ;;  %v675_v39 = vpop.f32.mrb[14].mxu1  ;;  %v681_v50 = vadd.f32 %v673_v35, %v594_v49 }
 0x404   :  { %v2227_v40 = vmul.f32 -1.442695, %v678_v59  ;;  %v635_v42 = vpop.f32.mrb[15].mxu0  ;;  %v676_v41 = vpop.f32.mrb[15].mxu1  ;;  %v2229_v52 = vmul.f32 -1.442695, %v680_v45 }
 0x405   :  { %v2228_v43 = vmul.f32 -1.442695, %v679_v46 }
 0x406   :  { %2388 = vpow2.f32 %v2227_v40 }
 0x407   :  { %2390 = vpow2.f32 %v2228_v43 }
 0x408   :  { %2392 = vtanh.f32 %v681_v50 }
 0x409   :  { %2394 = vpow2.f32 %v2229_v52 }
 0x410   :  { %v2389_v53 = vpop.eup %2388 }
 0x411   :  { %v691_v33 = vadd.f32 1.0, %v2389_v53  ;;  %v2391_v54 = vpop.eup %2390 }
 0x412   :  { %v692_v57 = vadd.f32 1.0, %v2391_v54  ;;  %v2393_v56 = vpop.eup %2392 }
 0x413   :  { %2396 = vrcp.f32 %v691_v33  ;;  %v2395_v60 = vpop.eup %2394 }
 0x414   :  { %2398 = vrcp.f32 %v692_v57  ;;  %v693_v63 = vadd.f32 1.0, %v2395_v60 }
 0x416   :  { %2400 = vrcp.f32 %v693_v63 }
 0x41d   :  { %v2397_v58 = vpop.eup %2396 }
 0x41e   :  { %v702_v61 = vmul.f32 %v2397_v58, %v2393_v56  ;;  %v2399_v59 = vpop.eup %2398 }
 0x41f   :  { %v701_v34 = vmul.f32 %v2399_v59, %v3046_v51 }
 0x420   :  { %v2401_v62 = vpop.eup %2400 }
 0x421   :  { %v3094_v46 = vadd.f32 %v702_v61, %v701_v34 }
 0x423   :  { %2402 = vtanh.f32 %v3094_v46 }
 0x42d   :  { %v2403_v35 = vpop.eup %2402 }
 0x42e   :  { %v705_v37 = vmul.f32 %v2403_v35, %v2401_v62 }
 0x430   :  { %v717_v39 = vpack.c.bf16 %v705_v37, %v705_v37 }
 0x432   :  { %751 = vmatmul.mubr.bf16.vlgmr.msra.gmra.mrb[16].mxu0 %v717_v39  ;;  %792 = vmatmul.mubr.bf16.vlgmr.msra.gmra.mrb[16].mxu1 %v717_v39 }
 0x433   :  { %841 = vmatpush1.bf16.msra.mxu0 %v2700_v2  ;;  %882 = vmatpush1.bf16.msra.mxu1 %v2728_v7  ;;  %v2230_v2 = vld [vmem:[%s3994_s0 + $0x40] sm:$0xff]  ;;  %v2231_v7 = vld [vmem:[%s3994_s0 + $0x48] sm:$0xff] }
 0x434   :  { %842 = vmatprep.subr.bf16.mxu0 %v2706_v3  ;;  %883 = vmatprep.subr.bf16.mxu1 %v2747_v10  ;;  %v709_v3 = vunpack.c.l.bf16 %v2230_v2  ;;  %v712_v52 = vunpack.c.h.bf16 %v2231_v7 }
 0x435   :  { %872 = vmatprep.mubr.bf16.mxu0 %v2668_v1  ;;  %913 = vmatprep.mubr.bf16.mxu1 %v2668_v1 }
 0x436   :  { %v716_v33 = vadd.f32 %v712_v52, %v2947_v55 }
 0x437   :  { %843 = vmatpush1.bf16.msra.mxu0 %v2712_v4  ;;  %884 = vmatpush1.bf16.msra.mxu1 %v2752_v11  ;;  %v710_v4 = vunpack.c.h.bf16 %v2230_v2 }
 0x438   :  { %844 = vmatprep.subr.bf16.mxu0 %v2718_v5  ;;  %885 = vmatprep.subr.bf16.mxu1 %v2769_v14  ;;  %v713_v5 = vadd.f32 %v709_v3, %v2926_v36 }
 0x43b   :  { %845 = vmatpush1.bf16.msra.mxu0 %v2734_v8  ;;  %886 = vmatpush1.bf16.msra.mxu1 %v2776_v15  ;;  %v714_v8 = vadd.f32 %v710_v4, %v2931_v38 }
 0x43c   :  { %846 = vmatprep.subr.bf16.mxu0 %v2741_v9  ;;  %887 = vmatprep.subr.bf16.mxu1 %v2782_v16 }
 0x43f   :  { %847 = vmatpush1.bf16.msra.mxu0 %v2759_v12  ;;  %888 = vmatpush1.bf16.msra.mxu1 %v2800_v19 }
 0x440   :  { %848 = vmatprep.subr.bf16.mxu0 %v2764_v13  ;;  %889 = vmatprep.subr.bf16.mxu1 %v2806_v20 }
 0x443   :  { %849 = vmatpush1.bf16.msra.mxu0 %v2788_v17  ;;  %890 = vmatpush1.bf16.msra.mxu1 %v2824_v23 }
 0x444   :  { %850 = vmatprep.subr.bf16.mxu0 %v2794_v18  ;;  %891 = vmatprep.subr.bf16.mxu1 %v2830_v24 }
 0x447   :  { %851 = vmatpush1.bf16.msra.mxu0 %v2812_v21  ;;  %892 = vmatpush1.bf16.msra.mxu1 %v2848_v27 }
 0x448   :  { %852 = vmatprep.subr.bf16.mxu0 %v2817_v22  ;;  %893 = vmatprep.subr.bf16.mxu1 %v2854_v28 }
 0x44b   :  { %853 = vmatpush1.bf16.msra.mxu0 %v2836_v25  ;;  %894 = vmatpush1.bf16.msra.mxu1 %v2867_v30 }
 0x44c   :  { %854 = vmatprep.subr.bf16.mxu0 %v2842_v26  ;;  %895 = vmatprep.subr.bf16.mxu1 %v2873_v31 }
 0x44f   :  { %855 = vmatpush1.bf16.msra.mxu0 %v2860_v29  ;;  %896 = vmatpush1.bf16.msra.mxu1 %v2880_v32 }
 0x450   :  { %962 = vmatprep.subr.bf16.mxu0 %v2693_v0  ;;  %1003 = vmatprep.subr.bf16.mxu1 %v2723_v6  ;;  %v711_v0 = vunpack.c.l.bf16 %v2231_v7 }
 0x452   :  { %v715_v53 = vadd.f32 %v711_v0, %v2941_v44  ;;  %v3176_v0 = vld [vmem:[%s3993_s2 + $0x44] ss:$16 sps:$4 sm:$0xff]  }
 0x505   :  { %v752_v9 = vpop.f32.mrb[16].mxu0  ;;  %v793_v51 = vpop.f32.mrb[16].mxu1 }
 0x506   :  { %v800_v40 = vadd.f32 %v752_v9, %v713_v5  ;;  %v754_v42 = vpop.f32.mrb[17].mxu0  ;;  %v795_v6 = vpop.f32.mrb[17].mxu1  ;;  %v802_v54 = vadd.f32 %v793_v51, %v715_v53  ;;  %v3148_v9 = vld [vmem:[%s3993_s2] ss:$16 sps:$4 sm:$0xff]   ;;  %v3160_v51 = vld [vmem:[%s3993_s2 + $0x24] ss:$16 sps:$4 sm:$0xff]  }
 0x507   :  { %v801_v41 = vadd.f32 %v754_v42, %v714_v8  ;;  %v756_v43 = vpop.f32.mrb[18].mxu0  ;;  %v797_v47 = vpop.f32.mrb[18].mxu1  ;;  %v803_v57 = vadd.f32 %v795_v6, %v716_v33 }
 0x508   :  { %v2232_v48 = vmul.f32 -1.442695, %v800_v40  ;;  %v757_v49 = vpop.f32.mrb[19].mxu0  ;;  %v798_v45 = vpop.f32.mrb[19].mxu1  ;;  %v2234_v56 = vmul.f32 -1.442695, %v802_v54 }
 0x509   :  { %v2233_v50 = vmul.f32 -1.442695, %v801_v41  ;;  %v3169_v40 = vld [vmem:[%s3993_s2 + $0x20] ss:$16 sps:$4 sm:$0xff]  }
 0x50a   :  { %2404 = vpow2.f32 %v2232_v48 }
 0x50b   :  { %2406 = vpow2.f32 %v2233_v50 }
 0x50c   :  { %2408 = vtanh.f32 %v803_v57 }
 0x50d   :  { %2410 = vpow2.f32 %v2234_v56 }
 0x514   :  { %v2405_v60 = vpop.eup %2404 }
 0x515   :  { %v813_v58 = vadd.f32 1.0, %v2405_v60  ;;  %v2407_v61 = vpop.eup %2406 }
 0x516   :  { %v814_v59 = vadd.f32 1.0, %v2407_v61  ;;  %v2409_v63 = vpop.eup %2408 }
 0x517   :  { %2412 = vrcp.f32 %v813_v58  ;;  %v2411_v34 = vpop.eup %2410 }
 0x518   :  { %2414 = vrcp.f32 %v814_v59  ;;  %v815_v39 = vadd.f32 1.0, %v2411_v34  ;;  %v3244_v59 = vld [vmem:[%s3993_s2 + $0x2c] ss:$16 sps:$4 sm:$0xff]  }
 0x519   :  { %v3260_v34 = vld [vmem:[%s3993_s2 + $0x4c] ss:$16 sps:$4 sm:$0xff]  }
 0x51a   :  { %2416 = vrcp.f32 %v815_v39  ;;  %v3286_v39 = vld [vmem:[%s3993_s2 + $0x68] ss:$16 sps:$4 sm:$0xff]  }
 0x521   :  { %v2413_v62 = vpop.eup %2412 }
 0x522   :  { %v824_v35 = vmul.f32 %v2413_v62, %v2409_v63  ;;  %v2415_v37 = vpop.eup %2414  ;;  %v3253_v63 = vld [vmem:[%s3993_s2 + $0x28] ss:$16 sps:$4 sm:$0xff]  }
 0x523   :  { %v823_v2 = vmul.f32 %v2415_v37, %v3094_v46  ;;  %v3154_v46 = vld [vmem:[%s3993_s2 + $0x8] ss:$16 sps:$4 sm:$0xff]   ;;  %v3280_v37 = vld [vmem:[%s3993_s2 + $0x60] ss:$16 sps:$4 sm:$0xff]  }
 0x524   :  { %v2417_v4 = vpop.eup %2416  ;;  %v3267_v62 = vld [vmem:[%s3993_s2 + $0x48] ss:$16 sps:$4 sm:$0xff]  }
 0x525   :  { %v3142_v3 = vadd.f32 %v824_v35, %v823_v2  ;;  %v3274_v35 = vld [vmem:[%s3993_s2 + $0x6c] ss:$16 sps:$4 sm:$0xff]   ;;  %v3292_v2 = vld [vmem:[%s3993_s2 + $0x84] ss:$16 sps:$4 sm:$0xff]  }
 0x527   :  { %2418 = vtanh.f32 %v3142_v3 }
 0x531   :  { %v2419_v5 = vpop.eup %2418 }
 0x532   :  { %v827_v7 = vmul.f32 %v2419_v5, %v2417_v4  ;;  %v3304_v4 = vld [vmem:[%s3993_s2 + $0x80] ss:$16 sps:$4 sm:$0xff]   ;;  %v3310_v5 = vld [vmem:[%s3993_s2 + $0x88] ss:$16 sps:$4 sm:$0xff]  }
 0x534   :  { %v839_v8 = vpack.c.bf16 %v827_v7, %v827_v7  ;;  %v3316_v7 = vld [vmem:[%s3993_s2 + $0xa4] ss:$16 sps:$4 sm:$0xff]  }
 0x536   :  { %873 = vmatmul.mubr.bf16.vlgmr.msra.gmra.mrb[20].mxu0 %v839_v8  ;;  %914 = vmatmul.mubr.bf16.vlgmr.msra.gmra.mrb[20].mxu1 %v839_v8  ;;  %v3322_v8 = vld [vmem:[%s3993_s2 + $0xac] ss:$16 sps:$4 sm:$0xff]  }
 0x537   :  { %963 = vmatpush1.bf16.msra.mxu0 %v3148_v9  ;;  %1004 = vmatpush1.bf16.msra.mxu1 %v3154_v46 }
 0x538   :  { %964 = vmatprep.subr.bf16.mxu0 %v3160_v51  ;;  %1005 = vmatprep.subr.bf16.mxu1 %v2747_v10  ;;  %v3183_v10 = vld [vmem:[%s3993_s2 + $0x40] ss:$16 sps:$4 sm:$0xff]  }
 0x539   :  { %994 = vmatprep.mubr.bf16.mxu0 %v2668_v1  ;;  %1035 = vmatprep.mubr.bf16.mxu1 %v2668_v1 }
 0x53b   :  { %965 = vmatpush1.bf16.msra.mxu0 %v3169_v40  ;;  %1006 = vmatpush1.bf16.msra.mxu1 %v2752_v11  ;;  %v3190_v11 = vld [vmem:[%s3993_s2 + $0x64] ss:$16 sps:$4 sm:$0xff]  }
 0x53c   :  { %966 = vmatprep.subr.bf16.mxu0 %v3176_v0  ;;  %1007 = vmatprep.subr.bf16.mxu1 %v2769_v14  ;;  %v2235_v14 = vld [vmem:[%s3994_s0 + $0x50] sm:$0xff] }
 0x53f   :  { %967 = vmatpush1.bf16.msra.mxu0 %v3183_v10  ;;  %1008 = vmatpush1.bf16.msra.mxu1 %v2776_v15  ;;  %v831_v15 = vunpack.c.l.bf16 %v2235_v14 }
 0x540   :  { %968 = vmatprep.subr.bf16.mxu0 %v3190_v11  ;;  %1009 = vmatprep.subr.bf16.mxu1 %v2782_v16  ;;  %v832_v16 = vunpack.c.h.bf16 %v2235_v14  ;;  %v3328_v14 = vld [vmem:[%s3993_s2 + $0xa0] ss:$16 sps:$4 sm:$0xff]  }
 0x543   :  { %969 = vmatpush1.bf16.msra.mxu0 %v2759_v12  ;;  %1010 = vmatpush1.bf16.msra.mxu1 %v2800_v19  ;;  %v3215_v12 = vld [vmem:[%s3993_s2 + $0x4] ss:$16 sps:$4 sm:$0xff]   ;;  %v836_v19 = vadd.f32 %v832_v16, %v2931_v38 }
 0x544   :  { %970 = vmatprep.subr.bf16.mxu0 %v2764_v13  ;;  %1011 = vmatprep.subr.bf16.mxu1 %v2806_v20  ;;  %v3221_v13 = vld [vmem:[%s3993_s2 + $0xc] ss:$16 sps:$4 sm:$0xff]   ;;  %v3340_v16 = vld [vmem:[%s3993_s2 + $0xc4] ss:$16 sps:$4 sm:$0xff]  }
 0x547   :  { %971 = vmatpush1.bf16.msra.mxu0 %v2788_v17  ;;  %1012 = vmatpush1.bf16.msra.mxu1 %v2824_v23  ;;  %v835_v17 = vadd.f32 %v831_v15, %v2926_v36  ;;  %v3334_v15 = vld [vmem:[%s3993_s2 + $0xa8] ss:$16 sps:$4 sm:$0xff]  }
 0x548   :  { %972 = vmatprep.subr.bf16.mxu0 %v2794_v18  ;;  %1013 = vmatprep.subr.bf16.mxu1 %v2830_v24  ;;  %v2236_v18 = vld [vmem:[%s3994_s0 + $0x58] sm:$0xff] }
 0x549   :  { %v833_v23 = vunpack.c.l.bf16 %v2236_v18  ;;  %v834_v36 = vunpack.c.h.bf16 %v2236_v18  ;;  %v3352_v18 = vld [vmem:[%s3993_s2 + $0xc0] ss:$16 sps:$4 sm:$0xff]  }
 0x54b   :  { %973 = vmatpush1.bf16.msra.mxu0 %v2812_v21  ;;  %1014 = vmatpush1.bf16.msra.mxu1 %v2848_v27  ;;  %v837_v42 = vadd.f32 %v833_v23, %v2941_v44  ;;  %v838_v38 = vadd.f32 %v834_v36, %v2947_v55  ;;  %v3382_v23 = vld [vmem:[%s3993_s2 + $0xe8] ss:$16 sps:$4 sm:$0xff]  }
 0x54c   :  { %974 = vmatprep.subr.bf16.mxu0 %v2817_v22  ;;  %1015 = vmatprep.subr.bf16.mxu1 %v2854_v28 }
 0x54f   :  { %975 = vmatpush1.bf16.msra.mxu0 %v2836_v25  ;;  %1016 = vmatpush1.bf16.msra.mxu1 %v2867_v30 }
 0x550   :  { %976 = vmatprep.subr.bf16.mxu0 %v2842_v26  ;;  %1017 = vmatprep.subr.bf16.mxu1 %v2873_v31 }
 0x553   :  { %977 = vmatpush1.bf16.msra.mxu0 %v2860_v29  ;;  %1018 = vmatpush1.bf16.msra.mxu1 %v2880_v32 }
 0x554   :  { %1084 = vmatprep.subr.bf16.mxu0 %v3215_v12  ;;  %1125 = vmatprep.subr.bf16.mxu1 %v3221_v13 }
 0x609   :  { %v874_v20 = vpop.f32.mrb[20].mxu0  ;;  %v915_v21 = vpop.f32.mrb[20].mxu1 }
 0x60a   :  { %v922_v22 = vadd.f32 %v874_v20, %v835_v17  ;;  %v876_v24 = vpop.f32.mrb[21].mxu0  ;;  %v917_v25 = vpop.f32.mrb[21].mxu1  ;;  %v924_v6 = vadd.f32 %v915_v21, %v837_v42  ;;  %v3346_v17 = vld [vmem:[%s3993_s2 + $0xcc] ss:$16 sps:$4 sm:$0xff]   ;;  %v3364_v20 = vld [vmem:[%s3993_s2 + $0xe4] ss:$16 sps:$4 sm:$0xff]  }
 0x60b   :  { %v923_v26 = vadd.f32 %v876_v24, %v836_v19  ;;  %v878_v27 = vpop.f32.mrb[22].mxu0  ;;  %v919_v28 = vpop.f32.mrb[22].mxu1  ;;  %v925_v41 = vadd.f32 %v917_v25, %v838_v38  ;;  %v3358_v19 = vld [vmem:[%s3993_s2 + $0xc8] ss:$16 sps:$4 sm:$0xff]   ;;  %v3370_v21 = vld [vmem:[%s3993_s2 + $0xec] ss:$16 sps:$4 sm:$0xff]  }
 0x60c   :  { %v2237_v29 = vmul.f32 -1.442695, %v922_v22  ;;  %v879_v30 = vpop.f32.mrb[23].mxu0  ;;  %v920_v31 = vpop.f32.mrb[23].mxu1  ;;  %v2239_v43 = vmul.f32 -1.442695, %v924_v6 }
 0x60d   :  { %v2238_v32 = vmul.f32 -1.442695, %v923_v26  ;;  %v3376_v22 = vld [vmem:[%s3993_s2 + $0xe0] ss:$16 sps:$4 sm:$0xff]   ;;  %v3402_v30 = vld [vmem:[%s3995_s1 + $0x8] sm:$0xff] }
 0x60e   :  { %2420 = vpow2.f32 %v2237_v29  ;;  %v2240_v24 = vld [vmem:[%s3994_s0 + $0x60] sm:$0xff]  ;;  %v2241_v29 = vld [vmem:[%s3994_s0 + $0x68] sm:$0xff] }
 0x60f   :  { %2422 = vpow2.f32 %v2238_v32  ;;  %v953_v25 = vunpack.c.l.bf16 %v2240_v24  ;;  %v954_v26 = vunpack.c.h.bf16 %v2240_v24  ;;  %v3393_v27 = vld [vmem:[%s3995_s1] sm:$0xff]  ;;  %v955_v38 = vunpack.c.l.bf16 %v2241_v29 }
 0x610   :  { %2424 = vtanh.f32 %v925_v41 }
 0x611   :  { %2426 = vpow2.f32 %v2239_v43  ;;  %v957_v28 = vadd.f32 %v3393_v27, %v953_v25  ;;  %v958_v31 = vadd.f32 %v3402_v30, %v954_v26 }
 0x618   :  { %v2421_v47 = vpop.eup %2420 }
 0x619   :  { %v935_v48 = vadd.f32 1.0, %v2421_v47  ;;  %v2423_v49 = vpop.eup %2422 }
 0x61a   :  { %v936_v45 = vadd.f32 1.0, %v2423_v49  ;;  %v2425_v50 = vpop.eup %2424 }
 0x61b   :  { %2428 = vrcp.f32 %v935_v48  ;;  %v2427_v52 = vpop.eup %2426 }
 0x61c   :  { %2430 = vrcp.f32 %v936_v45  ;;  %v937_v44 = vadd.f32 1.0, %v2427_v52 }
 0x61e   :  { %2432 = vrcp.f32 %v937_v44  ;;  %v3414_v44 = vld [vmem:[%s3995_s1 + $0x18] sm:$0xff] }
 0x625   :  { %v2429_v53 = vpop.eup %2428 }
 0x626   :  { %v946_v33 = vmul.f32 %v2429_v53, %v2425_v50  ;;  %v2431_v54 = vpop.eup %2430  ;;  %v956_v53 = vunpack.c.h.bf16 %v2241_v29 }
 0x627   :  { %v945_v57 = vmul.f32 %v2431_v54, %v3142_v3  ;;  %v3298_v3 = vld [vmem:[%s3993_s2 + $0x8c] ss:$16 sps:$4 sm:$0xff]  }
 0x628   :  { %v2433_v56 = vpop.eup %2432 }
 0x629   :  { %v3235_v55 = vadd.f32 %v946_v33, %v945_v57  ;;  %v3408_v33 = vld [vmem:[%s3995_s1 + $0x10] sm:$0xff]  ;;  %v960_v57 = vadd.f32 %v3414_v44, %v956_v53 }
 0x62a   :  { %v959_v54 = vadd.f32 %v3408_v33, %v955_v38 }
 0x62b   :  { %2434 = vtanh.f32 %v3235_v55 }
 0x635   :  { %v2435_v60 = vpop.eup %2434 }
 0x636   :  { %v949_v58 = vmul.f32 %v2435_v60, %v2433_v56 }
 0x638   :  { %v961_v61 = vpack.c.bf16 %v949_v58, %v949_v58 }
 0x63a   :  { %995 = vmatmul.mubr.bf16.vlgmr.msra.gmra.mrb[24].mxu0 %v961_v61  ;;  %1036 = vmatmul.mubr.bf16.vlgmr.msra.gmra.mrb[24].mxu1 %v961_v61 }
 0x63b   :  { %1085 = vmatpush1.bf16.msra.mxu0 %v3148_v9  ;;  %1126 = vmatpush1.bf16.msra.mxu1 %v3154_v46 }
 0x63c   :  { %1086 = vmatprep.subr.bf16.mxu0 %v3160_v51  ;;  %1127 = vmatprep.subr.bf16.mxu1 %v3244_v59 }
 0x63d   :  { %1116 = vmatprep.mubr.bf16.mxu0 %v2668_v1  ;;  %1157 = vmatprep.mubr.bf16.mxu1 %v2668_v1 }
 0x63f   :  { %1087 = vmatpush1.bf16.msra.mxu0 %v3169_v40  ;;  %1128 = vmatpush1.bf16.msra.mxu1 %v3253_v63 }
 0x640   :  { %1088 = vmatprep.subr.bf16.mxu0 %v3176_v0  ;;  %1129 = vmatprep.subr.bf16.mxu1 %v3260_v34 }
 0x643   :  { %1089 = vmatpush1.bf16.msra.mxu0 %v3183_v10  ;;  %1130 = vmatpush1.bf16.msra.mxu1 %v3267_v62 }
 0x644   :  { %1090 = vmatprep.subr.bf16.mxu0 %v3190_v11  ;;  %1131 = vmatprep.subr.bf16.mxu1 %v3274_v35 }
 0x647   :  { %1091 = vmatpush1.bf16.msra.mxu0 %v3280_v37  ;;  %1132 = vmatpush1.bf16.msra.mxu1 %v3286_v39 }
 0x648   :  { %1092 = vmatprep.subr.bf16.mxu0 %v3292_v2  ;;  %1133 = vmatprep.subr.bf16.mxu1 %v3298_v3 }
 0x64b   :  { %1093 = vmatpush1.bf16.msra.mxu0 %v3304_v4  ;;  %1134 = vmatpush1.bf16.msra.mxu1 %v3310_v5 }
 0x64c   :  { %1094 = vmatprep.subr.bf16.mxu0 %v3316_v7  ;;  %1135 = vmatprep.subr.bf16.mxu1 %v3322_v8 }
 0x64f   :  { %1095 = vmatpush1.bf16.msra.mxu0 %v3328_v14  ;;  %1136 = vmatpush1.bf16.msra.mxu1 %v3334_v15 }
 0x650   :  { %1096 = vmatprep.subr.bf16.mxu0 %v3340_v16  ;;  %1137 = vmatprep.subr.bf16.mxu1 %v3346_v17 }
 0x653   :  { %1097 = vmatpush1.bf16.msra.mxu0 %v3352_v18  ;;  %1138 = vmatpush1.bf16.msra.mxu1 %v3358_v19 }
 0x654   :  { %1098 = vmatprep.subr.bf16.mxu0 %v3364_v20  ;;  %1139 = vmatprep.subr.bf16.mxu1 %v3370_v21 }
 0x657   :  { %1099 = vmatpush1.bf16.msra.mxu0 %v3376_v22  ;;  %1140 = vmatpush1.bf16.msra.mxu1 %v3382_v23 }
 0x658   :  { %1206 = vmatprep.subr.bf16.mxu0 %v3215_v12  ;;  %1247 = vmatprep.subr.bf16.mxu1 %v3221_v13 }
 0x70d   :  { %v996_v32 = vpop.f32.mrb[24].mxu0  ;;  %v1037_v36 = vpop.f32.mrb[24].mxu1 }
 0x70e   :  { %v1044_v42 = vadd.f32 %v996_v32, %v957_v28  ;;  %v998_v6 = vpop.f32.mrb[25].mxu0  ;;  %v1039_v41 = vpop.f32.mrb[25].mxu1  ;;  %v1046_v56 = vadd.f32 %v1037_v36, %v959_v54 }
 0x70f   :  { %v1045_v43 = vadd.f32 %v998_v6, %v958_v31  ;;  %v1000_v47 = vpop.f32.mrb[26].mxu0  ;;  %v1041_v48 = vpop.f32.mrb[26].mxu1  ;;  %v1047_v60 = vadd.f32 %v1039_v41, %v960_v57 }
 0x710   :  { %v2242_v49 = vmul.f32 -1.442695, %v1044_v42  ;;  %v1001_v45 = vpop.f32.mrb[27].mxu0  ;;  %v1042_v50 = vpop.f32.mrb[27].mxu1  ;;  %v2244_v58 = vmul.f32 -1.442695, %v1046_v56 }
 0x711   :  { %v2243_v52 = vmul.f32 -1.442695, %v1045_v43 }
 0x712   :  { %2436 = vpow2.f32 %v2242_v49 }
 0x713   :  { %2438 = vpow2.f32 %v2243_v52  ;;  %v2246_v52 = vld [vmem:[%s3994_s0 + $0x78] sm:$0xff] }
 0x714   :  { %2440 = vtanh.f32 %v1047_v60  ;;  %v1077_v60 = vunpack.c.l.bf16 %v2246_v52 }
 0x715   :  { %2442 = vpow2.f32 %v2244_v58 }
 0x71c   :  { %v2437_v61 = vpop.eup %2436 }
 0x71d   :  { %v1057_v24 = vadd.f32 1.0, %v2437_v61  ;;  %v2439_v25 = vpop.eup %2438 }
 0x71e   :  { %v1058_v26 = vadd.f32 1.0, %v2439_v25  ;;  %v2441_v28 = vpop.eup %2440 }
 0x71f   :  { %2444 = vrcp.f32 %v1057_v24  ;;  %v2443_v29 = vpop.eup %2442 }
 0x720   :  { %2446 = vrcp.f32 %v1058_v26  ;;  %v1059_v38 = vadd.f32 1.0, %v2443_v29 }
 0x722   :  { %2448 = vrcp.f32 %v1059_v38  ;;  %v1081_v38 = vadd.f32 %v3408_v33, %v1077_v60 }
 0x729   :  { %v2445_v31 = vpop.eup %2444 }
 0x72a   :  { %v1068_v32 = vmul.f32 %v2445_v31, %v2441_v28  ;;  %v2447_v42 = vpop.eup %2446 }
 0x72b   :  { %v1067_v6 = vmul.f32 %v2447_v42, %v3235_v55  ;;  %v2245_v55 = vld [vmem:[%s3994_s0 + $0x70] sm:$0xff]  ;;  %v1078_v42 = vunpack.c.h.bf16 %v2246_v52 }
 0x72c   :  { %v2449_v36 = vpop.eup %2448  ;;  %v1075_v49 = vunpack.c.l.bf16 %v2245_v55  ;;  %v1076_v45 = vunpack.c.h.bf16 %v2245_v55 }
 0x72d   :  { %v3418_v43 = vadd.f32 %v1068_v32, %v1067_v6  ;;  %v1082_v6 = vadd.f32 %v3414_v44, %v1078_v42 }
 0x72e   :  { %v1079_v50 = vadd.f32 %v3393_v27, %v1075_v49  ;;  %v1080_v53 = vadd.f32 %v3402_v30, %v1076_v45 }
 0x72f   :  { %2450 = vtanh.f32 %v3418_v43 }
 0x739   :  { %v2451_v41 = vpop.eup %2450 }
 0x73a   :  { %v1071_v47 = vmul.f32 %v2451_v41, %v2449_v36 }
 0x73c   :  { %v1083_v48 = vpack.c.bf16 %v1071_v47, %v1071_v47 }
 0x73e   :  { %1117 = vmatmul.mubr.bf16.vlgmr.msra.gmra.mrb[28].mxu0 %v1083_v48  ;;  %1158 = vmatmul.mubr.bf16.vlgmr.msra.gmra.mrb[28].mxu1 %v1083_v48 }
 0x73f   :  { %1207 = vmatpush1.bf16.msra.mxu0 %v3148_v9  ;;  %1248 = vmatpush1.bf16.msra.mxu1 %v3154_v46 }
 0x740   :  { %1208 = vmatprep.subr.bf16.mxu0 %v3160_v51  ;;  %1249 = vmatprep.subr.bf16.mxu1 %v3244_v59 }
 0x741   :  { %1238 = vmatprep.mubr.bf16.mxu0 %v2668_v1  ;;  %1279 = vmatprep.mubr.bf16.mxu1 %v2668_v1 }
 0x743   :  { %1209 = vmatpush1.bf16.msra.mxu0 %v3169_v40  ;;  %1250 = vmatpush1.bf16.msra.mxu1 %v3253_v63 }
 0x744   :  { %1210 = vmatprep.subr.bf16.mxu0 %v3176_v0  ;;  %1251 = vmatprep.subr.bf16.mxu1 %v3260_v34 }
 0x747   :  { %1211 = vmatpush1.bf16.msra.mxu0 %v3183_v10  ;;  %1252 = vmatpush1.bf16.msra.mxu1 %v3267_v62 }
 0x748   :  { %1212 = vmatprep.subr.bf16.mxu0 %v3190_v11  ;;  %1253 = vmatprep.subr.bf16.mxu1 %v3274_v35 }
 0x74b   :  { %1213 = vmatpush1.bf16.msra.mxu0 %v3280_v37  ;;  %1254 = vmatpush1.bf16.msra.mxu1 %v3286_v39 }
 0x74c   :  { %1214 = vmatprep.subr.bf16.mxu0 %v3292_v2  ;;  %1255 = vmatprep.subr.bf16.mxu1 %v3298_v3 }
 0x74f   :  { %1215 = vmatpush1.bf16.msra.mxu0 %v3304_v4  ;;  %1256 = vmatpush1.bf16.msra.mxu1 %v3310_v5 }
 0x750   :  { %1216 = vmatprep.subr.bf16.mxu0 %v3316_v7  ;;  %1257 = vmatprep.subr.bf16.mxu1 %v3322_v8 }
 0x753   :  { %1217 = vmatpush1.bf16.msra.mxu0 %v3328_v14  ;;  %1258 = vmatpush1.bf16.msra.mxu1 %v3334_v15 }
 0x754   :  { %1218 = vmatprep.subr.bf16.mxu0 %v3340_v16  ;;  %1259 = vmatprep.subr.bf16.mxu1 %v3346_v17 }
 0x757   :  { %1219 = vmatpush1.bf16.msra.mxu0 %v3352_v18  ;;  %1260 = vmatpush1.bf16.msra.mxu1 %v3358_v19 }
 0x758   :  { %1220 = vmatprep.subr.bf16.mxu0 %v3364_v20  ;;  %1261 = vmatprep.subr.bf16.mxu1 %v3370_v21 }
 0x75b   :  { %1221 = vmatpush1.bf16.msra.mxu0 %v3376_v22  ;;  %1262 = vmatpush1.bf16.msra.mxu1 %v3382_v23 }
 0x75c   :  { %1328 = vmatprep.subr.bf16.mxu0 %v3215_v12  ;;  %1369 = vmatprep.subr.bf16.mxu1 %v3221_v13 }
 0x811   :  { %v1118_v54 = vpop.f32.mrb[28].mxu0  ;;  %v1159_v57 = vpop.f32.mrb[28].mxu1 }
 0x812   :  { %v1166_v56 = vadd.f32 %v1118_v54, %v1079_v50  ;;  %v1120_v58 = vpop.f32.mrb[29].mxu0  ;;  %v1161_v61 = vpop.f32.mrb[29].mxu1  ;;  %v1168_v36 = vadd.f32 %v1159_v57, %v1081_v38 }
 0x813   :  { %v1167_v24 = vadd.f32 %v1120_v58, %v1080_v53  ;;  %v1122_v25 = vpop.f32.mrb[30].mxu0  ;;  %v1163_v26 = vpop.f32.mrb[30].mxu1  ;;  %v1169_v41 = vadd.f32 %v1161_v61, %v1082_v6 }
 0x814   :  { %v2247_v28 = vmul.f32 -1.442695, %v1166_v56  ;;  %v1123_v29 = vpop.f32.mrb[31].mxu0  ;;  %v1164_v31 = vpop.f32.mrb[31].mxu1  ;;  %v2249_v47 = vmul.f32 -1.442695, %v1168_v36 }
 0x815   :  { %v2248_v32 = vmul.f32 -1.442695, %v1167_v24 }
 0x816   :  { %2452 = vpow2.f32 %v2247_v28 }
 0x817   :  { %2454 = vpow2.f32 %v2248_v32  ;;  %v2251_v32 = vld [vmem:[%s3994_s0 + $0x88] sm:$0xff] }
 0x818   :  { %2456 = vtanh.f32 %v1169_v41  ;;  %v1199_v41 = vunpack.c.l.bf16 %v2251_v32 }
 0x819   :  { %2458 = vpow2.f32 %v2249_v47 }
 0x820   :  { %v2453_v48 = vpop.eup %2452 }
 0x821   :  { %v1179_v55 = vadd.f32 1.0, %v2453_v48  ;;  %v2455_v49 = vpop.eup %2454 }
 0x822   :  { %v1180_v45 = vadd.f32 1.0, %v2455_v49  ;;  %v2457_v50 = vpop.eup %2456 }
 0x823   :  { %2460 = vrcp.f32 %v1179_v55  ;;  %v2459_v53 = vpop.eup %2458 }
 0x824   :  { %2462 = vrcp.f32 %v1180_v45  ;;  %v1181_v60 = vadd.f32 1.0, %v2459_v53 }
 0x826   :  { %2464 = vrcp.f32 %v1181_v60  ;;  %v1203_v60 = vadd.f32 %v3408_v33, %v1199_v41 }
 0x82d   :  { %v2461_v52 = vpop.eup %2460 }
 0x82e   :  { %v1190_v54 = vmul.f32 %v2461_v52, %v2457_v50  ;;  %v2463_v56 = vpop.eup %2462 }
 0x82f   :  { %v1189_v58 = vmul.f32 %v2463_v56, %v3418_v43  ;;  %v2250_v43 = vld [vmem:[%s3994_s0 + $0x80] sm:$0xff]  ;;  %v1200_v56 = vunpack.c.h.bf16 %v2251_v32 }
 0x830   :  { %v2465_v57 = vpop.eup %2464  ;;  %v1197_v28 = vunpack.c.l.bf16 %v2250_v43  ;;  %v1198_v29 = vunpack.c.h.bf16 %v2250_v43 }
 0x831   :  { %v3466_v24 = vadd.f32 %v1190_v54, %v1189_v58  ;;  %v1204_v58 = vadd.f32 %v3414_v44, %v1200_v56 }
 0x832   :  { %v1201_v31 = vadd.f32 %v3393_v27, %v1197_v28  ;;  %v1202_v42 = vadd.f32 %v3402_v30, %v1198_v29 }
 0x833   :  { %2466 = vtanh.f32 %v3466_v24 }
 0x83d   :  { %v2467_v61 = vpop.eup %2466 }
 0x83e   :  { %v1193_v25 = vmul.f32 %v2467_v61, %v2465_v57 }
 0x840   :  { %v1205_v26 = vpack.c.bf16 %v1193_v25, %v1193_v25 }
 0x842   :  { %1239 = vmatmul.mubr.bf16.vlgmr.msra.gmra.mrb[32].mxu0 %v1205_v26  ;;  %1280 = vmatmul.mubr.bf16.vlgmr.msra.gmra.mrb[32].mxu1 %v1205_v26 }
 0x843   :  { %1329 = vmatpush1.bf16.msra.mxu0 %v3148_v9  ;;  %1370 = vmatpush1.bf16.msra.mxu1 %v3154_v46 }
 0x844   :  { %1330 = vmatprep.subr.bf16.mxu0 %v3160_v51  ;;  %1371 = vmatprep.subr.bf16.mxu1 %v3244_v59 }
 0x845   :  { %1360 = vmatprep.mubr.bf16.mxu0 %v2668_v1  ;;  %1401 = vmatprep.mubr.bf16.mxu1 %v2668_v1 }
 0x847   :  { %1331 = vmatpush1.bf16.msra.mxu0 %v3169_v40  ;;  %1372 = vmatpush1.bf16.msra.mxu1 %v3253_v63 }
 0x848   :  { %1332 = vmatprep.subr.bf16.mxu0 %v3176_v0  ;;  %1373 = vmatprep.subr.bf16.mxu1 %v3260_v34 }
 0x84b   :  { %1333 = vmatpush1.bf16.msra.mxu0 %v3183_v10  ;;  %1374 = vmatpush1.bf16.msra.mxu1 %v3267_v62 }
 0x84c   :  { %1334 = vmatprep.subr.bf16.mxu0 %v3190_v11  ;;  %1375 = vmatprep.subr.bf16.mxu1 %v3274_v35 }
 0x84f   :  { %1335 = vmatpush1.bf16.msra.mxu0 %v3280_v37  ;;  %1376 = vmatpush1.bf16.msra.mxu1 %v3286_v39 }
 0x850   :  { %1336 = vmatprep.subr.bf16.mxu0 %v3292_v2  ;;  %1377 = vmatprep.subr.bf16.mxu1 %v3298_v3 }
 0x853   :  { %1337 = vmatpush1.bf16.msra.mxu0 %v3304_v4  ;;  %1378 = vmatpush1.bf16.msra.mxu1 %v3310_v5 }
 0x854   :  { %1338 = vmatprep.subr.bf16.mxu0 %v3316_v7  ;;  %1379 = vmatprep.subr.bf16.mxu1 %v3322_v8 }
 0x857   :  { %1339 = vmatpush1.bf16.msra.mxu0 %v3328_v14  ;;  %1380 = vmatpush1.bf16.msra.mxu1 %v3334_v15 }
 0x858   :  { %1340 = vmatprep.subr.bf16.mxu0 %v3340_v16  ;;  %1381 = vmatprep.subr.bf16.mxu1 %v3346_v17 }
 0x85b   :  { %1341 = vmatpush1.bf16.msra.mxu0 %v3352_v18  ;;  %1382 = vmatpush1.bf16.msra.mxu1 %v3358_v19 }
 0x85c   :  { %1342 = vmatprep.subr.bf16.mxu0 %v3364_v20  ;;  %1383 = vmatprep.subr.bf16.mxu1 %v3370_v21 }
 0x85f   :  { %1343 = vmatpush1.bf16.msra.mxu0 %v3376_v22  ;;  %1384 = vmatpush1.bf16.msra.mxu1 %v3382_v23 }
 0x860   :  { %1450 = vmatprep.subr.bf16.mxu0 %v3215_v12  ;;  %1491 = vmatprep.subr.bf16.mxu1 %v3221_v13 }
 0x915   :  { %v1240_v38 = vpop.f32.mrb[32].mxu0  ;;  %v1281_v6 = vpop.f32.mrb[32].mxu1 }
 0x916   :  { %v1288_v36 = vadd.f32 %v1240_v38, %v1201_v31  ;;  %v1242_v47 = vpop.f32.mrb[33].mxu0  ;;  %v1283_v48 = vpop.f32.mrb[33].mxu1  ;;  %v1290_v57 = vadd.f32 %v1281_v6, %v1203_v60 }
 0x917   :  { %v1289_v55 = vadd.f32 %v1242_v47, %v1202_v42  ;;  %v1244_v49 = vpop.f32.mrb[34].mxu0  ;;  %v1285_v45 = vpop.f32.mrb[34].mxu1  ;;  %v1291_v61 = vadd.f32 %v1283_v48, %v1204_v58 }
 0x918   :  { %v2252_v50 = vmul.f32 -1.442695, %v1288_v36  ;;  %v1245_v53 = vpop.f32.mrb[35].mxu0  ;;  %v1286_v52 = vpop.f32.mrb[35].mxu1  ;;  %v2254_v25 = vmul.f32 -1.442695, %v1290_v57 }
 0x919   :  { %v2253_v54 = vmul.f32 -1.442695, %v1289_v55 }
 0x91a   :  { %2468 = vpow2.f32 %v2252_v50 }
 0x91b   :  { %2470 = vpow2.f32 %v2253_v54  ;;  %v2256_v54 = vld [vmem:[%s3994_s0 + $0x98] sm:$0xff] }
 0x91c   :  { %2472 = vtanh.f32 %v1291_v61  ;;  %v1321_v61 = vunpack.c.l.bf16 %v2256_v54 }
 0x91d   :  { %2474 = vpow2.f32 %v2254_v25 }
 0x924   :  { %v2469_v26 = vpop.eup %2468 }
 0x925   :  { %v1301_v43 = vadd.f32 1.0, %v2469_v26  ;;  %v2471_v28 = vpop.eup %2470 }
 0x926   :  { %v1302_v29 = vadd.f32 1.0, %v2471_v28  ;;  %v2473_v31 = vpop.eup %2472 }
 0x927   :  { %2476 = vrcp.f32 %v1301_v43  ;;  %v2475_v42 = vpop.eup %2474 }
 0x928   :  { %2478 = vrcp.f32 %v1302_v29  ;;  %v1303_v41 = vadd.f32 1.0, %v2475_v42 }
 0x92a   :  { %2480 = vrcp.f32 %v1303_v41  ;;  %v1325_v41 = vadd.f32 %v3408_v33, %v1321_v61 }
 0x931   :  { %v2477_v32 = vpop.eup %2476 }
 0x932   :  { %v1312_v38 = vmul.f32 %v2477_v32, %v2473_v31  ;;  %v2479_v36 = vpop.eup %2478 }
 0x933   :  { %v1311_v47 = vmul.f32 %v2479_v36, %v3466_v24  ;;  %v2255_v24 = vld [vmem:[%s3994_s0 + $0x90] sm:$0xff]  ;;  %v1322_v36 = vunpack.c.h.bf16 %v2256_v54 }
 0x934   :  { %v2481_v6 = vpop.eup %2480  ;;  %v1319_v50 = vunpack.c.l.bf16 %v2255_v24  ;;  %v1320_v53 = vunpack.c.h.bf16 %v2255_v24 }
 0x935   :  { %v3514_v55 = vadd.f32 %v1312_v38, %v1311_v47  ;;  %v1326_v47 = vadd.f32 %v3414_v44, %v1322_v36 }
 0x936   :  { %v1323_v52 = vadd.f32 %v3393_v27, %v1319_v50  ;;  %v1324_v56 = vadd.f32 %v3402_v30, %v1320_v53 }
 0x937   :  { %2482 = vtanh.f32 %v3514_v55 }
 0x941   :  { %v2483_v48 = vpop.eup %2482 }
 0x942   :  { %v1315_v49 = vmul.f32 %v2483_v48, %v2481_v6 }
 0x944   :  { %v1327_v45 = vpack.c.bf16 %v1315_v49, %v1315_v49 }
 0x946   :  { %1361 = vmatmul.mubr.bf16.vlgmr.msra.gmra.mrb[36].mxu0 %v1327_v45  ;;  %1402 = vmatmul.mubr.bf16.vlgmr.msra.gmra.mrb[36].mxu1 %v1327_v45 }
 0x947   :  { %1451 = vmatpush1.bf16.msra.mxu0 %v3148_v9  ;;  %1492 = vmatpush1.bf16.msra.mxu1 %v3154_v46 }
 0x948   :  { %1452 = vmatprep.subr.bf16.mxu0 %v3160_v51  ;;  %1493 = vmatprep.subr.bf16.mxu1 %v3244_v59 }
 0x949   :  { %1482 = vmatprep.mubr.bf16.mxu0 %v2668_v1  ;;  %1523 = vmatprep.mubr.bf16.mxu1 %v2668_v1 }
 0x94b   :  { %1453 = vmatpush1.bf16.msra.mxu0 %v3169_v40  ;;  %1494 = vmatpush1.bf16.msra.mxu1 %v3253_v63 }
 0x94c   :  { %1454 = vmatprep.subr.bf16.mxu0 %v3176_v0  ;;  %1495 = vmatprep.subr.bf16.mxu1 %v3260_v34 }
 0x94f   :  { %1455 = vmatpush1.bf16.msra.mxu0 %v3183_v10  ;;  %1496 = vmatpush1.bf16.msra.mxu1 %v3267_v62 }
 0x950   :  { %1456 = vmatprep.subr.bf16.mxu0 %v3190_v11  ;;  %1497 = vmatprep.subr.bf16.mxu1 %v3274_v35 }
 0x953   :  { %1457 = vmatpush1.bf16.msra.mxu0 %v3280_v37  ;;  %1498 = vmatpush1.bf16.msra.mxu1 %v3286_v39 }
 0x954   :  { %1458 = vmatprep.subr.bf16.mxu0 %v3292_v2  ;;  %1499 = vmatprep.subr.bf16.mxu1 %v3298_v3 }
 0x957   :  { %1459 = vmatpush1.bf16.msra.mxu0 %v3304_v4  ;;  %1500 = vmatpush1.bf16.msra.mxu1 %v3310_v5 }
 0x958   :  { %1460 = vmatprep.subr.bf16.mxu0 %v3316_v7  ;;  %1501 = vmatprep.subr.bf16.mxu1 %v3322_v8 }
 0x95b   :  { %1461 = vmatpush1.bf16.msra.mxu0 %v3328_v14  ;;  %1502 = vmatpush1.bf16.msra.mxu1 %v3334_v15 }
 0x95c   :  { %1462 = vmatprep.subr.bf16.mxu0 %v3340_v16  ;;  %1503 = vmatprep.subr.bf16.mxu1 %v3346_v17 }
 0x95f   :  { %1463 = vmatpush1.bf16.msra.mxu0 %v3352_v18  ;;  %1504 = vmatpush1.bf16.msra.mxu1 %v3358_v19 }
 0x960   :  { %1464 = vmatprep.subr.bf16.mxu0 %v3364_v20  ;;  %1505 = vmatprep.subr.bf16.mxu1 %v3370_v21 }
 0x963   :  { %1465 = vmatpush1.bf16.msra.mxu0 %v3376_v22  ;;  %1506 = vmatpush1.bf16.msra.mxu1 %v3382_v23 }
 0x964   :  { %1572 = vmatprep.subr.bf16.mxu0 %v3215_v12  ;;  %1613 = vmatprep.subr.bf16.mxu1 %v3221_v13 }
 0xa19   :  { %v1362_v60 = vpop.f32.mrb[36].mxu0  ;;  %v1403_v58 = vpop.f32.mrb[36].mxu1 }
 0xa1a   :  { %v1410_v57 = vadd.f32 %v1362_v60, %v1323_v52  ;;  %v1364_v25 = vpop.f32.mrb[37].mxu0  ;;  %v1405_v26 = vpop.f32.mrb[37].mxu1  ;;  %v1412_v6 = vadd.f32 %v1403_v58, %v1325_v41 }
 0xa1b   :  { %v1411_v43 = vadd.f32 %v1364_v25, %v1324_v56  ;;  %v1366_v28 = vpop.f32.mrb[38].mxu0  ;;  %v1407_v29 = vpop.f32.mrb[38].mxu1  ;;  %v1413_v48 = vadd.f32 %v1405_v26, %v1326_v47 }
 0xa1c   :  { %v2257_v31 = vmul.f32 -1.442695, %v1410_v57  ;;  %v1367_v42 = vpop.f32.mrb[39].mxu0  ;;  %v1408_v32 = vpop.f32.mrb[39].mxu1  ;;  %v2259_v49 = vmul.f32 -1.442695, %v1412_v6 }
 0xa1d   :  { %v2258_v38 = vmul.f32 -1.442695, %v1411_v43 }
 0xa1e   :  { %2484 = vpow2.f32 %v2257_v31 }
 0xa1f   :  { %2486 = vpow2.f32 %v2258_v38  ;;  %v2261_v38 = vld [vmem:[%s3994_s0 + $0xa8] sm:$0xff] }
 0xa20   :  { %2488 = vtanh.f32 %v1413_v48  ;;  %v1443_v48 = vunpack.c.l.bf16 %v2261_v38 }
 0xa21   :  { %2490 = vpow2.f32 %v2259_v49 }
 0xa28   :  { %v2485_v45 = vpop.eup %2484 }
 0xa29   :  { %v1423_v24 = vadd.f32 1.0, %v2485_v45  ;;  %v2487_v50 = vpop.eup %2486 }
 0xa2a   :  { %v1424_v53 = vadd.f32 1.0, %v2487_v50  ;;  %v2489_v52 = vpop.eup %2488 }
 0xa2b   :  { %2492 = vrcp.f32 %v1423_v24  ;;  %v2491_v56 = vpop.eup %2490 }
 0xa2c   :  { %2494 = vrcp.f32 %v1424_v53  ;;  %v1425_v61 = vadd.f32 1.0, %v2491_v56 }
 0xa2e   :  { %2496 = vrcp.f32 %v1425_v61  ;;  %v1447_v61 = vadd.f32 %v3408_v33, %v1443_v48 }
 0xa35   :  { %v2493_v54 = vpop.eup %2492 }
 0xa36   :  { %v1434_v60 = vmul.f32 %v2493_v54, %v2489_v52  ;;  %v2495_v57 = vpop.eup %2494 }
 0xa37   :  { %v1433_v25 = vmul.f32 %v2495_v57, %v3514_v55  ;;  %v2260_v55 = vld [vmem:[%s3994_s0 + $0xa0] sm:$0xff]  ;;  %v1444_v57 = vunpack.c.h.bf16 %v2261_v38 }
 0xa38   :  { %v2497_v58 = vpop.eup %2496  ;;  %v1441_v31 = vunpack.c.l.bf16 %v2260_v55  ;;  %v1442_v42 = vunpack.c.h.bf16 %v2260_v55 }
 0xa39   :  { %v3562_v43 = vadd.f32 %v1434_v60, %v1433_v25  ;;  %v1448_v25 = vadd.f32 %v3414_v44, %v1444_v57 }
 0xa3a   :  { %v1445_v32 = vadd.f32 %v3393_v27, %v1441_v31  ;;  %v1446_v36 = vadd.f32 %v3402_v30, %v1442_v42 }
 0xa3b   :  { %2498 = vtanh.f32 %v3562_v43 }
 0xa45   :  { %v2499_v26 = vpop.eup %2498 }
 0xa46   :  { %v1437_v28 = vmul.f32 %v2499_v26, %v2497_v58 }
 0xa48   :  { %v1449_v29 = vpack.c.bf16 %v1437_v28, %v1437_v28 }
 0xa4a   :  { %1483 = vmatmul.mubr.bf16.vlgmr.msra.gmra.mrb[40].mxu0 %v1449_v29  ;;  %1524 = vmatmul.mubr.bf16.vlgmr.msra.gmra.mrb[40].mxu1 %v1449_v29 }
 0xa4b   :  { %1573 = vmatpush1.bf16.msra.mxu0 %v3148_v9  ;;  %1614 = vmatpush1.bf16.msra.mxu1 %v3154_v46 }
 0xa4c   :  { %1574 = vmatprep.subr.bf16.mxu0 %v3160_v51  ;;  %1615 = vmatprep.subr.bf16.mxu1 %v3244_v59 }
 0xa4d   :  { %1604 = vmatprep.mubr.bf16.mxu0 %v2668_v1  ;;  %1645 = vmatprep.mubr.bf16.mxu1 %v2668_v1 }
 0xa4f   :  { %1575 = vmatpush1.bf16.msra.mxu0 %v3169_v40  ;;  %1616 = vmatpush1.bf16.msra.mxu1 %v3253_v63 }
 0xa50   :  { %1576 = vmatprep.subr.bf16.mxu0 %v3176_v0  ;;  %1617 = vmatprep.subr.bf16.mxu1 %v3260_v34 }
 0xa53   :  { %1577 = vmatpush1.bf16.msra.mxu0 %v3183_v10  ;;  %1618 = vmatpush1.bf16.msra.mxu1 %v3267_v62 }
 0xa54   :  { %1578 = vmatprep.subr.bf16.mxu0 %v3190_v11  ;;  %1619 = vmatprep.subr.bf16.mxu1 %v3274_v35 }
 0xa57   :  { %1579 = vmatpush1.bf16.msra.mxu0 %v3280_v37  ;;  %1620 = vmatpush1.bf16.msra.mxu1 %v3286_v39 }
 0xa58   :  { %1580 = vmatprep.subr.bf16.mxu0 %v3292_v2  ;;  %1621 = vmatprep.subr.bf16.mxu1 %v3298_v3 }
 0xa5b   :  { %1581 = vmatpush1.bf16.msra.mxu0 %v3304_v4  ;;  %1622 = vmatpush1.bf16.msra.mxu1 %v3310_v5 }
 0xa5c   :  { %1582 = vmatprep.subr.bf16.mxu0 %v3316_v7  ;;  %1623 = vmatprep.subr.bf16.mxu1 %v3322_v8 }
 0xa5f   :  { %1583 = vmatpush1.bf16.msra.mxu0 %v3328_v14  ;;  %1624 = vmatpush1.bf16.msra.mxu1 %v3334_v15 }
 0xa60   :  { %1584 = vmatprep.subr.bf16.mxu0 %v3340_v16  ;;  %1625 = vmatprep.subr.bf16.mxu1 %v3346_v17 }
 0xa63   :  { %1585 = vmatpush1.bf16.msra.mxu0 %v3352_v18  ;;  %1626 = vmatpush1.bf16.msra.mxu1 %v3358_v19 }
 0xa64   :  { %1586 = vmatprep.subr.bf16.mxu0 %v3364_v20  ;;  %1627 = vmatprep.subr.bf16.mxu1 %v3370_v21 }
 0xa67   :  { %1587 = vmatpush1.bf16.msra.mxu0 %v3376_v22  ;;  %1628 = vmatpush1.bf16.msra.mxu1 %v3382_v23 }
 0xa68   :  { %1694 = vmatprep.subr.bf16.mxu0 %v3215_v12  ;;  %1735 = vmatprep.subr.bf16.mxu1 %v3221_v13 }
 0xb1d   :  { %v1484_v41 = vpop.f32.mrb[40].mxu0  ;;  %v1525_v47 = vpop.f32.mrb[40].mxu1 }
 0xb1e   :  { %v1532_v6 = vadd.f32 %v1484_v41, %v1445_v32  ;;  %v1486_v49 = vpop.f32.mrb[41].mxu0  ;;  %v1527_v45 = vpop.f32.mrb[41].mxu1  ;;  %v1534_v58 = vadd.f32 %v1525_v47, %v1447_v61 }
 0xb1f   :  { %v1533_v24 = vadd.f32 %v1486_v49, %v1446_v36  ;;  %v1488_v50 = vpop.f32.mrb[42].mxu0  ;;  %v1529_v53 = vpop.f32.mrb[42].mxu1  ;;  %v1535_v26 = vadd.f32 %v1527_v45, %v1448_v25 }
 0xb20   :  { %v2262_v52 = vmul.f32 -1.442695, %v1532_v6  ;;  %v1489_v56 = vpop.f32.mrb[43].mxu0  ;;  %v1530_v54 = vpop.f32.mrb[43].mxu1  ;;  %v2264_v28 = vmul.f32 -1.442695, %v1534_v58 }
 0xb21   :  { %v2263_v60 = vmul.f32 -1.442695, %v1533_v24 }
 0xb22   :  { %2500 = vpow2.f32 %v2262_v52 }
 0xb23   :  { %2502 = vpow2.f32 %v2263_v60 }
 0xb24   :  { %2504 = vtanh.f32 %v1535_v26 }
 0xb25   :  { %2506 = vpow2.f32 %v2264_v28 }
 0xb2c   :  { %v2501_v29 = vpop.eup %2500 }
 0xb2d   :  { %v1545_v55 = vadd.f32 1.0, %v2501_v29  ;;  %v2503_v31 = vpop.eup %2502 }
 0xb2e   :  { %v1546_v42 = vadd.f32 1.0, %v2503_v31  ;;  %v2505_v32 = vpop.eup %2504 }
 0xb2f   :  { %2508 = vrcp.f32 %v1545_v55  ;;  %v2507_v36 = vpop.eup %2506 }
 0xb30   :  { %2510 = vrcp.f32 %v1546_v42  ;;  %v1547_v48 = vadd.f32 1.0, %v2507_v36 }
 0xb32   :  { %2512 = vrcp.f32 %v1547_v48 }
 0xb39   :  { %v2509_v38 = vpop.eup %2508 }
 0xb3a   :  { %v1556_v41 = vmul.f32 %v2509_v38, %v2505_v32  ;;  %v2511_v6 = vpop.eup %2510 }
 0xb3b   :  { %v1555_v49 = vmul.f32 %v2511_v6, %v3562_v43 }
 0xb3c   :  { %v2513_v47 = vpop.eup %2512 }
 0xb3d   :  { %v3610_v24 = vadd.f32 %v1556_v41, %v1555_v49 }
 0xb3f   :  { %2514 = vtanh.f32 %v3610_v24 }
 0xb49   :  { %v2515_v45 = vpop.eup %2514 }
 0xb4a   :  { %v1559_v50 = vmul.f32 %v2515_v45, %v2513_v47 }
 0xb4c   :  { %v1571_v53 = vpack.c.bf16 %v1559_v50, %v1559_v50 }
 0xb4e   :  { %1605 = vmatmul.mubr.bf16.vlgmr.msra.gmra.mrb[44].mxu0 %v1571_v53  ;;  %1646 = vmatmul.mubr.bf16.vlgmr.msra.gmra.mrb[44].mxu1 %v1571_v53 }
 0xb4f   :  { %1695 = vmatpush1.bf16.msra.mxu0 %v3148_v9  ;;  %1736 = vmatpush1.bf16.msra.mxu1 %v3154_v46  ;;  %v2265_v9 = vld [vmem:[%s3994_s0 + $0xb0] sm:$0xff] }
 0xb50   :  { %1696 = vmatprep.subr.bf16.mxu0 %v3160_v51  ;;  %1737 = vmatprep.subr.bf16.mxu1 %v3244_v59  ;;  %v1563_v46 = vunpack.c.l.bf16 %v2265_v9  ;;  %v1564_v51 = vunpack.c.h.bf16 %v2265_v9 }
 0xb51   :  { %1726 = vmatprep.mubr.bf16.mxu0 %v2668_v1  ;;  %1767 = vmatprep.mubr.bf16.mxu1 %v2668_v1 }
 0xb53   :  { %1697 = vmatpush1.bf16.msra.mxu0 %v3169_v40  ;;  %1738 = vmatpush1.bf16.msra.mxu1 %v3253_v63  ;;  %v1567_v40 = vadd.f32 %v3393_v27, %v1563_v46 }
 0xb54   :  { %1698 = vmatprep.subr.bf16.mxu0 %v3176_v0  ;;  %1739 = vmatprep.subr.bf16.mxu1 %v3260_v34  ;;  %v2266_v0 = vld [vmem:[%s3994_s0 + $0xb8] sm:$0xff] }
 0xb55   :  { %v1566_v28 = vunpack.c.h.bf16 %v2266_v0 }
 0xb57   :  { %1699 = vmatpush1.bf16.msra.mxu0 %v3183_v10  ;;  %1740 = vmatpush1.bf16.msra.mxu1 %v3267_v62  ;;  %v1568_v10 = vadd.f32 %v3402_v30, %v1564_v51  ;;  %v1570_v55 = vadd.f32 %v3414_v44, %v1566_v28 }
 0xb58   :  { %1700 = vmatprep.subr.bf16.mxu0 %v3190_v11  ;;  %1741 = vmatprep.subr.bf16.mxu1 %v3274_v35 }
 0xb5b   :  { %1701 = vmatpush1.bf16.msra.mxu0 %v3280_v37  ;;  %1742 = vmatpush1.bf16.msra.mxu1 %v3286_v39 }
 0xb5c   :  { %1702 = vmatprep.subr.bf16.mxu0 %v3292_v2  ;;  %1743 = vmatprep.subr.bf16.mxu1 %v3298_v3 }
 0xb5f   :  { %1703 = vmatpush1.bf16.msra.mxu0 %v3304_v4  ;;  %1744 = vmatpush1.bf16.msra.mxu1 %v3310_v5 }
 0xb60   :  { %1704 = vmatprep.subr.bf16.mxu0 %v3316_v7  ;;  %1745 = vmatprep.subr.bf16.mxu1 %v3322_v8 }
 0xb63   :  { %1705 = vmatpush1.bf16.msra.mxu0 %v3328_v14  ;;  %1746 = vmatpush1.bf16.msra.mxu1 %v3334_v15 }
 0xb64   :  { %1706 = vmatprep.subr.bf16.mxu0 %v3340_v16  ;;  %1747 = vmatprep.subr.bf16.mxu1 %v3346_v17 }
 0xb67   :  { %1707 = vmatpush1.bf16.msra.mxu0 %v3352_v18  ;;  %1748 = vmatpush1.bf16.msra.mxu1 %v3358_v19 }
 0xb68   :  { %1708 = vmatprep.subr.bf16.mxu0 %v3364_v20  ;;  %1749 = vmatprep.subr.bf16.mxu1 %v3370_v21 }
 0xb6b   :  { %1709 = vmatpush1.bf16.msra.mxu0 %v3376_v22  ;;  %1750 = vmatpush1.bf16.msra.mxu1 %v3382_v23 }
 0xb6c   :  { %1816 = vmatprep.subr.bf16.mxu0 %v3215_v12  ;;  %1857 = vmatprep.subr.bf16.mxu1 %v3221_v13  ;;  %v1565_v12 = vunpack.c.l.bf16 %v2266_v0 }
 0xb6e   :  { %v1569_v29 = vadd.f32 %v3408_v33, %v1565_v12  ;;  %v3692_v12 = vld [vmem:[%s3993_s2 + $0x44] ss:$16 sps:$4 sm:$0xff]  }
 0xc21   :  { %v1606_v11 = vpop.f32.mrb[44].mxu0  ;;  %v1647_v43 = vpop.f32.mrb[44].mxu1 }
 0xc22   :  { %v1654_v52 = vadd.f32 %v1606_v11, %v1567_v40  ;;  %v1608_v56 = vpop.f32.mrb[45].mxu0  ;;  %v1649_v13 = vpop.f32.mrb[45].mxu1  ;;  %v1656_v31 = vadd.f32 %v1647_v43, %v1569_v29  ;;  %v3664_v11 = vld [vmem:[%s3993_s2] ss:$16 sps:$4 sm:$0xff]   ;;  %v3676_v43 = vld [vmem:[%s3993_s2 + $0x24] ss:$16 sps:$4 sm:$0xff]  }
 0xc23   :  { %v1655_v54 = vadd.f32 %v1608_v56, %v1568_v10  ;;  %v1610_v60 = vpop.f32.mrb[46].mxu0  ;;  %v1651_v57 = vpop.f32.mrb[46].mxu1  ;;  %v1657_v42 = vadd.f32 %v1649_v13, %v1570_v55 }
 0xc24   :  { %v2267_v61 = vmul.f32 -1.442695, %v1654_v52  ;;  %v1611_v25 = vpop.f32.mrb[47].mxu0  ;;  %v1652_v58 = vpop.f32.mrb[47].mxu1  ;;  %v2269_v32 = vmul.f32 -1.442695, %v1656_v31 }
 0xc25   :  { %v2268_v26 = vmul.f32 -1.442695, %v1655_v54  ;;  %v3685_v52 = vld [vmem:[%s3993_s2 + $0x20] ss:$16 sps:$4 sm:$0xff]  }
 0xc26   :  { %2516 = vpow2.f32 %v2267_v61 }
 0xc27   :  { %2518 = vpow2.f32 %v2268_v26 }
 0xc28   :  { %2520 = vtanh.f32 %v1657_v42 }
 0xc29   :  { %2522 = vpow2.f32 %v2269_v32 }
 0xc30   :  { %v2517_v36 = vpop.eup %2516 }
 0xc31   :  { %v1667_v38 = vadd.f32 1.0, %v2517_v36  ;;  %v2519_v41 = vpop.eup %2518 }
 0xc32   :  { %v1668_v6 = vadd.f32 1.0, %v2519_v41  ;;  %v2521_v48 = vpop.eup %2520 }
 0xc33   :  { %2524 = vrcp.f32 %v1667_v38  ;;  %v2523_v49 = vpop.eup %2522 }
 0xc34   :  { %2526 = vrcp.f32 %v1668_v6  ;;  %v1669_v53 = vadd.f32 1.0, %v2523_v49  ;;  %v3760_v6 = vld [vmem:[%s3993_s2 + $0x2c] ss:$16 sps:$4 sm:$0xff]  }
 0xc35   :  { %v3776_v49 = vld [vmem:[%s3993_s2 + $0x4c] ss:$16 sps:$4 sm:$0xff]  }
 0xc36   :  { %2528 = vrcp.f32 %v1669_v53  ;;  %v3802_v53 = vld [vmem:[%s3993_s2 + $0x68] ss:$16 sps:$4 sm:$0xff]  }
 0xc3d   :  { %v2525_v47 = vpop.eup %2524 }
 0xc3e   :  { %v1678_v45 = vmul.f32 %v2525_v47, %v2521_v48  ;;  %v2527_v50 = vpop.eup %2526  ;;  %v3769_v48 = vld [vmem:[%s3993_s2 + $0x28] ss:$16 sps:$4 sm:$0xff]  }
 0xc3f   :  { %v1677_v9 = vmul.f32 %v2527_v50, %v3610_v24  ;;  %v3670_v24 = vld [vmem:[%s3993_s2 + $0x8] ss:$16 sps:$4 sm:$0xff]   ;;  %v3796_v50 = vld [vmem:[%s3993_s2 + $0x60] ss:$16 sps:$4 sm:$0xff]  }
 0xc40   :  { %v2529_v51 = vpop.eup %2528  ;;  %v3783_v47 = vld [vmem:[%s3993_s2 + $0x48] ss:$16 sps:$4 sm:$0xff]  }
 0xc41   :  { %v3658_v46 = vadd.f32 %v1678_v45, %v1677_v9  ;;  %v3790_v45 = vld [vmem:[%s3993_s2 + $0x6c] ss:$16 sps:$4 sm:$0xff]   ;;  %v3808_v9 = vld [vmem:[%s3993_s2 + $0x84] ss:$16 sps:$4 sm:$0xff]  }
 0xc43   :  { %2530 = vtanh.f32 %v3658_v46 }
 0xc4d   :  { %v2531_v40 = vpop.eup %2530 }
 0xc4e   :  { %v1681_v0 = vmul.f32 %v2531_v40, %v2529_v51  ;;  %v3820_v51 = vld [vmem:[%s3993_s2 + $0x80] ss:$16 sps:$4 sm:$0xff]   ;;  %v3826_v40 = vld [vmem:[%s3993_s2 + $0x88] ss:$16 sps:$4 sm:$0xff]  }
 0xc50   :  { %v1693_v10 = vpack.c.bf16 %v1681_v0, %v1681_v0  ;;  %v3832_v0 = vld [vmem:[%s3993_s2 + $0xa4] ss:$16 sps:$4 sm:$0xff]  }
 0xc52   :  { %1727 = vmatmul.mubr.bf16.vlgmr.msra.gmra.mrb[48].mxu0 %v1693_v10  ;;  %1768 = vmatmul.mubr.bf16.vlgmr.msra.gmra.mrb[48].mxu1 %v1693_v10  ;;  %v3838_v10 = vld [vmem:[%s3993_s2 + $0xac] ss:$16 sps:$4 sm:$0xff]  }
 0xc53   :  { %1817 = vmatpush1.bf16.msra.mxu0 %v3664_v11  ;;  %1858 = vmatpush1.bf16.msra.mxu1 %v3670_v24 }
 0xc54   :  { %1818 = vmatprep.subr.bf16.mxu0 %v3676_v43  ;;  %1859 = vmatprep.subr.bf16.mxu1 %v3244_v59  ;;  %v3699_v59 = vld [vmem:[%s3993_s2 + $0x40] ss:$16 sps:$4 sm:$0xff]  }
 0xc55   :  { %1848 = vmatprep.mubr.bf16.mxu0 %v2668_v1  ;;  %1889 = vmatprep.mubr.bf16.mxu1 %v2668_v1 }
 0xc57   :  { %1819 = vmatpush1.bf16.msra.mxu0 %v3685_v52  ;;  %1860 = vmatpush1.bf16.msra.mxu1 %v3253_v63  ;;  %v3706_v63 = vld [vmem:[%s3993_s2 + $0x64] ss:$16 sps:$4 sm:$0xff]  }
 0xc58   :  { %1820 = vmatprep.subr.bf16.mxu0 %v3692_v12  ;;  %1861 = vmatprep.subr.bf16.mxu1 %v3260_v34  ;;  %v3731_v34 = vld [vmem:[%s3993_s2 + $0x4] ss:$16 sps:$4 sm:$0xff]  }
 0xc5b   :  { %1821 = vmatpush1.bf16.msra.mxu0 %v3699_v59  ;;  %1862 = vmatpush1.bf16.msra.mxu1 %v3267_v62  ;;  %v3737_v62 = vld [vmem:[%s3993_s2 + $0xc] ss:$16 sps:$4 sm:$0xff]  }
 0xc5c   :  { %1822 = vmatprep.subr.bf16.mxu0 %v3706_v63  ;;  %1863 = vmatprep.subr.bf16.mxu1 %v3274_v35  ;;  %v2270_v35 = vld [vmem:[%s3994_s0 + $0xc0] sm:$0xff] }
 0xc5f   :  { %1823 = vmatpush1.bf16.msra.mxu0 %v3280_v37  ;;  %1864 = vmatpush1.bf16.msra.mxu1 %v3286_v39  ;;  %v1685_v37 = vunpack.c.l.bf16 %v2270_v35  ;;  %v1686_v39 = vunpack.c.h.bf16 %v2270_v35  ;;  %v3844_v35 = vld [vmem:[%s3993_s2 + $0xa0] ss:$16 sps:$4 sm:$0xff]  }
 0xc60   :  { %1824 = vmatprep.subr.bf16.mxu0 %v3292_v2  ;;  %1865 = vmatprep.subr.bf16.mxu1 %v3298_v3  ;;  %v2271_v3 = vld [vmem:[%s3994_s0 + $0xc8] sm:$0xff] }
 0xc61   :  { %v1689_v2 = vadd.f32 %v3393_v27, %v1685_v37  ;;  %v1688_v27 = vunpack.c.h.bf16 %v2271_v3  ;;  %v3850_v37 = vld [vmem:[%s3993_s2 + $0xa8] ss:$16 sps:$4 sm:$0xff]  }
 0xc63   :  { %1825 = vmatpush1.bf16.msra.mxu0 %v3304_v4  ;;  %1866 = vmatpush1.bf16.msra.mxu1 %v3310_v5  ;;  %v1690_v4 = vadd.f32 %v3402_v30, %v1686_v39  ;;  %v1692_v30 = vadd.f32 %v3414_v44, %v1688_v27  ;;  %v3856_v39 = vld [vmem:[%s3993_s2 + $0xc4] ss:$16 sps:$4 sm:$0xff]  }
 0xc64   :  { %1826 = vmatprep.subr.bf16.mxu0 %v3316_v7  ;;  %1867 = vmatprep.subr.bf16.mxu1 %v3322_v8 }
 0xc67   :  { %1827 = vmatpush1.bf16.msra.mxu0 %v3328_v14  ;;  %1868 = vmatpush1.bf16.msra.mxu1 %v3334_v15  ;;  %v1687_v14 = vunpack.c.l.bf16 %v2271_v3  ;;  %v3868_v3 = vld [vmem:[%s3993_s2 + $0xc0] ss:$16 sps:$4 sm:$0xff]  }
 0xc68   :  { %1828 = vmatprep.subr.bf16.mxu0 %v3340_v16  ;;  %1869 = vmatprep.subr.bf16.mxu1 %v3346_v17 }
 0xc69   :  { %v1691_v56 = vadd.f32 %v3408_v33, %v1687_v14  ;;  %v3898_v14 = vld [vmem:[%s3993_s2 + $0xe8] ss:$16 sps:$4 sm:$0xff]  }
 0xc6b   :  { %1829 = vmatpush1.bf16.msra.mxu0 %v3352_v18  ;;  %1870 = vmatpush1.bf16.msra.mxu1 %v3358_v19 }
 0xc6c   :  { %1830 = vmatprep.subr.bf16.mxu0 %v3364_v20  ;;  %1871 = vmatprep.subr.bf16.mxu1 %v3370_v21 }
 0xc6f   :  { %1831 = vmatpush1.bf16.msra.mxu0 %v3376_v22  ;;  %1872 = vmatpush1.bf16.msra.mxu1 %v3382_v23 }
 0xc70   :  { %1938 = vmatprep.subr.bf16.mxu0 %v3731_v34  ;;  %1979 = vmatprep.subr.bf16.mxu1 %v3737_v62 }
 0xd25   :  { %v1728_v5 = vpop.f32.mrb[48].mxu0  ;;  %v1769_v7 = vpop.f32.mrb[48].mxu1 }
 0xd26   :  { %v1776_v8 = vadd.f32 %v1728_v5, %v1689_v2  ;;  %v1730_v15 = vpop.f32.mrb[49].mxu0  ;;  %v1771_v16 = vpop.f32.mrb[49].mxu1  ;;  %v1778_v13 = vadd.f32 %v1769_v7, %v1691_v56  ;;  %v3862_v2 = vld [vmem:[%s3993_s2 + $0xcc] ss:$16 sps:$4 sm:$0xff]   ;;  %v3880_v5 = vld [vmem:[%s3993_s2 + $0xe4] ss:$16 sps:$4 sm:$0xff]  }
 0xd27   :  { %v1777_v17 = vadd.f32 %v1730_v15, %v1690_v4  ;;  %v1732_v18 = vpop.f32.mrb[50].mxu0  ;;  %v1773_v19 = vpop.f32.mrb[50].mxu1  ;;  %v1779_v54 = vadd.f32 %v1771_v16, %v1692_v30  ;;  %v3874_v4 = vld [vmem:[%s3993_s2 + $0xc8] ss:$16 sps:$4 sm:$0xff]   ;;  %v3886_v7 = vld [vmem:[%s3993_s2 + $0xec] ss:$16 sps:$4 sm:$0xff]  }
 0xd28   :  { %v2272_v20 = vmul.f32 -1.442695, %v1776_v8  ;;  %v1733_v21 = vpop.f32.mrb[51].mxu0  ;;  %v1774_v22 = vpop.f32.mrb[51].mxu1  ;;  %v2274_v60 = vmul.f32 -1.442695, %v1778_v13 }
 0xd29   :  { %v2273_v23 = vmul.f32 -1.442695, %v1777_v17  ;;  %v3892_v8 = vld [vmem:[%s3993_s2 + $0xe0] ss:$16 sps:$4 sm:$0xff]  }
 0xd2a   :  { %2532 = vpow2.f32 %v2272_v20  ;;  %v2275_v15 = vld [vmem:[%s3994_s0 + $0xd0] sm:$0xff]  ;;  %v3909_v18 = vld [vmem:[%s3995_s1] sm:$0xff]  ;;  %v2276_v20 = vld [vmem:[%s3994_s0 + $0xd8] sm:$0xff] }
 0xd2b   :  { %2534 = vpow2.f32 %v2273_v23  ;;  %v1807_v16 = vunpack.c.l.bf16 %v2275_v15  ;;  %v1808_v17 = vunpack.c.h.bf16 %v2275_v15  ;;  %v1809_v27 = vunpack.c.l.bf16 %v2276_v20 }
 0xd2c   :  { %2536 = vtanh.f32 %v1779_v54 }
 0xd2d   :  { %2538 = vpow2.f32 %v2274_v60  ;;  %v1811_v19 = vadd.f32 %v3909_v18, %v1807_v16 }
 0xd34   :  { %v2533_v57 = vpop.eup %2532 }
 0xd35   :  { %v1789_v61 = vadd.f32 1.0, %v2533_v57  ;;  %v2535_v25 = vpop.eup %2534 }
 0xd36   :  { %v1790_v58 = vadd.f32 1.0, %v2535_v25  ;;  %v2537_v26 = vpop.eup %2536 }
 0xd37   :  { %2540 = vrcp.f32 %v1789_v61  ;;  %v2539_v28 = vpop.eup %2538 }
 0xd38   :  { %2542 = vrcp.f32 %v1790_v58  ;;  %v1791_v33 = vadd.f32 1.0, %v2539_v28  ;;  %v3924_v28 = vld [vmem:[%s3995_s1 + $0x10] sm:$0xff] }
 0xd3a   :  { %2544 = vrcp.f32 %v1791_v33 }
 0xd41   :  { %v2541_v29 = vpop.eup %2540 }
 0xd42   :  { %v1800_v55 = vmul.f32 %v2541_v29, %v2537_v26  ;;  %v2543_v31 = vpop.eup %2542  ;;  %v1810_v26 = vunpack.c.h.bf16 %v2276_v20  ;;  %v1813_v29 = vadd.f32 %v3924_v28, %v1809_v27 }
 0xd43   :  { %v1799_v42 = vmul.f32 %v2543_v31, %v3658_v46  ;;  %v3814_v46 = vld [vmem:[%s3993_s2 + $0x8c] ss:$16 sps:$4 sm:$0xff]  }
 0xd44   :  { %v2545_v32 = vpop.eup %2544 }
 0xd45   :  { %v3751_v44 = vadd.f32 %v1800_v55, %v1799_v42  ;;  %v3930_v55 = vld [vmem:[%s3995_s1 + $0x18] sm:$0xff] }
 0xd46   :  { %v1814_v31 = vadd.f32 %v3930_v55, %v1810_v26 }
 0xd47   :  { %2546 = vtanh.f32 %v3751_v44 }
 0xd51   :  { %v2547_v36 = vpop.eup %2546 }
 0xd52   :  { %v1803_v38 = vmul.f32 %v2547_v36, %v2545_v32 }
 0xd54   :  { %v1815_v41 = vpack.c.bf16 %v1803_v38, %v1803_v38 }
 0xd56   :  { %1849 = vmatmul.mubr.bf16.vlgmr.msra.gmra.mrb[52].mxu0 %v1815_v41  ;;  %1890 = vmatmul.mubr.bf16.vlgmr.msra.gmra.mrb[52].mxu1 %v1815_v41 }
 0xd57   :  { %1939 = vmatpush1.bf16.msra.mxu0 %v3664_v11  ;;  %1980 = vmatpush1.bf16.msra.mxu1 %v3670_v24 }
 0xd58   :  { %1940 = vmatprep.subr.bf16.mxu0 %v3676_v43  ;;  %1981 = vmatprep.subr.bf16.mxu1 %v3760_v6 }
 0xd59   :  { %1970 = vmatprep.mubr.bf16.mxu0 %v2668_v1  ;;  %2011 = vmatprep.mubr.bf16.mxu1 %v2668_v1 }
 0xd5b   :  { %1941 = vmatpush1.bf16.msra.mxu0 %v3685_v52  ;;  %1982 = vmatpush1.bf16.msra.mxu1 %v3769_v48 }
 0xd5c   :  { %1942 = vmatprep.subr.bf16.mxu0 %v3692_v12  ;;  %1983 = vmatprep.subr.bf16.mxu1 %v3776_v49 }
 0xd5f   :  { %1943 = vmatpush1.bf16.msra.mxu0 %v3699_v59  ;;  %1984 = vmatpush1.bf16.msra.mxu1 %v3783_v47 }
 0xd60   :  { %1944 = vmatprep.subr.bf16.mxu0 %v3706_v63  ;;  %1985 = vmatprep.subr.bf16.mxu1 %v3790_v45 }
 0xd63   :  { %1945 = vmatpush1.bf16.msra.mxu0 %v3796_v50  ;;  %1986 = vmatpush1.bf16.msra.mxu1 %v3802_v53 }
 0xd64   :  { %1946 = vmatprep.subr.bf16.mxu0 %v3808_v9  ;;  %1987 = vmatprep.subr.bf16.mxu1 %v3814_v46 }
 0xd67   :  { %1947 = vmatpush1.bf16.msra.mxu0 %v3820_v51  ;;  %1988 = vmatpush1.bf16.msra.mxu1 %v3826_v40 }
 0xd68   :  { %1948 = vmatprep.subr.bf16.mxu0 %v3832_v0  ;;  %1989 = vmatprep.subr.bf16.mxu1 %v3838_v10 }
 0xd6b   :  { %1949 = vmatpush1.bf16.msra.mxu0 %v3844_v35  ;;  %1990 = vmatpush1.bf16.msra.mxu1 %v3850_v37 }
 0xd6c   :  { %1950 = vmatprep.subr.bf16.mxu0 %v3856_v39  ;;  %1991 = vmatprep.subr.bf16.mxu1 %v3862_v2 }
 0xd6f   :  { %1951 = vmatpush1.bf16.msra.mxu0 %v3868_v3  ;;  %1992 = vmatpush1.bf16.msra.mxu1 %v3874_v4 }
 0xd70   :  { %1952 = vmatprep.subr.bf16.mxu0 %v3880_v5  ;;  %1993 = vmatprep.subr.bf16.mxu1 %v3886_v7 }
 0xd73   :  { %1953 = vmatpush1.bf16.msra.mxu0 %v3892_v8  ;;  %1994 = vmatpush1.bf16.msra.mxu1 %v3898_v14 }
 0xd74   :  { %2060 = vmatprep.subr.bf16.mxu0 %v3731_v34  ;;  %2101 = vmatprep.subr.bf16.mxu1 %v3737_v62  ;;  %v3918_v34 = vld [vmem:[%s3995_s1 + $0x8] sm:$0xff] }
 0xd75   :  { %v1812_v62 = vadd.f32 %v3918_v34, %v1808_v17 }
 0xe29   :  { %v1850_v21 = vpop.f32.mrb[52].mxu0  ;;  %v1891_v22 = vpop.f32.mrb[52].mxu1 }
 0xe2a   :  { %v1898_v23 = vadd.f32 %v1850_v21, %v1811_v19  ;;  %v1852_v56 = vpop.f32.mrb[53].mxu0  ;;  %v1893_v30 = vpop.f32.mrb[53].mxu1  ;;  %v1900_v33 = vadd.f32 %v1891_v22, %v1813_v29 }
 0xe2b   :  { %v1899_v13 = vadd.f32 %v1852_v56, %v1812_v62  ;;  %v1854_v54 = vpop.f32.mrb[54].mxu0  ;;  %v1895_v60 = vpop.f32.mrb[54].mxu1  ;;  %v1901_v42 = vadd.f32 %v1893_v30, %v1814_v31 }
 0xe2c   :  { %v2277_v57 = vmul.f32 -1.442695, %v1898_v23  ;;  %v1855_v61 = vpop.f32.mrb[55].mxu0  ;;  %v1896_v25 = vpop.f32.mrb[55].mxu1  ;;  %v2279_v32 = vmul.f32 -1.442695, %v1900_v33 }
 0xe2d   :  { %v2278_v58 = vmul.f32 -1.442695, %v1899_v13  ;;  %v2285_v33 = vld [vmem:[%s3994_s0 + $0xf0] sm:$0xff] }
 0xe2e   :  { %2548 = vpow2.f32 %v2277_v57 }
 0xe2f   :  { %2550 = vpow2.f32 %v2278_v58 }
 0xe30   :  { %2552 = vtanh.f32 %v1901_v42  ;;  %v2051_v42 = vunpack.c.l.bf16 %v2285_v33 }
 0xe31   :  { %2554 = vpow2.f32 %v2279_v32  ;;  %v2052_v32 = vunpack.c.h.bf16 %v2285_v33 }
 0xe38   :  { %v2549_v36 = vpop.eup %2548 }
 0xe39   :  { %v1911_v38 = vadd.f32 1.0, %v2549_v36  ;;  %v2551_v41 = vpop.eup %2550  ;;  %v2055_v36 = vadd.f32 %v3909_v18, %v2051_v42 }
 0xe3a   :  { %v1912_v15 = vadd.f32 1.0, %v2551_v41  ;;  %v2553_v16 = vpop.eup %2552  ;;  %v2056_v41 = vadd.f32 %v3918_v34, %v2052_v32 }
 0xe3b   :  { %2556 = vrcp.f32 %v1911_v38  ;;  %v2555_v17 = vpop.eup %2554  ;;  %v2286_v38 = vld [vmem:[%s3994_s0 + $0xf8] sm:$0xff] }
 0xe3c   :  { %2558 = vrcp.f32 %v1912_v15  ;;  %v1913_v21 = vadd.f32 1.0, %v2555_v17 }
 0xe3e   :  { %2560 = vrcp.f32 %v1913_v21 }
 0xe45   :  { %v2557_v19 = vpop.eup %2556 }
 0xe46   :  { %v1922_v20 = vmul.f32 %v2557_v19, %v2553_v16  ;;  %v2559_v62 = vpop.eup %2558  ;;  %v2053_v19 = vunpack.c.l.bf16 %v2286_v38 }
 0xe47   :  { %v1921_v23 = vmul.f32 %v2559_v62, %v3751_v44 }
 0xe48   :  { %v2561_v22 = vpop.eup %2560 }
 0xe49   :  { %v3934_v27 = vadd.f32 %v1922_v20, %v1921_v23 }
 0xe4b   :  { %2562 = vtanh.f32 %v3934_v27 }
 0xe55   :  { %v2563_v56 = vpop.eup %2562 }
 0xe56   :  { %v1925_v30 = vmul.f32 %v2563_v56, %v2561_v22 }
 0xe58   :  { %v1937_v13 = vpack.c.bf16 %v1925_v30, %v1925_v30 }
 0xe5a   :  { %1971 = vmatmul.mubr.bf16.vlgmr.msra.gmra.mrb[56].mxu0 %v1937_v13  ;;  %2012 = vmatmul.mubr.bf16.vlgmr.msra.gmra.mrb[56].mxu1 %v1937_v13 }
 0xe5b   :  { %2061 = vmatpush1.bf16.msra.mxu0 %v3664_v11  ;;  %2102 = vmatpush1.bf16.msra.mxu1 %v3670_v24 }
 0xe5c   :  { %2062 = vmatprep.subr.bf16.mxu0 %v3676_v43  ;;  %2103 = vmatprep.subr.bf16.mxu1 %v3760_v6 }
 0xe5d   :  { %2092 = vmatprep.mubr.bf16.mxu0 %v2668_v1  ;;  %2133 = vmatprep.mubr.bf16.mxu1 %v2668_v1  ;;  %v2280_v1 = vld [vmem:[%s3994_s0 + $0xe0] sm:$0xff] }
 0xe5e   :  { %v1929_v11 = vunpack.c.l.bf16 %v2280_v1  ;;  %v1930_v24 = vunpack.c.h.bf16 %v2280_v1  ;;  %v2057_v1 = vadd.f32 %v3924_v28, %v2053_v19 }
 0xe5f   :  { %2063 = vmatpush1.bf16.msra.mxu0 %v3685_v52  ;;  %2104 = vmatpush1.bf16.msra.mxu1 %v3769_v48  ;;  %v2281_v52 = vld [vmem:[%s3994_s0 + $0xe8] sm:$0xff] }
 0xe60   :  { %2064 = vmatprep.subr.bf16.mxu0 %v3692_v12  ;;  %2105 = vmatprep.subr.bf16.mxu1 %v3776_v49  ;;  %v1933_v43 = vadd.f32 %v3909_v18, %v1929_v11  ;;  %v1934_v12 = vadd.f32 %v3918_v34, %v1930_v24  ;;  %v1931_v6 = vunpack.c.l.bf16 %v2281_v52  ;;  %v2054_v18 = vunpack.c.h.bf16 %v2286_v38 }
 0xe62   :  { %v2058_v34 = vadd.f32 %v3930_v55, %v2054_v18 }
 0xe63   :  { %2065 = vmatpush1.bf16.msra.mxu0 %v3699_v59  ;;  %2106 = vmatpush1.bf16.msra.mxu1 %v3783_v47 }
 0xe64   :  { %2066 = vmatprep.subr.bf16.mxu0 %v3706_v63  ;;  %2107 = vmatprep.subr.bf16.mxu1 %v3790_v45 }
 0xe67   :  { %2067 = vmatpush1.bf16.msra.mxu0 %v3796_v50  ;;  %2108 = vmatpush1.bf16.msra.mxu1 %v3802_v53 }
 0xe68   :  { %2068 = vmatprep.subr.bf16.mxu0 %v3808_v9  ;;  %2109 = vmatprep.subr.bf16.mxu1 %v3814_v46 }
 0xe6b   :  { %2069 = vmatpush1.bf16.msra.mxu0 %v3820_v51  ;;  %2110 = vmatpush1.bf16.msra.mxu1 %v3826_v40  ;;  %v1932_v40 = vunpack.c.h.bf16 %v2281_v52 }
 0xe6c   :  { %2070 = vmatprep.subr.bf16.mxu0 %v3832_v0  ;;  %2111 = vmatprep.subr.bf16.mxu1 %v3838_v10  ;;  %v1935_v0 = vadd.f32 %v3924_v28, %v1931_v6 }
 0xe6d   :  { %v1936_v10 = vadd.f32 %v3930_v55, %v1932_v40 }
 0xe6f   :  { %2071 = vmatpush1.bf16.msra.mxu0 %v3844_v35  ;;  %2112 = vmatpush1.bf16.msra.mxu1 %v3850_v37 }
 0xe70   :  { %2072 = vmatprep.subr.bf16.mxu0 %v3856_v39  ;;  %2113 = vmatprep.subr.bf16.mxu1 %v3862_v2 }
 0xe73   :  { %2073 = vmatpush1.bf16.msra.mxu0 %v3868_v3  ;;  %2114 = vmatpush1.bf16.msra.mxu1 %v3874_v4 }
 0xe74   :  { %2074 = vmatprep.subr.bf16.mxu0 %v3880_v5  ;;  %2115 = vmatprep.subr.bf16.mxu1 %v3886_v7 }
 0xe77   :  { %2075 = vmatpush1.bf16.msra.mxu0 %v3892_v8  ;;  %2116 = vmatpush1.bf16.msra.mxu1 %v3898_v14 }
 0xf2d   :  { %v1972_v59 = vpop.f32.mrb[56].mxu0  ;;  %v2013_v63 = vpop.f32.mrb[56].mxu1 }
 0xf2e   :  { %v2020_v44 = vadd.f32 %v1972_v59, %v1933_v43  ;;  %v1974_v48 = vpop.f32.mrb[57].mxu0  ;;  %v2015_v49 = vpop.f32.mrb[57].mxu1  ;;  %v2022_v35 = vadd.f32 %v2013_v63, %v1935_v0 }
 0xf2f   :  { %v2021_v47 = vadd.f32 %v1974_v48, %v1934_v12  ;;  %v1976_v45 = vpop.f32.mrb[58].mxu0  ;;  %v2017_v50 = vpop.f32.mrb[58].mxu1  ;;  %v2023_v37 = vadd.f32 %v2015_v49, %v1936_v10 }
 0xf30   :  { %v2282_v53 = vmul.f32 -1.442695, %v2020_v44  ;;  %v1977_v9 = vpop.f32.mrb[59].mxu0  ;;  %v2018_v46 = vpop.f32.mrb[59].mxu1  ;;  %v2284_v39 = vmul.f32 -1.442695, %v2022_v35 }
 0xf31   :  { %v2283_v51 = vmul.f32 -1.442695, %v2021_v47 }
 0xf32   :  { %2564 = vpow2.f32 %v2282_v53 }
 0xf33   :  { %2566 = vpow2.f32 %v2283_v51 }
 0xf34   :  { %2568 = vtanh.f32 %v2023_v37 }
 0xf35   :  { %2570 = vpow2.f32 %v2284_v39 }
 0xf3c   :  { %v2565_v2 = vpop.eup %2564 }
 0xf3d   :  { %v2033_v3 = vadd.f32 1.0, %v2565_v2  ;;  %v2567_v4 = vpop.eup %2566 }
 0xf3e   :  { %v2034_v5 = vadd.f32 1.0, %v2567_v4  ;;  %v2569_v7 = vpop.eup %2568 }
 0xf3f   :  { %2572 = vrcp.f32 %v2033_v3  ;;  %v2571_v8 = vpop.eup %2570 }
 0xf40   :  { %2574 = vrcp.f32 %v2034_v5  ;;  %v2035_v57 = vadd.f32 1.0, %v2571_v8 }
 0xf42   :  { %2576 = vrcp.f32 %v2035_v57 }
 0xf49   :  { %v2573_v14 = vpop.eup %2572 }
 0xf4a   :  { %v2044_v54 = vmul.f32 %v2573_v14, %v2569_v7  ;;  %v2575_v60 = vpop.eup %2574 }
 0xf4b   :  { %v2043_v61 = vmul.f32 %v2575_v60, %v3934_v27 }
 0xf4c   :  { %v2577_v58 = vpop.eup %2576 }
 0xf4d   :  { %v2045_v25 = vadd.f32 %v2044_v54, %v2043_v61 }
 0xf4f   :  { %2578 = vtanh.f32 %v2045_v25 }
 0xf59   :  { %v2579_v26 = vpop.eup %2578 }
 0xf5a   :  { %v2047_v29 = vmul.f32 %v2579_v26, %v2577_v58 }
 0xf5c   :  { %v2059_v31 = vpack.c.bf16 %v2047_v29, %v2047_v29 }
 0xf5e   :  { %2093 = vmatmul.mubr.bf16.vlgmr.msra.gmra.mrb[60].mxu0 %v2059_v31  ;;  %2134 = vmatmul.mubr.bf16.vlgmr.msra.gmra.mrb[60].mxu1 %v2059_v31 }
0x1031   :  { %v2094_v15 = vpop.f32.mrb[60].mxu0  ;;  %v2135_v16 = vpop.f32.mrb[60].mxu1 }
0x1032   :  { %v2142_v17 = vadd.f32 %v2094_v15, %v2055_v36  ;;  %v2096_v20 = vpop.f32.mrb[61].mxu0  ;;  %v2137_v62 = vpop.f32.mrb[61].mxu1  ;;  %v2144_v11 = vadd.f32 %v2135_v16, %v2057_v1 }
0x1033   :  { %v2143_v21 = vadd.f32 %v2096_v20, %v2056_v41  ;;  %v2098_v23 = vpop.f32.mrb[62].mxu0  ;;  %v2139_v27 = vpop.f32.mrb[62].mxu1  ;;  %v2145_v24 = vadd.f32 %v2137_v62, %v2058_v34 }
0x1034   :  { %v2287_v22 = vmul.f32 -1.442695, %v2142_v17  ;;  %v2099_v56 = vpop.f32.mrb[63].mxu0  ;;  %v2140_v30 = vpop.f32.mrb[63].mxu1  ;;  %v2289_v43 = vmul.f32 -1.442695, %v2144_v11 }
0x1035   :  { %v2288_v13 = vmul.f32 -1.442695, %v2143_v21 }
0x1036   :  { %2580 = vpow2.f32 %v2287_v22 }
0x1037   :  { %2582 = vpow2.f32 %v2288_v13 }
0x1038   :  { %2584 = vtanh.f32 %v2145_v24 }
0x1039   :  { %2586 = vpow2.f32 %v2289_v43 }
0x1040   :  { %v2581_v52 = vpop.eup %2580 }
0x1041   :  { %v2155_v12 = vadd.f32 1.0, %v2581_v52  ;;  %v2583_v59 = vpop.eup %2582 }
0x1042   :  { %v2156_v63 = vadd.f32 1.0, %v2583_v59  ;;  %v2585_v44 = vpop.eup %2584 }
0x1043   :  { %2588 = vrcp.f32 %v2155_v12  ;;  %v2587_v6 = vpop.eup %2586 }
0x1044   :  { %2590 = vrcp.f32 %v2156_v63  ;;  %v2157_v28 = vadd.f32 1.0, %v2587_v6 }
0x1046   :  { %2592 = vrcp.f32 %v2157_v28 }
0x104d   :  { %v2589_v48 = vpop.eup %2588 }
0x104e   :  { %v2166_v49 = vmul.f32 %v2589_v48, %v2585_v44  ;;  %v2591_v47 = vpop.eup %2590 }
0x104f   :  { %v2165_v45 = vmul.f32 %v2591_v47, %v2045_v25 }
0x1050   :  { %v2593_v55 = vpop.eup %2592 }
0x1051   :  { %v2167_v50 = vadd.f32 %v2166_v49, %v2165_v45 }
0x1053   :  { %2594 = vtanh.f32 %v2167_v50 }
0x105d   :  { %v2595_v53 = vpop.eup %2594 }
0x105e   :  { %v2169_v9 = vmul.f32 %v2595_v53, %v2593_v55 }
0x1060   :  { %2175 = vst [vmem:[%s3996_s3] sm:$0xff] %v2169_v9 }

// kernel: music_vae_forward.12
= control target key start
LH: loop header
LB: loop body
LE: loop exit
PB: predicated region body
PF: predicated region fallthrough
CT: control target
= control target key end

     0   :  { %v2635_v1 = vmov 0   ;;  %s3883_s2 = inlined_call_operand.vmem [shape: bf16[128,512], index: 2, kind: input, shape index: {}]   ;;  %s3884_s1 = inlined_call_operand.vmem [shape: f32[8,128], index: 1, kind: input, shape index: {}]   ;;  %s3885_s0 = inlined_call_operand.vmem [shape: bf16[16,8,512], index: 0, kind: input, shape index: {}]   ;;  %s3886_s3 = inlined_call_operand.vmem [shape: bf16[16,8,128], index: 3, kind: output, shape index: {}]  }
   0x1   :  { %v2659_v0 = vld [vmem:[%s3883_s2 + $0x4] ss:$16 sps:$4 sm:$0xff]   ;;  %255 = vmatprep.mubr.bf16.mxu0 %v2635_v1  ;;  %296 = vmatprep.mubr.bf16.mxu1 %v2635_v1  ;;  %v2666_v2 = vld [vmem:[%s3883_s2] ss:$16 sps:$4 sm:$0xff]   ;;  %v2689_v6 = vld [vmem:[%s3883_s2 + $0xc] ss:$16 sps:$4 sm:$0xff]  }
   0x2   :  { %223 = vmatprep.subr.bf16.mxu0 %v2659_v0  ;;  %v2672_v3 = vld [vmem:[%s3883_s2 + $0x24] ss:$16 sps:$4 sm:$0xff]   ;;  %v2678_v4 = vld [vmem:[%s3883_s2 + $0x20] ss:$16 sps:$4 sm:$0xff]   ;;  %v2694_v7 = vld [vmem:[%s3883_s2 + $0x8] ss:$16 sps:$4 sm:$0xff]   ;;  %264 = vmatprep.subr.bf16.mxu1 %v2689_v6 }
   0x3   :  { %224 = vmatpush1.bf16.msra.mxu0 %v2666_v2  ;;  %v2684_v5 = vld [vmem:[%s3883_s2 + $0x44] ss:$16 sps:$4 sm:$0xff]   ;;  %v2700_v8 = vld [vmem:[%s3883_s2 + $0x40] ss:$16 sps:$4 sm:$0xff]   ;;  %265 = vmatpush1.bf16.msra.mxu1 %v2694_v7  ;;  %v2713_v10 = vld [vmem:[%s3883_s2 + $0x2c] ss:$16 sps:$4 sm:$0xff]  }
   0x4   :  { %225 = vmatprep.subr.bf16.mxu0 %v2672_v3  ;;  %v2707_v9 = vld [vmem:[%s3883_s2 + $0x64] ss:$16 sps:$4 sm:$0xff]   ;;  %v2718_v11 = vld [vmem:[%s3883_s2 + $0x28] ss:$16 sps:$4 sm:$0xff]   ;;  %266 = vmatprep.subr.bf16.mxu1 %v2713_v10  ;;  %v2725_v12 = vld [vmem:[%s3883_s2 + $0x60] ss:$16 sps:$4 sm:$0xff]  }
   0x5   :  { %v2730_v13 = vld [vmem:[%s3883_s2 + $0x84] ss:$16 sps:$4 sm:$0xff]   ;;  %v2735_v14 = vld [vmem:[%s3883_s2 + $0x4c] ss:$16 sps:$4 sm:$0xff]   ;;  %v2742_v15 = vld [vmem:[%s3883_s2 + $0x48] ss:$16 sps:$4 sm:$0xff]  }
   0x6   :  { %v2748_v16 = vld [vmem:[%s3883_s2 + $0x6c] ss:$16 sps:$4 sm:$0xff]   ;;  %v2754_v17 = vld [vmem:[%s3883_s2 + $0x80] ss:$16 sps:$4 sm:$0xff]   ;;  %v2760_v18 = vld [vmem:[%s3883_s2 + $0xa4] ss:$16 sps:$4 sm:$0xff]  }
   0x7   :  { %226 = vmatpush1.bf16.msra.mxu0 %v2678_v4  ;;  %267 = vmatpush1.bf16.msra.mxu1 %v2718_v11  ;;  %v2766_v19 = vld [vmem:[%s3883_s2 + $0x68] ss:$16 sps:$4 sm:$0xff]   ;;  %v2772_v20 = vld [vmem:[%s3883_s2 + $0x8c] ss:$16 sps:$4 sm:$0xff]   ;;  %v2777_v21 = vld [vmem:[%s3883_s2 + $0xa0] ss:$16 sps:$4 sm:$0xff]  }
   0x8   :  { %227 = vmatprep.subr.bf16.mxu0 %v2684_v5  ;;  %268 = vmatprep.subr.bf16.mxu1 %v2735_v14  ;;  %v2783_v22 = vld [vmem:[%s3883_s2 + $0xc4] ss:$16 sps:$4 sm:$0xff]   ;;  %v2790_v23 = vld [vmem:[%s3883_s2 + $0x88] ss:$16 sps:$4 sm:$0xff]   ;;  %v2796_v24 = vld [vmem:[%s3883_s2 + $0xac] ss:$16 sps:$4 sm:$0xff]  }
   0x9   :  { %v2802_v25 = vld [vmem:[%s3883_s2 + $0xc0] ss:$16 sps:$4 sm:$0xff]   ;;  %v2808_v26 = vld [vmem:[%s3883_s2 + $0xe4] ss:$16 sps:$4 sm:$0xff]   ;;  %v2814_v27 = vld [vmem:[%s3883_s2 + $0xa8] ss:$16 sps:$4 sm:$0xff]  }
   0xa   :  { %v2820_v28 = vld [vmem:[%s3883_s2 + $0xcc] ss:$16 sps:$4 sm:$0xff]   ;;  %v2826_v29 = vld [vmem:[%s3883_s2 + $0xe0] ss:$16 sps:$4 sm:$0xff]   ;;  %v2836_v31 = vld [vmem:[%s3883_s2 + $0xc8] ss:$16 sps:$4 sm:$0xff]  }
   0xb   :  { %228 = vmatpush1.bf16.msra.mxu0 %v2700_v8  ;;  %269 = vmatpush1.bf16.msra.mxu1 %v2742_v15  ;;  %v19_v30 = vld [vmem:[%s3884_s1] sm:$0xff]  ;;  %v2842_v32 = vld [vmem:[%s3883_s2 + $0xec] ss:$16 sps:$4 sm:$0xff]   ;;  %v2849_v34 = vld [vmem:[%s3883_s2 + $0xe8] ss:$16 sps:$4 sm:$0xff]  }
   0xc   :  { %229 = vmatprep.subr.bf16.mxu0 %v2707_v9  ;;  %270 = vmatprep.subr.bf16.mxu1 %v2748_v16  ;;  %v62_v33 = vpack.c.bf16 %v19_v30, %v19_v30  ;;  %v56_v35 = vld [vmem:[%s3885_s0] sm:$0xff]  ;;  %v57_v39 = vld [vmem:[%s3885_s0 + $0x8] sm:$0xff] }
   0xd   :  { %v58_v36 = vunpack.c.l.bf16 %v56_v35  ;;  %v59_v37 = vunpack.c.h.bf16 %v56_v35  ;;  %v60_v46 = vunpack.c.l.bf16 %v57_v39  ;;  %v61_v52 = vunpack.c.h.bf16 %v57_v39 }
   0xf   :  { %230 = vmatpush1.bf16.msra.mxu0 %v2725_v12  ;;  %271 = vmatpush1.bf16.msra.mxu1 %v2766_v19 }
  0x10   :  { %231 = vmatprep.subr.bf16.mxu0 %v2730_v13  ;;  %272 = vmatprep.subr.bf16.mxu1 %v2772_v20 }
  0x13   :  { %232 = vmatpush1.bf16.msra.mxu0 %v2754_v17  ;;  %273 = vmatpush1.bf16.msra.mxu1 %v2790_v23 }
  0x14   :  { %233 = vmatprep.subr.bf16.mxu0 %v2760_v18  ;;  %274 = vmatprep.subr.bf16.mxu1 %v2796_v24 }
  0x17   :  { %234 = vmatpush1.bf16.msra.mxu0 %v2777_v21  ;;  %275 = vmatpush1.bf16.msra.mxu1 %v2814_v27 }
  0x18   :  { %235 = vmatprep.subr.bf16.mxu0 %v2783_v22  ;;  %276 = vmatprep.subr.bf16.mxu1 %v2820_v28 }
  0x1b   :  { %236 = vmatpush1.bf16.msra.mxu0 %v2802_v25  ;;  %277 = vmatpush1.bf16.msra.mxu1 %v2836_v31 }
  0x1c   :  { %237 = vmatprep.subr.bf16.mxu0 %v2808_v26  ;;  %278 = vmatprep.subr.bf16.mxu1 %v2842_v32 }
  0x1f   :  { %238 = vmatpush1.bf16.msra.mxu0 %v2826_v29  ;;  %279 = vmatpush1.bf16.msra.mxu1 %v2849_v34 }
  0x20   :  { %342 = vmatprep.subr.bf16.mxu0 %v2659_v0  ;;  %383 = vmatprep.subr.bf16.mxu1 %v2689_v6 }
  0x22   :  { %256 = vmatmul.mubr.bf16.vlgmr.msra.gmra.mrb[0].mxu0 %v62_v33  ;;  %297 = vmatmul.mubr.bf16.vlgmr.msra.gmra.mrb[0].mxu1 %v62_v33 }
  0x23   :  { %343 = vmatpush1.bf16.msra.mxu0 %v2666_v2  ;;  %374 = vmatprep.mubr.bf16.mxu0 %v2635_v1 }
  0x24   :  { %344 = vmatprep.subr.bf16.mxu0 %v2672_v3  ;;  %384 = vmatpush1.bf16.msra.mxu1 %v2694_v7 }
  0x25   :  { %385 = vmatprep.subr.bf16.mxu1 %v2713_v10  ;;  %415 = vmatprep.mubr.bf16.mxu1 %v2635_v1 }
  0x27   :  { %345 = vmatpush1.bf16.msra.mxu0 %v2678_v4 }
  0x28   :  { %346 = vmatprep.subr.bf16.mxu0 %v2684_v5  ;;  %386 = vmatpush1.bf16.msra.mxu1 %v2718_v11 }
  0x29   :  { %387 = vmatprep.subr.bf16.mxu1 %v2735_v14 }
  0x2b   :  { %347 = vmatpush1.bf16.msra.mxu0 %v2700_v8 }
  0x2c   :  { %348 = vmatprep.subr.bf16.mxu0 %v2707_v9  ;;  %388 = vmatpush1.bf16.msra.mxu1 %v2742_v15 }
  0x2d   :  { %389 = vmatprep.subr.bf16.mxu1 %v2748_v16 }
  0x2f   :  { %349 = vmatpush1.bf16.msra.mxu0 %v2725_v12 }
  0x30   :  { %350 = vmatprep.subr.bf16.mxu0 %v2730_v13  ;;  %390 = vmatpush1.bf16.msra.mxu1 %v2766_v19 }
  0x31   :  { %391 = vmatprep.subr.bf16.mxu1 %v2772_v20 }
  0x33   :  { %351 = vmatpush1.bf16.msra.mxu0 %v2754_v17 }
  0x34   :  { %352 = vmatprep.subr.bf16.mxu0 %v2760_v18  ;;  %392 = vmatpush1.bf16.msra.mxu1 %v2790_v23 }
  0x35   :  { %393 = vmatprep.subr.bf16.mxu1 %v2796_v24 }
  0x37   :  { %353 = vmatpush1.bf16.msra.mxu0 %v2777_v21 }
  0x38   :  { %354 = vmatprep.subr.bf16.mxu0 %v2783_v22  ;;  %394 = vmatpush1.bf16.msra.mxu1 %v2814_v27 }
  0x39   :  { %395 = vmatprep.subr.bf16.mxu1 %v2820_v28 }
  0x3b   :  { %355 = vmatpush1.bf16.msra.mxu0 %v2802_v25 }
  0x3c   :  { %356 = vmatprep.subr.bf16.mxu0 %v2808_v26  ;;  %396 = vmatpush1.bf16.msra.mxu1 %v2836_v31 }
  0x3d   :  { %397 = vmatprep.subr.bf16.mxu1 %v2842_v32 }
  0x3f   :  { %357 = vmatpush1.bf16.msra.mxu0 %v2826_v29 }
  0x40   :  { %462 = vmatprep.subr.bf16.mxu0 %v2659_v0  ;;  %398 = vmatpush1.bf16.msra.mxu1 %v2849_v34 }
  0x41   :  { %503 = vmatprep.subr.bf16.mxu1 %v2689_v6 }
  0xf5   :  { %v257_v38 = vpop.f32.mrb[0].mxu0  ;;  %v298_v48 = vpop.f32.mrb[0].mxu1 }
  0xf6   :  { %v305_v40 = vadd.f32 %v257_v38, %v58_v36  ;;  %v259_v41 = vpop.f32.mrb[1].mxu0  ;;  %v300_v49 = vpop.f32.mrb[1].mxu1  ;;  %v307_v50 = vadd.f32 %v298_v48, %v60_v46 }
  0xf7   :  { %v306_v42 = vadd.f32 %v259_v41, %v59_v37  ;;  %v261_v43 = vpop.f32.mrb[2].mxu0  ;;  %v302_v51 = vpop.f32.mrb[2].mxu1  ;;  %v308_v55 = vadd.f32 %v300_v49, %v61_v52  ;;  %v2176_v41 = vld [vmem:[%s3885_s0 + $0x10] sm:$0xff]  ;;  %v2177_v49 = vld [vmem:[%s3885_s0 + $0x18] sm:$0xff] }
  0xf8   :  { %v2173_v44 = vmul.f32 -1.442695, %v305_v40  ;;  %v262_v45 = vpop.f32.mrb[3].mxu0  ;;  %v303_v53 = vpop.f32.mrb[3].mxu1  ;;  %v2175_v54 = vmul.f32 -1.442695, %v307_v50  ;;  %v339_v43 = vunpack.c.h.bf16 %v2176_v41 }
  0xf9   :  { %v2174_v47 = vmul.f32 -1.442695, %v306_v42  ;;  %v338_v42 = vunpack.c.l.bf16 %v2176_v41 }
  0xfa   :  { %2315 = vpow2.f32 %v2173_v44 }
  0xfb   :  { %2317 = vpow2.f32 %v2174_v47 }
  0xfc   :  { %2319 = vpow2.f32 %v2175_v54 }
  0xfd   :  { %2321 = vtanh.f32 %v308_v55 }
 0x104   :  { %v2316_v56 = vpop.eup %2315 }
 0x105   :  { %v2318_v57 = vpop.eup %2317  ;;  %v318_v58 = vadd.f32 1.0, %v2316_v56 }
 0x106   :  { %v319_v59 = vadd.f32 1.0, %v2318_v57  ;;  %v2320_v60 = vpop.eup %2319  ;;  %v340_v57 = vunpack.c.l.bf16 %v2177_v49 }
 0x107   :  { %2323 = vrcp.f32 %v318_v58  ;;  %v2322_v61 = vpop.eup %2321  ;;  %v320_v63 = vadd.f32 1.0, %v2320_v60  ;;  %v341_v58 = vunpack.c.h.bf16 %v2177_v49 }
 0x108   :  { %2325 = vrcp.f32 %v319_v59 }
 0x109   :  { %2327 = vrcp.f32 %v320_v63 }
 0x111   :  { %v2324_v62 = vpop.eup %2323 }
 0x112   :  { %v2326_v30 = vpop.eup %2325  ;;  %v329_v33 = vmul.f32 %v2324_v62, %v2322_v61 }
 0x113   :  { %v328_v35 = vmul.f32 0.0, %v2326_v30  ;;  %v2328_v37 = vpop.eup %2327 }
 0x115   :  { %v2895_v36 = vadd.f32 %v329_v33, %v328_v35 }
 0x117   :  { %2329 = vtanh.f32 %v2895_v36 }
 0x121   :  { %v2330_v38 = vpop.eup %2329 }
 0x122   :  { %v332_v39 = vmul.f32 %v2330_v38, %v2328_v37 }
 0x124   :  { %v333_v40 = vpack.c.bf16 %v332_v39, %v332_v39 }
 0x126   :  { %334 = vst [vmem:[%s3886_s3] sm:$0xf] %v333_v40  ;;  %375 = vmatmul.mubr.bf16.vlgmr.msra.gmra.mrb[4].mxu0 %v333_v40  ;;  %416 = vmatmul.mubr.bf16.vlgmr.msra.gmra.mrb[4].mxu1 %v333_v40 }
 0x127   :  { %463 = vmatpush1.bf16.msra.mxu0 %v2666_v2  ;;  %504 = vmatpush1.bf16.msra.mxu1 %v2694_v7 }
 0x128   :  { %464 = vmatprep.subr.bf16.mxu0 %v2672_v3  ;;  %505 = vmatprep.subr.bf16.mxu1 %v2713_v10 }
 0x129   :  { %494 = vmatprep.mubr.bf16.mxu0 %v2635_v1  ;;  %535 = vmatprep.mubr.bf16.mxu1 %v2635_v1 }
 0x12b   :  { %465 = vmatpush1.bf16.msra.mxu0 %v2678_v4  ;;  %506 = vmatpush1.bf16.msra.mxu1 %v2718_v11 }
 0x12c   :  { %466 = vmatprep.subr.bf16.mxu0 %v2684_v5  ;;  %507 = vmatprep.subr.bf16.mxu1 %v2735_v14 }
 0x12f   :  { %467 = vmatpush1.bf16.msra.mxu0 %v2700_v8  ;;  %508 = vmatpush1.bf16.msra.mxu1 %v2742_v15 }
 0x130   :  { %468 = vmatprep.subr.bf16.mxu0 %v2707_v9  ;;  %509 = vmatprep.subr.bf16.mxu1 %v2748_v16 }
 0x133   :  { %469 = vmatpush1.bf16.msra.mxu0 %v2725_v12  ;;  %510 = vmatpush1.bf16.msra.mxu1 %v2766_v19 }
 0x134   :  { %470 = vmatprep.subr.bf16.mxu0 %v2730_v13  ;;  %511 = vmatprep.subr.bf16.mxu1 %v2772_v20 }
 0x137   :  { %471 = vmatpush1.bf16.msra.mxu0 %v2754_v17  ;;  %512 = vmatpush1.bf16.msra.mxu1 %v2790_v23 }
 0x138   :  { %472 = vmatprep.subr.bf16.mxu0 %v2760_v18  ;;  %513 = vmatprep.subr.bf16.mxu1 %v2796_v24 }
 0x13b   :  { %473 = vmatpush1.bf16.msra.mxu0 %v2777_v21  ;;  %514 = vmatpush1.bf16.msra.mxu1 %v2814_v27 }
 0x13c   :  { %474 = vmatprep.subr.bf16.mxu0 %v2783_v22  ;;  %515 = vmatprep.subr.bf16.mxu1 %v2820_v28 }
 0x13f   :  { %475 = vmatpush1.bf16.msra.mxu0 %v2802_v25  ;;  %516 = vmatpush1.bf16.msra.mxu1 %v2836_v31 }
 0x140   :  { %476 = vmatprep.subr.bf16.mxu0 %v2808_v26  ;;  %517 = vmatprep.subr.bf16.mxu1 %v2842_v32 }
 0x143   :  { %477 = vmatpush1.bf16.msra.mxu0 %v2826_v29  ;;  %518 = vmatpush1.bf16.msra.mxu1 %v2849_v34 }
 0x144   :  { %582 = vmatprep.subr.bf16.mxu0 %v2659_v0  ;;  %623 = vmatprep.subr.bf16.mxu1 %v2689_v6 }
 0x1f9   :  { %v376_v44 = vpop.f32.mrb[4].mxu0  ;;  %v417_v45 = vpop.f32.mrb[4].mxu1 }
 0x1fa   :  { %v424_v46 = vadd.f32 %v376_v44, %v338_v42  ;;  %v378_v47 = vpop.f32.mrb[5].mxu0  ;;  %v419_v48 = vpop.f32.mrb[5].mxu1  ;;  %v426_v59 = vadd.f32 %v417_v45, %v340_v57 }
 0x1fb   :  { %v425_v50 = vadd.f32 %v378_v47, %v339_v43  ;;  %v380_v51 = vpop.f32.mrb[6].mxu0  ;;  %v421_v52 = vpop.f32.mrb[6].mxu1  ;;  %v427_v60 = vadd.f32 %v419_v48, %v341_v58 }
 0x1fc   :  { %v2178_v53 = vmul.f32 -1.442695, %v424_v46  ;;  %v381_v54 = vpop.f32.mrb[7].mxu0  ;;  %v422_v55 = vpop.f32.mrb[7].mxu1  ;;  %v2180_v61 = vmul.f32 -1.442695, %v426_v59 }
 0x1fd   :  { %v2179_v56 = vmul.f32 -1.442695, %v425_v50  ;;  %v2183_v55 = vld [vmem:[%s3885_s0 + $0x28] sm:$0xff] }
 0x1fe   :  { %2331 = vpow2.f32 %v2178_v53 }
 0x1ff   :  { %2333 = vpow2.f32 %v2179_v56 }
 0x200   :  { %2335 = vtanh.f32 %v427_v60 }
 0x201   :  { %2337 = vpow2.f32 %v2180_v61 }
 0x208   :  { %v2332_v62 = vpop.eup %2331 }
 0x209   :  { %v437_v63 = vadd.f32 1.0, %v2332_v62  ;;  %v2334_v30 = vpop.eup %2333 }
 0x20a   :  { %v438_v33 = vadd.f32 1.0, %v2334_v30  ;;  %v2336_v35 = vpop.eup %2335  ;;  %v461_v30 = vunpack.c.h.bf16 %v2183_v55 }
 0x20b   :  { %2339 = vrcp.f32 %v437_v63  ;;  %v2338_v37 = vpop.eup %2337  ;;  %v460_v63 = vunpack.c.l.bf16 %v2183_v55 }
 0x20c   :  { %2341 = vrcp.f32 %v438_v33  ;;  %v439_v41 = vadd.f32 1.0, %v2338_v37 }
 0x20e   :  { %2343 = vrcp.f32 %v439_v41 }
 0x215   :  { %v2340_v38 = vpop.eup %2339 }
 0x216   :  { %v448_v39 = vmul.f32 %v2340_v38, %v2336_v35  ;;  %v2342_v40 = vpop.eup %2341 }
 0x217   :  { %v447_v42 = vmul.f32 %v2342_v40, %v2895_v36  ;;  %v2182_v36 = vld [vmem:[%s3885_s0 + $0x20] sm:$0xff] }
 0x218   :  { %v2344_v44 = vpop.eup %2343  ;;  %v458_v48 = vunpack.c.l.bf16 %v2182_v36  ;;  %v459_v49 = vunpack.c.h.bf16 %v2182_v36 }
 0x219   :  { %v2942_v43 = vadd.f32 %v448_v39, %v447_v42 }
 0x21b   :  { %2345 = vtanh.f32 %v2942_v43 }
 0x225   :  { %v2346_v45 = vpop.eup %2345 }
 0x226   :  { %v451_v46 = vmul.f32 %v2346_v45, %v2344_v44 }
 0x228   :  { %v452_v47 = vpack.c.bf16 %v451_v46, %v451_v46 }
 0x22a   :  { %2181 = vst [vmem:[%s3886_s3 + $0x4] sm:$0xf] %v452_v47  ;;  %495 = vmatmul.mubr.bf16.vlgmr.msra.gmra.mrb[8].mxu0 %v452_v47  ;;  %536 = vmatmul.mubr.bf16.vlgmr.msra.gmra.mrb[8].mxu1 %v452_v47 }
 0x22b   :  { %583 = vmatpush1.bf16.msra.mxu0 %v2666_v2  ;;  %624 = vmatpush1.bf16.msra.mxu1 %v2694_v7 }
 0x22c   :  { %584 = vmatprep.subr.bf16.mxu0 %v2672_v3  ;;  %625 = vmatprep.subr.bf16.mxu1 %v2713_v10 }
 0x22d   :  { %614 = vmatprep.mubr.bf16.mxu0 %v2635_v1  ;;  %655 = vmatprep.mubr.bf16.mxu1 %v2635_v1 }
 0x22f   :  { %585 = vmatpush1.bf16.msra.mxu0 %v2678_v4  ;;  %626 = vmatpush1.bf16.msra.mxu1 %v2718_v11 }
 0x230   :  { %586 = vmatprep.subr.bf16.mxu0 %v2684_v5  ;;  %627 = vmatprep.subr.bf16.mxu1 %v2735_v14 }
 0x233   :  { %587 = vmatpush1.bf16.msra.mxu0 %v2700_v8  ;;  %628 = vmatpush1.bf16.msra.mxu1 %v2742_v15 }
 0x234   :  { %588 = vmatprep.subr.bf16.mxu0 %v2707_v9  ;;  %629 = vmatprep.subr.bf16.mxu1 %v2748_v16 }
 0x237   :  { %589 = vmatpush1.bf16.msra.mxu0 %v2725_v12  ;;  %630 = vmatpush1.bf16.msra.mxu1 %v2766_v19 }
 0x238   :  { %590 = vmatprep.subr.bf16.mxu0 %v2730_v13  ;;  %631 = vmatprep.subr.bf16.mxu1 %v2772_v20 }
 0x23b   :  { %591 = vmatpush1.bf16.msra.mxu0 %v2754_v17  ;;  %632 = vmatpush1.bf16.msra.mxu1 %v2790_v23 }
 0x23c   :  { %592 = vmatprep.subr.bf16.mxu0 %v2760_v18  ;;  %633 = vmatprep.subr.bf16.mxu1 %v2796_v24 }
 0x23f   :  { %593 = vmatpush1.bf16.msra.mxu0 %v2777_v21  ;;  %634 = vmatpush1.bf16.msra.mxu1 %v2814_v27 }
 0x240   :  { %594 = vmatprep.subr.bf16.mxu0 %v2783_v22  ;;  %635 = vmatprep.subr.bf16.mxu1 %v2820_v28 }
 0x243   :  { %595 = vmatpush1.bf16.msra.mxu0 %v2802_v25  ;;  %636 = vmatpush1.bf16.msra.mxu1 %v2836_v31 }
 0x244   :  { %596 = vmatprep.subr.bf16.mxu0 %v2808_v26  ;;  %637 = vmatprep.subr.bf16.mxu1 %v2842_v32 }
 0x247   :  { %597 = vmatpush1.bf16.msra.mxu0 %v2826_v29  ;;  %638 = vmatpush1.bf16.msra.mxu1 %v2849_v34 }
 0x248   :  { %702 = vmatprep.subr.bf16.mxu0 %v2659_v0  ;;  %743 = vmatprep.subr.bf16.mxu1 %v2689_v6 }
 0x2fd   :  { %v496_v50 = vpop.f32.mrb[8].mxu0  ;;  %v537_v51 = vpop.f32.mrb[8].mxu1 }
 0x2fe   :  { %v544_v52 = vadd.f32 %v496_v50, %v458_v48  ;;  %v498_v53 = vpop.f32.mrb[9].mxu0  ;;  %v539_v54 = vpop.f32.mrb[9].mxu1  ;;  %v546_v33 = vadd.f32 %v537_v51, %v460_v63 }
 0x2ff   :  { %v545_v56 = vadd.f32 %v498_v53, %v459_v49  ;;  %v500_v57 = vpop.f32.mrb[10].mxu0  ;;  %v541_v58 = vpop.f32.mrb[10].mxu1  ;;  %v547_v35 = vadd.f32 %v539_v54, %v461_v30 }
 0x300   :  { %v2184_v59 = vmul.f32 -1.442695, %v544_v52  ;;  %v501_v60 = vpop.f32.mrb[11].mxu0  ;;  %v542_v61 = vpop.f32.mrb[11].mxu1  ;;  %v2186_v37 = vmul.f32 -1.442695, %v546_v33 }
 0x301   :  { %v2185_v62 = vmul.f32 -1.442695, %v545_v56  ;;  %v2189_v61 = vld [vmem:[%s3885_s0 + $0x38] sm:$0xff] }
 0x302   :  { %2347 = vpow2.f32 %v2184_v59 }
 0x303   :  { %2349 = vpow2.f32 %v2185_v62 }
 0x304   :  { %2351 = vtanh.f32 %v547_v35 }
 0x305   :  { %2353 = vpow2.f32 %v2186_v37 }
 0x30c   :  { %v2348_v38 = vpop.eup %2347 }
 0x30d   :  { %v557_v39 = vadd.f32 1.0, %v2348_v38  ;;  %v2350_v40 = vpop.eup %2349 }
 0x30e   :  { %v558_v41 = vadd.f32 1.0, %v2350_v40  ;;  %v2352_v42 = vpop.eup %2351  ;;  %v581_v40 = vunpack.c.h.bf16 %v2189_v61 }
 0x30f   :  { %2355 = vrcp.f32 %v557_v39  ;;  %v2354_v44 = vpop.eup %2353  ;;  %v580_v39 = vunpack.c.l.bf16 %v2189_v61 }
 0x310   :  { %2357 = vrcp.f32 %v558_v41  ;;  %v559_v36 = vadd.f32 1.0, %v2354_v44 }
 0x312   :  { %2359 = vrcp.f32 %v559_v36 }
 0x319   :  { %v2356_v45 = vpop.eup %2355 }
 0x31a   :  { %v568_v46 = vmul.f32 %v2356_v45, %v2352_v42  ;;  %v2358_v47 = vpop.eup %2357 }
 0x31b   :  { %v567_v48 = vmul.f32 %v2358_v47, %v2942_v43  ;;  %v2188_v43 = vld [vmem:[%s3885_s0 + $0x30] sm:$0xff] }
 0x31c   :  { %v2360_v50 = vpop.eup %2359  ;;  %v578_v54 = vunpack.c.l.bf16 %v2188_v43  ;;  %v579_v55 = vunpack.c.h.bf16 %v2188_v43 }
 0x31d   :  { %v2989_v49 = vadd.f32 %v568_v46, %v567_v48 }
 0x31f   :  { %2361 = vtanh.f32 %v2989_v49 }
 0x329   :  { %v2362_v51 = vpop.eup %2361 }
 0x32a   :  { %v571_v52 = vmul.f32 %v2362_v51, %v2360_v50 }
 0x32c   :  { %v572_v53 = vpack.c.bf16 %v571_v52, %v571_v52 }
 0x32e   :  { %2187 = vst [vmem:[%s3886_s3 + $0x8] sm:$0xf] %v572_v53  ;;  %615 = vmatmul.mubr.bf16.vlgmr.msra.gmra.mrb[12].mxu0 %v572_v53  ;;  %656 = vmatmul.mubr.bf16.vlgmr.msra.gmra.mrb[12].mxu1 %v572_v53 }
 0x32f   :  { %703 = vmatpush1.bf16.msra.mxu0 %v2666_v2  ;;  %744 = vmatpush1.bf16.msra.mxu1 %v2694_v7 }
 0x330   :  { %704 = vmatprep.subr.bf16.mxu0 %v2672_v3  ;;  %745 = vmatprep.subr.bf16.mxu1 %v2713_v10 }
 0x331   :  { %734 = vmatprep.mubr.bf16.mxu0 %v2635_v1  ;;  %775 = vmatprep.mubr.bf16.mxu1 %v2635_v1 }
 0x333   :  { %705 = vmatpush1.bf16.msra.mxu0 %v2678_v4  ;;  %746 = vmatpush1.bf16.msra.mxu1 %v2718_v11 }
 0x334   :  { %706 = vmatprep.subr.bf16.mxu0 %v2684_v5  ;;  %747 = vmatprep.subr.bf16.mxu1 %v2735_v14 }
 0x337   :  { %707 = vmatpush1.bf16.msra.mxu0 %v2700_v8  ;;  %748 = vmatpush1.bf16.msra.mxu1 %v2742_v15 }
 0x338   :  { %708 = vmatprep.subr.bf16.mxu0 %v2707_v9  ;;  %749 = vmatprep.subr.bf16.mxu1 %v2748_v16 }
 0x33b   :  { %709 = vmatpush1.bf16.msra.mxu0 %v2725_v12  ;;  %750 = vmatpush1.bf16.msra.mxu1 %v2766_v19 }
 0x33c   :  { %710 = vmatprep.subr.bf16.mxu0 %v2730_v13  ;;  %751 = vmatprep.subr.bf16.mxu1 %v2772_v20 }
 0x33f   :  { %711 = vmatpush1.bf16.msra.mxu0 %v2754_v17  ;;  %752 = vmatpush1.bf16.msra.mxu1 %v2790_v23 }
 0x340   :  { %712 = vmatprep.subr.bf16.mxu0 %v2760_v18  ;;  %753 = vmatprep.subr.bf16.mxu1 %v2796_v24 }
 0x343   :  { %713 = vmatpush1.bf16.msra.mxu0 %v2777_v21  ;;  %754 = vmatpush1.bf16.msra.mxu1 %v2814_v27 }
 0x344   :  { %714 = vmatprep.subr.bf16.mxu0 %v2783_v22  ;;  %755 = vmatprep.subr.bf16.mxu1 %v2820_v28 }
 0x347   :  { %715 = vmatpush1.bf16.msra.mxu0 %v2802_v25  ;;  %756 = vmatpush1.bf16.msra.mxu1 %v2836_v31 }
 0x348   :  { %716 = vmatprep.subr.bf16.mxu0 %v2808_v26  ;;  %757 = vmatprep.subr.bf16.mxu1 %v2842_v32 }
 0x34b   :  { %717 = vmatpush1.bf16.msra.mxu0 %v2826_v29  ;;  %758 = vmatpush1.bf16.msra.mxu1 %v2849_v34 }
 0x34c   :  { %822 = vmatprep.subr.bf16.mxu0 %v2659_v0  ;;  %863 = vmatprep.subr.bf16.mxu1 %v2689_v6 }
 0x401   :  { %v616_v56 = vpop.f32.mrb[12].mxu0  ;;  %v657_v57 = vpop.f32.mrb[12].mxu1 }
 0x402   :  { %v664_v58 = vadd.f32 %v616_v56, %v578_v54  ;;  %v618_v59 = vpop.f32.mrb[13].mxu0  ;;  %v659_v60 = vpop.f32.mrb[13].mxu1  ;;  %v666_v41 = vadd.f32 %v657_v57, %v580_v39 }
 0x403   :  { %v665_v62 = vadd.f32 %v618_v59, %v579_v55  ;;  %v620_v63 = vpop.f32.mrb[14].mxu0  ;;  %v661_v30 = vpop.f32.mrb[14].mxu1  ;;  %v667_v42 = vadd.f32 %v659_v60, %v581_v40 }
 0x404   :  { %v2190_v33 = vmul.f32 -1.442695, %v664_v58  ;;  %v621_v35 = vpop.f32.mrb[15].mxu0  ;;  %v662_v37 = vpop.f32.mrb[15].mxu1  ;;  %v2192_v44 = vmul.f32 -1.442695, %v666_v41 }
 0x405   :  { %v2191_v38 = vmul.f32 -1.442695, %v665_v62  ;;  %v2195_v35 = vld [vmem:[%s3885_s0 + $0x48] sm:$0xff] }
 0x406   :  { %2363 = vpow2.f32 %v2190_v33 }
 0x407   :  { %2365 = vpow2.f32 %v2191_v38 }
 0x408   :  { %2367 = vtanh.f32 %v667_v42  ;;  %v700_v42 = vunpack.c.l.bf16 %v2195_v35 }
 0x409   :  { %2369 = vpow2.f32 %v2192_v44  ;;  %v701_v44 = vunpack.c.h.bf16 %v2195_v35 }
 0x410   :  { %v2364_v45 = vpop.eup %2363 }
 0x411   :  { %v677_v46 = vadd.f32 1.0, %v2364_v45  ;;  %v2366_v47 = vpop.eup %2365 }
 0x412   :  { %v678_v36 = vadd.f32 1.0, %v2366_v47  ;;  %v2368_v48 = vpop.eup %2367 }
 0x413   :  { %2371 = vrcp.f32 %v677_v46  ;;  %v2370_v50 = vpop.eup %2369 }
 0x414   :  { %2373 = vrcp.f32 %v678_v36  ;;  %v679_v43 = vadd.f32 1.0, %v2370_v50 }
 0x416   :  { %2375 = vrcp.f32 %v679_v43 }
 0x41d   :  { %v2372_v51 = vpop.eup %2371 }
 0x41e   :  { %v688_v52 = vmul.f32 %v2372_v51, %v2368_v48  ;;  %v2374_v53 = vpop.eup %2373 }
 0x41f   :  { %v687_v54 = vmul.f32 %v2374_v53, %v2989_v49 }
 0x420   :  { %v2376_v56 = vpop.eup %2375 }
 0x421   :  { %v3036_v55 = vadd.f32 %v688_v52, %v687_v54 }
 0x423   :  { %2377 = vtanh.f32 %v3036_v55 }
 0x42d   :  { %v2378_v57 = vpop.eup %2377 }
 0x42e   :  { %v691_v58 = vmul.f32 %v2378_v57, %v2376_v56 }
 0x430   :  { %v692_v59 = vpack.c.bf16 %v691_v58, %v691_v58 }
 0x432   :  { %2193 = vst [vmem:[%s3886_s3 + $0xc] sm:$0xf] %v692_v59  ;;  %735 = vmatmul.mubr.bf16.vlgmr.msra.gmra.mrb[16].mxu0 %v692_v59  ;;  %776 = vmatmul.mubr.bf16.vlgmr.msra.gmra.mrb[16].mxu1 %v692_v59 }
 0x433   :  { %823 = vmatpush1.bf16.msra.mxu0 %v2666_v2  ;;  %864 = vmatpush1.bf16.msra.mxu1 %v2694_v7  ;;  %v2194_v2 = vld [vmem:[%s3885_s0 + $0x40] sm:$0xff] }
 0x434   :  { %824 = vmatprep.subr.bf16.mxu0 %v2672_v3  ;;  %865 = vmatprep.subr.bf16.mxu1 %v2713_v10  ;;  %v698_v49 = vunpack.c.l.bf16 %v2194_v2  ;;  %v699_v60 = vunpack.c.h.bf16 %v2194_v2 }
 0x435   :  { %854 = vmatprep.mubr.bf16.mxu0 %v2635_v1  ;;  %895 = vmatprep.mubr.bf16.mxu1 %v2635_v1 }
 0x437   :  { %825 = vmatpush1.bf16.msra.mxu0 %v2678_v4  ;;  %866 = vmatpush1.bf16.msra.mxu1 %v2718_v11 }
 0x438   :  { %826 = vmatprep.subr.bf16.mxu0 %v2684_v5  ;;  %867 = vmatprep.subr.bf16.mxu1 %v2735_v14 }
 0x43b   :  { %827 = vmatpush1.bf16.msra.mxu0 %v2700_v8  ;;  %868 = vmatpush1.bf16.msra.mxu1 %v2742_v15 }
 0x43c   :  { %828 = vmatprep.subr.bf16.mxu0 %v2707_v9  ;;  %869 = vmatprep.subr.bf16.mxu1 %v2748_v16 }
 0x43f   :  { %829 = vmatpush1.bf16.msra.mxu0 %v2725_v12  ;;  %870 = vmatpush1.bf16.msra.mxu1 %v2766_v19 }
 0x440   :  { %830 = vmatprep.subr.bf16.mxu0 %v2730_v13  ;;  %871 = vmatprep.subr.bf16.mxu1 %v2772_v20 }
 0x443   :  { %831 = vmatpush1.bf16.msra.mxu0 %v2754_v17  ;;  %872 = vmatpush1.bf16.msra.mxu1 %v2790_v23 }
 0x444   :  { %832 = vmatprep.subr.bf16.mxu0 %v2760_v18  ;;  %873 = vmatprep.subr.bf16.mxu1 %v2796_v24 }
 0x447   :  { %833 = vmatpush1.bf16.msra.mxu0 %v2777_v21  ;;  %874 = vmatpush1.bf16.msra.mxu1 %v2814_v27 }
 0x448   :  { %834 = vmatprep.subr.bf16.mxu0 %v2783_v22  ;;  %875 = vmatprep.subr.bf16.mxu1 %v2820_v28 }
 0x44b   :  { %835 = vmatpush1.bf16.msra.mxu0 %v2802_v25  ;;  %876 = vmatpush1.bf16.msra.mxu1 %v2836_v31 }
 0x44c   :  { %836 = vmatprep.subr.bf16.mxu0 %v2808_v26  ;;  %877 = vmatprep.subr.bf16.mxu1 %v2842_v32 }
 0x44f   :  { %837 = vmatpush1.bf16.msra.mxu0 %v2826_v29  ;;  %878 = vmatpush1.bf16.msra.mxu1 %v2849_v34 }
 0x450   :  { %942 = vmatprep.subr.bf16.mxu0 %v2659_v0  ;;  %983 = vmatprep.subr.bf16.mxu1 %v2689_v6 }
 0x505   :  { %v736_v61 = vpop.f32.mrb[16].mxu0  ;;  %v777_v62 = vpop.f32.mrb[16].mxu1 }
 0x506   :  { %v784_v63 = vadd.f32 %v736_v61, %v698_v49  ;;  %v738_v30 = vpop.f32.mrb[17].mxu0  ;;  %v779_v33 = vpop.f32.mrb[17].mxu1  ;;  %v786_v45 = vadd.f32 %v777_v62, %v700_v42  ;;  %v3092_v62 = vld [vmem:[%s3883_s2] ss:$16 sps:$4 sm:$0xff]   ;;  %v3167_v42 = vld [vmem:[%s3883_s2 + $0x2c] ss:$16 sps:$4 sm:$0xff]  }
 0x507   :  { %v785_v37 = vadd.f32 %v738_v30, %v699_v60  ;;  %v740_v38 = vpop.f32.mrb[18].mxu0  ;;  %v781_v0 = vpop.f32.mrb[18].mxu1  ;;  %v787_v46 = vadd.f32 %v779_v33, %v701_v44  ;;  %v3175_v44 = vld [vmem:[%s3883_s2 + $0x20] ss:$16 sps:$4 sm:$0xff]  }
 0x508   :  { %v2196_v39 = vmul.f32 -1.442695, %v784_v63  ;;  %v741_v6 = vpop.f32.mrb[19].mxu0  ;;  %v782_v40 = vpop.f32.mrb[19].mxu1  ;;  %v2198_v47 = vmul.f32 -1.442695, %v786_v45 }
 0x509   :  { %v2197_v41 = vmul.f32 -1.442695, %v785_v37  ;;  %v3155_v40 = vld [vmem:[%s3883_s2 + $0x8] ss:$16 sps:$4 sm:$0xff]  }
 0x50a   :  { %2379 = vpow2.f32 %v2196_v39  ;;  %v3181_v45 = vld [vmem:[%s3883_s2 + $0x28] ss:$16 sps:$4 sm:$0xff]  }
 0x50b   :  { %2381 = vpow2.f32 %v2197_v41  ;;  %v3161_v41 = vld [vmem:[%s3883_s2 + $0x24] ss:$16 sps:$4 sm:$0xff]  }
 0x50c   :  { %2383 = vtanh.f32 %v787_v46  ;;  %v3187_v46 = vld [vmem:[%s3883_s2 + $0x44] ss:$16 sps:$4 sm:$0xff]  }
 0x50d   :  { %2385 = vpow2.f32 %v2198_v47  ;;  %v3193_v47 = vld [vmem:[%s3883_s2 + $0x4c] ss:$16 sps:$4 sm:$0xff]  }
 0x514   :  { %v2380_v36 = vpop.eup %2379 }
 0x515   :  { %v797_v48 = vadd.f32 1.0, %v2380_v36  ;;  %v2382_v50 = vpop.eup %2381  ;;  %v3199_v36 = vld [vmem:[%s3883_s2 + $0x40] ss:$16 sps:$4 sm:$0xff]  }
 0x516   :  { %v798_v51 = vadd.f32 1.0, %v2382_v50  ;;  %v2384_v52 = vpop.eup %2383  ;;  %v3211_v50 = vld [vmem:[%s3883_s2 + $0x64] ss:$16 sps:$4 sm:$0xff]  }
 0x517   :  { %2387 = vrcp.f32 %v797_v48  ;;  %v2386_v53 = vpop.eup %2385  ;;  %v3205_v48 = vld [vmem:[%s3883_s2 + $0x48] ss:$16 sps:$4 sm:$0xff]  }
 0x518   :  { %2389 = vrcp.f32 %v798_v51  ;;  %v799_v57 = vadd.f32 1.0, %v2386_v53  ;;  %v3217_v51 = vld [vmem:[%s3883_s2 + $0x6c] ss:$16 sps:$4 sm:$0xff]   ;;  %v3229_v53 = vld [vmem:[%s3883_s2 + $0x68] ss:$16 sps:$4 sm:$0xff]  }
 0x51a   :  { %2391 = vrcp.f32 %v799_v57  ;;  %v3253_v57 = vld [vmem:[%s3883_s2 + $0x88] ss:$16 sps:$4 sm:$0xff]  }
 0x521   :  { %v2388_v43 = vpop.eup %2387 }
 0x522   :  { %v808_v54 = vmul.f32 %v2388_v43, %v2384_v52  ;;  %v2390_v56 = vpop.eup %2389  ;;  %v3223_v52 = vld [vmem:[%s3883_s2 + $0x60] ss:$16 sps:$4 sm:$0xff]   ;;  %v3235_v43 = vld [vmem:[%s3883_s2 + $0x84] ss:$16 sps:$4 sm:$0xff]  }
 0x523   :  { %v807_v58 = vmul.f32 %v2390_v56, %v3036_v55  ;;  %v3247_v56 = vld [vmem:[%s3883_s2 + $0x80] ss:$16 sps:$4 sm:$0xff]  }
 0x524   :  { %v2392_v2 = vpop.eup %2391 }
 0x525   :  { %v3083_v59 = vadd.f32 %v808_v54, %v807_v58  ;;  %v3241_v54 = vld [vmem:[%s3883_s2 + $0x8c] ss:$16 sps:$4 sm:$0xff]   ;;  %v3259_v58 = vld [vmem:[%s3883_s2 + $0xa4] ss:$16 sps:$4 sm:$0xff]  }
 0x527   :  { %2393 = vtanh.f32 %v3083_v59 }
 0x531   :  { %v2394_v49 = vpop.eup %2393 }
 0x532   :  { %v811_v60 = vmul.f32 %v2394_v49, %v2392_v2  ;;  %v3271_v2 = vld [vmem:[%s3883_s2 + $0xa0] ss:$16 sps:$4 sm:$0xff]   ;;  %v3277_v49 = vld [vmem:[%s3883_s2 + $0xa8] ss:$16 sps:$4 sm:$0xff]  }
 0x534   :  { %v812_v61 = vpack.c.bf16 %v811_v60, %v811_v60  ;;  %v3283_v60 = vld [vmem:[%s3883_s2 + $0xc4] ss:$16 sps:$4 sm:$0xff]  }
 0x536   :  { %2199 = vst [vmem:[%s3886_s3 + $0x10] sm:$0xf] %v812_v61  ;;  %855 = vmatmul.mubr.bf16.vlgmr.msra.gmra.mrb[20].mxu0 %v812_v61  ;;  %896 = vmatmul.mubr.bf16.vlgmr.msra.gmra.mrb[20].mxu1 %v812_v61  ;;  %v3289_v61 = vld [vmem:[%s3883_s2 + $0xcc] ss:$16 sps:$4 sm:$0xff]  }
 0x537   :  { %943 = vmatpush1.bf16.msra.mxu0 %v3092_v62  ;;  %984 = vmatpush1.bf16.msra.mxu1 %v2694_v7 }
 0x538   :  { %944 = vmatprep.subr.bf16.mxu0 %v2672_v3  ;;  %985 = vmatprep.subr.bf16.mxu1 %v2713_v10  ;;  %v3129_v3 = vld [vmem:[%s3883_s2 + $0x4] ss:$16 sps:$4 sm:$0xff]  }
 0x539   :  { %974 = vmatprep.mubr.bf16.mxu0 %v2635_v1  ;;  %1015 = vmatprep.mubr.bf16.mxu1 %v2635_v1 }
 0x53b   :  { %945 = vmatpush1.bf16.msra.mxu0 %v2678_v4  ;;  %986 = vmatpush1.bf16.msra.mxu1 %v2718_v11  ;;  %v3135_v4 = vld [vmem:[%s3883_s2 + $0xc] ss:$16 sps:$4 sm:$0xff]  }
 0x53c   :  { %946 = vmatprep.subr.bf16.mxu0 %v2684_v5  ;;  %987 = vmatprep.subr.bf16.mxu1 %v2735_v14  ;;  %v2200_v5 = vld [vmem:[%s3885_s0 + $0x50] sm:$0xff]  ;;  %v2201_v14 = vld [vmem:[%s3885_s0 + $0x58] sm:$0xff] }
 0x53d   :  { %v818_v7 = vunpack.c.l.bf16 %v2200_v5 }
 0x53f   :  { %947 = vmatpush1.bf16.msra.mxu0 %v2700_v8  ;;  %988 = vmatpush1.bf16.msra.mxu1 %v2742_v15  ;;  %v819_v8 = vunpack.c.h.bf16 %v2200_v5  ;;  %v3295_v5 = vld [vmem:[%s3883_s2 + $0xc0] ss:$16 sps:$4 sm:$0xff]  }
 0x540   :  { %948 = vmatprep.subr.bf16.mxu0 %v2707_v9  ;;  %989 = vmatprep.subr.bf16.mxu1 %v2748_v16 }
 0x543   :  { %949 = vmatpush1.bf16.msra.mxu0 %v2725_v12  ;;  %990 = vmatpush1.bf16.msra.mxu1 %v2766_v19 }
 0x544   :  { %950 = vmatprep.subr.bf16.mxu0 %v2730_v13  ;;  %991 = vmatprep.subr.bf16.mxu1 %v2772_v20 }
 0x547   :  { %951 = vmatpush1.bf16.msra.mxu0 %v2754_v17  ;;  %992 = vmatpush1.bf16.msra.mxu1 %v2790_v23  ;;  %v821_v23 = vunpack.c.h.bf16 %v2201_v14 }
 0x548   :  { %952 = vmatprep.subr.bf16.mxu0 %v2760_v18  ;;  %993 = vmatprep.subr.bf16.mxu1 %v2796_v24 }
 0x54b   :  { %953 = vmatpush1.bf16.msra.mxu0 %v2777_v21  ;;  %994 = vmatpush1.bf16.msra.mxu1 %v2814_v27 }
 0x54c   :  { %954 = vmatprep.subr.bf16.mxu0 %v2783_v22  ;;  %995 = vmatprep.subr.bf16.mxu1 %v2820_v28  ;;  %v820_v22 = vunpack.c.l.bf16 %v2201_v14 }
 0x54f   :  { %955 = vmatpush1.bf16.msra.mxu0 %v2802_v25  ;;  %996 = vmatpush1.bf16.msra.mxu1 %v2836_v31 }
 0x550   :  { %956 = vmatprep.subr.bf16.mxu0 %v2808_v26  ;;  %997 = vmatprep.subr.bf16.mxu1 %v2842_v32 }
 0x553   :  { %957 = vmatpush1.bf16.msra.mxu0 %v2826_v29  ;;  %998 = vmatpush1.bf16.msra.mxu1 %v2849_v34 }
 0x554   :  { %1062 = vmatprep.subr.bf16.mxu0 %v3129_v3  ;;  %1103 = vmatprep.subr.bf16.mxu1 %v3135_v4 }
 0x609   :  { %v856_v9 = vpop.f32.mrb[20].mxu0  ;;  %v897_v10 = vpop.f32.mrb[20].mxu1 }
 0x60a   :  { %v904_v11 = vadd.f32 %v856_v9, %v818_v7  ;;  %v858_v12 = vpop.f32.mrb[21].mxu0  ;;  %v899_v13 = vpop.f32.mrb[21].mxu1  ;;  %v906_v24 = vadd.f32 %v897_v10, %v820_v22  ;;  %v3301_v7 = vld [vmem:[%s3883_s2 + $0xc8] ss:$16 sps:$4 sm:$0xff]   ;;  %v3313_v9 = vld [vmem:[%s3883_s2 + $0xec] ss:$16 sps:$4 sm:$0xff]  }
 0x60b   :  { %v905_v15 = vadd.f32 %v858_v12, %v819_v8  ;;  %v860_v16 = vpop.f32.mrb[22].mxu0  ;;  %v901_v17 = vpop.f32.mrb[22].mxu1  ;;  %v907_v25 = vadd.f32 %v899_v13, %v821_v23  ;;  %v3307_v8 = vld [vmem:[%s3883_s2 + $0xe4] ss:$16 sps:$4 sm:$0xff]   ;;  %v3319_v10 = vld [vmem:[%s3883_s2 + $0xe0] ss:$16 sps:$4 sm:$0xff]  }
 0x60c   :  { %v2202_v18 = vmul.f32 -1.442695, %v904_v11  ;;  %v861_v19 = vpop.f32.mrb[23].mxu0  ;;  %v902_v20 = vpop.f32.mrb[23].mxu1  ;;  %v2204_v26 = vmul.f32 -1.442695, %v906_v24 }
 0x60d   :  { %v2203_v21 = vmul.f32 -1.442695, %v905_v15  ;;  %v3325_v11 = vld [vmem:[%s3883_s2 + $0xe8] ss:$16 sps:$4 sm:$0xff]   ;;  %v2206_v12 = vld [vmem:[%s3885_s0 + $0x60] sm:$0xff] }
 0x60e   :  { %2395 = vpow2.f32 %v2202_v18  ;;  %v938_v13 = vunpack.c.l.bf16 %v2206_v12  ;;  %v939_v14 = vunpack.c.h.bf16 %v2206_v12  ;;  %v2207_v20 = vld [vmem:[%s3885_s0 + $0x68] sm:$0xff] }
 0x60f   :  { %2397 = vpow2.f32 %v2203_v21 }
 0x610   :  { %2399 = vtanh.f32 %v907_v25 }
 0x611   :  { %2401 = vpow2.f32 %v2204_v26 }
 0x618   :  { %v2396_v27 = vpop.eup %2395 }
 0x619   :  { %v917_v28 = vadd.f32 1.0, %v2396_v27  ;;  %v2398_v29 = vpop.eup %2397 }
 0x61a   :  { %v918_v31 = vadd.f32 1.0, %v2398_v29  ;;  %v2400_v32 = vpop.eup %2399  ;;  %v941_v29 = vunpack.c.h.bf16 %v2207_v20 }
 0x61b   :  { %2403 = vrcp.f32 %v917_v28  ;;  %v2402_v34 = vpop.eup %2401  ;;  %v940_v28 = vunpack.c.l.bf16 %v2207_v20 }
 0x61c   :  { %2405 = vrcp.f32 %v918_v31  ;;  %v919_v33 = vadd.f32 1.0, %v2402_v34 }
 0x61e   :  { %2407 = vrcp.f32 %v919_v33 }
 0x625   :  { %v2404_v55 = vpop.eup %2403 }
 0x626   :  { %v928_v63 = vmul.f32 %v2404_v55, %v2400_v32  ;;  %v2406_v30 = vpop.eup %2405 }
 0x627   :  { %v927_v35 = vmul.f32 %v2406_v30, %v3083_v59  ;;  %v3265_v59 = vld [vmem:[%s3883_s2 + $0xac] ss:$16 sps:$4 sm:$0xff]  }
 0x628   :  { %v2408_v38 = vpop.eup %2407 }
 0x629   :  { %v3145_v37 = vadd.f32 %v928_v63, %v927_v35 }
 0x62b   :  { %2409 = vtanh.f32 %v3145_v37 }
 0x635   :  { %v2410_v0 = vpop.eup %2409 }
 0x636   :  { %v931_v39 = vmul.f32 %v2410_v0, %v2408_v38 }
 0x638   :  { %v932_v6 = vpack.c.bf16 %v931_v39, %v931_v39 }
 0x63a   :  { %2205 = vst [vmem:[%s3886_s3 + $0x14] sm:$0xf] %v932_v6  ;;  %975 = vmatmul.mubr.bf16.vlgmr.msra.gmra.mrb[24].mxu0 %v932_v6  ;;  %1016 = vmatmul.mubr.bf16.vlgmr.msra.gmra.mrb[24].mxu1 %v932_v6 }
 0x63b   :  { %1063 = vmatpush1.bf16.msra.mxu0 %v3092_v62  ;;  %1104 = vmatpush1.bf16.msra.mxu1 %v3155_v40 }
 0x63c   :  { %1064 = vmatprep.subr.bf16.mxu0 %v3161_v41  ;;  %1105 = vmatprep.subr.bf16.mxu1 %v3167_v42 }
 0x63d   :  { %1094 = vmatprep.mubr.bf16.mxu0 %v2635_v1  ;;  %1135 = vmatprep.mubr.bf16.mxu1 %v2635_v1 }
 0x63f   :  { %1065 = vmatpush1.bf16.msra.mxu0 %v3175_v44  ;;  %1106 = vmatpush1.bf16.msra.mxu1 %v3181_v45 }
 0x640   :  { %1066 = vmatprep.subr.bf16.mxu0 %v3187_v46  ;;  %1107 = vmatprep.subr.bf16.mxu1 %v3193_v47 }
 0x643   :  { %1067 = vmatpush1.bf16.msra.mxu0 %v3199_v36  ;;  %1108 = vmatpush1.bf16.msra.mxu1 %v3205_v48 }
 0x644   :  { %1068 = vmatprep.subr.bf16.mxu0 %v3211_v50  ;;  %1109 = vmatprep.subr.bf16.mxu1 %v3217_v51 }
 0x647   :  { %1069 = vmatpush1.bf16.msra.mxu0 %v3223_v52  ;;  %1110 = vmatpush1.bf16.msra.mxu1 %v3229_v53 }
 0x648   :  { %1070 = vmatprep.subr.bf16.mxu0 %v3235_v43  ;;  %1111 = vmatprep.subr.bf16.mxu1 %v3241_v54 }
 0x64b   :  { %1071 = vmatpush1.bf16.msra.mxu0 %v3247_v56  ;;  %1112 = vmatpush1.bf16.msra.mxu1 %v3253_v57 }
 0x64c   :  { %1072 = vmatprep.subr.bf16.mxu0 %v3259_v58  ;;  %1113 = vmatprep.subr.bf16.mxu1 %v3265_v59 }
 0x64f   :  { %1073 = vmatpush1.bf16.msra.mxu0 %v3271_v2  ;;  %1114 = vmatpush1.bf16.msra.mxu1 %v3277_v49 }
 0x650   :  { %1074 = vmatprep.subr.bf16.mxu0 %v3283_v60  ;;  %1115 = vmatprep.subr.bf16.mxu1 %v3289_v61 }
 0x653   :  { %1075 = vmatpush1.bf16.msra.mxu0 %v3295_v5  ;;  %1116 = vmatpush1.bf16.msra.mxu1 %v3301_v7 }
 0x654   :  { %1076 = vmatprep.subr.bf16.mxu0 %v3307_v8  ;;  %1117 = vmatprep.subr.bf16.mxu1 %v3313_v9 }
 0x657   :  { %1077 = vmatpush1.bf16.msra.mxu0 %v3319_v10  ;;  %1118 = vmatpush1.bf16.msra.mxu1 %v3325_v11 }
 0x658   :  { %1182 = vmatprep.subr.bf16.mxu0 %v3129_v3  ;;  %1223 = vmatprep.subr.bf16.mxu1 %v3135_v4 }
 0x70d   :  { %v976_v15 = vpop.f32.mrb[24].mxu0  ;;  %v1017_v16 = vpop.f32.mrb[24].mxu1 }
 0x70e   :  { %v1024_v17 = vadd.f32 %v976_v15, %v938_v13  ;;  %v978_v18 = vpop.f32.mrb[25].mxu0  ;;  %v1019_v19 = vpop.f32.mrb[25].mxu1  ;;  %v1026_v31 = vadd.f32 %v1017_v16, %v940_v28 }
 0x70f   :  { %v1025_v21 = vadd.f32 %v978_v18, %v939_v14  ;;  %v980_v22 = vpop.f32.mrb[26].mxu0  ;;  %v1021_v23 = vpop.f32.mrb[26].mxu1  ;;  %v1027_v32 = vadd.f32 %v1019_v19, %v941_v29 }
 0x710   :  { %v2208_v24 = vmul.f32 -1.442695, %v1024_v17  ;;  %v981_v25 = vpop.f32.mrb[27].mxu0  ;;  %v1022_v26 = vpop.f32.mrb[27].mxu1  ;;  %v2210_v34 = vmul.f32 -1.442695, %v1026_v31 }
 0x711   :  { %v2209_v27 = vmul.f32 -1.442695, %v1025_v21  ;;  %v2213_v26 = vld [vmem:[%s3885_s0 + $0x78] sm:$0xff] }
 0x712   :  { %2411 = vpow2.f32 %v2208_v24 }
 0x713   :  { %2413 = vpow2.f32 %v2209_v27 }
 0x714   :  { %2415 = vtanh.f32 %v1027_v32 }
 0x715   :  { %2417 = vpow2.f32 %v2210_v34 }
 0x71c   :  { %v2412_v55 = vpop.eup %2411 }
 0x71d   :  { %v1037_v63 = vadd.f32 1.0, %v2412_v55  ;;  %v2414_v30 = vpop.eup %2413 }
 0x71e   :  { %v1038_v33 = vadd.f32 1.0, %v2414_v30  ;;  %v2416_v35 = vpop.eup %2415  ;;  %v1061_v30 = vunpack.c.h.bf16 %v2213_v26 }
 0x71f   :  { %2419 = vrcp.f32 %v1037_v63  ;;  %v2418_v38 = vpop.eup %2417  ;;  %v1060_v63 = vunpack.c.l.bf16 %v2213_v26 }
 0x720   :  { %2421 = vrcp.f32 %v1038_v33  ;;  %v1039_v12 = vadd.f32 1.0, %v2418_v38 }
 0x722   :  { %2423 = vrcp.f32 %v1039_v12 }
 0x729   :  { %v2420_v0 = vpop.eup %2419 }
 0x72a   :  { %v1048_v39 = vmul.f32 %v2420_v0, %v2416_v35  ;;  %v2422_v6 = vpop.eup %2421 }
 0x72b   :  { %v1047_v13 = vmul.f32 %v2422_v6, %v3145_v37  ;;  %v2212_v37 = vld [vmem:[%s3885_s0 + $0x70] sm:$0xff] }
 0x72c   :  { %v2424_v15 = vpop.eup %2423  ;;  %v1058_v19 = vunpack.c.l.bf16 %v2212_v37  ;;  %v1059_v20 = vunpack.c.h.bf16 %v2212_v37 }
 0x72d   :  { %v3337_v14 = vadd.f32 %v1048_v39, %v1047_v13 }
 0x72f   :  { %2425 = vtanh.f32 %v3337_v14 }
 0x739   :  { %v2426_v16 = vpop.eup %2425 }
 0x73a   :  { %v1051_v17 = vmul.f32 %v2426_v16, %v2424_v15 }
 0x73c   :  { %v1052_v18 = vpack.c.bf16 %v1051_v17, %v1051_v17 }
 0x73e   :  { %2211 = vst [vmem:[%s3886_s3 + $0x18] sm:$0xf] %v1052_v18  ;;  %1095 = vmatmul.mubr.bf16.vlgmr.msra.gmra.mrb[28].mxu0 %v1052_v18  ;;  %1136 = vmatmul.mubr.bf16.vlgmr.msra.gmra.mrb[28].mxu1 %v1052_v18 }
 0x73f   :  { %1183 = vmatpush1.bf16.msra.mxu0 %v3092_v62  ;;  %1224 = vmatpush1.bf16.msra.mxu1 %v3155_v40 }
 0x740   :  { %1184 = vmatprep.subr.bf16.mxu0 %v3161_v41  ;;  %1225 = vmatprep.subr.bf16.mxu1 %v3167_v42 }
 0x741   :  { %1214 = vmatprep.mubr.bf16.mxu0 %v2635_v1  ;;  %1255 = vmatprep.mubr.bf16.mxu1 %v2635_v1 }
 0x743   :  { %1185 = vmatpush1.bf16.msra.mxu0 %v3175_v44  ;;  %1226 = vmatpush1.bf16.msra.mxu1 %v3181_v45 }
 0x744   :  { %1186 = vmatprep.subr.bf16.mxu0 %v3187_v46  ;;  %1227 = vmatprep.subr.bf16.mxu1 %v3193_v47 }
 0x747   :  { %1187 = vmatpush1.bf16.msra.mxu0 %v3199_v36  ;;  %1228 = vmatpush1.bf16.msra.mxu1 %v3205_v48 }
 0x748   :  { %1188 = vmatprep.subr.bf16.mxu0 %v3211_v50  ;;  %1229 = vmatprep.subr.bf16.mxu1 %v3217_v51 }
 0x74b   :  { %1189 = vmatpush1.bf16.msra.mxu0 %v3223_v52  ;;  %1230 = vmatpush1.bf16.msra.mxu1 %v3229_v53 }
 0x74c   :  { %1190 = vmatprep.subr.bf16.mxu0 %v3235_v43  ;;  %1231 = vmatprep.subr.bf16.mxu1 %v3241_v54 }
 0x74f   :  { %1191 = vmatpush1.bf16.msra.mxu0 %v3247_v56  ;;  %1232 = vmatpush1.bf16.msra.mxu1 %v3253_v57 }
 0x750   :  { %1192 = vmatprep.subr.bf16.mxu0 %v3259_v58  ;;  %1233 = vmatprep.subr.bf16.mxu1 %v3265_v59 }
 0x753   :  { %1193 = vmatpush1.bf16.msra.mxu0 %v3271_v2  ;;  %1234 = vmatpush1.bf16.msra.mxu1 %v3277_v49 }
 0x754   :  { %1194 = vmatprep.subr.bf16.mxu0 %v3283_v60  ;;  %1235 = vmatprep.subr.bf16.mxu1 %v3289_v61 }
 0x757   :  { %1195 = vmatpush1.bf16.msra.mxu0 %v3295_v5  ;;  %1236 = vmatpush1.bf16.msra.mxu1 %v3301_v7 }
 0x758   :  { %1196 = vmatprep.subr.bf16.mxu0 %v3307_v8  ;;  %1237 = vmatprep.subr.bf16.mxu1 %v3313_v9 }
 0x75b   :  { %1197 = vmatpush1.bf16.msra.mxu0 %v3319_v10  ;;  %1238 = vmatpush1.bf16.msra.mxu1 %v3325_v11 }
 0x75c   :  { %1302 = vmatprep.subr.bf16.mxu0 %v3129_v3  ;;  %1343 = vmatprep.subr.bf16.mxu1 %v3135_v4 }
 0x811   :  { %v1096_v21 = vpop.f32.mrb[28].mxu0  ;;  %v1137_v22 = vpop.f32.mrb[28].mxu1 }
 0x812   :  { %v1144_v23 = vadd.f32 %v1096_v21, %v1058_v19  ;;  %v1098_v24 = vpop.f32.mrb[29].mxu0  ;;  %v1139_v25 = vpop.f32.mrb[29].mxu1  ;;  %v1146_v33 = vadd.f32 %v1137_v22, %v1060_v63 }
 0x813   :  { %v1145_v27 = vadd.f32 %v1098_v24, %v1059_v20  ;;  %v1100_v28 = vpop.f32.mrb[30].mxu0  ;;  %v1141_v29 = vpop.f32.mrb[30].mxu1  ;;  %v1147_v35 = vadd.f32 %v1139_v25, %v1061_v30 }
 0x814   :  { %v2214_v31 = vmul.f32 -1.442695, %v1144_v23  ;;  %v1101_v32 = vpop.f32.mrb[31].mxu0  ;;  %v1142_v34 = vpop.f32.mrb[31].mxu1  ;;  %v2216_v38 = vmul.f32 -1.442695, %v1146_v33 }
 0x815   :  { %v2215_v55 = vmul.f32 -1.442695, %v1145_v27  ;;  %v2219_v34 = vld [vmem:[%s3885_s0 + $0x88] sm:$0xff] }
 0x816   :  { %2427 = vpow2.f32 %v2214_v31 }
 0x817   :  { %2429 = vpow2.f32 %v2215_v55 }
 0x818   :  { %2431 = vtanh.f32 %v1147_v35 }
 0x819   :  { %2433 = vpow2.f32 %v2216_v38 }
 0x820   :  { %v2428_v0 = vpop.eup %2427 }
 0x821   :  { %v1157_v39 = vadd.f32 1.0, %v2428_v0  ;;  %v2430_v6 = vpop.eup %2429 }
 0x822   :  { %v1158_v12 = vadd.f32 1.0, %v2430_v6  ;;  %v2432_v13 = vpop.eup %2431  ;;  %v1181_v6 = vunpack.c.h.bf16 %v2219_v34 }
 0x823   :  { %2435 = vrcp.f32 %v1157_v39  ;;  %v2434_v15 = vpop.eup %2433  ;;  %v1180_v39 = vunpack.c.l.bf16 %v2219_v34 }
 0x824   :  { %2437 = vrcp.f32 %v1158_v12  ;;  %v1159_v37 = vadd.f32 1.0, %v2434_v15 }
 0x826   :  { %2439 = vrcp.f32 %v1159_v37 }
 0x82d   :  { %v2436_v16 = vpop.eup %2435 }
 0x82e   :  { %v1168_v17 = vmul.f32 %v2436_v16, %v2432_v13  ;;  %v2438_v18 = vpop.eup %2437 }
 0x82f   :  { %v1167_v19 = vmul.f32 %v2438_v18, %v3337_v14  ;;  %v2218_v14 = vld [vmem:[%s3885_s0 + $0x80] sm:$0xff] }
 0x830   :  { %v2440_v21 = vpop.eup %2439  ;;  %v1178_v25 = vunpack.c.l.bf16 %v2218_v14  ;;  %v1179_v26 = vunpack.c.h.bf16 %v2218_v14 }
 0x831   :  { %v3384_v20 = vadd.f32 %v1168_v17, %v1167_v19 }
 0x833   :  { %2441 = vtanh.f32 %v3384_v20 }
 0x83d   :  { %v2442_v22 = vpop.eup %2441 }
 0x83e   :  { %v1171_v23 = vmul.f32 %v2442_v22, %v2440_v21 }
 0x840   :  { %v1172_v24 = vpack.c.bf16 %v1171_v23, %v1171_v23 }
 0x842   :  { %2217 = vst [vmem:[%s3886_s3 + $0x1c] sm:$0xf] %v1172_v24  ;;  %1215 = vmatmul.mubr.bf16.vlgmr.msra.gmra.mrb[32].mxu0 %v1172_v24  ;;  %1256 = vmatmul.mubr.bf16.vlgmr.msra.gmra.mrb[32].mxu1 %v1172_v24 }
 0x843   :  { %1303 = vmatpush1.bf16.msra.mxu0 %v3092_v62  ;;  %1344 = vmatpush1.bf16.msra.mxu1 %v3155_v40 }
 0x844   :  { %1304 = vmatprep.subr.bf16.mxu0 %v3161_v41  ;;  %1345 = vmatprep.subr.bf16.mxu1 %v3167_v42 }
 0x845   :  { %1334 = vmatprep.mubr.bf16.mxu0 %v2635_v1  ;;  %1375 = vmatprep.mubr.bf16.mxu1 %v2635_v1 }
 0x847   :  { %1305 = vmatpush1.bf16.msra.mxu0 %v3175_v44  ;;  %1346 = vmatpush1.bf16.msra.mxu1 %v3181_v45 }
 0x848   :  { %1306 = vmatprep.subr.bf16.mxu0 %v3187_v46  ;;  %1347 = vmatprep.subr.bf16.mxu1 %v3193_v47 }
 0x84b   :  { %1307 = vmatpush1.bf16.msra.mxu0 %v3199_v36  ;;  %1348 = vmatpush1.bf16.msra.mxu1 %v3205_v48 }
 0x84c   :  { %1308 = vmatprep.subr.bf16.mxu0 %v3211_v50  ;;  %1349 = vmatprep.subr.bf16.mxu1 %v3217_v51 }
 0x84f   :  { %1309 = vmatpush1.bf16.msra.mxu0 %v3223_v52  ;;  %1350 = vmatpush1.bf16.msra.mxu1 %v3229_v53 }
 0x850   :  { %1310 = vmatprep.subr.bf16.mxu0 %v3235_v43  ;;  %1351 = vmatprep.subr.bf16.mxu1 %v3241_v54 }
 0x853   :  { %1311 = vmatpush1.bf16.msra.mxu0 %v3247_v56  ;;  %1352 = vmatpush1.bf16.msra.mxu1 %v3253_v57 }
 0x854   :  { %1312 = vmatprep.subr.bf16.mxu0 %v3259_v58  ;;  %1353 = vmatprep.subr.bf16.mxu1 %v3265_v59 }
 0x857   :  { %1313 = vmatpush1.bf16.msra.mxu0 %v3271_v2  ;;  %1354 = vmatpush1.bf16.msra.mxu1 %v3277_v49 }
 0x858   :  { %1314 = vmatprep.subr.bf16.mxu0 %v3283_v60  ;;  %1355 = vmatprep.subr.bf16.mxu1 %v3289_v61 }
 0x85b   :  { %1315 = vmatpush1.bf16.msra.mxu0 %v3295_v5  ;;  %1356 = vmatpush1.bf16.msra.mxu1 %v3301_v7 }
 0x85c   :  { %1316 = vmatprep.subr.bf16.mxu0 %v3307_v8  ;;  %1357 = vmatprep.subr.bf16.mxu1 %v3313_v9 }
 0x85f   :  { %1317 = vmatpush1.bf16.msra.mxu0 %v3319_v10  ;;  %1358 = vmatpush1.bf16.msra.mxu1 %v3325_v11 }
 0x860   :  { %1422 = vmatprep.subr.bf16.mxu0 %v3129_v3  ;;  %1463 = vmatprep.subr.bf16.mxu1 %v3135_v4 }
 0x915   :  { %v1216_v27 = vpop.f32.mrb[32].mxu0  ;;  %v1257_v28 = vpop.f32.mrb[32].mxu1 }
 0x916   :  { %v1264_v29 = vadd.f32 %v1216_v27, %v1178_v25  ;;  %v1218_v31 = vpop.f32.mrb[33].mxu0  ;;  %v1259_v32 = vpop.f32.mrb[33].mxu1  ;;  %v1266_v12 = vadd.f32 %v1257_v28, %v1180_v39 }
 0x917   :  { %v1265_v55 = vadd.f32 %v1218_v31, %v1179_v26  ;;  %v1220_v63 = vpop.f32.mrb[34].mxu0  ;;  %v1261_v30 = vpop.f32.mrb[34].mxu1  ;;  %v1267_v13 = vadd.f32 %v1259_v32, %v1181_v6 }
 0x918   :  { %v2220_v33 = vmul.f32 -1.442695, %v1264_v29  ;;  %v1221_v35 = vpop.f32.mrb[35].mxu0  ;;  %v1262_v38 = vpop.f32.mrb[35].mxu1  ;;  %v2222_v15 = vmul.f32 -1.442695, %v1266_v12 }
 0x919   :  { %v2221_v0 = vmul.f32 -1.442695, %v1265_v55  ;;  %v2225_v38 = vld [vmem:[%s3885_s0 + $0x98] sm:$0xff] }
 0x91a   :  { %2443 = vpow2.f32 %v2220_v33 }
 0x91b   :  { %2445 = vpow2.f32 %v2221_v0 }
 0x91c   :  { %2447 = vtanh.f32 %v1267_v13 }
 0x91d   :  { %2449 = vpow2.f32 %v2222_v15 }
 0x924   :  { %v2444_v16 = vpop.eup %2443 }
 0x925   :  { %v1277_v17 = vadd.f32 1.0, %v2444_v16  ;;  %v2446_v18 = vpop.eup %2445 }
 0x926   :  { %v1278_v37 = vadd.f32 1.0, %v2446_v18  ;;  %v2448_v19 = vpop.eup %2447  ;;  %v1301_v18 = vunpack.c.h.bf16 %v2225_v38 }
 0x927   :  { %2451 = vrcp.f32 %v1277_v17  ;;  %v2450_v21 = vpop.eup %2449  ;;  %v1300_v17 = vunpack.c.l.bf16 %v2225_v38 }
 0x928   :  { %2453 = vrcp.f32 %v1278_v37  ;;  %v1279_v14 = vadd.f32 1.0, %v2450_v21 }
 0x92a   :  { %2455 = vrcp.f32 %v1279_v14 }
 0x931   :  { %v2452_v22 = vpop.eup %2451 }
 0x932   :  { %v1288_v23 = vmul.f32 %v2452_v22, %v2448_v19  ;;  %v2454_v24 = vpop.eup %2453 }
 0x933   :  { %v1287_v25 = vmul.f32 %v2454_v24, %v3384_v20  ;;  %v2224_v20 = vld [vmem:[%s3885_s0 + $0x90] sm:$0xff] }
 0x934   :  { %v2456_v27 = vpop.eup %2455  ;;  %v1298_v32 = vunpack.c.l.bf16 %v2224_v20  ;;  %v1299_v34 = vunpack.c.h.bf16 %v2224_v20 }
 0x935   :  { %v3431_v26 = vadd.f32 %v1288_v23, %v1287_v25 }
 0x937   :  { %2457 = vtanh.f32 %v3431_v26 }
 0x941   :  { %v2458_v28 = vpop.eup %2457 }
 0x942   :  { %v1291_v29 = vmul.f32 %v2458_v28, %v2456_v27 }
 0x944   :  { %v1292_v31 = vpack.c.bf16 %v1291_v29, %v1291_v29 }
 0x946   :  { %2223 = vst [vmem:[%s3886_s3 + $0x20] sm:$0xf] %v1292_v31  ;;  %1335 = vmatmul.mubr.bf16.vlgmr.msra.gmra.mrb[36].mxu0 %v1292_v31  ;;  %1376 = vmatmul.mubr.bf16.vlgmr.msra.gmra.mrb[36].mxu1 %v1292_v31 }
 0x947   :  { %1423 = vmatpush1.bf16.msra.mxu0 %v3092_v62  ;;  %1464 = vmatpush1.bf16.msra.mxu1 %v3155_v40 }
 0x948   :  { %1424 = vmatprep.subr.bf16.mxu0 %v3161_v41  ;;  %1465 = vmatprep.subr.bf16.mxu1 %v3167_v42 }
 0x949   :  { %1454 = vmatprep.mubr.bf16.mxu0 %v2635_v1  ;;  %1495 = vmatprep.mubr.bf16.mxu1 %v2635_v1 }
 0x94b   :  { %1425 = vmatpush1.bf16.msra.mxu0 %v3175_v44  ;;  %1466 = vmatpush1.bf16.msra.mxu1 %v3181_v45 }
 0x94c   :  { %1426 = vmatprep.subr.bf16.mxu0 %v3187_v46  ;;  %1467 = vmatprep.subr.bf16.mxu1 %v3193_v47 }
 0x94f   :  { %1427 = vmatpush1.bf16.msra.mxu0 %v3199_v36  ;;  %1468 = vmatpush1.bf16.msra.mxu1 %v3205_v48 }
 0x950   :  { %1428 = vmatprep.subr.bf16.mxu0 %v3211_v50  ;;  %1469 = vmatprep.subr.bf16.mxu1 %v3217_v51 }
 0x953   :  { %1429 = vmatpush1.bf16.msra.mxu0 %v3223_v52  ;;  %1470 = vmatpush1.bf16.msra.mxu1 %v3229_v53 }
 0x954   :  { %1430 = vmatprep.subr.bf16.mxu0 %v3235_v43  ;;  %1471 = vmatprep.subr.bf16.mxu1 %v3241_v54 }
 0x957   :  { %1431 = vmatpush1.bf16.msra.mxu0 %v3247_v56  ;;  %1472 = vmatpush1.bf16.msra.mxu1 %v3253_v57 }
 0x958   :  { %1432 = vmatprep.subr.bf16.mxu0 %v3259_v58  ;;  %1473 = vmatprep.subr.bf16.mxu1 %v3265_v59 }
 0x95b   :  { %1433 = vmatpush1.bf16.msra.mxu0 %v3271_v2  ;;  %1474 = vmatpush1.bf16.msra.mxu1 %v3277_v49 }
 0x95c   :  { %1434 = vmatprep.subr.bf16.mxu0 %v3283_v60  ;;  %1475 = vmatprep.subr.bf16.mxu1 %v3289_v61 }
 0x95f   :  { %1435 = vmatpush1.bf16.msra.mxu0 %v3295_v5  ;;  %1476 = vmatpush1.bf16.msra.mxu1 %v3301_v7 }
 0x960   :  { %1436 = vmatprep.subr.bf16.mxu0 %v3307_v8  ;;  %1477 = vmatprep.subr.bf16.mxu1 %v3313_v9 }
 0x963   :  { %1437 = vmatpush1.bf16.msra.mxu0 %v3319_v10  ;;  %1478 = vmatpush1.bf16.msra.mxu1 %v3325_v11 }
 0x964   :  { %1542 = vmatprep.subr.bf16.mxu0 %v3129_v3  ;;  %1583 = vmatprep.subr.bf16.mxu1 %v3135_v4 }
 0xa19   :  { %v1336_v55 = vpop.f32.mrb[36].mxu0  ;;  %v1377_v63 = vpop.f32.mrb[36].mxu1 }
 0xa1a   :  { %v1384_v30 = vadd.f32 %v1336_v55, %v1298_v32  ;;  %v1338_v33 = vpop.f32.mrb[37].mxu0  ;;  %v1379_v35 = vpop.f32.mrb[37].mxu1  ;;  %v1386_v37 = vadd.f32 %v1377_v63, %v1300_v17 }
 0xa1b   :  { %v1385_v0 = vadd.f32 %v1338_v33, %v1299_v34  ;;  %v1340_v39 = vpop.f32.mrb[38].mxu0  ;;  %v1381_v6 = vpop.f32.mrb[38].mxu1  ;;  %v1387_v19 = vadd.f32 %v1379_v35, %v1301_v18 }
 0xa1c   :  { %v2226_v12 = vmul.f32 -1.442695, %v1384_v30  ;;  %v1341_v13 = vpop.f32.mrb[39].mxu0  ;;  %v1382_v15 = vpop.f32.mrb[39].mxu1  ;;  %v2228_v21 = vmul.f32 -1.442695, %v1386_v37 }
 0xa1d   :  { %v2227_v16 = vmul.f32 -1.442695, %v1385_v0  ;;  %v2231_v15 = vld [vmem:[%s3885_s0 + $0xa8] sm:$0xff] }
 0xa1e   :  { %2459 = vpow2.f32 %v2226_v12 }
 0xa1f   :  { %2461 = vpow2.f32 %v2227_v16 }
 0xa20   :  { %2463 = vtanh.f32 %v1387_v19 }
 0xa21   :  { %2465 = vpow2.f32 %v2228_v21 }
 0xa28   :  { %v2460_v22 = vpop.eup %2459 }
 0xa29   :  { %v1397_v23 = vadd.f32 1.0, %v2460_v22  ;;  %v2462_v24 = vpop.eup %2461 }
 0xa2a   :  { %v1398_v14 = vadd.f32 1.0, %v2462_v24  ;;  %v2464_v25 = vpop.eup %2463  ;;  %v1421_v24 = vunpack.c.h.bf16 %v2231_v15 }
 0xa2b   :  { %2467 = vrcp.f32 %v1397_v23  ;;  %v2466_v27 = vpop.eup %2465  ;;  %v1420_v23 = vunpack.c.l.bf16 %v2231_v15 }
 0xa2c   :  { %2469 = vrcp.f32 %v1398_v14  ;;  %v1399_v20 = vadd.f32 1.0, %v2466_v27 }
 0xa2e   :  { %2471 = vrcp.f32 %v1399_v20 }
 0xa35   :  { %v2468_v28 = vpop.eup %2467 }
 0xa36   :  { %v1408_v29 = vmul.f32 %v2468_v28, %v2464_v25  ;;  %v2470_v31 = vpop.eup %2469 }
 0xa37   :  { %v1407_v32 = vmul.f32 %v2470_v31, %v3431_v26  ;;  %v2230_v26 = vld [vmem:[%s3885_s0 + $0xa0] sm:$0xff] }
 0xa38   :  { %v2472_v55 = vpop.eup %2471  ;;  %v1418_v35 = vunpack.c.l.bf16 %v2230_v26  ;;  %v1419_v38 = vunpack.c.h.bf16 %v2230_v26 }
 0xa39   :  { %v3478_v34 = vadd.f32 %v1408_v29, %v1407_v32 }
 0xa3b   :  { %2473 = vtanh.f32 %v3478_v34 }
 0xa45   :  { %v2474_v63 = vpop.eup %2473 }
 0xa46   :  { %v1411_v30 = vmul.f32 %v2474_v63, %v2472_v55 }
 0xa48   :  { %v1412_v33 = vpack.c.bf16 %v1411_v30, %v1411_v30 }
 0xa4a   :  { %2229 = vst [vmem:[%s3886_s3 + $0x24] sm:$0xf] %v1412_v33  ;;  %1455 = vmatmul.mubr.bf16.vlgmr.msra.gmra.mrb[40].mxu0 %v1412_v33  ;;  %1496 = vmatmul.mubr.bf16.vlgmr.msra.gmra.mrb[40].mxu1 %v1412_v33 }
 0xa4b   :  { %1543 = vmatpush1.bf16.msra.mxu0 %v3092_v62  ;;  %1584 = vmatpush1.bf16.msra.mxu1 %v3155_v40 }
 0xa4c   :  { %1544 = vmatprep.subr.bf16.mxu0 %v3161_v41  ;;  %1585 = vmatprep.subr.bf16.mxu1 %v3167_v42 }
 0xa4d   :  { %1574 = vmatprep.mubr.bf16.mxu0 %v2635_v1  ;;  %1615 = vmatprep.mubr.bf16.mxu1 %v2635_v1 }
 0xa4f   :  { %1545 = vmatpush1.bf16.msra.mxu0 %v3175_v44  ;;  %1586 = vmatpush1.bf16.msra.mxu1 %v3181_v45 }
 0xa50   :  { %1546 = vmatprep.subr.bf16.mxu0 %v3187_v46  ;;  %1587 = vmatprep.subr.bf16.mxu1 %v3193_v47 }
 0xa53   :  { %1547 = vmatpush1.bf16.msra.mxu0 %v3199_v36  ;;  %1588 = vmatpush1.bf16.msra.mxu1 %v3205_v48 }
 0xa54   :  { %1548 = vmatprep.subr.bf16.mxu0 %v3211_v50  ;;  %1589 = vmatprep.subr.bf16.mxu1 %v3217_v51 }
 0xa57   :  { %1549 = vmatpush1.bf16.msra.mxu0 %v3223_v52  ;;  %1590 = vmatpush1.bf16.msra.mxu1 %v3229_v53 }
 0xa58   :  { %1550 = vmatprep.subr.bf16.mxu0 %v3235_v43  ;;  %1591 = vmatprep.subr.bf16.mxu1 %v3241_v54 }
 0xa5b   :  { %1551 = vmatpush1.bf16.msra.mxu0 %v3247_v56  ;;  %1592 = vmatpush1.bf16.msra.mxu1 %v3253_v57 }
 0xa5c   :  { %1552 = vmatprep.subr.bf16.mxu0 %v3259_v58  ;;  %1593 = vmatprep.subr.bf16.mxu1 %v3265_v59 }
 0xa5f   :  { %1553 = vmatpush1.bf16.msra.mxu0 %v3271_v2  ;;  %1594 = vmatpush1.bf16.msra.mxu1 %v3277_v49 }
 0xa60   :  { %1554 = vmatprep.subr.bf16.mxu0 %v3283_v60  ;;  %1595 = vmatprep.subr.bf16.mxu1 %v3289_v61 }
 0xa63   :  { %1555 = vmatpush1.bf16.msra.mxu0 %v3295_v5  ;;  %1596 = vmatpush1.bf16.msra.mxu1 %v3301_v7 }
 0xa64   :  { %1556 = vmatprep.subr.bf16.mxu0 %v3307_v8  ;;  %1597 = vmatprep.subr.bf16.mxu1 %v3313_v9 }
 0xa67   :  { %1557 = vmatpush1.bf16.msra.mxu0 %v3319_v10  ;;  %1598 = vmatpush1.bf16.msra.mxu1 %v3325_v11 }
 0xa68   :  { %1662 = vmatprep.subr.bf16.mxu0 %v3129_v3  ;;  %1703 = vmatprep.subr.bf16.mxu1 %v3135_v4 }
 0xb1d   :  { %v1456_v0 = vpop.f32.mrb[40].mxu0  ;;  %v1497_v39 = vpop.f32.mrb[40].mxu1 }
 0xb1e   :  { %v1504_v6 = vadd.f32 %v1456_v0, %v1418_v35  ;;  %v1458_v12 = vpop.f32.mrb[41].mxu0  ;;  %v1499_v13 = vpop.f32.mrb[41].mxu1  ;;  %v1506_v14 = vadd.f32 %v1497_v39, %v1420_v23 }
 0xb1f   :  { %v1505_v16 = vadd.f32 %v1458_v12, %v1419_v38  ;;  %v1460_v17 = vpop.f32.mrb[42].mxu0  ;;  %v1501_v18 = vpop.f32.mrb[42].mxu1  ;;  %v1507_v25 = vadd.f32 %v1499_v13, %v1421_v24 }
 0xb20   :  { %v2232_v37 = vmul.f32 -1.442695, %v1504_v6  ;;  %v1461_v19 = vpop.f32.mrb[43].mxu0  ;;  %v1502_v21 = vpop.f32.mrb[43].mxu1  ;;  %v2234_v27 = vmul.f32 -1.442695, %v1506_v14 }
 0xb21   :  { %v2233_v22 = vmul.f32 -1.442695, %v1505_v16  ;;  %v2237_v19 = vld [vmem:[%s3885_s0 + $0xb8] sm:$0xff] }
 0xb22   :  { %2475 = vpow2.f32 %v2232_v37 }
 0xb23   :  { %2477 = vpow2.f32 %v2233_v22 }
 0xb24   :  { %2479 = vtanh.f32 %v1507_v25  ;;  %v1540_v25 = vunpack.c.l.bf16 %v2237_v19 }
 0xb25   :  { %2481 = vpow2.f32 %v2234_v27  ;;  %v1541_v27 = vunpack.c.h.bf16 %v2237_v19 }
 0xb2c   :  { %v2476_v28 = vpop.eup %2475 }
 0xb2d   :  { %v1517_v29 = vadd.f32 1.0, %v2476_v28  ;;  %v2478_v31 = vpop.eup %2477 }
 0xb2e   :  { %v1518_v20 = vadd.f32 1.0, %v2478_v31  ;;  %v2480_v32 = vpop.eup %2479 }
 0xb2f   :  { %2483 = vrcp.f32 %v1517_v29  ;;  %v2482_v55 = vpop.eup %2481 }
 0xb30   :  { %2485 = vrcp.f32 %v1518_v20  ;;  %v1519_v26 = vadd.f32 1.0, %v2482_v55 }
 0xb32   :  { %2487 = vrcp.f32 %v1519_v26 }
 0xb39   :  { %v2484_v63 = vpop.eup %2483 }
 0xb3a   :  { %v1528_v30 = vmul.f32 %v2484_v63, %v2480_v32  ;;  %v2486_v33 = vpop.eup %2485 }
 0xb3b   :  { %v1527_v35 = vmul.f32 %v2486_v33, %v3478_v34 }
 0xb3c   :  { %v2488_v0 = vpop.eup %2487 }
 0xb3d   :  { %v3525_v38 = vadd.f32 %v1528_v30, %v1527_v35 }
 0xb3f   :  { %2489 = vtanh.f32 %v3525_v38 }
 0xb49   :  { %v2490_v39 = vpop.eup %2489 }
 0xb4a   :  { %v1531_v6 = vmul.f32 %v2490_v39, %v2488_v0 }
 0xb4c   :  { %v1532_v12 = vpack.c.bf16 %v1531_v6, %v1531_v6 }
 0xb4e   :  { %2235 = vst [vmem:[%s3886_s3 + $0x28] sm:$0xf] %v1532_v12  ;;  %1575 = vmatmul.mubr.bf16.vlgmr.msra.gmra.mrb[44].mxu0 %v1532_v12  ;;  %1616 = vmatmul.mubr.bf16.vlgmr.msra.gmra.mrb[44].mxu1 %v1532_v12 }
 0xb4f   :  { %1663 = vmatpush1.bf16.msra.mxu0 %v3092_v62  ;;  %1704 = vmatpush1.bf16.msra.mxu1 %v3155_v40  ;;  %v2236_v62 = vld [vmem:[%s3885_s0 + $0xb0] sm:$0xff] }
 0xb50   :  { %1664 = vmatprep.subr.bf16.mxu0 %v3161_v41  ;;  %1705 = vmatprep.subr.bf16.mxu1 %v3167_v42  ;;  %v1538_v34 = vunpack.c.l.bf16 %v2236_v62  ;;  %v1539_v13 = vunpack.c.h.bf16 %v2236_v62 }
 0xb51   :  { %1694 = vmatprep.mubr.bf16.mxu0 %v2635_v1  ;;  %1735 = vmatprep.mubr.bf16.mxu1 %v2635_v1 }
 0xb53   :  { %1665 = vmatpush1.bf16.msra.mxu0 %v3175_v44  ;;  %1706 = vmatpush1.bf16.msra.mxu1 %v3181_v45 }
 0xb54   :  { %1666 = vmatprep.subr.bf16.mxu0 %v3187_v46  ;;  %1707 = vmatprep.subr.bf16.mxu1 %v3193_v47 }
 0xb57   :  { %1667 = vmatpush1.bf16.msra.mxu0 %v3199_v36  ;;  %1708 = vmatpush1.bf16.msra.mxu1 %v3205_v48 }
 0xb58   :  { %1668 = vmatprep.subr.bf16.mxu0 %v3211_v50  ;;  %1709 = vmatprep.subr.bf16.mxu1 %v3217_v51 }
 0xb5b   :  { %1669 = vmatpush1.bf16.msra.mxu0 %v3223_v52  ;;  %1710 = vmatpush1.bf16.msra.mxu1 %v3229_v53 }
 0xb5c   :  { %1670 = vmatprep.subr.bf16.mxu0 %v3235_v43  ;;  %1711 = vmatprep.subr.bf16.mxu1 %v3241_v54 }
 0xb5f   :  { %1671 = vmatpush1.bf16.msra.mxu0 %v3247_v56  ;;  %1712 = vmatpush1.bf16.msra.mxu1 %v3253_v57 }
 0xb60   :  { %1672 = vmatprep.subr.bf16.mxu0 %v3259_v58  ;;  %1713 = vmatprep.subr.bf16.mxu1 %v3265_v59 }
 0xb63   :  { %1673 = vmatpush1.bf16.msra.mxu0 %v3271_v2  ;;  %1714 = vmatpush1.bf16.msra.mxu1 %v3277_v49 }
 0xb64   :  { %1674 = vmatprep.subr.bf16.mxu0 %v3283_v60  ;;  %1715 = vmatprep.subr.bf16.mxu1 %v3289_v61 }
 0xb67   :  { %1675 = vmatpush1.bf16.msra.mxu0 %v3295_v5  ;;  %1716 = vmatpush1.bf16.msra.mxu1 %v3301_v7 }
 0xb68   :  { %1676 = vmatprep.subr.bf16.mxu0 %v3307_v8  ;;  %1717 = vmatprep.subr.bf16.mxu1 %v3313_v9 }
 0xb6b   :  { %1677 = vmatpush1.bf16.msra.mxu0 %v3319_v10  ;;  %1718 = vmatpush1.bf16.msra.mxu1 %v3325_v11 }
 0xb6c   :  { %1782 = vmatprep.subr.bf16.mxu0 %v3129_v3  ;;  %1823 = vmatprep.subr.bf16.mxu1 %v3135_v4 }
 0xc21   :  { %v1576_v15 = vpop.f32.mrb[44].mxu0  ;;  %v1617_v16 = vpop.f32.mrb[44].mxu1 }
 0xc22   :  { %v1624_v17 = vadd.f32 %v1576_v15, %v1538_v34  ;;  %v1578_v18 = vpop.f32.mrb[45].mxu0  ;;  %v1619_v37 = vpop.f32.mrb[45].mxu1  ;;  %v1626_v28 = vadd.f32 %v1617_v16, %v1540_v25  ;;  %v3581_v16 = vld [vmem:[%s3883_s2] ss:$16 sps:$4 sm:$0xff]   ;;  %v3656_v25 = vld [vmem:[%s3883_s2 + $0x2c] ss:$16 sps:$4 sm:$0xff]  }
 0xc23   :  { %v1625_v21 = vadd.f32 %v1578_v18, %v1539_v13  ;;  %v1580_v22 = vpop.f32.mrb[46].mxu0  ;;  %v1621_v3 = vpop.f32.mrb[46].mxu1  ;;  %v1627_v29 = vadd.f32 %v1619_v37, %v1541_v27  ;;  %v3664_v27 = vld [vmem:[%s3883_s2 + $0x20] ss:$16 sps:$4 sm:$0xff]  }
 0xc24   :  { %v2238_v23 = vmul.f32 -1.442695, %v1624_v17  ;;  %v1581_v4 = vpop.f32.mrb[47].mxu0  ;;  %v1622_v24 = vpop.f32.mrb[47].mxu1  ;;  %v2240_v31 = vmul.f32 -1.442695, %v1626_v28 }
 0xc25   :  { %v2239_v14 = vmul.f32 -1.442695, %v1625_v21  ;;  %v3644_v24 = vld [vmem:[%s3883_s2 + $0x8] ss:$16 sps:$4 sm:$0xff]  }
 0xc26   :  { %2491 = vpow2.f32 %v2238_v23  ;;  %v3670_v28 = vld [vmem:[%s3883_s2 + $0x28] ss:$16 sps:$4 sm:$0xff]  }
 0xc27   :  { %2493 = vpow2.f32 %v2239_v14  ;;  %v3650_v14 = vld [vmem:[%s3883_s2 + $0x24] ss:$16 sps:$4 sm:$0xff]  }
 0xc28   :  { %2495 = vtanh.f32 %v1627_v29  ;;  %v3676_v29 = vld [vmem:[%s3883_s2 + $0x44] ss:$16 sps:$4 sm:$0xff]  }
 0xc29   :  { %2497 = vpow2.f32 %v2240_v31  ;;  %v3682_v31 = vld [vmem:[%s3883_s2 + $0x4c] ss:$16 sps:$4 sm:$0xff]  }
 0xc30   :  { %v2492_v20 = vpop.eup %2491 }
 0xc31   :  { %v1637_v32 = vadd.f32 1.0, %v2492_v20  ;;  %v2494_v55 = vpop.eup %2493  ;;  %v3688_v20 = vld [vmem:[%s3883_s2 + $0x40] ss:$16 sps:$4 sm:$0xff]  }
 0xc32   :  { %v1638_v63 = vadd.f32 1.0, %v2494_v55  ;;  %v2496_v30 = vpop.eup %2495  ;;  %v3700_v55 = vld [vmem:[%s3883_s2 + $0x64] ss:$16 sps:$4 sm:$0xff]  }
 0xc33   :  { %2499 = vrcp.f32 %v1637_v32  ;;  %v2498_v33 = vpop.eup %2497  ;;  %v3694_v32 = vld [vmem:[%s3883_s2 + $0x48] ss:$16 sps:$4 sm:$0xff]  }
 0xc34   :  { %2501 = vrcp.f32 %v1638_v63  ;;  %v1639_v39 = vadd.f32 1.0, %v2498_v33  ;;  %v3706_v63 = vld [vmem:[%s3883_s2 + $0x6c] ss:$16 sps:$4 sm:$0xff]   ;;  %v3718_v33 = vld [vmem:[%s3883_s2 + $0x68] ss:$16 sps:$4 sm:$0xff]  }
 0xc36   :  { %2503 = vrcp.f32 %v1639_v39  ;;  %v3742_v39 = vld [vmem:[%s3883_s2 + $0x88] ss:$16 sps:$4 sm:$0xff]  }
 0xc3d   :  { %v2500_v26 = vpop.eup %2499 }
 0xc3e   :  { %v1648_v35 = vmul.f32 %v2500_v26, %v2496_v30  ;;  %v2502_v0 = vpop.eup %2501  ;;  %v3712_v30 = vld [vmem:[%s3883_s2 + $0x60] ss:$16 sps:$4 sm:$0xff]   ;;  %v3724_v26 = vld [vmem:[%s3883_s2 + $0x84] ss:$16 sps:$4 sm:$0xff]  }
 0xc3f   :  { %v1647_v6 = vmul.f32 %v2502_v0, %v3525_v38  ;;  %v3736_v0 = vld [vmem:[%s3883_s2 + $0x80] ss:$16 sps:$4 sm:$0xff]  }
 0xc40   :  { %v2504_v62 = vpop.eup %2503 }
 0xc41   :  { %v3572_v12 = vadd.f32 %v1648_v35, %v1647_v6  ;;  %v3730_v35 = vld [vmem:[%s3883_s2 + $0x8c] ss:$16 sps:$4 sm:$0xff]   ;;  %v3748_v6 = vld [vmem:[%s3883_s2 + $0xa4] ss:$16 sps:$4 sm:$0xff]  }
 0xc43   :  { %2505 = vtanh.f32 %v3572_v12 }
 0xc4d   :  { %v2506_v34 = vpop.eup %2505 }
 0xc4e   :  { %v1651_v13 = vmul.f32 %v2506_v34, %v2504_v62  ;;  %v3760_v62 = vld [vmem:[%s3883_s2 + $0xa0] ss:$16 sps:$4 sm:$0xff]   ;;  %v3766_v34 = vld [vmem:[%s3883_s2 + $0xa8] ss:$16 sps:$4 sm:$0xff]  }
 0xc50   :  { %v1652_v15 = vpack.c.bf16 %v1651_v13, %v1651_v13  ;;  %v3772_v13 = vld [vmem:[%s3883_s2 + $0xc4] ss:$16 sps:$4 sm:$0xff]  }
 0xc52   :  { %2241 = vst [vmem:[%s3886_s3 + $0x2c] sm:$0xf] %v1652_v15  ;;  %1695 = vmatmul.mubr.bf16.vlgmr.msra.gmra.mrb[48].mxu0 %v1652_v15  ;;  %1736 = vmatmul.mubr.bf16.vlgmr.msra.gmra.mrb[48].mxu1 %v1652_v15  ;;  %v3778_v15 = vld [vmem:[%s3883_s2 + $0xcc] ss:$16 sps:$4 sm:$0xff]  }
 0xc53   :  { %1783 = vmatpush1.bf16.msra.mxu0 %v3581_v16  ;;  %1824 = vmatpush1.bf16.msra.mxu1 %v3155_v40  ;;  %v3618_v40 = vld [vmem:[%s3883_s2 + $0x4] ss:$16 sps:$4 sm:$0xff]  }
 0xc54   :  { %1784 = vmatprep.subr.bf16.mxu0 %v3161_v41  ;;  %1825 = vmatprep.subr.bf16.mxu1 %v3167_v42  ;;  %v3624_v41 = vld [vmem:[%s3883_s2 + $0xc] ss:$16 sps:$4 sm:$0xff]   ;;  %v2242_v42 = vld [vmem:[%s3885_s0 + $0xc0] sm:$0xff] }
 0xc55   :  { %1814 = vmatprep.mubr.bf16.mxu0 %v2635_v1  ;;  %1855 = vmatprep.mubr.bf16.mxu1 %v2635_v1 }
 0xc57   :  { %1785 = vmatpush1.bf16.msra.mxu0 %v3175_v44  ;;  %1826 = vmatpush1.bf16.msra.mxu1 %v3181_v45  ;;  %v1658_v44 = vunpack.c.l.bf16 %v2242_v42  ;;  %v1659_v45 = vunpack.c.h.bf16 %v2242_v42  ;;  %v3784_v42 = vld [vmem:[%s3883_s2 + $0xc0] ss:$16 sps:$4 sm:$0xff]  }
 0xc58   :  { %1786 = vmatprep.subr.bf16.mxu0 %v3187_v46  ;;  %1827 = vmatprep.subr.bf16.mxu1 %v3193_v47 }
 0xc5b   :  { %1787 = vmatpush1.bf16.msra.mxu0 %v3199_v36  ;;  %1828 = vmatpush1.bf16.msra.mxu1 %v3205_v48 }
 0xc5c   :  { %1788 = vmatprep.subr.bf16.mxu0 %v3211_v50  ;;  %1829 = vmatprep.subr.bf16.mxu1 %v3217_v51  ;;  %v2243_v51 = vld [vmem:[%s3885_s0 + $0xc8] sm:$0xff] }
 0xc5f   :  { %1789 = vmatpush1.bf16.msra.mxu0 %v3223_v52  ;;  %1830 = vmatpush1.bf16.msra.mxu1 %v3229_v53 }
 0xc60   :  { %1790 = vmatprep.subr.bf16.mxu0 %v3235_v43  ;;  %1831 = vmatprep.subr.bf16.mxu1 %v3241_v54 }
 0xc63   :  { %1791 = vmatpush1.bf16.msra.mxu0 %v3247_v56  ;;  %1832 = vmatpush1.bf16.msra.mxu1 %v3253_v57 }
 0xc64   :  { %1792 = vmatprep.subr.bf16.mxu0 %v3259_v58  ;;  %1833 = vmatprep.subr.bf16.mxu1 %v3265_v59  ;;  %v1660_v59 = vunpack.c.l.bf16 %v2243_v51 }
 0xc67   :  { %1793 = vmatpush1.bf16.msra.mxu0 %v3271_v2  ;;  %1834 = vmatpush1.bf16.msra.mxu1 %v3277_v49  ;;  %v1661_v2 = vunpack.c.h.bf16 %v2243_v51 }
 0xc68   :  { %1794 = vmatprep.subr.bf16.mxu0 %v3283_v60  ;;  %1835 = vmatprep.subr.bf16.mxu1 %v3289_v61 }
 0xc6b   :  { %1795 = vmatpush1.bf16.msra.mxu0 %v3295_v5  ;;  %1836 = vmatpush1.bf16.msra.mxu1 %v3301_v7 }
 0xc6c   :  { %1796 = vmatprep.subr.bf16.mxu0 %v3307_v8  ;;  %1837 = vmatprep.subr.bf16.mxu1 %v3313_v9 }
 0xc6f   :  { %1797 = vmatpush1.bf16.msra.mxu0 %v3319_v10  ;;  %1838 = vmatpush1.bf16.msra.mxu1 %v3325_v11 }
 0xc70   :  { %1902 = vmatprep.subr.bf16.mxu0 %v3618_v40  ;;  %1943 = vmatprep.subr.bf16.mxu1 %v3624_v41 }
 0xd25   :  { %v1696_v46 = vpop.f32.mrb[48].mxu0  ;;  %v1737_v47 = vpop.f32.mrb[48].mxu1 }
 0xd26   :  { %v1744_v36 = vadd.f32 %v1696_v46, %v1658_v44  ;;  %v1698_v48 = vpop.f32.mrb[49].mxu0  ;;  %v1739_v50 = vpop.f32.mrb[49].mxu1  ;;  %v1746_v49 = vadd.f32 %v1737_v47, %v1660_v59  ;;  %v3790_v44 = vld [vmem:[%s3883_s2 + $0xc8] ss:$16 sps:$4 sm:$0xff]   ;;  %v3802_v46 = vld [vmem:[%s3883_s2 + $0xec] ss:$16 sps:$4 sm:$0xff]  }
 0xd27   :  { %v1745_v52 = vadd.f32 %v1698_v48, %v1659_v45  ;;  %v1700_v53 = vpop.f32.mrb[50].mxu0  ;;  %v1741_v43 = vpop.f32.mrb[50].mxu1  ;;  %v1747_v60 = vadd.f32 %v1739_v50, %v1661_v2  ;;  %v3796_v45 = vld [vmem:[%s3883_s2 + $0xe4] ss:$16 sps:$4 sm:$0xff]   ;;  %v3808_v47 = vld [vmem:[%s3883_s2 + $0xe0] ss:$16 sps:$4 sm:$0xff]  }
 0xd28   :  { %v2244_v54 = vmul.f32 -1.442695, %v1744_v36  ;;  %v1701_v56 = vpop.f32.mrb[51].mxu0  ;;  %v1742_v57 = vpop.f32.mrb[51].mxu1  ;;  %v2246_v61 = vmul.f32 -1.442695, %v1746_v49 }
 0xd29   :  { %v2245_v58 = vmul.f32 -1.442695, %v1745_v52  ;;  %v3814_v36 = vld [vmem:[%s3883_s2 + $0xe8] ss:$16 sps:$4 sm:$0xff]   ;;  %v2248_v48 = vld [vmem:[%s3885_s0 + $0xd0] sm:$0xff] }
 0xd2a   :  { %2507 = vpow2.f32 %v2244_v54  ;;  %v1778_v50 = vunpack.c.l.bf16 %v2248_v48  ;;  %v1779_v51 = vunpack.c.h.bf16 %v2248_v48  ;;  %v2249_v57 = vld [vmem:[%s3885_s0 + $0xd8] sm:$0xff] }
 0xd2b   :  { %2509 = vpow2.f32 %v2245_v58 }
 0xd2c   :  { %2511 = vtanh.f32 %v1747_v60 }
 0xd2d   :  { %2513 = vpow2.f32 %v2246_v61  ;;  %v1780_v61 = vunpack.c.l.bf16 %v2249_v57 }
 0xd34   :  { %v2508_v5 = vpop.eup %2507 }
 0xd35   :  { %v1757_v7 = vadd.f32 1.0, %v2508_v5  ;;  %v2510_v8 = vpop.eup %2509  ;;  %v1781_v5 = vunpack.c.h.bf16 %v2249_v57 }
 0xd36   :  { %v1758_v9 = vadd.f32 1.0, %v2510_v8  ;;  %v2512_v10 = vpop.eup %2511 }
 0xd37   :  { %2515 = vrcp.f32 %v1757_v7  ;;  %v2514_v11 = vpop.eup %2513 }
 0xd38   :  { %2517 = vrcp.f32 %v1758_v9  ;;  %v1759_v37 = vadd.f32 1.0, %v2514_v11 }
 0xd3a   :  { %2519 = vrcp.f32 %v1759_v37 }
 0xd41   :  { %v2516_v38 = vpop.eup %2515 }
 0xd42   :  { %v1768_v17 = vmul.f32 %v2516_v38, %v2512_v10  ;;  %v2518_v18 = vpop.eup %2517 }
 0xd43   :  { %v1767_v19 = vmul.f32 %v2518_v18, %v3572_v12  ;;  %v3754_v12 = vld [vmem:[%s3883_s2 + $0xac] ss:$16 sps:$4 sm:$0xff]  }
 0xd44   :  { %v2520_v22 = vpop.eup %2519 }
 0xd45   :  { %v3634_v21 = vadd.f32 %v1768_v17, %v1767_v19 }
 0xd47   :  { %2521 = vtanh.f32 %v3634_v21 }
 0xd51   :  { %v2522_v3 = vpop.eup %2521 }
 0xd52   :  { %v1771_v23 = vmul.f32 %v2522_v3, %v2520_v22 }
 0xd54   :  { %v1772_v4 = vpack.c.bf16 %v1771_v23, %v1771_v23 }
 0xd56   :  { %2247 = vst [vmem:[%s3886_s3 + $0x30] sm:$0xf] %v1772_v4  ;;  %1815 = vmatmul.mubr.bf16.vlgmr.msra.gmra.mrb[52].mxu0 %v1772_v4  ;;  %1856 = vmatmul.mubr.bf16.vlgmr.msra.gmra.mrb[52].mxu1 %v1772_v4 }
 0xd57   :  { %1903 = vmatpush1.bf16.msra.mxu0 %v3581_v16  ;;  %1944 = vmatpush1.bf16.msra.mxu1 %v3644_v24 }
 0xd58   :  { %1904 = vmatprep.subr.bf16.mxu0 %v3650_v14  ;;  %1945 = vmatprep.subr.bf16.mxu1 %v3656_v25 }
 0xd59   :  { %1934 = vmatprep.mubr.bf16.mxu0 %v2635_v1  ;;  %1975 = vmatprep.mubr.bf16.mxu1 %v2635_v1 }
 0xd5b   :  { %1905 = vmatpush1.bf16.msra.mxu0 %v3664_v27  ;;  %1946 = vmatpush1.bf16.msra.mxu1 %v3670_v28 }
 0xd5c   :  { %1906 = vmatprep.subr.bf16.mxu0 %v3676_v29  ;;  %1947 = vmatprep.subr.bf16.mxu1 %v3682_v31 }
 0xd5f   :  { %1907 = vmatpush1.bf16.msra.mxu0 %v3688_v20  ;;  %1948 = vmatpush1.bf16.msra.mxu1 %v3694_v32 }
 0xd60   :  { %1908 = vmatprep.subr.bf16.mxu0 %v3700_v55  ;;  %1949 = vmatprep.subr.bf16.mxu1 %v3706_v63 }
 0xd63   :  { %1909 = vmatpush1.bf16.msra.mxu0 %v3712_v30  ;;  %1950 = vmatpush1.bf16.msra.mxu1 %v3718_v33 }
 0xd64   :  { %1910 = vmatprep.subr.bf16.mxu0 %v3724_v26  ;;  %1951 = vmatprep.subr.bf16.mxu1 %v3730_v35 }
 0xd67   :  { %1911 = vmatpush1.bf16.msra.mxu0 %v3736_v0  ;;  %1952 = vmatpush1.bf16.msra.mxu1 %v3742_v39 }
 0xd68   :  { %1912 = vmatprep.subr.bf16.mxu0 %v3748_v6  ;;  %1953 = vmatprep.subr.bf16.mxu1 %v3754_v12 }
 0xd6b   :  { %1913 = vmatpush1.bf16.msra.mxu0 %v3760_v62  ;;  %1954 = vmatpush1.bf16.msra.mxu1 %v3766_v34 }
 0xd6c   :  { %1914 = vmatprep.subr.bf16.mxu0 %v3772_v13  ;;  %1955 = vmatprep.subr.bf16.mxu1 %v3778_v15 }
 0xd6f   :  { %1915 = vmatpush1.bf16.msra.mxu0 %v3784_v42  ;;  %1956 = vmatpush1.bf16.msra.mxu1 %v3790_v44 }
 0xd70   :  { %1916 = vmatprep.subr.bf16.mxu0 %v3796_v45  ;;  %1957 = vmatprep.subr.bf16.mxu1 %v3802_v46 }
 0xd73   :  { %1917 = vmatpush1.bf16.msra.mxu0 %v3808_v47  ;;  %1958 = vmatpush1.bf16.msra.mxu1 %v3814_v36 }
 0xd74   :  { %2022 = vmatprep.subr.bf16.mxu0 %v3618_v40  ;;  %2063 = vmatprep.subr.bf16.mxu1 %v3624_v41 }
 0xe29   :  { %v1816_v52 = vpop.f32.mrb[52].mxu0  ;;  %v1857_v53 = vpop.f32.mrb[52].mxu1 }
 0xe2a   :  { %v1864_v43 = vadd.f32 %v1816_v52, %v1778_v50  ;;  %v1818_v54 = vpop.f32.mrb[53].mxu0  ;;  %v1859_v56 = vpop.f32.mrb[53].mxu1  ;;  %v1866_v7 = vadd.f32 %v1857_v53, %v1780_v61 }
 0xe2b   :  { %v1865_v58 = vadd.f32 %v1818_v54, %v1779_v51  ;;  %v1820_v59 = vpop.f32.mrb[54].mxu0  ;;  %v1861_v40 = vpop.f32.mrb[54].mxu1  ;;  %v1867_v8 = vadd.f32 %v1859_v56, %v1781_v5 }
 0xe2c   :  { %v2250_v2 = vmul.f32 -1.442695, %v1864_v43  ;;  %v1821_v41 = vpop.f32.mrb[55].mxu0  ;;  %v1862_v49 = vpop.f32.mrb[55].mxu1  ;;  %v2252_v9 = vmul.f32 -1.442695, %v1866_v7 }
 0xe2d   :  { %v2251_v60 = vmul.f32 -1.442695, %v1865_v58  ;;  %v2260_v59 = vld [vmem:[%s3885_s0 + $0xf0] sm:$0xff]  ;;  %v2261_v7 = vld [vmem:[%s3885_s0 + $0xf8] sm:$0xff] }
 0xe2e   :  { %2523 = vpow2.f32 %v2250_v2  ;;  %v2018_v40 = vunpack.c.l.bf16 %v2260_v59  ;;  %v2019_v2 = vunpack.c.h.bf16 %v2260_v59 }
 0xe2f   :  { %2525 = vpow2.f32 %v2251_v60 }
 0xe30   :  { %2527 = vtanh.f32 %v1867_v8 }
 0xe31   :  { %2529 = vpow2.f32 %v2252_v9 }
 0xe38   :  { %v2524_v10 = vpop.eup %2523 }
 0xe39   :  { %v1877_v11 = vadd.f32 1.0, %v2524_v10  ;;  %v2526_v38 = vpop.eup %2525 }
 0xe3a   :  { %v1878_v17 = vadd.f32 1.0, %v2526_v38  ;;  %v2528_v18 = vpop.eup %2527 }
 0xe3b   :  { %2531 = vrcp.f32 %v1877_v11  ;;  %v2530_v37 = vpop.eup %2529 }
 0xe3c   :  { %2533 = vrcp.f32 %v1878_v17  ;;  %v1879_v23 = vadd.f32 1.0, %v2530_v37  ;;  %v2020_v37 = vunpack.c.l.bf16 %v2261_v7 }
 0xe3e   :  { %2535 = vrcp.f32 %v1879_v23 }
 0xe45   :  { %v2532_v19 = vpop.eup %2531 }
 0xe46   :  { %v1888_v22 = vmul.f32 %v2532_v19, %v2528_v18  ;;  %v2534_v3 = vpop.eup %2533  ;;  %v2021_v19 = vunpack.c.h.bf16 %v2261_v7 }
 0xe47   :  { %v1887_v4 = vmul.f32 %v2534_v3, %v3634_v21 }
 0xe48   :  { %v2536_v50 = vpop.eup %2535 }
 0xe49   :  { %v3826_v48 = vadd.f32 %v1888_v22, %v1887_v4 }
 0xe4b   :  { %2537 = vtanh.f32 %v3826_v48 }
 0xe55   :  { %v2538_v51 = vpop.eup %2537 }
 0xe56   :  { %v1891_v52 = vmul.f32 %v2538_v51, %v2536_v50 }
 0xe58   :  { %v1892_v53 = vpack.c.bf16 %v1891_v52, %v1891_v52 }
 0xe5a   :  { %2253 = vst [vmem:[%s3886_s3 + $0x34] sm:$0xf] %v1892_v53  ;;  %1935 = vmatmul.mubr.bf16.vlgmr.msra.gmra.mrb[56].mxu0 %v1892_v53  ;;  %1976 = vmatmul.mubr.bf16.vlgmr.msra.gmra.mrb[56].mxu1 %v1892_v53 }
 0xe5b   :  { %2023 = vmatpush1.bf16.msra.mxu0 %v3581_v16  ;;  %2064 = vmatpush1.bf16.msra.mxu1 %v3644_v24 }
 0xe5c   :  { %2024 = vmatprep.subr.bf16.mxu0 %v3650_v14  ;;  %2065 = vmatprep.subr.bf16.mxu1 %v3656_v25 }
 0xe5d   :  { %2054 = vmatprep.mubr.bf16.mxu0 %v2635_v1  ;;  %2095 = vmatprep.mubr.bf16.mxu1 %v2635_v1  ;;  %v2254_v1 = vld [vmem:[%s3885_s0 + $0xe0] sm:$0xff] }
 0xe5e   :  { %v1898_v16 = vunpack.c.l.bf16 %v2254_v1  ;;  %v1899_v21 = vunpack.c.h.bf16 %v2254_v1 }
 0xe5f   :  { %2025 = vmatpush1.bf16.msra.mxu0 %v3664_v27  ;;  %2066 = vmatpush1.bf16.msra.mxu1 %v3670_v28 }
 0xe60   :  { %2026 = vmatprep.subr.bf16.mxu0 %v3676_v29  ;;  %2067 = vmatprep.subr.bf16.mxu1 %v3682_v31  ;;  %v2255_v29 = vld [vmem:[%s3885_s0 + $0xe8] sm:$0xff] }
 0xe63   :  { %2027 = vmatpush1.bf16.msra.mxu0 %v3688_v20  ;;  %2068 = vmatpush1.bf16.msra.mxu1 %v3694_v32 }
 0xe64   :  { %2028 = vmatprep.subr.bf16.mxu0 %v3700_v55  ;;  %2069 = vmatprep.subr.bf16.mxu1 %v3706_v63 }
 0xe67   :  { %2029 = vmatpush1.bf16.msra.mxu0 %v3712_v30  ;;  %2070 = vmatpush1.bf16.msra.mxu1 %v3718_v33 }
 0xe68   :  { %2030 = vmatprep.subr.bf16.mxu0 %v3724_v26  ;;  %2071 = vmatprep.subr.bf16.mxu1 %v3730_v35  ;;  %v1900_v26 = vunpack.c.l.bf16 %v2255_v29  ;;  %v1901_v35 = vunpack.c.h.bf16 %v2255_v29 }
 0xe6b   :  { %2031 = vmatpush1.bf16.msra.mxu0 %v3736_v0  ;;  %2072 = vmatpush1.bf16.msra.mxu1 %v3742_v39 }
 0xe6c   :  { %2032 = vmatprep.subr.bf16.mxu0 %v3748_v6  ;;  %2073 = vmatprep.subr.bf16.mxu1 %v3754_v12 }
 0xe6f   :  { %2033 = vmatpush1.bf16.msra.mxu0 %v3760_v62  ;;  %2074 = vmatpush1.bf16.msra.mxu1 %v3766_v34 }
 0xe70   :  { %2034 = vmatprep.subr.bf16.mxu0 %v3772_v13  ;;  %2075 = vmatprep.subr.bf16.mxu1 %v3778_v15 }
 0xe73   :  { %2035 = vmatpush1.bf16.msra.mxu0 %v3784_v42  ;;  %2076 = vmatpush1.bf16.msra.mxu1 %v3790_v44 }
 0xe74   :  { %2036 = vmatprep.subr.bf16.mxu0 %v3796_v45  ;;  %2077 = vmatprep.subr.bf16.mxu1 %v3802_v46 }
 0xe77   :  { %2037 = vmatpush1.bf16.msra.mxu0 %v3808_v47  ;;  %2078 = vmatpush1.bf16.msra.mxu1 %v3814_v36 }
 0xf2d   :  { %v1936_v24 = vpop.f32.mrb[56].mxu0  ;;  %v1977_v14 = vpop.f32.mrb[56].mxu1 }
 0xf2e   :  { %v1984_v25 = vadd.f32 %v1936_v24, %v1898_v16  ;;  %v1938_v27 = vpop.f32.mrb[57].mxu0  ;;  %v1979_v28 = vpop.f32.mrb[57].mxu1  ;;  %v1986_v0 = vadd.f32 %v1977_v14, %v1900_v26 }
 0xf2f   :  { %v1985_v31 = vadd.f32 %v1938_v27, %v1899_v21  ;;  %v1940_v20 = vpop.f32.mrb[58].mxu0  ;;  %v1981_v32 = vpop.f32.mrb[58].mxu1  ;;  %v1987_v39 = vadd.f32 %v1979_v28, %v1901_v35 }
 0xf30   :  { %v2256_v55 = vmul.f32 -1.442695, %v1984_v25  ;;  %v1941_v63 = vpop.f32.mrb[59].mxu0  ;;  %v1982_v30 = vpop.f32.mrb[59].mxu1  ;;  %v2258_v6 = vmul.f32 -1.442695, %v1986_v0 }
 0xf31   :  { %v2257_v33 = vmul.f32 -1.442695, %v1985_v31 }
 0xf32   :  { %2539 = vpow2.f32 %v2256_v55 }
 0xf33   :  { %2541 = vpow2.f32 %v2257_v33 }
 0xf34   :  { %2543 = vtanh.f32 %v1987_v39 }
 0xf35   :  { %2545 = vpow2.f32 %v2258_v6 }
 0xf3c   :  { %v2540_v12 = vpop.eup %2539 }
 0xf3d   :  { %v1997_v62 = vadd.f32 1.0, %v2540_v12  ;;  %v2542_v34 = vpop.eup %2541 }
 0xf3e   :  { %v1998_v13 = vadd.f32 1.0, %v2542_v34  ;;  %v2544_v15 = vpop.eup %2543 }
 0xf3f   :  { %2547 = vrcp.f32 %v1997_v62  ;;  %v2546_v42 = vpop.eup %2545 }
 0xf40   :  { %2549 = vrcp.f32 %v1998_v13  ;;  %v1999_v47 = vadd.f32 1.0, %v2546_v42 }
 0xf42   :  { %2551 = vrcp.f32 %v1999_v47 }
 0xf49   :  { %v2548_v44 = vpop.eup %2547 }
 0xf4a   :  { %v2008_v45 = vmul.f32 %v2548_v44, %v2544_v15  ;;  %v2550_v46 = vpop.eup %2549 }
 0xf4b   :  { %v2007_v36 = vmul.f32 %v2550_v46, %v3826_v48 }
 0xf4c   :  { %v2552_v54 = vpop.eup %2551 }
 0xf4d   :  { %v2009_v43 = vadd.f32 %v2008_v45, %v2007_v36 }
 0xf4f   :  { %2553 = vtanh.f32 %v2009_v43 }
 0xf59   :  { %v2554_v56 = vpop.eup %2553 }
 0xf5a   :  { %v2011_v57 = vmul.f32 %v2554_v56, %v2552_v54 }
 0xf5c   :  { %v2012_v58 = vpack.c.bf16 %v2011_v57, %v2011_v57 }
 0xf5e   :  { %2259 = vst [vmem:[%s3886_s3 + $0x38] sm:$0xf] %v2012_v58  ;;  %2055 = vmatmul.mubr.bf16.vlgmr.msra.gmra.mrb[60].mxu0 %v2012_v58  ;;  %2096 = vmatmul.mubr.bf16.vlgmr.msra.gmra.mrb[60].mxu1 %v2012_v58 }
0x1031   :  { %v2056_v41 = vpop.f32.mrb[60].mxu0  ;;  %v2097_v49 = vpop.f32.mrb[60].mxu1 }
0x1032   :  { %v2104_v60 = vadd.f32 %v2056_v41, %v2018_v40  ;;  %v2058_v61 = vpop.f32.mrb[61].mxu0  ;;  %v2099_v5 = vpop.f32.mrb[61].mxu1  ;;  %v2106_v22 = vadd.f32 %v2097_v49, %v2020_v37 }
0x1033   :  { %v2105_v8 = vadd.f32 %v2058_v61, %v2019_v2  ;;  %v2060_v9 = vpop.f32.mrb[62].mxu0  ;;  %v2101_v10 = vpop.f32.mrb[62].mxu1  ;;  %v2107_v3 = vadd.f32 %v2099_v5, %v2021_v19 }
0x1034   :  { %v2262_v11 = vmul.f32 -1.442695, %v2104_v60  ;;  %v2061_v38 = vpop.f32.mrb[63].mxu0  ;;  %v2102_v17 = vpop.f32.mrb[63].mxu1  ;;  %v2264_v23 = vmul.f32 -1.442695, %v2106_v22 }
0x1035   :  { %v2263_v18 = vmul.f32 -1.442695, %v2105_v8 }
0x1036   :  { %2555 = vpow2.f32 %v2262_v11 }
0x1037   :  { %2557 = vpow2.f32 %v2263_v18 }
0x1038   :  { %2559 = vtanh.f32 %v2107_v3 }
0x1039   :  { %2561 = vpow2.f32 %v2264_v23 }
0x1040   :  { %v2556_v4 = vpop.eup %2555 }
0x1041   :  { %v2117_v48 = vadd.f32 1.0, %v2556_v4  ;;  %v2558_v50 = vpop.eup %2557 }
0x1042   :  { %v2118_v51 = vadd.f32 1.0, %v2558_v50  ;;  %v2560_v52 = vpop.eup %2559 }
0x1043   :  { %2563 = vrcp.f32 %v2117_v48  ;;  %v2562_v53 = vpop.eup %2561 }
0x1044   :  { %2565 = vrcp.f32 %v2118_v51  ;;  %v2119_v24 = vadd.f32 1.0, %v2562_v53 }
0x1046   :  { %2567 = vrcp.f32 %v2119_v24 }
0x104d   :  { %v2564_v1 = vpop.eup %2563 }
0x104e   :  { %v2128_v16 = vmul.f32 %v2564_v1, %v2560_v52  ;;  %v2566_v21 = vpop.eup %2565 }
0x104f   :  { %v2127_v14 = vmul.f32 %v2566_v21, %v2009_v43 }
0x1050   :  { %v2568_v27 = vpop.eup %2567 }
0x1051   :  { %v2129_v25 = vadd.f32 %v2128_v16, %v2127_v14 }
0x1053   :  { %2569 = vtanh.f32 %v2129_v25 }
0x105d   :  { %v2570_v28 = vpop.eup %2569 }
0x105e   :  { %v2131_v29 = vmul.f32 %v2570_v28, %v2568_v27 }
0x1060   :  { %v2132_v31 = vpack.c.bf16 %v2131_v29, %v2131_v29 }
0x1062   :  { %2265 = vst [vmem:[%s3886_s3 + $0x3c] sm:$0xf] %v2132_v31 }

</bundles_post_ra>
